<compile_context>
chip_gen: v7x
topology: tpu7x:2x2x1
jax: 0.10.0
libtpu: 0.0.40
codegen_flags: <defaults>
</compile_context>

<pallas_src>
import math
import jax
import jax.numpy as jnp
from jax.experimental import pallas as pl
from jax.experimental.pallas import tpu as pltpu

# ---- static config (small shapes consistent with the module) ----
B, C_IN, H, W = 2, 4, 8, 8
S = H * W              # sequence length per image = 64
T = B * S              # stacked tokens = 128
E = 32                 # embed_dim
NH = 4                 # num_heads
HD = E // NH           # head_dim = 8
FF = 64                # dim_feedforward
L = 2                  # num_layers
EPS = 1e-5
SCALE = 1.0 / math.sqrt(HD)
C_PAD = 8              # C_IN channels + 1 ones column (folded conv bias), padded to 8

# Approximate EUP reciprocal in the softmax denominator (~1e-3 rel error vs exact divide).
APPROX_SOFTMAX_RECIP = True

# rows of the per-layer small-parameter slab (each row is 128 lanes, f32)
R_QKV_B, R_OUT_B, R_LN1_W, R_LN1_B, R_LIN1_B, R_LIN2_B, R_LN2_W, R_LN2_B = range(8)


def _layer_norm(v, w, b):
    mu = jnp.mean(v, axis=-1, keepdims=True)
    var = jnp.mean((v - mu) ** 2, axis=-1, keepdims=True)
    return (v - mu) * jax.lax.rsqrt(var + EPS) * w + b


def bridge_kernel(tok_ref, conv_w_ref, wqkv_ref, wo_ref, w1_ref, w2_ref,
                  slab_ref, y_ref):
    # ---- 1x1 conv == per-token linear; bias folded via the ones column of tok ----
    h = jnp.dot(tok_ref[...].astype(jnp.bfloat16), conv_w_ref[...],
                preferred_element_type=jnp.float32)                       # (T, E) f32

    for l in range(L):                                                    # static unroll (L=2)
        slab = slab_ref[l]                                                # (8, 128) f32
        h16 = h.astype(jnp.bfloat16)

        # ---- fused QKV projection: one (T,E)x(E,3E) matmul ----
        qkv = jnp.dot(h16, wqkv_ref[l], preferred_element_type=jnp.float32)
        qkv = qkv + slab[R_QKV_B:R_QKV_B + 1, :3 * E]                     # (T, 3E) f32
        qkvb = qkv.astype(jnp.bfloat16).reshape(B, S, 3 * E)              # batch split (sublanes)

        # ---- attention: batched over B via einsum; head outputs concatenated on lanes ----
        ctx_heads = []
        for hh in range(NH):                                              # static unroll (NH=4)
            qh = qkvb[:, :, hh * HD:(hh + 1) * HD]                        # (B, S, HD) bf16
            kh = qkvb[:, :, E + hh * HD:E + (hh + 1) * HD]
            vh = qkvb[:, :, 2 * E + hh * HD:2 * E + (hh + 1) * HD]
            s = jnp.einsum('bqd,bkd->bqk', qh, kh,
                           preferred_element_type=jnp.float32) * SCALE    # (B, S, S) f32
            s = s - jnp.max(s, axis=-1, keepdims=True)
            p = jnp.exp(s)
            den = jnp.sum(p, axis=-1, keepdims=True)
            if APPROX_SOFTMAX_RECIP:
                p = p * pl.reciprocal(den, approx=True)
            else:
                p = p / den
            ctx_heads.append(
                jnp.einsum('bqk,bkd->bqd', p.astype(jnp.bfloat16), vh,
                           preferred_element_type=jnp.float32))           # (B, S, HD) f32
        ctx = jnp.concatenate(ctx_heads, axis=-1).reshape(T, E)           # (T, E) f32

        # ---- single out-projection over all heads ----
        attn = (jnp.dot(ctx.astype(jnp.bfloat16), wo_ref[l],
                        preferred_element_type=jnp.float32)
                + slab[R_OUT_B:R_OUT_B + 1, :E])
        h = _layer_norm(h + attn,
                        slab[R_LN1_W:R_LN1_W + 1, :E], slab[R_LN1_B:R_LN1_B + 1, :E])

        # ---- feed-forward (relu) ----
        ff = jnp.dot(h.astype(jnp.bfloat16), w1_ref[l],
                     preferred_element_type=jnp.float32) + slab[R_LIN1_B:R_LIN1_B + 1, :FF]
        ff = jnp.maximum(ff, 0.0)
        ff = jnp.dot(ff.astype(jnp.bfloat16), w2_ref[l],
                     preferred_element_type=jnp.float32) + slab[R_LIN2_B:R_LIN2_B + 1, :E]
        h = _layer_norm(h + ff,
                        slab[R_LN2_W:R_LN2_W + 1, :E], slab[R_LN2_B:R_LN2_B + 1, :E])

    # ---- InstanceNorm2d (no affine): stats per (batch, channel) over S, in (B,S,E) layout ----
    hb = h.reshape(B, S, E)
    mu = jnp.mean(hb, axis=1, keepdims=True)
    var = jnp.mean((hb - mu) ** 2, axis=1, keepdims=True)
    y_ref[...] = (hb - mu) * jax.lax.rsqrt(var + EPS)
    # TODO(synk): dropout layers are identity at inference and are intentionally omitted.


# ---------------- parameter construction (PyTorch layouts) and packing ----------------

def init_torch_like_params(key):
    ks = iter(jax.random.split(key, 4 + 8 * L))

    def rnd(shape, scale=0.05):
        return jax.random.normal(next(ks), shape, jnp.float32) * scale

    params = {"conv_w": rnd((E, C_IN)),          # Conv2d(k=1) weight, squeezed
              "conv_b": rnd((E,), 0.02),
              "layers": []}
    for _ in range(L):
        params["layers"].append({
            "in_proj_w": rnd((3 * E, E)),        # [q; k; v] rows, PyTorch ordering
            "in_proj_b": rnd((3 * E,), 0.02),
            "out_w": rnd((E, E)),
            "out_b": rnd((E,), 0.02),
            "lin1_w": rnd((FF, E)),
            "lin1_b": rnd((FF,), 0.02),
            "lin2_w": rnd((E, FF)),
            "lin2_b": rnd((E,), 0.02),
            "ln1_w": jnp.ones((E,), jnp.float32),
            "ln1_b": jnp.zeros((E,), jnp.float32),
            "ln2_w": jnp.ones((E,), jnp.float32),
            "ln2_b": jnp.zeros((E,), jnp.float32),
        })
    return params


def pack_params(p):
    # Augmented conv weight: rows 0..C_IN-1 = conv_w.T, row C_IN = conv bias (multiplied by
    # the ones column of tok), remaining rows zero. Pre-cast to bf16.
    conv_w_aug = jnp.zeros((C_PAD, E), jnp.float32)
    conv_w_aug = conv_w_aug.at[:C_IN].set(p["conv_w"].T)
    conv_w_aug = conv_w_aug.at[C_IN].set(p["conv_b"])
    conv_w_aug = conv_w_aug.astype(jnp.bfloat16)

    wqkv, wo, w1, w2, slabs = [], [], [], [], []
    for lp in p["layers"]:
        wqkv.append(lp["in_proj_w"].T)           # (E, 3E): columns [q | k | v], heads inside
        wo.append(lp["out_w"].T)                 # (E, E)
        w1.append(lp["lin1_w"].T)                # (E, FF)
        w2.append(lp["lin2_w"].T)                # (FF, E)

        rows = jnp.zeros((8, 128), jnp.float32)
        rows = rows.at[R_QKV_B, :3 * E].set(lp["in_proj_b"])
        rows = rows.at[R_OUT_B, :E].set(lp["out_b"])
        rows = rows.at[R_LN1_W, :E].set(lp["ln1_w"])
        rows = rows.at[R_LN1_B, :E].set(lp["ln1_b"])
        rows = rows.at[R_LIN1_B, :FF].set(lp["lin1_b"])
        rows = rows.at[R_LIN2_B, :E].set(lp["lin2_b"])
        rows = rows.at[R_LN2_W, :E].set(lp["ln2_w"])
        rows = rows.at[R_LN2_B, :E].set(lp["ln2_b"])
        slabs.append(rows)

    bf16 = lambda arrs: jnp.stack(arrs).astype(jnp.bfloat16)
    return (conv_w_aug, bf16(wqkv), bf16(wo), bf16(w1), bf16(w2), jnp.stack(slabs))


@jax.jit
def transformer_bridge(x, conv_w, wqkv, wo, w1, w2, slab):
    Bx = x.shape[0]
    Tx = Bx * S
    # NCHW -> stacked tokens (T, C_PAD); column C_IN is 1.0 (folds the conv bias into the
    # matmul), remaining columns zero-padded. This tiny transpose fuses for free in XLA.
    tok = x.reshape(Bx, C_IN, S).transpose(0, 2, 1).reshape(Tx, C_IN)
    tok = jnp.concatenate(
        [tok, jnp.ones((Tx, 1), x.dtype), jnp.zeros((Tx, C_PAD - C_IN - 1), x.dtype)],
        axis=-1)

    vmem = pltpu.MemorySpace.VMEM
    y = pl.pallas_call(
        bridge_kernel,
        out_shape=jax.ShapeDtypeStruct((Bx, S, E), jnp.float32),
        in_specs=[pl.BlockSpec(memory_space=vmem)] * 7,
        out_specs=pl.BlockSpec(memory_space=vmem),
    )(tok, conv_w, wqkv, wo, w1, w2, slab)
    # (B, S, E) -> (B, E, H, W): 16 KB transpose left to XLA (cheaper than in-kernel XLU).
    return y.transpose(0, 2, 1).reshape(Bx, E, H, W)


if __name__ == "__main__":
    key = jax.random.PRNGKey(0)
    kx, kp = jax.random.split(key)
    x = jax.random.normal(kx, (B, C_IN, H, W), jnp.float32)
    operands = pack_params(init_torch_like_params(kp))

    y = transformer_bridge(x, *operands)
    y = jax.block_until_ready(y)

    assert y.shape == (B, E, H, W), y.shape
    assert bool(jnp.all(jnp.isfinite(y)))
    print("KERNEL_OK")
</pallas_src>

<mosaic_0001>
module attributes {stable_mosaic.version = 11 : i64} {
  func.func @bridge_kernel(%arg0: memref<128x8xf32, #tpu.memory_space<vmem>>, %arg1: memref<8x32xbf16, #tpu.memory_space<vmem>>, %arg2: memref<2x32x96xbf16, #tpu.memory_space<vmem>>, %arg3: memref<2x32x32xbf16, #tpu.memory_space<vmem>>, %arg4: memref<2x32x64xbf16, #tpu.memory_space<vmem>>, %arg5: memref<2x64x32xbf16, #tpu.memory_space<vmem>>, %arg6: memref<2x8x128xf32, #tpu.memory_space<vmem>>, %arg7: memref<2x64x32xf32, #tpu.memory_space<vmem>>) attributes {dimension_semantics = [], scalar_prefetch = 0 : i64, scratch_operands = 0 : i64, tpu.core_type = #tpu.core_type<tc>} {
    %c0 = arith.constant 0 : index
    %c0_0 = arith.constant 0 : index
    %0 = vector.load %arg0[%c0, %c0_0] : memref<128x8xf32, #tpu.memory_space<vmem>>, vector<128x8xf32>
    %1 = arith.truncf %0 : vector<128x8xf32> to vector<128x8xbf16>
    %c0_1 = arith.constant 0 : index
    %c0_2 = arith.constant 0 : index
    %2 = vector.load %arg1[%c0_1, %c0_2] : memref<8x32xbf16, #tpu.memory_space<vmem>>, vector<8x32xbf16>
    %cst = arith.constant dense<0.000000e+00> : vector<128x32xf32>
    %3 = tpu.matmul %1, %2, %cst {dimension_numbers = #tpu.dot_dimension_numbers<[1], [0], [0], [1], [0, 0, 1, 1], [], []>} : vector<128x8xbf16>, vector<8x32xbf16>, vector<128x32xf32> -> vector<128x32xf32>
    %c0_3 = arith.constant 0 : index
    %c0_4 = arith.constant 0 : index
    %c0_5 = arith.constant 0 : index
    %4 = vector.load %arg6[%c0_3, %c0_4, %c0_5] : memref<2x8x128xf32, #tpu.memory_space<vmem>>, vector<1x8x128xf32>
    %5 = vector.shape_cast %4 : vector<1x8x128xf32> to vector<8x128xf32>
    %6 = arith.truncf %3 : vector<128x32xf32> to vector<128x32xbf16>
    %c0_6 = arith.constant 0 : index
    %c0_7 = arith.constant 0 : index
    %c0_8 = arith.constant 0 : index
    %7 = vector.load %arg2[%c0_6, %c0_7, %c0_8] : memref<2x32x96xbf16, #tpu.memory_space<vmem>>, vector<1x32x96xbf16>
    %8 = vector.shape_cast %7 : vector<1x32x96xbf16> to vector<32x96xbf16>
    %cst_9 = arith.constant dense<0.000000e+00> : vector<128x96xf32>
    %9 = tpu.matmul %6, %8, %cst_9 {dimension_numbers = #tpu.dot_dimension_numbers<[1], [0], [0], [1], [0, 0, 1, 1], [], []>} : vector<128x32xbf16>, vector<32x96xbf16>, vector<128x96xf32> -> vector<128x96xf32>
    %10 = vector.extract_strided_slice %5 {offsets = [0, 0], sizes = [1, 96], strides = [1, 1]} : vector<8x128xf32> to vector<1x96xf32>
    %11 = vector.broadcast %10 : vector<1x96xf32> to vector<128x96xf32>
    %12 = arith.addf %9, %11 : vector<128x96xf32>
    %13 = arith.truncf %12 : vector<128x96xf32> to vector<128x96xbf16>
    %14 = vector.shape_cast %13 : vector<128x96xbf16> to vector<2x64x96xbf16>
    %15 = vector.extract_strided_slice %14 {offsets = [0, 0, 0], sizes = [2, 64, 8], strides = [1, 1, 1]} : vector<2x64x96xbf16> to vector<2x64x8xbf16>
    %16 = vector.extract_strided_slice %14 {offsets = [0, 0, 32], sizes = [2, 64, 8], strides = [1, 1, 1]} : vector<2x64x96xbf16> to vector<2x64x8xbf16>
    %17 = vector.extract_strided_slice %14 {offsets = [0, 0, 64], sizes = [2, 64, 8], strides = [1, 1, 1]} : vector<2x64x96xbf16> to vector<2x64x8xbf16>
    "tpu.trace_start"() <{level = 10 : i32, message = "bqd,bkd->bqk"}> : () -> ()
    %cst_10 = arith.constant dense<0.000000e+00> : vector<2x64x64xf32>
    %18 = tpu.matmul %15, %16, %cst_10 {dimension_numbers = #tpu.dot_dimension_numbers<[2], [2], [1], [1], [0, 0, 0, 1, 1, 1], [0], [0]>} : vector<2x64x8xbf16>, vector<2x64x8xbf16>, vector<2x64x64xf32> -> vector<2x64x64xf32>
    "tpu.trace_stop"() : () -> ()
    %cst_11 = arith.constant 0.353553385 : f32
    %19 = vector.broadcast %cst_11 : f32 to vector<2x64x64xf32>
    %20 = arith.mulf %18, %19 : vector<2x64x64xf32>
    %cst_12 = arith.constant dense<0xFF800000> : vector<2x64xf32>
    %21 = vector.multi_reduction <maximumf>, %20, %cst_12 [2] : vector<2x64x64xf32> to vector<2x64xf32>
    %22 = vector.shape_cast %21 : vector<2x64xf32> to vector<2x64x1xf32>
    %23 = vector.broadcast %22 : vector<2x64x1xf32> to vector<2x64x64xf32>
    %24 = arith.subf %20, %23 : vector<2x64x64xf32>
    %25 = math.exp %24 : vector<2x64x64xf32>
    %cst_13 = arith.constant dense<0.000000e+00> : vector<2x64xf32>
    %26 = vector.multi_reduction <add>, %25, %cst_13 [2] : vector<2x64x64xf32> to vector<2x64xf32>
    %27 = vector.shape_cast %26 : vector<2x64xf32> to vector<2x64x1xf32>
    %28 = tpu.reciprocal %27 {approx = true} : vector<2x64x1xf32> -> vector<2x64x1xf32>
    %29 = vector.broadcast %28 : vector<2x64x1xf32> to vector<2x64x64xf32>
    %30 = arith.mulf %25, %29 : vector<2x64x64xf32>
    %31 = arith.truncf %30 : vector<2x64x64xf32> to vector<2x64x64xbf16>
    "tpu.trace_start"() <{level = 10 : i32, message = "bqk,bkd->bqd"}> : () -> ()
    %cst_14 = arith.constant dense<0.000000e+00> : vector<2x64x8xf32>
    %32 = tpu.matmul %31, %17, %cst_14 {dimension_numbers = #tpu.dot_dimension_numbers<[2], [1], [1], [2], [0, 0, 0, 1, 1, 2], [0], [0]>} : vector<2x64x64xbf16>, vector<2x64x8xbf16>, vector<2x64x8xf32> -> vector<2x64x8xf32>
    "tpu.trace_stop"() : () -> ()
    %33 = vector.extract_strided_slice %14 {offsets = [0, 0, 8], sizes = [2, 64, 8], strides = [1, 1, 1]} : vector<2x64x96xbf16> to vector<2x64x8xbf16>
    %34 = vector.extract_strided_slice %14 {offsets = [0, 0, 40], sizes = [2, 64, 8], strides = [1, 1, 1]} : vector<2x64x96xbf16> to vector<2x64x8xbf16>
    %35 = vector.extract_strided_slice %14 {offsets = [0, 0, 72], sizes = [2, 64, 8], strides = [1, 1, 1]} : vector<2x64x96xbf16> to vector<2x64x8xbf16>
    "tpu.trace_start"() <{level = 10 : i32, message = "bqd,bkd->bqk"}> : () -> ()
    %cst_15 = arith.constant dense<0.000000e+00> : vector<2x64x64xf32>
    %36 = tpu.matmul %33, %34, %cst_15 {dimension_numbers = #tpu.dot_dimension_numbers<[2], [2], [1], [1], [0, 0, 0, 1, 1, 1], [0], [0]>} : vector<2x64x8xbf16>, vector<2x64x8xbf16>, vector<2x64x64xf32> -> vector<2x64x64xf32>
    "tpu.trace_stop"() : () -> ()
    %cst_16 = arith.constant 0.353553385 : f32
    %37 = vector.broadcast %cst_16 : f32 to vector<2x64x64xf32>
    %38 = arith.mulf %36, %37 : vector<2x64x64xf32>
    %cst_17 = arith.constant dense<0xFF800000> : vector<2x64xf32>
    %39 = vector.multi_reduction <maximumf>, %38, %cst_17 [2] : vector<2x64x64xf32> to vector<2x64xf32>
    %40 = vector.shape_cast %39 : vector<2x64xf32> to vector<2x64x1xf32>
    %41 = vector.broadcast %40 : vector<2x64x1xf32> to vector<2x64x64xf32>
    %42 = arith.subf %38, %41 : vector<2x64x64xf32>
    %43 = math.exp %42 : vector<2x64x64xf32>
    %cst_18 = arith.constant dense<0.000000e+00> : vector<2x64xf32>
    %44 = vector.multi_reduction <add>, %43, %cst_18 [2] : vector<2x64x64xf32> to vector<2x64xf32>
    %45 = vector.shape_cast %44 : vector<2x64xf32> to vector<2x64x1xf32>
    %46 = tpu.reciprocal %45 {approx = true} : vector<2x64x1xf32> -> vector<2x64x1xf32>
    %47 = vector.broadcast %46 : vector<2x64x1xf32> to vector<2x64x64xf32>
    %48 = arith.mulf %43, %47 : vector<2x64x64xf32>
    %49 = arith.truncf %48 : vector<2x64x64xf32> to vector<2x64x64xbf16>
    "tpu.trace_start"() <{level = 10 : i32, message = "bqk,bkd->bqd"}> : () -> ()
    %cst_19 = arith.constant dense<0.000000e+00> : vector<2x64x8xf32>
    %50 = tpu.matmul %49, %35, %cst_19 {dimension_numbers = #tpu.dot_dimension_numbers<[2], [1], [1], [2], [0, 0, 0, 1, 1, 2], [0], [0]>} : vector<2x64x64xbf16>, vector<2x64x8xbf16>, vector<2x64x8xf32> -> vector<2x64x8xf32>
    "tpu.trace_stop"() : () -> ()
    %51 = vector.extract_strided_slice %14 {offsets = [0, 0, 16], sizes = [2, 64, 8], strides = [1, 1, 1]} : vector<2x64x96xbf16> to vector<2x64x8xbf16>
    %52 = vector.extract_strided_slice %14 {offsets = [0, 0, 48], sizes = [2, 64, 8], strides = [1, 1, 1]} : vector<2x64x96xbf16> to vector<2x64x8xbf16>
    %53 = vector.extract_strided_slice %14 {offsets = [0, 0, 80], sizes = [2, 64, 8], strides = [1, 1, 1]} : vector<2x64x96xbf16> to vector<2x64x8xbf16>
    "tpu.trace_start"() <{level = 10 : i32, message = "bqd,bkd->bqk"}> : () -> ()
    %cst_20 = arith.constant dense<0.000000e+00> : vector<2x64x64xf32>
    %54 = tpu.matmul %51, %52, %cst_20 {dimension_numbers = #tpu.dot_dimension_numbers<[2], [2], [1], [1], [0, 0, 0, 1, 1, 1], [0], [0]>} : vector<2x64x8xbf16>, vector<2x64x8xbf16>, vector<2x64x64xf32> -> vector<2x64x64xf32>
    "tpu.trace_stop"() : () -> ()
    %cst_21 = arith.constant 0.353553385 : f32
    %55 = vector.broadcast %cst_21 : f32 to vector<2x64x64xf32>
    %56 = arith.mulf %54, %55 : vector<2x64x64xf32>
    %cst_22 = arith.constant dense<0xFF800000> : vector<2x64xf32>
    %57 = vector.multi_reduction <maximumf>, %56, %cst_22 [2] : vector<2x64x64xf32> to vector<2x64xf32>
    %58 = vector.shape_cast %57 : vector<2x64xf32> to vector<2x64x1xf32>
    %59 = vector.broadcast %58 : vector<2x64x1xf32> to vector<2x64x64xf32>
    %60 = arith.subf %56, %59 : vector<2x64x64xf32>
    %61 = math.exp %60 : vector<2x64x64xf32>
    %cst_23 = arith.constant dense<0.000000e+00> : vector<2x64xf32>
    %62 = vector.multi_reduction <add>, %61, %cst_23 [2] : vector<2x64x64xf32> to vector<2x64xf32>
    %63 = vector.shape_cast %62 : vector<2x64xf32> to vector<2x64x1xf32>
    %64 = tpu.reciprocal %63 {approx = true} : vector<2x64x1xf32> -> vector<2x64x1xf32>
    %65 = vector.broadcast %64 : vector<2x64x1xf32> to vector<2x64x64xf32>
    %66 = arith.mulf %61, %65 : vector<2x64x64xf32>
    %67 = arith.truncf %66 : vector<2x64x64xf32> to vector<2x64x64xbf16>
    "tpu.trace_start"() <{level = 10 : i32, message = "bqk,bkd->bqd"}> : () -> ()
    %cst_24 = arith.constant dense<0.000000e+00> : vector<2x64x8xf32>
    %68 = tpu.matmul %67, %53, %cst_24 {dimension_numbers = #tpu.dot_dimension_numbers<[2], [1], [1], [2], [0, 0, 0, 1, 1, 2], [0], [0]>} : vector<2x64x64xbf16>, vector<2x64x8xbf16>, vector<2x64x8xf32> -> vector<2x64x8xf32>
    "tpu.trace_stop"() : () -> ()
    %69 = vector.extract_strided_slice %14 {offsets = [0, 0, 24], sizes = [2, 64, 8], strides = [1, 1, 1]} : vector<2x64x96xbf16> to vector<2x64x8xbf16>
    %70 = vector.extract_strided_slice %14 {offsets = [0, 0, 56], sizes = [2, 64, 8], strides = [1, 1, 1]} : vector<2x64x96xbf16> to vector<2x64x8xbf16>
    %71 = vector.extract_strided_slice %14 {offsets = [0, 0, 88], sizes = [2, 64, 8], strides = [1, 1, 1]} : vector<2x64x96xbf16> to vector<2x64x8xbf16>
    "tpu.trace_start"() <{level = 10 : i32, message = "bqd,bkd->bqk"}> : () -> ()
    %cst_25 = arith.constant dense<0.000000e+00> : vector<2x64x64xf32>
    %72 = tpu.matmul %69, %70, %cst_25 {dimension_numbers = #tpu.dot_dimension_numbers<[2], [2], [1], [1], [0, 0, 0, 1, 1, 1], [0], [0]>} : vector<2x64x8xbf16>, vector<2x64x8xbf16>, vector<2x64x64xf32> -> vector<2x64x64xf32>
    "tpu.trace_stop"() : () -> ()
    %cst_26 = arith.constant 0.353553385 : f32
    %73 = vector.broadcast %cst_26 : f32 to vector<2x64x64xf32>
    %74 = arith.mulf %72, %73 : vector<2x64x64xf32>
    %cst_27 = arith.constant dense<0xFF800000> : vector<2x64xf32>
    %75 = vector.multi_reduction <maximumf>, %74, %cst_27 [2] : vector<2x64x64xf32> to vector<2x64xf32>
    %76 = vector.shape_cast %75 : vector<2x64xf32> to vector<2x64x1xf32>
    %77 = vector.broadcast %76 : vector<2x64x1xf32> to vector<2x64x64xf32>
    %78 = arith.subf %74, %77 : vector<2x64x64xf32>
    %79 = math.exp %78 : vector<2x64x64xf32>
    %cst_28 = arith.constant dense<0.000000e+00> : vector<2x64xf32>
    %80 = vector.multi_reduction <add>, %79, %cst_28 [2] : vector<2x64x64xf32> to vector<2x64xf32>
    %81 = vector.shape_cast %80 : vector<2x64xf32> to vector<2x64x1xf32>
    %82 = tpu.reciprocal %81 {approx = true} : vector<2x64x1xf32> -> vector<2x64x1xf32>
    %83 = vector.broadcast %82 : vector<2x64x1xf32> to vector<2x64x64xf32>
    %84 = arith.mulf %79, %83 : vector<2x64x64xf32>
    %85 = arith.truncf %84 : vector<2x64x64xf32> to vector<2x64x64xbf16>
    "tpu.trace_start"() <{level = 10 : i32, message = "bqk,bkd->bqd"}> : () -> ()
    %cst_29 = arith.constant dense<0.000000e+00> : vector<2x64x8xf32>
    %86 = tpu.matmul %85, %71, %cst_29 {dimension_numbers = #tpu.dot_dimension_numbers<[2], [1], [1], [2], [0, 0, 0, 1, 1, 2], [0], [0]>} : vector<2x64x64xbf16>, vector<2x64x8xbf16>, vector<2x64x8xf32> -> vector<2x64x8xf32>
    "tpu.trace_stop"() : () -> ()
    %87 = tpu.concatenate %32, %50, %68, %86 in 2 : vector<2x64x8xf32>, vector<2x64x8xf32>, vector<2x64x8xf32>, vector<2x64x8xf32> -> vector<2x64x32xf32>
    %88 = vector.shape_cast %87 : vector<2x64x32xf32> to vector<128x32xf32>
    %89 = arith.truncf %88 : vector<128x32xf32> to vector<128x32xbf16>
    %c0_30 = arith.constant 0 : index
    %c0_31 = arith.constant 0 : index
    %c0_32 = arith.constant 0 : index
    %90 = vector.load %arg3[%c0_30, %c0_31, %c0_32] : memref<2x32x32xbf16, #tpu.memory_space<vmem>>, vector<1x32x32xbf16>
    %91 = vector.shape_cast %90 : vector<1x32x32xbf16> to vector<32x32xbf16>
    %cst_33 = arith.constant dense<0.000000e+00> : vector<128x32xf32>
    %92 = tpu.matmul %89, %91, %cst_33 {dimension_numbers = #tpu.dot_dimension_numbers<[1], [0], [0], [1], [0, 0, 1, 1], [], []>} : vector<128x32xbf16>, vector<32x32xbf16>, vector<128x32xf32> -> vector<128x32xf32>
    %93 = vector.extract_strided_slice %5 {offsets = [1, 0], sizes = [1, 32], strides = [1, 1]} : vector<8x128xf32> to vector<1x32xf32>
    %94 = vector.broadcast %93 : vector<1x32xf32> to vector<128x32xf32>
    %95 = arith.addf %92, %94 : vector<128x32xf32>
    %96 = arith.addf %3, %95 : vector<128x32xf32>
    %97 = vector.extract_strided_slice %5 {offsets = [2, 0], sizes = [1, 32], strides = [1, 1]} : vector<8x128xf32> to vector<1x32xf32>
    %98 = vector.extract_strided_slice %5 {offsets = [3, 0], sizes = [1, 32], strides = [1, 1]} : vector<8x128xf32> to vector<1x32xf32>
    %cst_34 = arith.constant dense<0.000000e+00> : vector<128xf32>
    %99 = vector.multi_reduction <add>, %96, %cst_34 [1] : vector<128x32xf32> to vector<128xf32>
    %100 = vector.shape_cast %99 : vector<128xf32> to vector<128x1xf32>
    %cst_35 = arith.constant 3.200000e+01 : f32
    %101 = vector.broadcast %cst_35 : f32 to vector<128x1xf32>
    %102 = arith.divf %100, %101 : vector<128x1xf32>
    %103 = vector.broadcast %102 : vector<128x1xf32> to vector<128x32xf32>
    %104 = arith.subf %96, %103 : vector<128x32xf32>
    %105 = arith.mulf %104, %104 : vector<128x32xf32>
    %cst_36 = arith.constant dense<0.000000e+00> : vector<128xf32>
    %106 = vector.multi_reduction <add>, %105, %cst_36 [1] : vector<128x32xf32> to vector<128xf32>
    %107 = vector.shape_cast %106 : vector<128xf32> to vector<128x1xf32>
    %cst_37 = arith.constant 3.200000e+01 : f32
    %108 = vector.broadcast %cst_37 : f32 to vector<128x1xf32>
    %109 = arith.divf %107, %108 : vector<128x1xf32>
    %110 = vector.broadcast %102 : vector<128x1xf32> to vector<128x32xf32>
    %111 = arith.subf %96, %110 : vector<128x32xf32>
    %cst_38 = arith.constant 9.99999974E-6 : f32
    %112 = vector.broadcast %cst_38 : f32 to vector<128x1xf32>
    %113 = arith.addf %109, %112 : vector<128x1xf32>
    %114 = math.rsqrt %113 : vector<128x1xf32>
    %115 = vector.broadcast %114 : vector<128x1xf32> to vector<128x32xf32>
    %116 = arith.mulf %111, %115 : vector<128x32xf32>
    %117 = vector.broadcast %97 : vector<1x32xf32> to vector<128x32xf32>
    %118 = arith.mulf %116, %117 : vector<128x32xf32>
    %119 = vector.broadcast %98 : vector<1x32xf32> to vector<128x32xf32>
    %120 = arith.addf %118, %119 : vector<128x32xf32>
    %121 = arith.truncf %120 : vector<128x32xf32> to vector<128x32xbf16>
    %c0_39 = arith.constant 0 : index
    %c0_40 = arith.constant 0 : index
    %c0_41 = arith.constant 0 : index
    %122 = vector.load %arg4[%c0_39, %c0_40, %c0_41] : memref<2x32x64xbf16, #tpu.memory_space<vmem>>, vector<1x32x64xbf16>
    %123 = vector.shape_cast %122 : vector<1x32x64xbf16> to vector<32x64xbf16>
    %cst_42 = arith.constant dense<0.000000e+00> : vector<128x64xf32>
    %124 = tpu.matmul %121, %123, %cst_42 {dimension_numbers = #tpu.dot_dimension_numbers<[1], [0], [0], [1], [0, 0, 1, 1], [], []>} : vector<128x32xbf16>, vector<32x64xbf16>, vector<128x64xf32> -> vector<128x64xf32>
    %125 = vector.extract_strided_slice %5 {offsets = [4, 0], sizes = [1, 64], strides = [1, 1]} : vector<8x128xf32> to vector<1x64xf32>
    %126 = vector.broadcast %125 : vector<1x64xf32> to vector<128x64xf32>
    %127 = arith.addf %124, %126 : vector<128x64xf32>
    %cst_43 = arith.constant 0.000000e+00 : f32
    %128 = vector.broadcast %cst_43 : f32 to vector<128x64xf32>
    %129 = arith.maximumf %127, %128 : vector<128x64xf32>
    %130 = arith.truncf %129 : vector<128x64xf32> to vector<128x64xbf16>
    %c0_44 = arith.constant 0 : index
    %c0_45 = arith.constant 0 : index
    %c0_46 = arith.constant 0 : index
    %131 = vector.load %arg5[%c0_44, %c0_45, %c0_46] : memref<2x64x32xbf16, #tpu.memory_space<vmem>>, vector<1x64x32xbf16>
    %132 = vector.shape_cast %131 : vector<1x64x32xbf16> to vector<64x32xbf16>
    %cst_47 = arith.constant dense<0.000000e+00> : vector<128x32xf32>
    %133 = tpu.matmul %130, %132, %cst_47 {dimension_numbers = #tpu.dot_dimension_numbers<[1], [0], [0], [1], [0, 0, 1, 1], [], []>} : vector<128x64xbf16>, vector<64x32xbf16>, vector<128x32xf32> -> vector<128x32xf32>
    %134 = vector.extract_strided_slice %5 {offsets = [5, 0], sizes = [1, 32], strides = [1, 1]} : vector<8x128xf32> to vector<1x32xf32>
    %135 = vector.broadcast %134 : vector<1x32xf32> to vector<128x32xf32>
    %136 = arith.addf %133, %135 : vector<128x32xf32>
    %137 = arith.addf %120, %136 : vector<128x32xf32>
    %138 = vector.extract_strided_slice %5 {offsets = [6, 0], sizes = [1, 32], strides = [1, 1]} : vector<8x128xf32> to vector<1x32xf32>
    %139 = vector.extract_strided_slice %5 {offsets = [7, 0], sizes = [1, 32], strides = [1, 1]} : vector<8x128xf32> to vector<1x32xf32>
    %cst_48 = arith.constant dense<0.000000e+00> : vector<128xf32>
    %140 = vector.multi_reduction <add>, %137, %cst_48 [1] : vector<128x32xf32> to vector<128xf32>
    %141 = vector.shape_cast %140 : vector<128xf32> to vector<128x1xf32>
    %cst_49 = arith.constant 3.200000e+01 : f32
    %142 = vector.broadcast %cst_49 : f32 to vector<128x1xf32>
    %143 = arith.divf %141, %142 : vector<128x1xf32>
    %144 = vector.broadcast %143 : vector<128x1xf32> to vector<128x32xf32>
    %145 = arith.subf %137, %144 : vector<128x32xf32>
    %146 = arith.mulf %145, %145 : vector<128x32xf32>
    %cst_50 = arith.constant dense<0.000000e+00> : vector<128xf32>
    %147 = vector.multi_reduction <add>, %146, %cst_50 [1] : vector<128x32xf32> to vector<128xf32>
    %148 = vector.shape_cast %147 : vector<128xf32> to vector<128x1xf32>
    %cst_51 = arith.constant 3.200000e+01 : f32
    %149 = vector.broadcast %cst_51 : f32 to vector<128x1xf32>
    %150 = arith.divf %148, %149 : vector<128x1xf32>
    %151 = vector.broadcast %143 : vector<128x1xf32> to vector<128x32xf32>
    %152 = arith.subf %137, %151 : vector<128x32xf32>
    %cst_52 = arith.constant 9.99999974E-6 : f32
    %153 = vector.broadcast %cst_52 : f32 to vector<128x1xf32>
    %154 = arith.addf %150, %153 : vector<128x1xf32>
    %155 = math.rsqrt %154 : vector<128x1xf32>
    %156 = vector.broadcast %155 : vector<128x1xf32> to vector<128x32xf32>
    %157 = arith.mulf %152, %156 : vector<128x32xf32>
    %158 = vector.broadcast %138 : vector<1x32xf32> to vector<128x32xf32>
    %159 = arith.mulf %157, %158 : vector<128x32xf32>
    %160 = vector.broadcast %139 : vector<1x32xf32> to vector<128x32xf32>
    %161 = arith.addf %159, %160 : vector<128x32xf32>
    %c1 = arith.constant 1 : index
    %c0_53 = arith.constant 0 : index
    %c0_54 = arith.constant 0 : index
    %162 = vector.load %arg6[%c1, %c0_53, %c0_54] : memref<2x8x128xf32, #tpu.memory_space<vmem>>, vector<1x8x128xf32>
    %163 = vector.shape_cast %162 : vector<1x8x128xf32> to vector<8x128xf32>
    %164 = arith.truncf %161 : vector<128x32xf32> to vector<128x32xbf16>
    %c1_55 = arith.constant 1 : index
    %c0_56 = arith.constant 0 : index
    %c0_57 = arith.constant 0 : index
    %165 = vector.load %arg2[%c1_55, %c0_56, %c0_57] : memref<2x32x96xbf16, #tpu.memory_space<vmem>>, vector<1x32x96xbf16>
    %166 = vector.shape_cast %165 : vector<1x32x96xbf16> to vector<32x96xbf16>
    %cst_58 = arith.constant dense<0.000000e+00> : vector<128x96xf32>
    %167 = tpu.matmul %164, %166, %cst_58 {dimension_numbers = #tpu.dot_dimension_numbers<[1], [0], [0], [1], [0, 0, 1, 1], [], []>} : vector<128x32xbf16>, vector<32x96xbf16>, vector<128x96xf32> -> vector<128x96xf32>
    %168 = vector.extract_strided_slice %163 {offsets = [0, 0], sizes = [1, 96], strides = [1, 1]} : vector<8x128xf32> to vector<1x96xf32>
    %169 = vector.broadcast %168 : vector<1x96xf32> to vector<128x96xf32>
    %170 = arith.addf %167, %169 : vector<128x96xf32>
    %171 = arith.truncf %170 : vector<128x96xf32> to vector<128x96xbf16>
    %172 = vector.shape_cast %171 : vector<128x96xbf16> to vector<2x64x96xbf16>
    %173 = vector.extract_strided_slice %172 {offsets = [0, 0, 0], sizes = [2, 64, 8], strides = [1, 1, 1]} : vector<2x64x96xbf16> to vector<2x64x8xbf16>
    %174 = vector.extract_strided_slice %172 {offsets = [0, 0, 32], sizes = [2, 64, 8], strides = [1, 1, 1]} : vector<2x64x96xbf16> to vector<2x64x8xbf16>
    %175 = vector.extract_strided_slice %172 {offsets = [0, 0, 64], sizes = [2, 64, 8], strides = [1, 1, 1]} : vector<2x64x96xbf16> to vector<2x64x8xbf16>
    "tpu.trace_start"() <{level = 10 : i32, message = "bqd,bkd->bqk"}> : () -> ()
    %cst_59 = arith.constant dense<0.000000e+00> : vector<2x64x64xf32>
    %176 = tpu.matmul %173, %174, %cst_59 {dimension_numbers = #tpu.dot_dimension_numbers<[2], [2], [1], [1], [0, 0, 0, 1, 1, 1], [0], [0]>} : vector<2x64x8xbf16>, vector<2x64x8xbf16>, vector<2x64x64xf32> -> vector<2x64x64xf32>
    "tpu.trace_stop"() : () -> ()
    %cst_60 = arith.constant 0.353553385 : f32
    %177 = vector.broadcast %cst_60 : f32 to vector<2x64x64xf32>
    %178 = arith.mulf %176, %177 : vector<2x64x64xf32>
    %cst_61 = arith.constant dense<0xFF800000> : vector<2x64xf32>
    %179 = vector.multi_reduction <maximumf>, %178, %cst_61 [2] : vector<2x64x64xf32> to vector<2x64xf32>
    %180 = vector.shape_cast %179 : vector<2x64xf32> to vector<2x64x1xf32>
    %181 = vector.broadcast %180 : vector<2x64x1xf32> to vector<2x64x64xf32>
    %182 = arith.subf %178, %181 : vector<2x64x64xf32>
    %183 = math.exp %182 : vector<2x64x64xf32>
    %cst_62 = arith.constant dense<0.000000e+00> : vector<2x64xf32>
    %184 = vector.multi_reduction <add>, %183, %cst_62 [2] : vector<2x64x64xf32> to vector<2x64xf32>
    %185 = vector.shape_cast %184 : vector<2x64xf32> to vector<2x64x1xf32>
    %186 = tpu.reciprocal %185 {approx = true} : vector<2x64x1xf32> -> vector<2x64x1xf32>
    %187 = vector.broadcast %186 : vector<2x64x1xf32> to vector<2x64x64xf32>
    %188 = arith.mulf %183, %187 : vector<2x64x64xf32>
    %189 = arith.truncf %188 : vector<2x64x64xf32> to vector<2x64x64xbf16>
    "tpu.trace_start"() <{level = 10 : i32, message = "bqk,bkd->bqd"}> : () -> ()
    %cst_63 = arith.constant dense<0.000000e+00> : vector<2x64x8xf32>
    %190 = tpu.matmul %189, %175, %cst_63 {dimension_numbers = #tpu.dot_dimension_numbers<[2], [1], [1], [2], [0, 0, 0, 1, 1, 2], [0], [0]>} : vector<2x64x64xbf16>, vector<2x64x8xbf16>, vector<2x64x8xf32> -> vector<2x64x8xf32>
    "tpu.trace_stop"() : () -> ()
    %191 = vector.extract_strided_slice %172 {offsets = [0, 0, 8], sizes = [2, 64, 8], strides = [1, 1, 1]} : vector<2x64x96xbf16> to vector<2x64x8xbf16>
    %192 = vector.extract_strided_slice %172 {offsets = [0, 0, 40], sizes = [2, 64, 8], strides = [1, 1, 1]} : vector<2x64x96xbf16> to vector<2x64x8xbf16>
    %193 = vector.extract_strided_slice %172 {offsets = [0, 0, 72], sizes = [2, 64, 8], strides = [1, 1, 1]} : vector<2x64x96xbf16> to vector<2x64x8xbf16>
    "tpu.trace_start"() <{level = 10 : i32, message = "bqd,bkd->bqk"}> : () -> ()
    %cst_64 = arith.constant dense<0.000000e+00> : vector<2x64x64xf32>
    %194 = tpu.matmul %191, %192, %cst_64 {dimension_numbers = #tpu.dot_dimension_numbers<[2], [2], [1], [1], [0, 0, 0, 1, 1, 1], [0], [0]>} : vector<2x64x8xbf16>, vector<2x64x8xbf16>, vector<2x64x64xf32> -> vector<2x64x64xf32>
    "tpu.trace_stop"() : () -> ()
    %cst_65 = arith.constant 0.353553385 : f32
    %195 = vector.broadcast %cst_65 : f32 to vector<2x64x64xf32>
    %196 = arith.mulf %194, %195 : vector<2x64x64xf32>
    %cst_66 = arith.constant dense<0xFF800000> : vector<2x64xf32>
    %197 = vector.multi_reduction <maximumf>, %196, %cst_66 [2] : vector<2x64x64xf32> to vector<2x64xf32>
    %198 = vector.shape_cast %197 : vector<2x64xf32> to vector<2x64x1xf32>
    %199 = vector.broadcast %198 : vector<2x64x1xf32> to vector<2x64x64xf32>
    %200 = arith.subf %196, %199 : vector<2x64x64xf32>
    %201 = math.exp %200 : vector<2x64x64xf32>
    %cst_67 = arith.constant dense<0.000000e+00> : vector<2x64xf32>
    %202 = vector.multi_reduction <add>, %201, %cst_67 [2] : vector<2x64x64xf32> to vector<2x64xf32>
    %203 = vector.shape_cast %202 : vector<2x64xf32> to vector<2x64x1xf32>
    %204 = tpu.reciprocal %203 {approx = true} : vector<2x64x1xf32> -> vector<2x64x1xf32>
    %205 = vector.broadcast %204 : vector<2x64x1xf32> to vector<2x64x64xf32>
    %206 = arith.mulf %201, %205 : vector<2x64x64xf32>
    %207 = arith.truncf %206 : vector<2x64x64xf32> to vector<2x64x64xbf16>
    "tpu.trace_start"() <{level = 10 : i32, message = "bqk,bkd->bqd"}> : () -> ()
    %cst_68 = arith.constant dense<0.000000e+00> : vector<2x64x8xf32>
    %208 = tpu.matmul %207, %193, %cst_68 {dimension_numbers = #tpu.dot_dimension_numbers<[2], [1], [1], [2], [0, 0, 0, 1, 1, 2], [0], [0]>} : vector<2x64x64xbf16>, vector<2x64x8xbf16>, vector<2x64x8xf32> -> vector<2x64x8xf32>
    "tpu.trace_stop"() : () -> ()
    %209 = vector.extract_strided_slice %172 {offsets = [0, 0, 16], sizes = [2, 64, 8], strides = [1, 1, 1]} : vector<2x64x96xbf16> to vector<2x64x8xbf16>
    %210 = vector.extract_strided_slice %172 {offsets = [0, 0, 48], sizes = [2, 64, 8], strides = [1, 1, 1]} : vector<2x64x96xbf16> to vector<2x64x8xbf16>
    %211 = vector.extract_strided_slice %172 {offsets = [0, 0, 80], sizes = [2, 64, 8], strides = [1, 1, 1]} : vector<2x64x96xbf16> to vector<2x64x8xbf16>
    "tpu.trace_start"() <{level = 10 : i32, message = "bqd,bkd->bqk"}> : () -> ()
    %cst_69 = arith.constant dense<0.000000e+00> : vector<2x64x64xf32>
    %212 = tpu.matmul %209, %210, %cst_69 {dimension_numbers = #tpu.dot_dimension_numbers<[2], [2], [1], [1], [0, 0, 0, 1, 1, 1], [0], [0]>} : vector<2x64x8xbf16>, vector<2x64x8xbf16>, vector<2x64x64xf32> -> vector<2x64x64xf32>
    "tpu.trace_stop"() : () -> ()
    %cst_70 = arith.constant 0.353553385 : f32
    %213 = vector.broadcast %cst_70 : f32 to vector<2x64x64xf32>
    %214 = arith.mulf %212, %213 : vector<2x64x64xf32>
    %cst_71 = arith.constant dense<0xFF800000> : vector<2x64xf32>
    %215 = vector.multi_reduction <maximumf>, %214, %cst_71 [2] : vector<2x64x64xf32> to vector<2x64xf32>
    %216 = vector.shape_cast %215 : vector<2x64xf32> to vector<2x64x1xf32>
    %217 = vector.broadcast %216 : vector<2x64x1xf32> to vector<2x64x64xf32>
    %218 = arith.subf %214, %217 : vector<2x64x64xf32>
    %219 = math.exp %218 : vector<2x64x64xf32>
    %cst_72 = arith.constant dense<0.000000e+00> : vector<2x64xf32>
    %220 = vector.multi_reduction <add>, %219, %cst_72 [2] : vector<2x64x64xf32> to vector<2x64xf32>
    %221 = vector.shape_cast %220 : vector<2x64xf32> to vector<2x64x1xf32>
    %222 = tpu.reciprocal %221 {approx = true} : vector<2x64x1xf32> -> vector<2x64x1xf32>
    %223 = vector.broadcast %222 : vector<2x64x1xf32> to vector<2x64x64xf32>
    %224 = arith.mulf %219, %223 : vector<2x64x64xf32>
    %225 = arith.truncf %224 : vector<2x64x64xf32> to vector<2x64x64xbf16>
    "tpu.trace_start"() <{level = 10 : i32, message = "bqk,bkd->bqd"}> : () -> ()
    %cst_73 = arith.constant dense<0.000000e+00> : vector<2x64x8xf32>
    %226 = tpu.matmul %225, %211, %cst_73 {dimension_numbers = #tpu.dot_dimension_numbers<[2], [1], [1], [2], [0, 0, 0, 1, 1, 2], [0], [0]>} : vector<2x64x64xbf16>, vector<2x64x8xbf16>, vector<2x64x8xf32> -> vector<2x64x8xf32>
    "tpu.trace_stop"() : () -> ()
    %227 = vector.extract_strided_slice %172 {offsets = [0, 0, 24], sizes = [2, 64, 8], strides = [1, 1, 1]} : vector<2x64x96xbf16> to vector<2x64x8xbf16>
    %228 = vector.extract_strided_slice %172 {offsets = [0, 0, 56], sizes = [2, 64, 8], strides = [1, 1, 1]} : vector<2x64x96xbf16> to vector<2x64x8xbf16>
    %229 = vector.extract_strided_slice %172 {offsets = [0, 0, 88], sizes = [2, 64, 8], strides = [1, 1, 1]} : vector<2x64x96xbf16> to vector<2x64x8xbf16>
    "tpu.trace_start"() <{level = 10 : i32, message = "bqd,bkd->bqk"}> : () -> ()
    %cst_74 = arith.constant dense<0.000000e+00> : vector<2x64x64xf32>
    %230 = tpu.matmul %227, %228, %cst_74 {dimension_numbers = #tpu.dot_dimension_numbers<[2], [2], [1], [1], [0, 0, 0, 1, 1, 1], [0], [0]>} : vector<2x64x8xbf16>, vector<2x64x8xbf16>, vector<2x64x64xf32> -> vector<2x64x64xf32>
    "tpu.trace_stop"() : () -> ()
    %cst_75 = arith.constant 0.353553385 : f32
    %231 = vector.broadcast %cst_75 : f32 to vector<2x64x64xf32>
    %232 = arith.mulf %230, %231 : vector<2x64x64xf32>
    %cst_76 = arith.constant dense<0xFF800000> : vector<2x64xf32>
    %233 = vector.multi_reduction <maximumf>, %232, %cst_76 [2] : vector<2x64x64xf32> to vector<2x64xf32>
    %234 = vector.shape_cast %233 : vector<2x64xf32> to vector<2x64x1xf32>
    %235 = vector.broadcast %234 : vector<2x64x1xf32> to vector<2x64x64xf32>
    %236 = arith.subf %232, %235 : vector<2x64x64xf32>
    %237 = math.exp %236 : vector<2x64x64xf32>
    %cst_77 = arith.constant dense<0.000000e+00> : vector<2x64xf32>
    %238 = vector.multi_reduction <add>, %237, %cst_77 [2] : vector<2x64x64xf32> to vector<2x64xf32>
    %239 = vector.shape_cast %238 : vector<2x64xf32> to vector<2x64x1xf32>
    %240 = tpu.reciprocal %239 {approx = true} : vector<2x64x1xf32> -> vector<2x64x1xf32>
    %241 = vector.broadcast %240 : vector<2x64x1xf32> to vector<2x64x64xf32>
    %242 = arith.mulf %237, %241 : vector<2x64x64xf32>
    %243 = arith.truncf %242 : vector<2x64x64xf32> to vector<2x64x64xbf16>
    "tpu.trace_start"() <{level = 10 : i32, message = "bqk,bkd->bqd"}> : () -> ()
    %cst_78 = arith.constant dense<0.000000e+00> : vector<2x64x8xf32>
    %244 = tpu.matmul %243, %229, %cst_78 {dimension_numbers = #tpu.dot_dimension_numbers<[2], [1], [1], [2], [0, 0, 0, 1, 1, 2], [0], [0]>} : vector<2x64x64xbf16>, vector<2x64x8xbf16>, vector<2x64x8xf32> -> vector<2x64x8xf32>
    "tpu.trace_stop"() : () -> ()
    %245 = tpu.concatenate %190, %208, %226, %244 in 2 : vector<2x64x8xf32>, vector<2x64x8xf32>, vector<2x64x8xf32>, vector<2x64x8xf32> -> vector<2x64x32xf32>
    %246 = vector.shape_cast %245 : vector<2x64x32xf32> to vector<128x32xf32>
    %247 = arith.truncf %246 : vector<128x32xf32> to vector<128x32xbf16>
    %c1_79 = arith.constant 1 : index
    %c0_80 = arith.constant 0 : index
    %c0_81 = arith.constant 0 : index
    %248 = vector.load %arg3[%c1_79, %c0_80, %c0_81] : memref<2x32x32xbf16, #tpu.memory_space<vmem>>, vector<1x32x32xbf16>
    %249 = vector.shape_cast %248 : vector<1x32x32xbf16> to vector<32x32xbf16>
    %cst_82 = arith.constant dense<0.000000e+00> : vector<128x32xf32>
    %250 = tpu.matmul %247, %249, %cst_82 {dimension_numbers = #tpu.dot_dimension_numbers<[1], [0], [0], [1], [0, 0, 1, 1], [], []>} : vector<128x32xbf16>, vector<32x32xbf16>, vector<128x32xf32> -> vector<128x32xf32>
    %251 = vector.extract_strided_slice %163 {offsets = [1, 0], sizes = [1, 32], strides = [1, 1]} : vector<8x128xf32> to vector<1x32xf32>
    %252 = vector.broadcast %251 : vector<1x32xf32> to vector<128x32xf32>
    %253 = arith.addf %250, %252 : vector<128x32xf32>
    %254 = arith.addf %161, %253 : vector<128x32xf32>
    %255 = vector.extract_strided_slice %163 {offsets = [2, 0], sizes = [1, 32], strides = [1, 1]} : vector<8x128xf32> to vector<1x32xf32>
    %256 = vector.extract_strided_slice %163 {offsets = [3, 0], sizes = [1, 32], strides = [1, 1]} : vector<8x128xf32> to vector<1x32xf32>
    %cst_83 = arith.constant dense<0.000000e+00> : vector<128xf32>
    %257 = vector.multi_reduction <add>, %254, %cst_83 [1] : vector<128x32xf32> to vector<128xf32>
    %258 = vector.shape_cast %257 : vector<128xf32> to vector<128x1xf32>
    %cst_84 = arith.constant 3.200000e+01 : f32
    %259 = vector.broadcast %cst_84 : f32 to vector<128x1xf32>
    %260 = arith.divf %258, %259 : vector<128x1xf32>
    %261 = vector.broadcast %260 : vector<128x1xf32> to vector<128x32xf32>
    %262 = arith.subf %254, %261 : vector<128x32xf32>
    %263 = arith.mulf %262, %262 : vector<128x32xf32>
    %cst_85 = arith.constant dense<0.000000e+00> : vector<128xf32>
    %264 = vector.multi_reduction <add>, %263, %cst_85 [1] : vector<128x32xf32> to vector<128xf32>
    %265 = vector.shape_cast %264 : vector<128xf32> to vector<128x1xf32>
    %cst_86 = arith.constant 3.200000e+01 : f32
    %266 = vector.broadcast %cst_86 : f32 to vector<128x1xf32>
    %267 = arith.divf %265, %266 : vector<128x1xf32>
    %268 = vector.broadcast %260 : vector<128x1xf32> to vector<128x32xf32>
    %269 = arith.subf %254, %268 : vector<128x32xf32>
    %cst_87 = arith.constant 9.99999974E-6 : f32
    %270 = vector.broadcast %cst_87 : f32 to vector<128x1xf32>
    %271 = arith.addf %267, %270 : vector<128x1xf32>
    %272 = math.rsqrt %271 : vector<128x1xf32>
    %273 = vector.broadcast %272 : vector<128x1xf32> to vector<128x32xf32>
    %274 = arith.mulf %269, %273 : vector<128x32xf32>
    %275 = vector.broadcast %255 : vector<1x32xf32> to vector<128x32xf32>
    %276 = arith.mulf %274, %275 : vector<128x32xf32>
    %277 = vector.broadcast %256 : vector<1x32xf32> to vector<128x32xf32>
    %278 = arith.addf %276, %277 : vector<128x32xf32>
    %279 = arith.truncf %278 : vector<128x32xf32> to vector<128x32xbf16>
    %c1_88 = arith.constant 1 : index
    %c0_89 = arith.constant 0 : index
    %c0_90 = arith.constant 0 : index
    %280 = vector.load %arg4[%c1_88, %c0_89, %c0_90] : memref<2x32x64xbf16, #tpu.memory_space<vmem>>, vector<1x32x64xbf16>
    %281 = vector.shape_cast %280 : vector<1x32x64xbf16> to vector<32x64xbf16>
    %cst_91 = arith.constant dense<0.000000e+00> : vector<128x64xf32>
    %282 = tpu.matmul %279, %281, %cst_91 {dimension_numbers = #tpu.dot_dimension_numbers<[1], [0], [0], [1], [0, 0, 1, 1], [], []>} : vector<128x32xbf16>, vector<32x64xbf16>, vector<128x64xf32> -> vector<128x64xf32>
    %283 = vector.extract_strided_slice %163 {offsets = [4, 0], sizes = [1, 64], strides = [1, 1]} : vector<8x128xf32> to vector<1x64xf32>
    %284 = vector.broadcast %283 : vector<1x64xf32> to vector<128x64xf32>
    %285 = arith.addf %282, %284 : vector<128x64xf32>
    %cst_92 = arith.constant 0.000000e+00 : f32
    %286 = vector.broadcast %cst_92 : f32 to vector<128x64xf32>
    %287 = arith.maximumf %285, %286 : vector<128x64xf32>
    %288 = arith.truncf %287 : vector<128x64xf32> to vector<128x64xbf16>
    %c1_93 = arith.constant 1 : index
    %c0_94 = arith.constant 0 : index
    %c0_95 = arith.constant 0 : index
    %289 = vector.load %arg5[%c1_93, %c0_94, %c0_95] : memref<2x64x32xbf16, #tpu.memory_space<vmem>>, vector<1x64x32xbf16>
    %290 = vector.shape_cast %289 : vector<1x64x32xbf16> to vector<64x32xbf16>
    %cst_96 = arith.constant dense<0.000000e+00> : vector<128x32xf32>
    %291 = tpu.matmul %288, %290, %cst_96 {dimension_numbers = #tpu.dot_dimension_numbers<[1], [0], [0], [1], [0, 0, 1, 1], [], []>} : vector<128x64xbf16>, vector<64x32xbf16>, vector<128x32xf32> -> vector<128x32xf32>
    %292 = vector.extract_strided_slice %163 {offsets = [5, 0], sizes = [1, 32], strides = [1, 1]} : vector<8x128xf32> to vector<1x32xf32>
    %293 = vector.broadcast %292 : vector<1x32xf32> to vector<128x32xf32>
    %294 = arith.addf %291, %293 : vector<128x32xf32>
    %295 = arith.addf %278, %294 : vector<128x32xf32>
    %296 = vector.extract_strided_slice %163 {offsets = [6, 0], sizes = [1, 32], strides = [1, 1]} : vector<8x128xf32> to vector<1x32xf32>
    %297 = vector.extract_strided_slice %163 {offsets = [7, 0], sizes = [1, 32], strides = [1, 1]} : vector<8x128xf32> to vector<1x32xf32>
    %cst_97 = arith.constant dense<0.000000e+00> : vector<128xf32>
    %298 = vector.multi_reduction <add>, %295, %cst_97 [1] : vector<128x32xf32> to vector<128xf32>
    %299 = vector.shape_cast %298 : vector<128xf32> to vector<128x1xf32>
    %cst_98 = arith.constant 3.200000e+01 : f32
    %300 = vector.broadcast %cst_98 : f32 to vector<128x1xf32>
    %301 = arith.divf %299, %300 : vector<128x1xf32>
    %302 = vector.broadcast %301 : vector<128x1xf32> to vector<128x32xf32>
    %303 = arith.subf %295, %302 : vector<128x32xf32>
    %304 = arith.mulf %303, %303 : vector<128x32xf32>
    %cst_99 = arith.constant dense<0.000000e+00> : vector<128xf32>
    %305 = vector.multi_reduction <add>, %304, %cst_99 [1] : vector<128x32xf32> to vector<128xf32>
    %306 = vector.shape_cast %305 : vector<128xf32> to vector<128x1xf32>
    %cst_100 = arith.constant 3.200000e+01 : f32
    %307 = vector.broadcast %cst_100 : f32 to vector<128x1xf32>
    %308 = arith.divf %306, %307 : vector<128x1xf32>
    %309 = vector.broadcast %301 : vector<128x1xf32> to vector<128x32xf32>
    %310 = arith.subf %295, %309 : vector<128x32xf32>
    %cst_101 = arith.constant 9.99999974E-6 : f32
    %311 = vector.broadcast %cst_101 : f32 to vector<128x1xf32>
    %312 = arith.addf %308, %311 : vector<128x1xf32>
    %313 = math.rsqrt %312 : vector<128x1xf32>
    %314 = vector.broadcast %313 : vector<128x1xf32> to vector<128x32xf32>
    %315 = arith.mulf %310, %314 : vector<128x32xf32>
    %316 = vector.broadcast %296 : vector<1x32xf32> to vector<128x32xf32>
    %317 = arith.mulf %315, %316 : vector<128x32xf32>
    %318 = vector.broadcast %297 : vector<1x32xf32> to vector<128x32xf32>
    %319 = arith.addf %317, %318 : vector<128x32xf32>
    %320 = vector.shape_cast %319 : vector<128x32xf32> to vector<2x64x32xf32>
    %cst_102 = arith.constant dense<0.000000e+00> : vector<2x32xf32>
    %321 = vector.multi_reduction <add>, %320, %cst_102 [1] : vector<2x64x32xf32> to vector<2x32xf32>
    %322 = vector.shape_cast %321 : vector<2x32xf32> to vector<2x1x32xf32>
    %cst_103 = arith.constant 6.400000e+01 : f32
    %323 = vector.broadcast %cst_103 : f32 to vector<2x1x32xf32>
    %324 = arith.divf %322, %323 : vector<2x1x32xf32>
    %325 = vector.broadcast %324 : vector<2x1x32xf32> to vector<2x64x32xf32>
    %326 = arith.subf %320, %325 : vector<2x64x32xf32>
    %327 = arith.mulf %326, %326 : vector<2x64x32xf32>
    %cst_104 = arith.constant dense<0.000000e+00> : vector<2x32xf32>
    %328 = vector.multi_reduction <add>, %327, %cst_104 [1] : vector<2x64x32xf32> to vector<2x32xf32>
    %329 = vector.shape_cast %328 : vector<2x32xf32> to vector<2x1x32xf32>
    %cst_105 = arith.constant 6.400000e+01 : f32
    %330 = vector.broadcast %cst_105 : f32 to vector<2x1x32xf32>
    %331 = arith.divf %329, %330 : vector<2x1x32xf32>
    %332 = vector.broadcast %324 : vector<2x1x32xf32> to vector<2x64x32xf32>
    %333 = arith.subf %320, %332 : vector<2x64x32xf32>
    %cst_106 = arith.constant 9.99999974E-6 : f32
    %334 = vector.broadcast %cst_106 : f32 to vector<2x1x32xf32>
    %335 = arith.addf %331, %334 : vector<2x1x32xf32>
    %336 = math.rsqrt %335 : vector<2x1x32xf32>
    %337 = vector.broadcast %336 : vector<2x1x32xf32> to vector<2x64x32xf32>
    %338 = arith.mulf %333, %337 : vector<2x64x32xf32>
    %c0_107 = arith.constant 0 : index
    %c0_108 = arith.constant 0 : index
    %c0_109 = arith.constant 0 : index
    %339 = vector.load %arg7[%c0_107, %c0_108, %c0_109] : memref<2x64x32xf32, #tpu.memory_space<vmem>>, vector<2x64x32xf32>
    tpu.vector_store %arg7[%c0_107, %c0_108, %c0_109], %338 {strides = array<i32>} : memref<2x64x32xf32, #tpu.memory_space<vmem>>, vector<2x64x32xf32>,
    return
  }
}

</mosaic_0001>

<bundles_post_ra>
// kernel: transformer_bridge.1
= control target key start
LH: loop header
LB: loop body
LE: loop exit
PB: predicated region body
PF: predicated region fallthrough
CT: control target
= control target key end

     0   :  { %vm78_vm0 = vcmask 1043456   ;;  %vm53_vm1 = vcmask 64512   ;;  %s14349_s0 = inlined_call_operand.vmem [shape: f32[128,8], index: 0, kind: input, shape index: {}]   ;;  %s14350_s1 = inlined_call_operand.vmem [shape: bf16[8,32], index: 1, kind: input, shape index: {}]   ;;  %s14351_s2 = inlined_call_operand.vmem [shape: bf16[2,32,96], index: 2, kind: input, shape index: {}]   ;;  %s14352_s3 = inlined_call_operand.vmem [shape: bf16[2,32,32], index: 3, kind: input, shape index: {}]   ;;  %s14353_s4 = inlined_call_operand.vmem [shape: bf16[2,32,64], index: 4, kind: input, shape index: {}]   ;;  %s14354_s5 = inlined_call_operand.vmem [shape: bf16[2,64,32], index: 5, kind: input, shape index: {}]   ;;  %s14355_s6 = inlined_call_operand.vmem [shape: f32[2,8,128], index: 6, kind: input, shape index: {}]   ;;  %s14356_s7 = inlined_call_operand.hbm [shape: f32[2,64,32], index: 7, kind: output, shape index: {}]  }
   0x1   :  { %v52_v0 = vld [vmem:[%s14350_s1] sm:$0xf]  ;;  %v29_v2 = vld [vmem:[%s14349_s0 + $0x8] sm:$0xff]  ;;  %v30_v5 = vld [vmem:[%s14349_s0 + $0x10] sm:$0xff] }
   0x2   :  { %v28_v1 = vld [vmem:[%s14349_s0] sm:$0xff]  ;;  %9148 = vmatprep.subr.msk.bf16.mxu0 %vm78_vm0, %v52_v0  ;;  %v80_v3 = vsel %vm78_vm0, %v52_v0, 0  ;;  %v31_v6 = vld [vmem:[%s14349_s0 + $0x18] sm:$0xff]  ;;  %v33_v9 = vld [vmem:[%s14349_s0 + $0x28] sm:$0xff] }
   0x3   :  { %v44_v4 = vpack.c.bf16 %v29_v2, %v28_v1  ;;  %v32_v7 = vld [vmem:[%s14349_s0 + $0x20] sm:$0xff]  ;;  %8451 = vmatpush3.bf16.msra.mxu0 %v80_v3  ;;  %v45_v8 = vpack.c.bf16 %v31_v6, %v30_v5  ;;  %v34_v11 = vld [vmem:[%s14349_s0 + $0x30] sm:$0xff]  ;;  %v35_v12 = vld [vmem:[%s14349_s0 + $0x38] sm:$0xff] }
   0x4   :  { %v46_v10 = vpack.c.bf16 %v33_v9, %v32_v7  ;;  %v36_v13 = vld [vmem:[%s14349_s0 + $0x40] sm:$0xff]  ;;  %v37_v14 = vld [vmem:[%s14349_s0 + $0x48] sm:$0xff]  ;;  %v47_v16 = vpack.c.bf16 %v35_v12, %v34_v11  ;;  %v38_v18 = vld [vmem:[%s14349_s0 + $0x50] sm:$0xff] }
   0x5   :  { %8452 = vmatprep.mubr.msk.bf16.mxu0 %vm53_vm1, %v44_v4  ;;  %v9469_v15 = vld [vmem:[%s14351_s2] sm:$0xff]   ;;  %v48_v17 = vpack.c.bf16 %v37_v14, %v36_v13  ;;  %v39_v19 = vld [vmem:[%s14349_s0 + $0x58] sm:$0xff]  ;;  %v41_v21 = vld [vmem:[%s14349_s0 + $0x68] sm:$0xff] }
   0x6   :  { %8453 = vmatmul.mubr.msk.bf16.vlgmr.msra.gmra.mrb[0].mxu0 %vm53_vm1, %v45_v8  ;;  %8468 = vmatprep.subr.bf16.mxu1 %v9469_v15  ;;  %v40_v20 = vld [vmem:[%s14349_s0 + $0x60] sm:$0xff]  ;;  %v49_v22 = vpack.c.bf16 %v39_v19, %v38_v18 }
   0x7   :  { %8456 = vmatprep.mubr.msk.bf16.mxu0 %vm53_vm1, %v46_v10  ;;  %8469 = vmatpush3.bf16.msra.mxu1 %v9469_v15  ;;  %v50_v23 = vpack.c.bf16 %v41_v21, %v40_v20 }
   0xe   :  { %8457 = vmatmul.mubr.msk.bf16.gmra.mrb[4].mxu0 %vm53_vm1, %v47_v16 }
   0xf   :  { %8460 = vmatprep.mubr.msk.bf16.mxu0 %vm53_vm1, %v48_v17 }
  0x10   :  { %12 = vsyncpa [#allocation3], 0  ;;  %v42_v24 = vld [vmem:[%s14349_s0 + $0x70] sm:$0xff]  ;;  %v43_v25 = vld [vmem:[%s14349_s0 + $0x78] sm:$0xff]  ;;  %vm208_vm2 = vcmask 261120   ;;  %v192_v52 = vlaneseq  ;;  %s10161_s15 = smov 96  }
  0x11   :  { %v51_v26 = vpack.c.bf16 %v43_v25, %v42_v24  ;;  %v9470_v27 = vld [vmem:[%s14351_s2 + $0x8] sm:$0xff]   ;;  %v179_v55 = vld [vmem:[%s14355_s6] sm:$0xff]  ;;  %s10162_s16 = smov 64   ;;  %s10163_s17 = smov 88   ;;  %vm556_vm3 = vcmask 523264   ;;  %vm2891_vm4 = vcmask 130048  }
  0x12   :  { %8470 = vmatprep.subr.bf16.mxu1 %v9470_v27  ;;  %v10338_v53 = vshrl.u32 %v192_v52, 7  ;;  %s10164_s18 = smov 120   ;;  %s10165_s19 = smov 56   ;;  %vm2908_vm5 = vcmask 195584  }
  0x13   :  { %8471 = vmatpush3.bf16.msra.mxu1 %v9470_v27  ;;  %s10166_s20 = smov 80   ;;  %s10167_s21 = smov 112  }
  0x14   :  { %14432 = vst [vmem:[#allocation21_spill] sm:$0xff] %v10338_v53  ;;  %v14357_v54 = vsub.s32 0, %v10338_v53  ;;  %s10168_s22 = smov 48   ;;  %s10169_s23 = smov 72  }
  0x15   :  { %s10170_s24 = smov 104   ;;  %s10171_s25 = smov 40  }
  0x16   :  { %8461 = vmatmul.mubr.msk.bf16.gmra.mrb[8].mxu0 %vm53_vm1, %v49_v22  ;;  %v195_v56 = vrot.slane %v179_v55, %v14357_v54  ;;  %s10172_s26 = smov 8   ;;  %s10173_s27 = smov 16  }
  0x17   :  { %8464 = vmatprep.mubr.msk.bf16.mxu0 %vm53_vm1, %v50_v23  ;;  %s10174_s9 = smov 24  }
  0x1e   :  { %8465 = vmatmul.mubr.msk.bf16.gmra.mrb[12].mxu0 %vm53_vm1, %v51_v26 }
  0xd9   :  { %v10282_v28 = vpop.f32.mrb[0].mxu0 }
  0xda   :  { %14416 = vst [vmem:[#allocation5_spill] sm:$0xff] %v10282_v28  ;;  %v10284_v29 = vpop.f32.mrb[1].mxu0 }
  0xdb   :  { %14417 = vst [vmem:[#allocation6_spill] sm:$0xff] %v10284_v29  ;;  %v10286_v30 = vpop.f32.mrb[2].mxu0 }
  0xdc   :  { %14418 = vst [vmem:[#allocation7_spill] sm:$0xff] %v10286_v30  ;;  %v181_v31 = vpack.c.bf16 %v10286_v30, %v10282_v28  ;;  %v10290_v32 = vpop.f32.mrb[3].mxu0 }
  0xdd   :  { %14419 = vst [vmem:[#allocation8_spill] sm:$0xff] %v10290_v32  ;;  %v180_v33 = vpack.c.bf16 %v10290_v32, %v10284_v29 }
  0xdf   :  { %8472 = vmatprep.mubr.msk.bf16.mxu1 %vm208_vm2, %v180_v33 }
  0xe0   :  { %8473 = vmatmul.mubr.msk.bf16.vlgmr.msra.gmra.mrb[0].mxu1 %vm208_vm2, %v181_v31 }
  0xe1   :  { %v10296_v34 = vpop.f32.mrb[4].mxu0 }
  0xe2   :  { %14420 = vst [vmem:[#allocation9_spill] sm:$0xff] %v10296_v34  ;;  %v10298_v35 = vpop.f32.mrb[5].mxu0 }
  0xe3   :  { %14421 = vst [vmem:[#allocation10_spill] sm:$0xff] %v10298_v35  ;;  %v10300_v36 = vpop.f32.mrb[6].mxu0 }
  0xe4   :  { %14422 = vst [vmem:[#allocation11_spill] sm:$0xff] %v10300_v36  ;;  %v183_v37 = vpack.c.bf16 %v10300_v36, %v10296_v34  ;;  %v10304_v38 = vpop.f32.mrb[7].mxu0 }
  0xe5   :  { %14423 = vst [vmem:[#allocation12_spill] sm:$0xff] %v10304_v38  ;;  %v182_v39 = vpack.c.bf16 %v10304_v38, %v10298_v35 }
  0xe7   :  { %8476 = vmatprep.mubr.msk.bf16.mxu1 %vm208_vm2, %v182_v39 }
  0xe8   :  { %8477 = vmatmul.mubr.msk.bf16.gmra.mrb[4].mxu1 %vm208_vm2, %v183_v37 }
  0xe9   :  { %v10310_v40 = vpop.f32.mrb[8].mxu0 }
  0xea   :  { %14424 = vst [vmem:[#allocation13_spill] sm:$0xff] %v10310_v40  ;;  %v10312_v41 = vpop.f32.mrb[9].mxu0 }
  0xeb   :  { %14425 = vst [vmem:[#allocation14_spill] sm:$0xff] %v10312_v41  ;;  %v10314_v42 = vpop.f32.mrb[10].mxu0 }
  0xec   :  { %14426 = vst [vmem:[#allocation15_spill] sm:$0xff] %v10314_v42  ;;  %v185_v43 = vpack.c.bf16 %v10314_v42, %v10310_v40  ;;  %v10318_v44 = vpop.f32.mrb[11].mxu0 }
  0xed   :  { %14427 = vst [vmem:[#allocation16_spill] sm:$0xff] %v10318_v44  ;;  %v184_v45 = vpack.c.bf16 %v10318_v44, %v10312_v41 }
  0xef   :  { %8480 = vmatprep.mubr.msk.bf16.mxu1 %vm208_vm2, %v184_v45 }
  0xf0   :  { %8481 = vmatmul.mubr.msk.bf16.gmra.mrb[8].mxu1 %vm208_vm2, %v185_v43 }
  0xf1   :  { %v10324_v46 = vpop.f32.mrb[12].mxu0 }
  0xf2   :  { %14428 = vst [vmem:[#allocation17_spill] sm:$0xff] %v10324_v46  ;;  %v10326_v47 = vpop.f32.mrb[13].mxu0 }
  0xf3   :  { %14429 = vst [vmem:[#allocation18_spill] sm:$0xff] %v10326_v47  ;;  %v10328_v48 = vpop.f32.mrb[14].mxu0 }
  0xf4   :  { %14430 = vst [vmem:[#allocation19_spill] sm:$0xff] %v10328_v48  ;;  %v187_v49 = vpack.c.bf16 %v10328_v48, %v10324_v46  ;;  %v10332_v50 = vpop.f32.mrb[15].mxu0 }
  0xf5   :  { %14431 = vst [vmem:[#allocation20_spill] sm:$0xff] %v10332_v50  ;;  %v186_v51 = vpack.c.bf16 %v10332_v50, %v10326_v47 }
  0xf7   :  { %8484 = vmatprep.mubr.msk.bf16.mxu1 %vm208_vm2, %v186_v51 }
  0xf8   :  { %8485 = vmatmul.mubr.msk.bf16.gmra.mrb[12].mxu1 %vm208_vm2, %v187_v49 }
 0x1b3   :  { %v8474_v57 = vpop.f32.mrb[0].mxu1 }
 0x1b4   :  { %v267_v58 = vpop.f32.mrb[1].mxu1  ;;  %v276_v60 = vadd.f32 %v8474_v57, %v195_v56 }
 0x1b5   :  { %v8475_v59 = vpop.f32.mrb[2].mxu1  ;;  %v268_v63 = vadd.f32 %v267_v58, %v195_v56 }
 0x1b6   :  { %v279_v61 = vadd.f32 %v8475_v59, %v195_v56  ;;  %v270_v62 = vpop.f32.mrb[3].mxu1 }
 0x1b7   :  { %v271_v0 = vadd.f32 %v270_v62, %v195_v56 }
 0x1b8   :  { %v10346_v1 = vpack.c.bf16 %v279_v61, %v276_v60 }
 0x1b9   :  { %v10348_v2 = vpack.c.bf16 %v271_v0, %v268_v63 }
 0x1bb   :  { %342 = vrot.lane.b32.xlu0 %v10348_v2, %s10161_s15  ;;  %8496 = vmatprep.mubr.msk.bf16.mxu0 %vm53_vm1, %v10348_v2  ;;  %v8478_v3 = vpop.f32.mrb[4].mxu1 }
 0x1bc   :  { %v292_v4 = vadd.f32 %v8478_v3, %v195_v56  ;;  %v283_v5 = vpop.f32.mrb[5].mxu1 }
 0x1bd   :  { %v284_v6 = vadd.f32 %v283_v5, %v195_v56  ;;  %v8479_v7 = vpop.f32.mrb[6].mxu1 }
 0x1be   :  { %v295_v8 = vadd.f32 %v8479_v7, %v195_v56  ;;  %v286_v9 = vpop.f32.mrb[7].mxu1 }
 0x1bf   :  { %344 = vrot.lane.b32.xlu0 %v10346_v1, %s10161_s15  ;;  %v287_v10 = vadd.f32 %v286_v9, %v195_v56 }
 0x1c0   :  { %v10356_v11 = vpack.c.bf16 %v295_v8, %v292_v4 }
 0x1c1   :  { %v10358_v12 = vpack.c.bf16 %v287_v10, %v284_v6 }
 0x1c3   :  { %v8482_v13 = vpop.f32.mrb[8].mxu1  ;;  %348 = vrot.lane.b32.xlu0 %v10356_v11, %s10161_s15  ;;  %346 = vrot.lane.b32.xlu1 %v10358_v12, %s10161_s15 }
 0x1c4   :  { %v308_v14 = vadd.f32 %v8482_v13, %v195_v56  ;;  %v299_v15 = vpop.f32.mrb[9].mxu1 }
 0x1c5   :  { %v300_v16 = vadd.f32 %v299_v15, %v195_v56  ;;  %v8483_v17 = vpop.f32.mrb[10].mxu1 }
 0x1c6   :  { %v311_v18 = vadd.f32 %v8483_v17, %v195_v56  ;;  %v302_v19 = vpop.f32.mrb[11].mxu1 }
 0x1c7   :  { %v303_v20 = vadd.f32 %v302_v19, %v195_v56 }
 0x1c8   :  { %v10364_v21 = vpack.c.bf16 %v311_v18, %v308_v14 }
 0x1c9   :  { %v10366_v22 = vpack.c.bf16 %v303_v20, %v300_v16 }
 0x1cb   :  { %443 = vrot.lane.b32.xlu1 %v10366_v22, %s10161_s15  ;;  %v8486_v23 = vpop.f32.mrb[12].mxu1  ;;  %8512 = vmatprep.mubr.msk.bf16.mxu1 %vm53_vm1, %v10366_v22 }
 0x1cc   :  { %v324_v24 = vadd.f32 %v8486_v23, %v195_v56  ;;  %v315_v25 = vpop.f32.mrb[13].mxu1 }
 0x1cd   :  { %v316_v26 = vadd.f32 %v315_v25, %v195_v56  ;;  %v8487_v27 = vpop.f32.mrb[14].mxu1 }
 0x1ce   :  { %v327_v31 = vadd.f32 %v8487_v27, %v195_v56  ;;  %v318_v33 = vpop.f32.mrb[15].mxu1 }
 0x1cf   :  { %v319_v37 = vadd.f32 %v318_v33, %v195_v56  ;;  %445 = vrot.lane.b32.xlu1 %v10364_v21, %s10161_s15 }
 0x1d0   :  { %v10374_v39 = vpack.c.bf16 %v327_v31, %v324_v24 }
 0x1d1   :  { %v10376_v43 = vpack.c.bf16 %v319_v37, %v316_v26 }
 0x1d3   :  { %449 = vrot.lane.b32.xlu1 %v10374_v39, %s10161_s15  ;;  %447 = vrot.lane.b32.xlu0 %v10376_v43, %s10161_s15 }
 0x1d7   :  { %741 = vrot.lane.b32.xlu1 %v10348_v2, %s10162_s16  ;;  %743 = vrot.lane.b32.xlu0 %v10346_v1, %s10162_s16 }
 0x1db   :  { %745 = vrot.lane.b32.xlu1 %v10358_v12, %s10162_s16  ;;  %830 = vrot.lane.b32.xlu0 %v10366_v22, %s10162_s16 }
 0x1df   :  { %747 = vrot.lane.b32.xlu1 %v10356_v11, %s10162_s16 }
 0x1e3   :  { %832 = vrot.lane.b32.xlu1 %v10364_v21, %s10162_s16 }
 0x1e7   :  { %927 = vrot.lane.b32.xlu1 %v10348_v2, %s10163_s17 }
 0x1eb   :  { %836 = vrot.lane.b32.xlu1 %v10374_v39, %s10162_s16 }
 0x1ef   :  { %929 = vrot.lane.b32.xlu1 %v10346_v1, %s10163_s17 }
 0x1f3   :  { %931 = vrot.lane.b32.xlu1 %v10358_v12, %s10163_s17 }
 0x1f7   :  { %834 = vrot.lane.b32.xlu1 %v10376_v43, %s10162_s16 }
 0x22d   :  { %v343_v45 = vpop.permute.xlu0 %342 }
 0x22e   :  { %9149 = vmatprep.subr.msk.bf16.mxu0 %vm53_vm1, %v343_v45  ;;  %v363_v49 = vsel %vm53_vm1, %v343_v45, 0 }
 0x22f   :  { %8489 = vmatpush3.bf16.xpose.msra.mxu0 %v363_v49 }
 0x231   :  { %v345_v51 = vpop.permute.xlu0 %344 }
 0x232   :  { %9150 = vmatprep.subr.msk.bf16.mxu0 %vm53_vm1, %v345_v51  ;;  %v366_v55 = vsel %vm53_vm1, %v345_v51, 0 }
 0x235   :  { %v347_v52 = vpop.permute.xlu1 %346  ;;  %v349_v59 = vpop.permute.xlu0 %348 }
 0x236   :  { %v369_v57 = vsel %vm53_vm1, %v347_v52, 0  ;;  %v372_v62 = vsel %vm53_vm1, %v349_v59, 0 }
 0x237   :  { %8491 = vmatpush3.bf16.xpose.msra.mxu0 %v366_v55 }
 0x238   :  { %9151 = vmatprep.subr.msk.bf16.mxu0 %vm53_vm1, %v347_v52 }
 0x23d   :  { %v444_v56 = vpop.permute.xlu1 %443 }
 0x23e   :  { %9153 = vmatprep.subr.msk.bf16.mxu1 %vm53_vm1, %v444_v56  ;;  %v464_v58 = vsel %vm53_vm1, %v444_v56, 0 }
 0x23f   :  { %8493 = vmatpush3.bf16.xpose.msra.mxu0 %v369_v57  ;;  %8505 = vmatpush3.bf16.xpose.msra.mxu1 %v464_v58 }
 0x240   :  { %9152 = vmatprep.subr.msk.bf16.mxu0 %vm53_vm1, %v349_v59 }
 0x241   :  { %v446_v60 = vpop.permute.xlu1 %445 }
 0x242   :  { %9154 = vmatprep.subr.msk.bf16.mxu1 %vm53_vm1, %v446_v60  ;;  %v467_v63 = vsel %vm53_vm1, %v446_v60, 0 }
 0x245   :  { %v450_v61 = vpop.permute.xlu1 %449  ;;  %v448_v0 = vpop.permute.xlu0 %447 }
 0x246   :  { %v470_v4 = vsel %vm53_vm1, %v448_v0, 0  ;;  %v473_v8 = vsel %vm53_vm1, %v450_v61, 0 }
 0x247   :  { %8495 = vmatpush3.bf16.xpose.msra.mxu0 %v372_v62  ;;  %8507 = vmatpush3.bf16.xpose.msra.mxu1 %v467_v63 }
 0x248   :  { %9155 = vmatprep.subr.msk.bf16.mxu1 %vm53_vm1, %v448_v0 }
 0x249   :  { %v742_v3 = vpop.permute.xlu1 %741  ;;  %v744_v14 = vpop.permute.xlu0 %743 }
 0x24d   :  { %v746_v5 = vpop.permute.xlu1 %745  ;;  %v10442_v19 = vpop.permute.xlu0 %830 }
 0x24e   :  { %8497 = vmatmul.mubr.msk.bf16.vlgmr.msra.gmra.mrb[16].mxu0 %vm53_vm1, %v10346_v1 }
 0x24f   :  { %8500 = vmatprep.mubr.msk.bf16.mxu0 %vm53_vm1, %v10358_v12  ;;  %8509 = vmatpush3.bf16.xpose.msra.mxu1 %v470_v4 }
 0x250   :  { %9156 = vmatprep.subr.msk.bf16.mxu1 %vm53_vm1, %v450_v61 }
 0x251   :  { %v748_v6 = vpop.permute.xlu1 %747 }
 0x255   :  { %v10423_v7 = vpop.permute.xlu1 %832 }
 0x256   :  { %8501 = vmatmul.mubr.msk.bf16.gmra.mrb[20].mxu0 %vm53_vm1, %v10356_v11 }
 0x257   :  { %8511 = vmatpush3.bf16.xpose.msra.mxu1 %v473_v8 }
 0x258   :  { %8520 = vmatprep.subr.bf16.mxu1 %v742_v3 }
 0x259   :  { %v928_v9 = vpop.permute.xlu1 %927 }
 0x25a   :  { %9157 = vmatprep.subr.msk.bf16.mxu0 %vm53_vm1, %v928_v9  ;;  %v948_v10 = vsel %vm53_vm1, %v928_v9, 0 }
 0x25b   :  { %8553 = vmatpush3.bf16.xpose.msra.mxu0 %v948_v10 }
 0x25d   :  { %v10430_v13 = vpop.permute.xlu1 %836 }
 0x25e   :  { %8513 = vmatmul.mubr.msk.bf16.vlgmr.msra.gmra.mrb[16].mxu1 %vm53_vm1, %v10364_v21 }
 0x25f   :  { %8516 = vmatprep.mubr.msk.bf16.mxu1 %vm53_vm1, %v10376_v43  ;;  %8521 = vmatpush3.bf16.msra.mxu1 %v742_v3 }
 0x260   :  { %8522 = vmatprep.subr.bf16.mxu1 %v744_v14 }
 0x261   :  { %v930_v15 = vpop.permute.xlu1 %929 }
 0x262   :  { %9158 = vmatprep.subr.msk.bf16.mxu0 %vm53_vm1, %v930_v15  ;;  %v951_v16 = vsel %vm53_vm1, %v930_v15, 0 }
 0x263   :  { %8523 = vmatpush3.bf16.msra.mxu1 %v744_v14  ;;  %8555 = vmatpush3.bf16.xpose.msra.mxu0 %v951_v16 }
 0x264   :  { %8524 = vmatprep.subr.bf16.mxu1 %v746_v5 }
 0x265   :  { %v932_v17 = vpop.permute.xlu1 %931 }
 0x266   :  { %8517 = vmatmul.mubr.msk.bf16.gmra.mrb[20].mxu1 %vm53_vm1, %v10374_v39  ;;  %9159 = vmatprep.subr.msk.bf16.mxu0 %vm53_vm1, %v932_v17  ;;  %v954_v18 = vsel %vm53_vm1, %v932_v17, 0 }
 0x267   :  { %8525 = vmatpush3.bf16.msra.mxu1 %v746_v5 }
 0x268   :  { %8526 = vmatprep.subr.bf16.mxu1 %v748_v6 }
 0x26b   :  { %8527 = vmatpush3.bf16.msra.mxu1 %v748_v6  ;;  %8557 = vmatpush3.bf16.xpose.msra.mxu0 %v954_v18 }
 0x26c   :  { %8536 = vmatprep.subr.bf16.mxu1 %v10442_v19 }
 0x321   :  { %v8498_v20 = vpop.f32.mrb[16].mxu0 }
 0x322   :  { %v10445_v23 = vmul.f32 0.35355338, %v8498_v20  ;;  %v408_v24 = vpop.f32.mrb[17].mxu0 }
 0x323   :  { %v8499_v25 = vpop.f32.mrb[18].mxu0  ;;  %v10447_v26 = vmul.f32 0.35355338, %v408_v24 }
 0x324   :  { %v411_v27 = vpop.f32.mrb[19].mxu0  ;;  %v563_v31 = vsel %vm556_vm3, %v10445_v23, -inf  ;;  %v10453_v37 = vmul.f32 0.35355338, %v8499_v25 }
 0x325   :  { %v10451_v33 = vmul.f32 0.35355338, %v411_v27  ;;  %564 = vmax.xlane.f32.xlu0 %v563_v31  ;;  %v557_v49 = vsel %vm556_vm3, %v10447_v26, -inf }
 0x326   :  { %v566_v57 = vsel %vm556_vm3, %v10453_v37, -inf }
 0x327   :  { %v560_v45 = vsel %vm556_vm3, %v10451_v33, -inf }
 0x328   :  { %561 = vmax.xlane.f32.xlu1 %v560_v45 }
 0x329   :  { %v8502_v51 = vpop.f32.mrb[20].mxu0  ;;  %558 = vmax.xlane.f32.xlu0 %v557_v49 }
 0x32a   :  { %v10459_v52 = vmul.f32 0.35355338, %v8502_v51  ;;  %v424_v55 = vpop.f32.mrb[21].mxu0 }
 0x32b   :  { %v8503_v56 = vpop.f32.mrb[22].mxu0  ;;  %v10463_v58 = vmul.f32 0.35355338, %v424_v55 }
 0x32c   :  { %v10465_v59 = vmul.f32 0.35355338, %v8503_v56  ;;  %v427_v60 = vpop.f32.mrb[23].mxu0  ;;  %v575_v61 = vsel %vm556_vm3, %v10459_v52, -inf }
 0x32d   :  { %576 = vmax.xlane.f32.xlu1 %v575_v61  ;;  %567 = vmax.xlane.f32.xlu0 %v566_v57  ;;  %v10469_v62 = vmul.f32 0.35355338, %v427_v60  ;;  %v569_v63 = vsel %vm556_vm3, %v10463_v58, -inf }
 0x32e   :  { %v578_v0 = vsel %vm556_vm3, %v10465_v59, -inf }
 0x32f   :  { %v572_v8 = vsel %vm556_vm3, %v10469_v62, -inf }
 0x331   :  { %570 = vmax.xlane.f32.xlu1 %v569_v63  ;;  %579 = vmax.xlane.f32.xlu0 %v578_v0  ;;  %v8514_v3 = vpop.f32.mrb[16].mxu1  ;;  %v10515_v63 = vpop.permute.xlu1 %834 }
 0x332   :  { %v10475_v4 = vmul.f32 0.35355338, %v8514_v3  ;;  %v509_v5 = vpop.f32.mrb[17].mxu1 }
 0x333   :  { %v8515_v6 = vpop.f32.mrb[18].mxu1  ;;  %v10479_v9 = vmul.f32 0.35355338, %v509_v5 }
 0x334   :  { %v10481_v10 = vmul.f32 0.35355338, %v8515_v6  ;;  %v512_v14 = vpop.f32.mrb[19].mxu1  ;;  %v587_v15 = vsel %vm556_vm3, %v10475_v4, -inf }
 0x335   :  { %573 = vmax.xlane.f32.xlu0 %v572_v8  ;;  %588 = vmax.xlane.f32.xlu1 %v587_v15  ;;  %v10485_v16 = vmul.f32 0.35355338, %v512_v14  ;;  %v581_v17 = vsel %vm556_vm3, %v10479_v9, -inf }
 0x336   :  { %v590_v18 = vsel %vm556_vm3, %v10481_v10, -inf }
 0x337   :  { %v584_v31 = vsel %vm556_vm3, %v10485_v16, -inf }
 0x339   :  { %582 = vmax.xlane.f32.xlu1 %v581_v17  ;;  %591 = vmax.xlane.f32.xlu0 %v590_v18  ;;  %v8518_v20 = vpop.f32.mrb[20].mxu1 }
 0x33a   :  { %v525_v24 = vpop.f32.mrb[21].mxu1  ;;  %v10497_v45 = vmul.f32 0.35355338, %v8518_v20 }
 0x33b   :  { %v8519_v25 = vpop.f32.mrb[22].mxu1  ;;  %v10499_v49 = vmul.f32 0.35355338, %v525_v24 }
 0x33c   :  { %v528_v27 = vpop.f32.mrb[23].mxu1  ;;  %v10501_v51 = vmul.f32 0.35355338, %v8519_v25  ;;  %v599_v55 = vsel %vm556_vm3, %v10497_v45, -inf }
 0x33d   :  { %585 = vmax.xlane.f32.xlu0 %v584_v31  ;;  %v10505_v56 = vmul.f32 0.35355338, %v528_v27  ;;  %v593_v57 = vsel %vm556_vm3, %v10499_v49, -inf }
 0x33e   :  { %v602_v60 = vsel %vm556_vm3, %v10501_v51, -inf }
 0x33f   :  { %v596_v61 = vsel %vm556_vm3, %v10505_v56, -inf }
 0x34a   :  { %933 = vrot.lane.b32.xlu1 %v10356_v11, %s10163_s17 }
 0x353   :  { %1032 = vrot.lane.b32.xlu0 %v10366_v22, %s10163_s17 }
 0x36e   :  { %600 = vmax.xlane.f32.xlu1 %v599_v55 }
 0x372   :  { %594 = vmax.xlane.f32.xlu1 %v593_v57  ;;  %603 = vmax.xlane.f32.xlu0 %v602_v60 }
 0x376   :  { %597 = vmax.xlane.f32.xlu0 %v596_v61 }
 0x383   :  { %1034 = vrot.lane.b32.xlu1 %v10364_v21, %s10163_s17 }
 0x3b2   :  { %v565_v0 = vpop.xlane.xlu0 %564 }
 0x3b3   :  { %v607_v3 = vsub.f32 %v10445_v23, %v565_v0 }
 0x3b5   :  { %v625_v5 = vmul.f32 1.442695, %v607_v3  ;;  %v562_v6 = vpop.xlane.xlu1 %561 }
 0x3b6   :  { %v559_v8 = vpop.xlane.xlu0 %558  ;;  %v606_v17 = vsub.f32 %v10451_v33, %v562_v6 }
 0x3b7   :  { %9489 = vpow2.f32 %v625_v5  ;;  %v605_v14 = vsub.f32 %v10447_v26, %v559_v8 }
 0x3b8   :  { %v623_v27 = vmul.f32 1.442695, %v606_v17 }
 0x3b9   :  { %v621_v15 = vmul.f32 1.442695, %v605_v14 }
 0x3ba   :  { %v577_v18 = vpop.xlane.xlu1 %576  ;;  %v568_v20 = vpop.xlane.xlu0 %567 }
 0x3bb   :  { %9491 = vpow2.f32 %v621_v15  ;;  %v608_v24 = vsub.f32 %v10453_v37, %v568_v20  ;;  %v611_v31 = vsub.f32 %v10459_v52, %v577_v18 }
 0x3bd   :  { %v627_v25 = vmul.f32 1.442695, %v608_v24  ;;  %v633_v61 = vmul.f32 1.442695, %v611_v31 }
 0x3be   :  { %v571_v55 = vpop.xlane.xlu1 %570  ;;  %v580_v23 = vpop.xlane.xlu0 %579 }
 0x3bf   :  { %v609_v57 = vsub.f32 %v10463_v58, %v571_v55  ;;  %9493 = vpow2.f32 %v627_v25  ;;  %v612_v33 = vsub.f32 %v10465_v59, %v580_v23 }
 0x3c0   :  { %9495 = vpow2.f32 %v623_v27 }
 0x3c1   :  { %v10523_v60 = vpop.eup %9489  ;;  %v629_v26 = vmul.f32 1.442695, %v609_v57  ;;  %v635_v5 = vmul.f32 1.442695, %v612_v33 }
 0x3c2   :  { %v589_v0 = vpop.xlane.xlu1 %588  ;;  %v659_v37 = vsel %vm556_vm3, %v10523_v60, 0.0  ;;  %v574_v3 = vpop.xlane.xlu0 %573 }
 0x3c3   :  { %9497 = vpow2.f32 %v629_v26  ;;  %660 = vadd.xlane.f32.xlu1 %v659_v37  ;;  %v610_v58 = vsub.f32 %v10469_v62, %v574_v3  ;;  %v615_v18 = vsub.f32 %v10475_v4, %v589_v0 }
 0x3c4   :  { %9499 = vpow2.f32 %v633_v61 }
 0x3c5   :  { %v10528_v52 = vpop.eup %9491  ;;  %9501 = vpow2.f32 %v635_v5  ;;  %v631_v20 = vmul.f32 1.442695, %v610_v58  ;;  %v641_v31 = vmul.f32 1.442695, %v615_v18 }
 0x3c6   :  { %v583_v6 = vpop.xlane.xlu1 %582  ;;  %v653_v8 = vsel %vm556_vm3, %v10528_v52, 0.0  ;;  %v592_v15 = vpop.xlane.xlu0 %591 }
 0x3c7   :  { %v613_v14 = vsub.f32 %v10479_v9, %v583_v6  ;;  %654 = vadd.xlane.f32.xlu1 %v653_v8  ;;  %v616_v4 = vsub.f32 %v10481_v10, %v592_v15 }
 0x3c9   :  { %v637_v59 = vmul.f32 1.442695, %v613_v14  ;;  %v10534_v17 = vpop.eup %9493  ;;  %v643_v61 = vmul.f32 1.442695, %v616_v4 }
 0x3ca   :  { %v934_v24 = vpop.permute.xlu1 %933  ;;  %v662_v62 = vsel %vm556_vm3, %v10534_v17, 0.0  ;;  %v10541_v27 = vpop.eup %9495 }
 0x3cb   :  { %9503 = vpow2.f32 %v637_v59  ;;  %9160 = vmatprep.subr.msk.bf16.mxu0 %vm53_vm1, %v934_v24  ;;  %v957_v25 = vsel %vm53_vm1, %v934_v24, 0  ;;  %663 = vadd.xlane.f32.xlu0 %v662_v62  ;;  %v586_v23 = vpop.xlane.xlu0 %585  ;;  %v656_v57 = vsel %vm556_vm3, %v10541_v27, 0.0 }
 0x3cc   :  { %8559 = vmatpush3.bf16.xpose.msra.mxu0 %v957_v25  ;;  %9505 = vpow2.f32 %v631_v20  ;;  %v614_v33 = vsub.f32 %v10485_v16, %v586_v23 }
 0x3cd   :  { %v10543_v9 = vpop.eup %9497  ;;  %9507 = vpow2.f32 %v641_v31 }
 0x3ce   :  { %v665_v55 = vsel %vm556_vm3, %v10543_v9, 0.0  ;;  %v10550_v26 = vpop.eup %9499  ;;  %9509 = vpow2.f32 %v643_v61  ;;  %v639_v3 = vmul.f32 1.442695, %v614_v33 }
 0x3cf   :  { %666 = vadd.xlane.f32.xlu1 %v665_v55  ;;  %657 = vadd.xlane.f32.xlu0 %v656_v57  ;;  %v671_v0 = vsel %vm556_vm3, %v10550_v26, 0.0  ;;  %v10555_v37 = vpop.eup %9501  ;;  %v10581_v24 = vpop.permute.xlu0 %1032 }
 0x3d0   :  { %v674_v58 = vsel %vm556_vm3, %v10555_v37, 0.0  ;;  %9511 = vpow2.f32 %v639_v3 }
 0x3d3   :  { %672 = vadd.xlane.f32.xlu0 %v671_v0 }
 0x3d5   :  { %v10557_v10 = vpop.eup %9503 }
 0x3d6   :  { %v677_v5 = vsel %vm556_vm3, %v10557_v10, 0.0  ;;  %v10563_v6 = vpop.eup %9505 }
 0x3d7   :  { %678 = vadd.xlane.f32.xlu1 %v677_v5  ;;  %675 = vadd.xlane.f32.xlu0 %v674_v58  ;;  %v668_v16 = vsel %vm556_vm3, %v10563_v6, 0.0  ;;  %v10567_v8 = vpop.eup %9507 }
 0x3d8   :  { %v683_v14 = vsel %vm556_vm3, %v10567_v8, 0.0  ;;  %v10571_v59 = vpop.eup %9509 }
 0x3d9   :  { %v686_v15 = vsel %vm556_vm3, %v10571_v59, 0.0 }
 0x3da   :  { %v10575_v18 = vpop.eup %9511 }
 0x3db   :  { %669 = vadd.xlane.f32.xlu0 %v668_v16  ;;  %v680_v20 = vsel %vm556_vm3, %v10575_v18, 0.0 }
 0x3df   :  { %684 = vadd.xlane.f32.xlu0 %v683_v14 }
 0x3e3   :  { %687 = vadd.xlane.f32.xlu0 %v686_v15 }
 0x3e7   :  { %681 = vadd.xlane.f32.xlu0 %v680_v20 }
 0x3e8   :  { %921 = vrot.lane.b32.xlu1 %v10346_v1, %s10164_s18 }
 0x3fb   :  { %v601_v25 = vpop.xlane.xlu1 %600 }
 0x3fc   :  { %v619_v23 = vsub.f32 %v10497_v45, %v601_v25 }
 0x3fd   :  { %919 = vrot.lane.b32.xlu0 %v10348_v2, %s10164_s18 }
 0x3fe   :  { %v649_v61 = vmul.f32 1.442695, %v619_v23 }
 0x3ff   :  { %v604_v62 = vpop.xlane.xlu0 %603  ;;  %v595_v57 = vpop.xlane.xlu1 %594 }
 0x400   :  { %v617_v33 = vsub.f32 %v10499_v49, %v595_v57  ;;  %v620_v3 = vsub.f32 %v10501_v51, %v604_v62 }
 0x402   :  { %v645_v0 = vmul.f32 1.442695, %v617_v33  ;;  %v651_v58 = vmul.f32 1.442695, %v620_v3 }
 0x403   :  { %v598_v31 = vpop.xlane.xlu0 %597  ;;  %v10621_v20 = vpop.permute.xlu1 %1034 }
 0x404   :  { %v618_v4 = vsub.f32 %v10505_v56, %v598_v31 }
 0x406   :  { %v647_v55 = vmul.f32 1.442695, %v618_v4 }
 0x408   :  { %9513 = vpow2.f32 %v647_v55 }
 0x409   :  { %9515 = vpow2.f32 %v649_v61 }
 0x40a   :  { %9517 = vpow2.f32 %v645_v0 }
 0x40b   :  { %9519 = vpow2.f32 %v651_v58 }
 0x412   :  { %v10589_v5 = vpop.eup %9513 }
 0x413   :  { %v692_v16 = vsel %vm556_vm3, %v10589_v5, 0.0  ;;  %v10593_v56 = vpop.eup %9515 }
 0x414   :  { %693 = vadd.xlane.f32.xlu1 %v692_v16  ;;  %v695_v45 = vsel %vm556_vm3, %v10593_v56, 0.0  ;;  %v10597_v14 = vpop.eup %9517 }
 0x415   :  { %v689_v49 = vsel %vm556_vm3, %v10597_v14, 0.0  ;;  %v10601_v51 = vpop.eup %9519 }
 0x416   :  { %v698_v15 = vsel %vm556_vm3, %v10601_v51, 0.0 }
 0x41c   :  { %696 = vadd.xlane.f32.xlu0 %v695_v45 }
 0x420   :  { %690 = vadd.xlane.f32.xlu0 %v689_v49 }
 0x424   :  { %699 = vadd.xlane.f32.xlu0 %v698_v15 }
 0x425   :  { %1038 = vrot.lane.b32.xlu1 %v10374_v39, %s10163_s17 }
 0x429   :  { %1026 = vrot.lane.b32.xlu1 %v10364_v21, %s10164_s18 }
 0x42d   :  { %925 = vrot.lane.b32.xlu1 %v10356_v11, %s10164_s18 }
 0x431   :  { %1030 = vrot.lane.b32.xlu1 %v10374_v39, %s10164_s18 }
 0x43a   :  { %1036 = vrot.lane.b32.xlu0 %v10376_v43, %s10163_s17 }
 0x43e   :  { %1024 = vrot.lane.b32.xlu0 %v10366_v22, %s10164_s18 }
 0x442   :  { %923 = vrot.lane.b32.xlu0 %v10358_v12, %s10164_s18 }
 0x446   :  { %1028 = vrot.lane.b32.xlu0 %v10376_v43, %s10164_s18 }
 0x450   :  { %v661_v62 = vpop.xlane.xlu1 %660 }
 0x454   :  { %v655_v25 = vpop.xlane.xlu1 %654 }
 0x458   :  { %v664_v31 = vpop.xlane.xlu0 %663 }
 0x459   :  { %9521 = vrcp.f32 %v664_v31 }
 0x45a   :  { %9523 = vrcp.f32 %v655_v25 }
 0x45b   :  { %9525 = vrcp.f32 %v661_v62 }
 0x45c   :  { %v658_v4 = vpop.xlane.xlu0 %657  ;;  %v667_v57 = vpop.xlane.xlu1 %666 }
 0x45d   :  { %9527 = vrcp.f32 %v658_v4 }
 0x460   :  { %v673_v55 = vpop.xlane.xlu0 %672 }
 0x463   :  { %v9522_v23 = vpop.eup %9521 }
 0x464   :  { %v676_v61 = vpop.xlane.xlu0 %675  ;;  %v9524_v33 = vpop.eup %9523  ;;  %v720_v58 = vmul.f32 %v9522_v23, %v10534_v17 }
 0x465   :  { %v9526_v0 = vpop.eup %9525  ;;  %9529 = vrcp.f32 %v676_v61  ;;  %v717_v45 = vmul.f32 %v9524_v33, %v10528_v52  ;;  %v679_v4 = vpop.xlane.xlu1 %678 }
 0x466   :  { %9531 = vrcp.f32 %v667_v57  ;;  %v719_v15 = vmul.f32 %v9526_v0, %v10523_v60 }
 0x467   :  { %v9528_v3 = vpop.eup %9527  ;;  %9533 = vrcp.f32 %v673_v55 }
 0x468   :  { %v670_v16 = vpop.xlane.xlu0 %669  ;;  %v718_v49 = vmul.f32 %v9528_v3, %v10541_v27  ;;  %v734_v25 = vpack.c.bf16 %v720_v58, %v719_v15 }
 0x469   :  { %9535 = vrcp.f32 %v670_v16  ;;  %v922_v58 = vpop.permute.xlu1 %921 }
 0x46a   :  { %v733_v62 = vpack.c.bf16 %v718_v49, %v717_v45 }
 0x46c   :  { %8528 = vmatprep.mubr.msk.bf16.mxu1 %vm556_vm3, %v733_v62  ;;  %v685_v31 = vpop.xlane.xlu0 %684 }
 0x46d   :  { %8529 = vmatmul.mubr.msk.bf16.vlgmr.msra.gmra.mrb[24].mxu1 %vm556_vm3, %v734_v25 }
 0x46e   :  { %8537 = vmatpush3.bf16.msra.mxu1 %v10442_v19 }
 0x46f   :  { %8538 = vmatprep.subr.bf16.mxu1 %v10423_v7  ;;  %v9530_v17 = vpop.eup %9529 }
 0x470   :  { %v688_v55 = vpop.xlane.xlu0 %687  ;;  %v9532_v52 = vpop.eup %9531  ;;  %v724_v27 = vmul.f32 %v9530_v17, %v10555_v37 }
 0x471   :  { %v9534_v23 = vpop.eup %9533  ;;  %9537 = vrcp.f32 %v688_v55  ;;  %v721_v19 = vmul.f32 %v9532_v52, %v10543_v9 }
 0x472   :  { %8539 = vmatpush3.bf16.msra.mxu1 %v10423_v7  ;;  %9539 = vrcp.f32 %v679_v4  ;;  %v723_v33 = vmul.f32 %v9534_v23, %v10550_v26 }
 0x473   :  { %v9536_v60 = vpop.eup %9535  ;;  %8540 = vmatprep.subr.bf16.mxu1 %v10515_v63  ;;  %9541 = vrcp.f32 %v685_v31 }
 0x474   :  { %v682_v57 = vpop.xlane.xlu0 %681  ;;  %v722_v61 = vmul.f32 %v9536_v60, %v10563_v6  ;;  %v736_v7 = vpack.c.bf16 %v724_v27, %v723_v33 }
 0x475   :  { %9543 = vrcp.f32 %v682_v57 }
 0x476   :  { %8541 = vmatpush3.bf16.msra.mxu1 %v10515_v63  ;;  %v735_v0 = vpack.c.bf16 %v722_v61, %v721_v19 }
 0x477   :  { %8542 = vmatprep.subr.bf16.mxu1 %v10430_v13 }
 0x478   :  { %8532 = vmatprep.mubr.msk.bf16.mxu1 %vm556_vm3, %v735_v0  ;;  %v920_v3 = vpop.permute.xlu0 %919 }
 0x479   :  { %8533 = vmatmul.mubr.msk.bf16.gmra.mrb[28].mxu1 %vm556_vm3, %v736_v7  ;;  %8560 = vmatprep.mubr.msk.bf16.mxu0 %vm53_vm1, %v920_v3 }
 0x47a   :  { %8543 = vmatpush3.bf16.msra.mxu1 %v10430_v13  ;;  %8561 = vmatmul.mubr.msk.bf16.vlgmr.msra.gmra.mrb[24].mxu0 %vm53_vm1, %v922_v58  ;;  %v1053_v13 = vsel %vm53_vm1, %v10581_v24, 0 }
 0x47b   :  { %9161 = vmatprep.subr.msk.bf16.mxu1 %vm53_vm1, %v10581_v24  ;;  %v9538_v63 = vpop.eup %9537 }
 0x47c   :  { %v9540_v9 = vpop.eup %9539  ;;  %v728_v6 = vmul.f32 %v9538_v63, %v10571_v59 }
 0x47d   :  { %v9542_v26 = vpop.eup %9541  ;;  %v725_v16 = vmul.f32 %v9540_v9, %v10557_v10  ;;  %v1056_v10 = vsel %vm53_vm1, %v10621_v20, 0 }
 0x47e   :  { %v727_v49 = vmul.f32 %v9542_v26, %v10567_v8 }
 0x47f   :  { %v9544_v37 = vpop.eup %9543 }
 0x480   :  { %v726_v45 = vmul.f32 %v9544_v37, %v10575_v18  ;;  %v738_v62 = vpack.c.bf16 %v728_v6, %v727_v49 }
 0x482   :  { %v737_v15 = vpack.c.bf16 %v726_v45, %v725_v16 }
 0x484   :  { %8544 = vmatprep.mubr.msk.bf16.mxu1 %vm556_vm3, %v737_v15 }
 0x485   :  { %8545 = vmatmul.mubr.msk.bf16.vlgmr.msra.gmra.mrb[32].mxu1 %vm556_vm3, %v738_v62 }
 0x486   :  { %8569 = vmatpush3.bf16.xpose.msra.mxu1 %v1053_v13 }
 0x487   :  { %9162 = vmatprep.subr.msk.bf16.mxu1 %vm53_vm1, %v10621_v20 }
 0x48e   :  { %8571 = vmatpush3.bf16.xpose.msra.mxu1 %v1056_v10 }
 0x4a1   :  { %v694_v59 = vpop.xlane.xlu1 %693 }
 0x4a2   :  { %9545 = vrcp.f32 %v694_v59 }
 0x4a5   :  { %v1039_v31 = vpop.permute.xlu1 %1038 }
 0x4a6   :  { %v1062_v3 = vsel %vm53_vm1, %v1039_v31, 0 }
 0x4a9   :  { %v697_v18 = vpop.xlane.xlu0 %696  ;;  %v1027_v52 = vpop.permute.xlu1 %1026 }
 0x4ac   :  { %v9546_v4 = vpop.eup %9545 }
 0x4ad   :  { %v691_v8 = vpop.xlane.xlu0 %690  ;;  %v730_v60 = vmul.f32 %v9546_v4, %v10589_v5  ;;  %v926_v7 = vpop.permute.xlu1 %925 }
 0x4ae   :  { %9547 = vrcp.f32 %v691_v8 }
 0x4af   :  { %9549 = vrcp.f32 %v697_v18 }
 0x4b1   :  { %v700_v25 = vpop.xlane.xlu0 %699 }
 0x4b2   :  { %9551 = vrcp.f32 %v700_v25 }
 0x4b5   :  { %v1037_v17 = vpop.permute.xlu0 %1036 }
 0x4b6   :  { %9163 = vmatprep.subr.msk.bf16.mxu1 %vm53_vm1, %v1037_v17  ;;  %v1059_v24 = vsel %vm53_vm1, %v1037_v17, 0 }
 0x4b7   :  { %8573 = vmatpush3.bf16.xpose.msra.mxu1 %v1059_v24 }
 0x4b8   :  { %v9548_v55 = vpop.eup %9547  ;;  %9164 = vmatprep.subr.msk.bf16.mxu1 %vm53_vm1, %v1039_v31 }
 0x4b9   :  { %v1025_v20 = vpop.permute.xlu0 %1024  ;;  %v729_v23 = vmul.f32 %v9548_v55, %v10597_v14  ;;  %v9550_v27 = vpop.eup %9549 }
 0x4ba   :  { %v731_v33 = vmul.f32 %v9550_v27, %v10593_v56  ;;  %v1031_v56 = vpop.permute.xlu1 %1030 }
 0x4bb   :  { %v739_v57 = vpack.c.bf16 %v730_v60, %v729_v23 }
 0x4bc   :  { %v9552_v19 = vpop.eup %9551 }
 0x4bd   :  { %8548 = vmatprep.mubr.msk.bf16.mxu1 %vm556_vm3, %v739_v57  ;;  %v924_v61 = vpop.permute.xlu0 %923  ;;  %v732_v0 = vmul.f32 %v9552_v19, %v10601_v51 }
 0x4be   :  { %8564 = vmatprep.mubr.msk.bf16.mxu0 %vm53_vm1, %v924_v61 }
 0x4bf   :  { %8565 = vmatmul.mubr.msk.bf16.gmra.mrb[28].mxu0 %vm53_vm1, %v926_v7  ;;  %8575 = vmatpush3.bf16.xpose.msra.mxu1 %v1062_v3  ;;  %v740_v14 = vpack.c.bf16 %v732_v0, %v731_v33 }
 0x4c1   :  { %8549 = vmatmul.mubr.msk.bf16.gmra.mrb[36].mxu1 %vm556_vm3, %v740_v14  ;;  %v1029_v5 = vpop.permute.xlu0 %1028 }
 0x4c2   :  { %8576 = vmatprep.mubr.msk.bf16.mxu1 %vm53_vm1, %v1025_v20 }
 0x4c9   :  { %8577 = vmatmul.mubr.msk.bf16.vlgmr.msra.gmra.mrb[40].mxu1 %vm53_vm1, %v1027_v52 }
 0x4ca   :  { %8580 = vmatprep.mubr.msk.bf16.mxu1 %vm53_vm1, %v1029_v5 }
 0x4d1   :  { %8581 = vmatmul.mubr.msk.bf16.gmra.mrb[44].mxu1 %vm53_vm1, %v1031_v56 }
 0x540   :  { %v10674_v51 = vpop.f32.mrb[24].mxu1 }
 0x541   :  { %14433 = vst [vmem:[#allocation22_spill] sm:$0xff] %v10674_v51  ;;  %v10676_v58 = vpop.f32.mrb[25].mxu1 }
 0x542   :  { %14434 = vst [vmem:[#allocation23_spill] sm:$0xff] %v10676_v58  ;;  %v10678_v63 = vpop.f32.mrb[26].mxu1 }
 0x543   :  { %14435 = vst [vmem:[#allocation24_spill] sm:$0xff] %v10678_v63  ;;  %v10680_v9 = vpop.f32.mrb[27].mxu1 }
 0x54c   :  { %v10682_v26 = vpop.f32.mrb[28].mxu1 }
 0x54d   :  { %14436 = vst [vmem:[#allocation25_spill] sm:$0xff] %v10682_v26  ;;  %v10684_v37 = vpop.f32.mrb[29].mxu1  ;;  %v8562_v6 = vpop.f32.mrb[24].mxu0 }
 0x54e   :  { %14437 = vst [vmem:[#allocation26_spill] sm:$0xff] %v10684_v37  ;;  %v10686_v16 = vpop.f32.mrb[30].mxu1  ;;  %v993_v45 = vpop.f32.mrb[25].mxu0  ;;  %v10692_v10 = vmul.f32 0.35355338, %v8562_v6 }
 0x54f   :  { %14438 = vst [vmem:[#allocation27_spill] sm:$0xff] %v10686_v16  ;;  %v10688_v49 = vmul.f32 0.35355338, %v993_v45  ;;  %v10690_v15 = vpop.f32.mrb[31].mxu1  ;;  %v8563_v62 = vpop.f32.mrb[26].mxu0 }
 0x550   :  { %14439 = vst [vmem:[#allocation28_spill] sm:$0xff] %v10690_v15  ;;  %v996_v13 = vpop.f32.mrb[27].mxu0  ;;  %v10700_v25 = vmul.f32 0.35355338, %v8563_v62  ;;  %v1151_v31 = vsel %vm556_vm3, %v10692_v10, -inf }
 0x551   :  { %v10694_v59 = vmul.f32 0.35355338, %v996_v13  ;;  %v1145_v18 = vsel %vm556_vm3, %v10688_v49, -inf }
 0x552   :  { %1146 = vmax.xlane.f32.xlu0 %v1145_v18  ;;  %v1154_v24 = vsel %vm556_vm3, %v10700_v25, -inf }
 0x553   :  { %v1148_v8 = vsel %vm556_vm3, %v10694_v59, -inf }
 0x554   :  { %1149 = vmax.xlane.f32.xlu1 %v1148_v8 }
 0x556   :  { %1152 = vmax.xlane.f32.xlu0 %v1151_v31 }
 0x558   :  { %v10704_v17 = vpop.f32.mrb[32].mxu1 }
 0x559   :  { %14440 = vst [vmem:[#allocation29_spill] sm:$0xff] %v10704_v17  ;;  %v10706_v4 = vpop.f32.mrb[33].mxu1 }
 0x55a   :  { %14441 = vst [vmem:[#allocation30_spill] sm:$0xff] %v10706_v4  ;;  %v10710_v55 = vpop.f32.mrb[34].mxu1  ;;  %1155 = vmax.xlane.f32.xlu0 %v1154_v24 }
 0x55b   :  { %14442 = vst [vmem:[#allocation31_spill] sm:$0xff] %v10710_v55  ;;  %v10712_v52 = vpop.f32.mrb[35].mxu1 }
 0x55c   :  { %14443 = vst [vmem:[#allocation32_spill] sm:$0xff] %v10712_v52 }
 0x592   :  { %v8566_v20 = vpop.f32.mrb[28].mxu0 }
 0x593   :  { %v1009_v23 = vpop.f32.mrb[29].mxu0  ;;  %v10720_v33 = vmul.f32 0.35355338, %v8566_v20 }
 0x594   :  { %v10714_v60 = vmul.f32 0.35355338, %v1009_v23  ;;  %v10716_v27 = vpop.f32.mrb[36].mxu1  ;;  %v8567_v57 = vpop.f32.mrb[30].mxu0 }
 0x595   :  { %14444 = vst [vmem:[#allocation33_spill] sm:$0xff] %v10716_v27  ;;  %v10718_v19 = vpop.f32.mrb[37].mxu1  ;;  %v1012_v61 = vpop.f32.mrb[31].mxu0  ;;  %v10730_v5 = vmul.f32 0.35355338, %v8567_v57  ;;  %v1163_v6 = vsel %vm556_vm3, %v10720_v33, -inf }
 0x596   :  { %14445 = vst [vmem:[#allocation34_spill] sm:$0xff] %v10718_v19  ;;  %v10722_v0 = vmul.f32 0.35355338, %v1012_v61  ;;  %v10724_v7 = vpop.f32.mrb[38].mxu1  ;;  %v1157_v3 = vsel %vm556_vm3, %v10714_v60, -inf }
 0x597   :  { %14446 = vst [vmem:[#allocation35_spill] sm:$0xff] %v10724_v7  ;;  %v10728_v14 = vpop.f32.mrb[39].mxu1  ;;  %1158 = vmax.xlane.f32.xlu1 %v1157_v3  ;;  %v1166_v62 = vsel %vm556_vm3, %v10730_v5, -inf }
 0x598   :  { %14447 = vst [vmem:[#allocation36_spill] sm:$0xff] %v10728_v14  ;;  %v1160_v56 = vsel %vm556_vm3, %v10722_v0, -inf }
 0x599   :  { %1161 = vmax.xlane.f32.xlu0 %v1160_v56 }
 0x59b   :  { %1164 = vmax.xlane.f32.xlu1 %v1163_v6 }
 0x59c   :  { %v10736_v45 = vpop.f32.mrb[40].mxu1 }
 0x59d   :  { %v10740_v13 = vpop.f32.mrb[41].mxu1  ;;  %1167 = vmax.xlane.f32.xlu0 %v1166_v62 }
 0x59e   :  { %v10742_v18 = vpop.f32.mrb[42].mxu1 }
 0x59f   :  { %v10744_v8 = vpop.f32.mrb[43].mxu1 }
 0x5a4   :  { %v10746_v31 = vpop.f32.mrb[44].mxu1 }
 0x5a5   :  { %v10748_v24 = vpop.f32.mrb[45].mxu1 }
 0x5a6   :  { %v10750_v20 = vpop.f32.mrb[46].mxu1 }
 0x5a7   :  { %v10752_v23 = vpop.f32.mrb[47].mxu1 }
 0x5ac   :  { %1329 = vrot.lane.b32.xlu1 %v10348_v2, %s10165_s19 }
 0x5b0   :  { %1333 = vrot.lane.b32.xlu1 %v10358_v12, %s10165_s19 }
 0x5b3   :  { %1331 = vrot.lane.b32.xlu0 %v10346_v1, %s10165_s19 }
 0x5b4   :  { %1418 = vrot.lane.b32.xlu1 %v10366_v22, %s10165_s19 }
 0x5b7   :  { %1335 = vrot.lane.b32.xlu0 %v10356_v11, %s10165_s19 }
 0x5b8   :  { %1515 = vrot.lane.b32.xlu1 %v10348_v2, %s10166_s20 }
 0x5bb   :  { %1420 = vrot.lane.b32.xlu0 %v10364_v21, %s10165_s19 }
 0x5bc   :  { %1422 = vrot.lane.b32.xlu1 %v10376_v43, %s10165_s19 }
 0x5bf   :  { %1424 = vrot.lane.b32.xlu0 %v10374_v39, %s10165_s19 }
 0x5c0   :  { %1517 = vrot.lane.b32.xlu1 %v10346_v1, %s10166_s20 }
 0x5c4   :  { %1519 = vrot.lane.b32.xlu1 %v10358_v12, %s10166_s20 }
 0x5df   :  { %v1147_v57 = vpop.xlane.xlu0 %1146 }
 0x5e0   :  { %v1193_v61 = vsub.f32 %v10688_v49, %v1147_v57 }
 0x5e1   :  { %v1150_v3 = vpop.xlane.xlu1 %1149 }
 0x5e2   :  { %v1209_v62 = vmul.f32 1.442695, %v1193_v61  ;;  %v1194_v54 = vsub.f32 %v10694_v59, %v1150_v3 }
 0x5e3   :  { %v1153_v56 = vpop.xlane.xlu0 %1152 }
 0x5e4   :  { %v1195_v6 = vsub.f32 %v10692_v10, %v1153_v56  ;;  %v1211_v46 = vmul.f32 1.442695, %v1194_v54 }
 0x5e6   :  { %v1213_v50 = vmul.f32 1.442695, %v1195_v6 }
 0x5e7   :  { %v1156_v48 = vpop.xlane.xlu0 %1155 }
 0x5e8   :  { %9553 = vpow2.f32 %v1213_v50  ;;  %v1196_v47 = vsub.f32 %v10700_v25, %v1156_v48 }
 0x5e9   :  { %9555 = vpow2.f32 %v1209_v62 }
 0x5ea   :  { %v1215_v44 = vmul.f32 1.442695, %v1196_v47 }
 0x5ec   :  { %9557 = vpow2.f32 %v1215_v44 }
 0x5ed   :  { %9559 = vpow2.f32 %v1211_v46 }
 0x5f2   :  { %v10780_v42 = vpop.eup %9553 }
 0x5f3   :  { %v1247_v49 = vsel %vm556_vm3, %v10780_v42, 0.0  ;;  %v10784_v57 = vpop.eup %9555 }
 0x5f4   :  { %1248 = vadd.xlane.f32.xlu1 %v1247_v49  ;;  %v1241_v50 = vsel %vm556_vm3, %v10784_v57, 0.0 }
 0x5f6   :  { %v10786_v10 = vpop.eup %9557 }
 0x5f7   :  { %v1250_v48 = vsel %vm556_vm3, %v10786_v10, 0.0  ;;  %v10792_v54 = vpop.eup %9559 }
 0x5f8   :  { %1242 = vadd.xlane.f32.xlu1 %v1241_v50  ;;  %1251 = vadd.xlane.f32.xlu0 %v1250_v48  ;;  %v1244_v44 = vsel %vm556_vm3, %v10792_v54, 0.0 }
 0x5fc   :  { %1245 = vadd.xlane.f32.xlu0 %v1244_v44 }
 0x624   :  { %v1159_v46 = vpop.xlane.xlu1 %1158 }
 0x625   :  { %v1197_v59 = vsub.f32 %v10714_v60, %v1159_v46 }
 0x626   :  { %v1162_v47 = vpop.xlane.xlu0 %1161 }
 0x627   :  { %v1198_v25 = vsub.f32 %v10722_v0, %v1162_v47  ;;  %v1217_v62 = vmul.f32 1.442695, %v1197_v59  ;;  %v10803_v47 = vmul.f32 0.35355338, %v10742_v18  ;;  %v10816_v18 = vmul.f32 0.35355338, %v10744_v8 }
 0x628   :  { %v1165_v61 = vpop.xlane.xlu1 %1164  ;;  %v10827_v8 = vmul.f32 0.35355338, %v10750_v20 }
 0x629   :  { %v1219_v3 = vmul.f32 1.442695, %v1198_v25  ;;  %v1199_v56 = vsub.f32 %v10720_v33, %v1165_v61 }
 0x62a   :  { %v1168_v6 = vpop.xlane.xlu0 %1167  ;;  %v1190_v20 = vsel %vm556_vm3, %v10827_v8, -inf }
 0x62b   :  { %9561 = vpow2.f32 %v1219_v3  ;;  %v1221_v49 = vmul.f32 1.442695, %v1199_v56  ;;  %v1200_v50 = vsub.f32 %v10730_v5, %v1168_v6  ;;  %v1178_v56 = vsel %vm556_vm3, %v10803_v47, -inf }
 0x62c   :  { %v1330_v48 = vpop.permute.xlu1 %1329 }
 0x62d   :  { %9563 = vpow2.f32 %v1221_v49  ;;  %8584 = vmatprep.subr.bf16.mxu0 %v1330_v48  ;;  %v1223_v41 = vmul.f32 1.442695, %v1200_v50 }
 0x62e   :  { %8585 = vmatpush3.bf16.msra.mxu0 %v1330_v48  ;;  %v1332_v44 = vpop.permute.xlu0 %1331  ;;  %9565 = vpow2.f32 %v1217_v62  ;;  %v1172_v48 = vsel %vm556_vm3, %v10816_v18, -inf }
 0x62f   :  { %8586 = vmatprep.subr.bf16.mxu0 %v1332_v44  ;;  %9567 = vpow2.f32 %v1223_v41 }
 0x630   :  { %v1334_v60 = vpop.permute.xlu1 %1333 }
 0x632   :  { %8587 = vmatpush3.bf16.msra.mxu0 %v1332_v44  ;;  %v1336_v0 = vpop.permute.xlu0 %1335  ;;  %v10832_v44 = vmul.f32 0.35355338, %v10736_v45 }
 0x633   :  { %8588 = vmatprep.subr.bf16.mxu0 %v1334_v60 }
 0x634   :  { %v1419_v33 = vpop.permute.xlu1 %1418 }
 0x635   :  { %v10800_v46 = vpop.eup %9561  ;;  %8600 = vmatprep.subr.bf16.mxu1 %v1419_v33 }
 0x636   :  { %8589 = vmatpush3.bf16.msra.mxu0 %v1334_v60  ;;  %8601 = vmatpush3.bf16.msra.mxu1 %v1419_v33  ;;  %v1421_v5 = vpop.permute.xlu0 %1420  ;;  %v1256_v59 = vsel %vm556_vm3, %v10800_v46, 0.0  ;;  %v10842_v33 = vmul.f32 0.35355338, %v10740_v13 }
 0x637   :  { %v10807_v25 = vpop.eup %9563  ;;  %1257 = vadd.xlane.f32.xlu0 %v1256_v59  ;;  %8590 = vmatprep.subr.bf16.mxu0 %v1336_v0  ;;  %v10849_v59 = vmul.f32 0.35355338, %v10746_v31 }
 0x638   :  { %8602 = vmatprep.subr.bf16.mxu1 %v1421_v5  ;;  %v10809_v41 = vpop.permute.xlu1 %1515  ;;  %v1259_v61 = vsel %vm556_vm3, %v10807_v25, 0.0  ;;  %v10813_v3 = vpop.eup %9565 }
 0x639   :  { %1260 = vadd.xlane.f32.xlu1 %v1259_v61  ;;  %v1253_v62 = vsel %vm556_vm3, %v10813_v3, 0.0  ;;  %v10824_v49 = vpop.eup %9567  ;;  %v10854_v61 = vmul.f32 0.35355338, %v10748_v24  ;;  %v1187_v13 = vsel %vm556_vm3, %v10849_v59, -inf }
 0x63a   :  { %8591 = vmatpush3.bf16.msra.mxu0 %v1336_v0  ;;  %8603 = vmatpush3.bf16.msra.mxu1 %v1421_v5  ;;  %v1425_v50 = vpop.permute.xlu0 %1424  ;;  %v1262_v60 = vsel %vm556_vm3, %v10824_v49, 0.0  ;;  %v10837_v0 = vmul.f32 0.35355338, %v10752_v23  ;;  %v1175_v5 = vsel %vm556_vm3, %v10832_v44, -inf  ;;  %v1169_v23 = vsel %vm556_vm3, %v10842_v33, -inf }
 0x63b   :  { %1179 = vmax.xlane.f32.xlu0 %v1178_v56  ;;  %9165 = vmatprep.subr.msk.bf16.mxu0 %vm53_vm1, %v10809_v41  ;;  %v1181_v56 = vsel %vm556_vm3, %v10854_v61, -inf }
 0x63c   :  { %v1423_v6 = vpop.permute.xlu1 %1422  ;;  %v1184_v45 = vsel %vm556_vm3, %v10837_v0, -inf }
 0x63d   :  { %1254 = vadd.xlane.f32.xlu1 %v1253_v62  ;;  %8604 = vmatprep.subr.bf16.mxu1 %v1423_v6 }
 0x63e   :  { %8605 = vmatpush3.bf16.msra.mxu1 %v1423_v6 }
 0x63f   :  { %1173 = vmax.xlane.f32.xlu0 %v1172_v48  ;;  %8606 = vmatprep.subr.bf16.mxu1 %v1425_v50 }
 0x640   :  { %v1518_v31 = vpop.permute.xlu1 %1517 }
 0x641   :  { %1263 = vadd.xlane.f32.xlu1 %v1262_v60 }
 0x642   :  { %8607 = vmatpush3.bf16.msra.mxu1 %v1425_v50 }
 0x643   :  { %1191 = vmax.xlane.f32.xlu0 %v1190_v20 }
 0x644   :  { %v1520_v24 = vpop.permute.xlu1 %1519 }
 0x645   :  { %1176 = vmax.xlane.f32.xlu1 %v1175_v5 }
 0x647   :  { %1185 = vmax.xlane.f32.xlu0 %v1184_v45 }
 0x649   :  { %1170 = vmax.xlane.f32.xlu1 %v1169_v23 }
 0x64d   :  { %1188 = vmax.xlane.f32.xlu1 %v1187_v13 }
 0x651   :  { %1182 = vmax.xlane.f32.xlu1 %v1181_v56 }
 0x65d   :  { %1620 = vrot.lane.b32.xlu0 %v10366_v22, %s10166_s20 }
 0x662   :  { %1521 = vrot.lane.b32.xlu1 %v10356_v11, %s10166_s20 }
 0x666   :  { %1622 = vrot.lane.b32.xlu1 %v10364_v21, %s10166_s20 }
 0x681   :  { %v1249_v6 = vpop.xlane.xlu1 %1248 }
 0x685   :  { %v1243_v62 = vpop.xlane.xlu1 %1242  ;;  %v1252_v50 = vpop.xlane.xlu0 %1251 }
 0x686   :  { %9569 = vrcp.f32 %v1252_v50 }
 0x687   :  { %9571 = vrcp.f32 %v1243_v62 }
 0x688   :  { %9573 = vrcp.f32 %v1249_v6  ;;  %v1536_v6 = vsel %vm53_vm1, %v10809_v41, 0 }
 0x689   :  { %v1246_v48 = vpop.xlane.xlu0 %1245 }
 0x68a   :  { %9575 = vrcp.f32 %v1246_v48 }
 0x690   :  { %v9570_v60 = vpop.eup %9569 }
 0x691   :  { %v9572_v20 = vpop.eup %9571  ;;  %v1308_v23 = vmul.f32 %v9570_v60, %v10786_v10  ;;  %v1539_v10 = vsel %vm53_vm1, %v1518_v31, 0 }
 0x692   :  { %v9574_v5 = vpop.eup %9573  ;;  %v1305_v13 = vmul.f32 %v9572_v20, %v10784_v57  ;;  %v1542_v57 = vsel %vm53_vm1, %v1520_v24, 0 }
 0x693   :  { %v1307_v40 = vmul.f32 %v9574_v5, %v10780_v42 }
 0x694   :  { %v9576_v45 = vpop.eup %9575 }
 0x695   :  { %v1306_v56 = vmul.f32 %v9576_v45, %v10792_v54  ;;  %v1322_v36 = vpack.c.bf16 %v1308_v23, %v1307_v40 }
 0x697   :  { %v1321_v38 = vpack.c.bf16 %v1306_v56, %v1305_v13 }
 0x699   :  { %8592 = vmatprep.mubr.msk.bf16.mxu0 %vm556_vm3, %v1321_v38 }
 0x69a   :  { %8593 = vmatmul.mubr.msk.bf16.vlgmr.msra.gmra.mrb[32].mxu0 %vm556_vm3, %v1322_v36 }
 0x69b   :  { %8617 = vmatpush3.bf16.xpose.msra.mxu0 %v1536_v6 }
 0x69c   :  { %9166 = vmatprep.subr.msk.bf16.mxu0 %vm53_vm1, %v1518_v31 }
 0x6a3   :  { %8619 = vmatpush3.bf16.xpose.msra.mxu0 %v1539_v10 }
 0x6a4   :  { %9167 = vmatprep.subr.msk.bf16.mxu0 %vm53_vm1, %v1520_v24 }
 0x6ab   :  { %8621 = vmatpush3.bf16.xpose.msra.mxu0 %v1542_v57 }
 0x6c4   :  { %v1258_v42 = vpop.xlane.xlu0 %1257 }
 0x6c5   :  { %9577 = vrcp.f32 %v1258_v42 }
 0x6c6   :  { %v1261_v40 = vpop.xlane.xlu1 %1260 }
 0x6c8   :  { %v1180_v54 = vpop.xlane.xlu0 %1179 }
 0x6c9   :  { %v1204_v50 = vsub.f32 %v10803_v47, %v1180_v54 }
 0x6ca   :  { %v1255_v38 = vpop.xlane.xlu1 %1254 }
 0x6cb   :  { %9579 = vrcp.f32 %v1255_v38  ;;  %v1231_v5 = vmul.f32 1.442695, %v1204_v50 }
 0x6cc   :  { %v1174_v36 = vpop.xlane.xlu0 %1173  ;;  %9581 = vrcp.f32 %v1261_v40 }
 0x6cd   :  { %v1202_v45 = vsub.f32 %v10816_v18, %v1174_v36 }
 0x6ce   :  { %v1264_v41 = vpop.xlane.xlu1 %1263 }
 0x6cf   :  { %9583 = vrcp.f32 %v1264_v41  ;;  %v9578_v48 = vpop.eup %9577 }
 0x6d0   :  { %v1192_v62 = vpop.xlane.xlu0 %1191  ;;  %v1310_v6 = vmul.f32 %v9578_v48, %v10800_v46 }
 0x6d2   :  { %v1177_v31 = vpop.xlane.xlu1 %1176 }
 0x6d3   :  { %v1203_v60 = vsub.f32 %v10832_v44, %v1177_v31  ;;  %v1227_v44 = vmul.f32 1.442695, %v1202_v45 }
 0x6d4   :  { %v1186_v20 = vpop.xlane.xlu0 %1185 }
 0x6d5   :  { %v9580_v24 = vpop.eup %9579  ;;  %v1229_v23 = vmul.f32 1.442695, %v1203_v60  ;;  %v1206_v45 = vsub.f32 %v10837_v0, %v1186_v20 }
 0x6d6   :  { %v1171_v13 = vpop.xlane.xlu1 %1170  ;;  %v1309_v56 = vmul.f32 %v9580_v24, %v10813_v3  ;;  %v9582_v10 = vpop.eup %9581 }
 0x6d7   :  { %9585 = vpow2.f32 %v1229_v23  ;;  %v1201_v57 = vsub.f32 %v10842_v33, %v1171_v13  ;;  %v1311_v3 = vmul.f32 %v9582_v10, %v10807_v25  ;;  %v1235_v23 = vmul.f32 1.442695, %v1206_v45 }
 0x6d8   :  { %v10884_v47 = vpop.permute.xlu0 %1620  ;;  %v1323_v42 = vpack.c.bf16 %v1310_v6, %v1309_v56  ;;  %9587 = vpow2.f32 %v1231_v5  ;;  %v1208_v10 = vsub.f32 %v10827_v8, %v1192_v62 }
 0x6d9   :  { %v9584_v40 = vpop.eup %9583  ;;  %v1225_v54 = vmul.f32 1.442695, %v1201_v57  ;;  %9169 = vmatprep.subr.msk.bf16.mxu1 %vm53_vm1, %v10884_v47 }
 0x6da   :  { %v1189_v18 = vpop.xlane.xlu1 %1188  ;;  %8596 = vmatprep.mubr.msk.bf16.mxu0 %vm556_vm3, %v1323_v42  ;;  %v1312_v46 = vmul.f32 %v9584_v40, %v10824_v49  ;;  %v1239_v42 = vmul.f32 1.442695, %v1208_v10 }
 0x6db   :  { %9589 = vpow2.f32 %v1225_v54  ;;  %v1207_v13 = vsub.f32 %v10849_v59, %v1189_v18 }
 0x6dc   :  { %v1324_v38 = vpack.c.bf16 %v1312_v46, %v1311_v3  ;;  %9591 = vpow2.f32 %v1227_v44 }
 0x6dd   :  { %9593 = vpow2.f32 %v1235_v23  ;;  %v1237_v56 = vmul.f32 1.442695, %v1207_v13 }
 0x6de   :  { %v1183_v33 = vpop.xlane.xlu1 %1182  ;;  %8597 = vmatmul.mubr.msk.bf16.gmra.mrb[36].mxu0 %vm556_vm3, %v1324_v38 }
 0x6df   :  { %v1205_v6 = vsub.f32 %v10854_v61, %v1183_v33  ;;  %9595 = vpow2.f32 %v1237_v56 }
 0x6e1   :  { %v10892_v36 = vpop.eup %9585  ;;  %v1233_v57 = vmul.f32 1.442695, %v1205_v6 }
 0x6e2   :  { %v1522_v41 = vpop.permute.xlu1 %1521  ;;  %v1271_v50 = vsel %vm556_vm3, %v10892_v36, 0.0  ;;  %v10896_v31 = vpop.eup %9587 }
 0x6e3   :  { %1272 = vadd.xlane.f32.xlu0 %v1271_v50  ;;  %9168 = vmatprep.subr.msk.bf16.mxu0 %vm53_vm1, %v1522_v41  ;;  %v1545_v25 = vsel %vm53_vm1, %v1522_v41, 0  ;;  %v1274_v60 = vsel %vm556_vm3, %v10896_v31, 0.0  ;;  %9597 = vpow2.f32 %v1233_v57 }
 0x6e4   :  { %8623 = vmatpush3.bf16.xpose.msra.mxu0 %v1545_v25  ;;  %9599 = vpow2.f32 %v1239_v42 }
 0x6e5   :  { %v10900_v49 = vpop.eup %9589 }
 0x6e6   :  { %v1265_v48 = vsel %vm556_vm3, %v10900_v49, 0.0  ;;  %v10906_v24 = vpop.eup %9591  ;;  %v1623_v3 = vpop.permute.xlu1 %1622 }
 0x6e7   :  { %1266 = vadd.xlane.f32.xlu1 %v1265_v48  ;;  %1275 = vadd.xlane.f32.xlu0 %v1274_v60  ;;  %v1268_v5 = vsel %vm556_vm3, %v10906_v24, 0.0  ;;  %v10918_v40 = vpop.eup %9593 }
 0x6e8   :  { %v1280_v44 = vsel %vm556_vm3, %v10918_v40, 0.0 }
 0x6e9   :  { %v10922_v0 = vpop.eup %9595 }
 0x6ea   :  { %v1283_v59 = vsel %vm556_vm3, %v10922_v0, 0.0 }
 0x6eb   :  { %1269 = vadd.xlane.f32.xlu0 %v1268_v5 }
 0x6ed   :  { %v10926_v20 = vpop.eup %9597 }
 0x6ee   :  { %v1277_v8 = vsel %vm556_vm3, %v10926_v20, 0.0  ;;  %v10930_v61 = vpop.eup %9599 }
 0x6ef   :  { %v1286_v62 = vsel %vm556_vm3, %v10930_v61, 0.0 }
 0x6f8   :  { %1509 = vrot.lane.b32.xlu1 %v10346_v1, %s10167_s21 }
 0x701   :  { %1507 = vrot.lane.b32.xlu0 %v10348_v2, %s10167_s21 }
 0x71c   :  { %1281 = vadd.xlane.f32.xlu1 %v1280_v44 }
 0x720   :  { %1284 = vadd.xlane.f32.xlu0 %v1283_v59 }
 0x724   :  { %1278 = vadd.xlane.f32.xlu0 %v1277_v8 }
 0x728   :  { %1287 = vadd.xlane.f32.xlu0 %v1286_v62  ;;  %v1641_v62 = vsel %vm53_vm1, %v10884_v47, 0 }
 0x72d   :  { %1626 = vrot.lane.b32.xlu1 %v10374_v39, %s10166_s20 }
 0x731   :  { %1614 = vrot.lane.b32.xlu1 %v10364_v21, %s10167_s21 }
 0x735   :  { %1513 = vrot.lane.b32.xlu1 %v10356_v11, %s10167_s21 }
 0x739   :  { %1618 = vrot.lane.b32.xlu1 %v10374_v39, %s10167_s21 }
 0x73e   :  { %1624 = vrot.lane.b32.xlu0 %v10376_v43, %s10166_s20 }
 0x742   :  { %1612 = vrot.lane.b32.xlu0 %v10366_v22, %s10167_s21 }
 0x746   :  { %1511 = vrot.lane.b32.xlu0 %v10358_v12, %s10167_s21 }
 0x74a   :  { %1616 = vrot.lane.b32.xlu0 %v10376_v43, %s10167_s21 }
 0x76d   :  { %v10950_v54 = vpop.f32.mrb[32].mxu0 }
 0x76e   :  { %v10952_v18 = vpop.f32.mrb[33].mxu0 }
 0x76f   :  { %v10954_v46 = vpop.f32.mrb[34].mxu0 }
 0x770   :  { %v10958_v33 = vpop.f32.mrb[35].mxu0  ;;  %v1273_v41 = vpop.xlane.xlu0 %1272 }
 0x774   :  { %v1267_v25 = vpop.xlane.xlu1 %1266  ;;  %v1276_v48 = vpop.xlane.xlu0 %1275 }
 0x775   :  { %9601 = vrcp.f32 %v1276_v48 }
 0x776   :  { %9603 = vrcp.f32 %v1267_v25 }
 0x777   :  { %9605 = vrcp.f32 %v1273_v41 }
 0x778   :  { %v1270_v60 = vpop.xlane.xlu0 %1269  ;;  %v1510_v45 = vpop.permute.xlu1 %1509 }
 0x779   :  { %9607 = vrcp.f32 %v1270_v60 }
 0x77c   :  { %v1508_v5 = vpop.permute.xlu0 %1507 }
 0x77d   :  { %8624 = vmatprep.mubr.msk.bf16.mxu0 %vm53_vm1, %v1508_v5 }
 0x77e   :  { %8625 = vmatmul.mubr.msk.bf16.vlgmr.msra.gmra.mrb[40].mxu0 %vm53_vm1, %v1510_v45 }
 0x77f   :  { %v9602_v23 = vpop.eup %9601 }
 0x780   :  { %v9604_v13 = vpop.eup %9603  ;;  %v1316_v10 = vmul.f32 %v9602_v23, %v10896_v31  ;;  %v1644_v31 = vsel %vm53_vm1, %v1623_v3, 0 }
 0x781   :  { %v9606_v56 = vpop.eup %9605  ;;  %v1313_v57 = vmul.f32 %v9604_v13, %v10900_v49 }
 0x782   :  { %v1315_v44 = vmul.f32 %v9606_v56, %v10892_v36 }
 0x783   :  { %v9608_v6 = vpop.eup %9607 }
 0x784   :  { %v1314_v42 = vmul.f32 %v9608_v6, %v10906_v24  ;;  %v1326_v8 = vpack.c.bf16 %v1316_v10, %v1315_v44 }
 0x786   :  { %v1325_v59 = vpack.c.bf16 %v1314_v42, %v1313_v57 }
 0x788   :  { %8608 = vmatprep.mubr.msk.bf16.mxu1 %vm556_vm3, %v1325_v59 }
 0x789   :  { %8609 = vmatmul.mubr.msk.bf16.vlgmr.msra.gmra.mrb[48].mxu1 %vm556_vm3, %v1326_v8 }
 0x78a   :  { %8633 = vmatpush3.bf16.xpose.msra.mxu1 %v1641_v62 }
 0x78b   :  { %9170 = vmatprep.subr.msk.bf16.mxu1 %vm53_vm1, %v1623_v3 }
 0x792   :  { %8635 = vmatpush3.bf16.xpose.msra.mxu1 %v1644_v31 }
 0x7a9   :  { %v1282_v41 = vpop.xlane.xlu1 %1281 }
 0x7aa   :  { %9609 = vrcp.f32 %v1282_v41 }
 0x7ad   :  { %v1285_v49 = vpop.xlane.xlu0 %1284  ;;  %v1627_v45 = vpop.permute.xlu1 %1626 }
 0x7b1   :  { %v10974_v24 = vpop.f32.mrb[36].mxu0  ;;  %v1279_v36 = vpop.xlane.xlu0 %1278 }
 0x7b2   :  { %v10976_v25 = vpop.f32.mrb[37].mxu0  ;;  %9611 = vrcp.f32 %v1279_v36  ;;  %v1615_v10 = vpop.permute.xlu1 %1614 }
 0x7b3   :  { %v10978_v48 = vpop.f32.mrb[38].mxu0  ;;  %9613 = vrcp.f32 %v1285_v49 }
 0x7b4   :  { %v10982_v60 = vpop.f32.mrb[39].mxu0  ;;  %v9610_v13 = vpop.eup %9609 }
 0x7b5   :  { %v1288_v5 = vpop.xlane.xlu0 %1287  ;;  %v1318_v44 = vmul.f32 %v9610_v13, %v10918_v40 }
 0x7b6   :  { %9615 = vrcp.f32 %v1288_v5  ;;  %v1514_v36 = vpop.permute.xlu1 %1513  ;;  %v1650_v5 = vsel %vm53_vm1, %v1627_v45, 0 }
 0x7b9   :  { %v1625_v23 = vpop.permute.xlu0 %1624 }
 0x7ba   :  { %9171 = vmatprep.subr.msk.bf16.mxu1 %vm53_vm1, %v1625_v23  ;;  %v1647_v56 = vsel %vm53_vm1, %v1625_v23, 0 }
 0x7bb   :  { %8637 = vmatpush3.bf16.xpose.msra.mxu1 %v1647_v56 }
 0x7bc   :  { %v9612_v6 = vpop.eup %9611  ;;  %9172 = vmatprep.subr.msk.bf16.mxu1 %vm53_vm1, %v1627_v45 }
 0x7bd   :  { %v1613_v57 = vpop.permute.xlu0 %1612  ;;  %v1317_v42 = vmul.f32 %v9612_v6, %v10926_v20  ;;  %v9614_v59 = vpop.eup %9613 }
 0x7be   :  { %v1319_v49 = vmul.f32 %v9614_v59, %v10922_v0  ;;  %v1619_v0 = vpop.permute.xlu1 %1618 }
 0x7bf   :  { %v1327_v8 = vpack.c.bf16 %v1318_v44, %v1317_v42 }
 0x7c0   :  { %v9616_v62 = vpop.eup %9615 }
 0x7c1   :  { %8612 = vmatprep.mubr.msk.bf16.mxu1 %vm556_vm3, %v1327_v8  ;;  %v1512_v31 = vpop.permute.xlu0 %1511  ;;  %v1320_v41 = vmul.f32 %v9616_v62, %v10930_v61 }
 0x7c2   :  { %8628 = vmatprep.mubr.msk.bf16.mxu0 %vm53_vm1, %v1512_v31 }
 0x7c3   :  { %8629 = vmatmul.mubr.msk.bf16.gmra.mrb[44].mxu0 %vm53_vm1, %v1514_v36  ;;  %8639 = vmatpush3.bf16.xpose.msra.mxu1 %v1650_v5  ;;  %v1328_v20 = vpack.c.bf16 %v1320_v41, %v1319_v49 }
 0x7c5   :  { %8613 = vmatmul.mubr.msk.bf16.gmra.mrb[52].mxu1 %vm556_vm3, %v1328_v20  ;;  %v1617_v40 = vpop.permute.xlu0 %1616 }
 0x7c6   :  { %8640 = vmatprep.mubr.msk.bf16.mxu1 %vm53_vm1, %v1613_v57 }
 0x7cd   :  { %8641 = vmatmul.mubr.msk.bf16.vlgmr.msra.gmra.mrb[56].mxu1 %vm53_vm1, %v1615_v10 }
 0x7ce   :  { %8644 = vmatprep.mubr.msk.bf16.mxu1 %vm53_vm1, %v1617_v40 }
 0x7d5   :  { %8645 = vmatmul.mubr.msk.bf16.gmra.mrb[60].mxu1 %vm53_vm1, %v1619_v0 }
 0x851   :  { %v8626_v61 = vpop.f32.mrb[40].mxu0 }
 0x852   :  { %v1581_v23 = vpop.f32.mrb[41].mxu0  ;;  %v11004_v6 = vmul.f32 0.35355338, %v8626_v61 }
 0x853   :  { %v11002_v13 = vmul.f32 0.35355338, %v1581_v23  ;;  %v8627_v45 = vpop.f32.mrb[42].mxu0 }
 0x854   :  { %v1584_v56 = vpop.f32.mrb[43].mxu0  ;;  %v11012_v44 = vmul.f32 0.35355338, %v8627_v45  ;;  %v1739_v59 = vsel %vm556_vm3, %v11004_v6, -inf }
 0x855   :  { %v11006_v42 = vmul.f32 0.35355338, %v1584_v56  ;;  %v1733_v57 = vsel %vm556_vm3, %v11002_v13, -inf }
 0x856   :  { %1734 = vmax.xlane.f32.xlu0 %v1733_v57  ;;  %v1742_v31 = vsel %vm556_vm3, %v11012_v44, -inf }
 0x857   :  { %v1736_v10 = vsel %vm556_vm3, %v11006_v42, -inf }
 0x858   :  { %1737 = vmax.xlane.f32.xlu1 %v1736_v10 }
 0x85a   :  { %1740 = vmax.xlane.f32.xlu0 %v1739_v59 }
 0x85c   :  { %v11016_v8 = vpop.f32.mrb[48].mxu1 }
 0x85d   :  { %v11018_v62 = vpop.f32.mrb[49].mxu1 }
 0x85e   :  { %v11022_v49 = vpop.f32.mrb[50].mxu1  ;;  %1743 = vmax.xlane.f32.xlu0 %v1742_v31 }
 0x85f   :  { %v11026_v36 = vpop.f32.mrb[51].mxu1 }
 0x896   :  { %v8630_v20 = vpop.f32.mrb[44].mxu0 }
 0x897   :  { %v1597_v40 = vpop.f32.mrb[45].mxu0  ;;  %v11036_v57 = vmul.f32 0.35355338, %v8630_v20 }
 0x898   :  { %v11030_v0 = vmul.f32 0.35355338, %v1597_v40  ;;  %v11032_v61 = vpop.f32.mrb[52].mxu1  ;;  %v8631_v23 = vpop.f32.mrb[46].mxu0 }
 0x899   :  { %14448 = vst [vmem:[#allocation37_spill] sm:$0xff] %v11032_v61  ;;  %v11034_v45 = vpop.f32.mrb[53].mxu1  ;;  %v1600_v56 = vpop.f32.mrb[47].mxu0  ;;  %v11048_v41 = vmul.f32 0.35355338, %v8631_v23 }
 0x89a   :  { %14449 = vst [vmem:[#allocation38_spill] sm:$0xff] %v11034_v45  ;;  %v11038_v10 = vmul.f32 0.35355338, %v1600_v56  ;;  %v11040_v59 = vpop.f32.mrb[54].mxu1  ;;  %v1745_v31 = vsel %vm556_vm3, %v11030_v0, -inf  ;;  %v1751_v56 = vsel %vm556_vm3, %v11036_v57, -inf }
 0x89b   :  { %14450 = vst [vmem:[#allocation39_spill] sm:$0xff] %v11040_v59  ;;  %v11046_v40 = vpop.f32.mrb[55].mxu1  ;;  %1746 = vmax.xlane.f32.xlu1 %v1745_v31  ;;  %v1754_v5 = vsel %vm556_vm3, %v11048_v41, -inf }
 0x89c   :  { %14451 = vst [vmem:[#allocation40_spill] sm:$0xff] %v11046_v40  ;;  %v1748_v20 = vsel %vm556_vm3, %v11038_v10, -inf }
 0x89d   :  { %1749 = vmax.xlane.f32.xlu0 %v1748_v20 }
 0x89f   :  { %1752 = vmax.xlane.f32.xlu1 %v1751_v56 }
 0x8a0   :  { %v11056_v47 = vpop.f32.mrb[56].mxu1 }
 0x8a1   :  { %v11060_v38 = vpop.f32.mrb[57].mxu1  ;;  %1755 = vmax.xlane.f32.xlu0 %v1754_v5 }
 0x8a2   :  { %v11062_v23 = vpop.f32.mrb[58].mxu1 }
 0x8a3   :  { %v11064_v31 = vpop.f32.mrb[59].mxu1 }
 0x8a8   :  { %v11066_v3 = vpop.f32.mrb[60].mxu1 }
 0x8a9   :  { %v11068_v50 = vpop.f32.mrb[61].mxu1 }
 0x8aa   :  { %v11070_v20 = vpop.f32.mrb[62].mxu1 }
 0x8ab   :  { %v11072_v35 = vpop.f32.mrb[63].mxu1 }
 0x8b0   :  { %1917 = vrot.lane.b32.xlu1 %v10348_v2, %s10168_s22 }
 0x8b4   :  { %1921 = vrot.lane.b32.xlu1 %v10358_v12, %s10168_s22 }
 0x8b7   :  { %1919 = vrot.lane.b32.xlu0 %v10346_v1, %s10168_s22 }
 0x8b8   :  { %2006 = vrot.lane.b32.xlu1 %v10366_v22, %s10168_s22 }
 0x8bb   :  { %1923 = vrot.lane.b32.xlu0 %v10356_v11, %s10168_s22 }
 0x8bc   :  { %2103 = vrot.lane.b32.xlu1 %v10348_v2, %s10169_s23 }
 0x8bf   :  { %2008 = vrot.lane.b32.xlu0 %v10364_v21, %s10168_s22 }
 0x8c0   :  { %2010 = vrot.lane.b32.xlu1 %v10376_v43, %s10168_s22 }
 0x8c3   :  { %2012 = vrot.lane.b32.xlu0 %v10374_v39, %s10168_s22 }
 0x8c4   :  { %2105 = vrot.lane.b32.xlu1 %v10346_v1, %s10169_s23 }
 0x8c7   :  { %2208 = vrot.lane.b32.xlu0 %v10366_v22, %s10169_s23 }
 0x8c8   :  { %2107 = vrot.lane.b32.xlu1 %v10358_v12, %s10169_s23 }
 0x8cc   :  { %2109 = vrot.lane.b32.xlu1 %v10356_v11, %s10169_s23 }
 0x8d0   :  { %2210 = vrot.lane.b32.xlu1 %v10364_v21, %s10169_s23 }
 0x8e3   :  { %v1735_v5 = vpop.xlane.xlu0 %1734 }
 0x8e4   :  { %v1781_v56 = vsub.f32 %v11002_v13, %v1735_v5 }
 0x8e5   :  { %v1738_v34 = vpop.xlane.xlu1 %1737 }
 0x8e6   :  { %v1797_v29 = vmul.f32 1.442695, %v1781_v56  ;;  %v1782_v28 = vsub.f32 %v11006_v42, %v1738_v34 }
 0x8e7   :  { %v1741_v32 = vpop.xlane.xlu0 %1740 }
 0x8e8   :  { %v1783_v30 = vsub.f32 %v11004_v6, %v1741_v32  ;;  %v1799_v27 = vmul.f32 1.442695, %v1782_v28 }
 0x8ea   :  { %v1801_v53 = vmul.f32 1.442695, %v1783_v30 }
 0x8eb   :  { %v1744_v19 = vpop.xlane.xlu0 %1743 }
 0x8ec   :  { %9617 = vpow2.f32 %v1801_v53  ;;  %v1784_v14 = vsub.f32 %v11012_v44, %v1744_v19 }
 0x8ed   :  { %9619 = vpow2.f32 %v1797_v29 }
 0x8ee   :  { %v1803_v7 = vmul.f32 1.442695, %v1784_v14 }
 0x8f0   :  { %9621 = vpow2.f32 %v1803_v7 }
 0x8f1   :  { %9623 = vpow2.f32 %v1799_v27 }
 0x8f6   :  { %v11106_v4 = vpop.eup %9617 }
 0x8f7   :  { %v1835_v13 = vsel %vm556_vm3, %v11106_v4, 0.0  ;;  %v11110_v5 = vpop.eup %9619 }
 0x8f8   :  { %1836 = vadd.xlane.f32.xlu1 %v1835_v13  ;;  %v1829_v30 = vsel %vm556_vm3, %v11110_v5, 0.0 }
 0x8fa   :  { %v11112_v32 = vpop.eup %9621 }
 0x8fb   :  { %v1838_v29 = vsel %vm556_vm3, %v11112_v32, 0.0  ;;  %v11118_v28 = vpop.eup %9623 }
 0x8fc   :  { %1830 = vadd.xlane.f32.xlu1 %v1829_v30  ;;  %1839 = vadd.xlane.f32.xlu0 %v1838_v29  ;;  %v1832_v34 = vsel %vm556_vm3, %v11118_v28, 0.0 }
 0x900   :  { %1833 = vadd.xlane.f32.xlu0 %v1832_v34 }
 0x928   :  { %v1747_v53 = vpop.xlane.xlu1 %1746 }
 0x929   :  { %v1785_v19 = vsub.f32 %v11030_v0, %v1747_v53 }
 0x92a   :  { %v1750_v27 = vpop.xlane.xlu0 %1749 }
 0x92b   :  { %v1786_v7 = vsub.f32 %v11038_v10, %v1750_v27  ;;  %v1805_v56 = vmul.f32 1.442695, %v1785_v19  ;;  %v11129_v27 = vmul.f32 0.35355338, %v11062_v23  ;;  %v11142_v23 = vmul.f32 0.35355338, %v11064_v31 }
 0x92c   :  { %v1753_v14 = vpop.xlane.xlu1 %1752  ;;  %v11153_v31 = vmul.f32 0.35355338, %v11070_v20 }
 0x92d   :  { %v1807_v6 = vmul.f32 1.442695, %v1786_v7  ;;  %v1787_v42 = vsub.f32 %v11036_v57, %v1753_v14 }
 0x92e   :  { %v1756_v44 = vpop.xlane.xlu0 %1755  ;;  %v1778_v20 = vsel %vm556_vm3, %v11153_v31, -inf }
 0x92f   :  { %9625 = vpow2.f32 %v1807_v6  ;;  %v1809_v13 = vmul.f32 1.442695, %v1787_v42  ;;  %v1788_v30 = vsub.f32 %v11048_v41, %v1756_v44  ;;  %v1766_v42 = vsel %vm556_vm3, %v11129_v27, -inf }
 0x930   :  { %v1918_v29 = vpop.permute.xlu1 %1917 }
 0x931   :  { %9627 = vpow2.f32 %v1809_v13  ;;  %8648 = vmatprep.subr.bf16.mxu0 %v1918_v29  ;;  %v1811_v52 = vmul.f32 1.442695, %v1788_v30 }
 0x932   :  { %8649 = vmatpush3.bf16.msra.mxu0 %v1918_v29  ;;  %v1920_v34 = vpop.permute.xlu0 %1919  ;;  %9629 = vpow2.f32 %v1805_v56  ;;  %v1760_v29 = vsel %vm556_vm3, %v11142_v23, -inf }
 0x933   :  { %8650 = vmatprep.subr.bf16.mxu0 %v1920_v34  ;;  %9631 = vpow2.f32 %v1811_v52 }
 0x934   :  { %v1922_v0 = vpop.permute.xlu1 %1921 }
 0x936   :  { %8651 = vmatpush3.bf16.msra.mxu0 %v1920_v34  ;;  %v1924_v10 = vpop.permute.xlu0 %1923  ;;  %v11158_v34 = vmul.f32 0.35355338, %v11056_v47  ;;  %v11172_v47 = vmul.f32 0.35355338, %v11060_v38 }
 0x937   :  { %8652 = vmatprep.subr.bf16.mxu0 %v1922_v0 }
 0x938   :  { %v2007_v57 = vpop.permute.xlu1 %2006 }
 0x939   :  { %v11126_v53 = vpop.eup %9625  ;;  %8664 = vmatprep.subr.bf16.mxu1 %v2007_v57 }
 0x93a   :  { %8653 = vmatpush3.bf16.msra.mxu0 %v1922_v0  ;;  %8665 = vmatpush3.bf16.msra.mxu1 %v2007_v57  ;;  %v2009_v41 = vpop.permute.xlu0 %2008  ;;  %v1844_v19 = vsel %vm556_vm3, %v11126_v53, 0.0 }
 0x93b   :  { %v11133_v7 = vpop.eup %9627  ;;  %1845 = vadd.xlane.f32.xlu0 %v1844_v19  ;;  %8654 = vmatprep.subr.bf16.mxu0 %v1924_v10  ;;  %v11179_v19 = vmul.f32 0.35355338, %v11066_v3 }
 0x93c   :  { %8666 = vmatprep.subr.bf16.mxu1 %v2009_v41  ;;  %v11135_v52 = vpop.permute.xlu1 %2103  ;;  %v1847_v14 = vsel %vm556_vm3, %v11133_v7, 0.0  ;;  %v11139_v6 = vpop.eup %9629 }
 0x93d   :  { %1848 = vadd.xlane.f32.xlu1 %v1847_v14  ;;  %v1841_v13 = vsel %vm556_vm3, %v11139_v6, 0.0  ;;  %v11150_v30 = vpop.eup %9631  ;;  %v1757_v14 = vsel %vm556_vm3, %v11172_v47, -inf  ;;  %v1775_v38 = vsel %vm556_vm3, %v11179_v19, -inf }
 0x93e   :  { %8655 = vmatpush3.bf16.msra.mxu0 %v1924_v10  ;;  %8667 = vmatpush3.bf16.msra.mxu1 %v2009_v41  ;;  %v2013_v44 = vpop.permute.xlu0 %2012  ;;  %v1850_v0 = vsel %vm556_vm3, %v11150_v30, 0.0  ;;  %v11163_v10 = vmul.f32 0.35355338, %v11072_v35  ;;  %v1763_v41 = vsel %vm556_vm3, %v11158_v34, -inf }
 0x93f   :  { %1767 = vmax.xlane.f32.xlu0 %v1766_v42  ;;  %9173 = vmatprep.subr.msk.bf16.mxu0 %vm53_vm1, %v11135_v52  ;;  %v11184_v42 = vmul.f32 0.35355338, %v11068_v50 }
 0x940   :  { %v2011_v56 = vpop.permute.xlu1 %2010  ;;  %v1772_v35 = vsel %vm556_vm3, %v11163_v10, -inf }
 0x941   :  { %1842 = vadd.xlane.f32.xlu1 %v1841_v13  ;;  %8668 = vmatprep.subr.bf16.mxu1 %v2011_v56 }
 0x942   :  { %8669 = vmatpush3.bf16.msra.mxu1 %v2011_v56  ;;  %v11165_v57 = vpop.permute.xlu0 %2208 }
 0x943   :  { %1761 = vmax.xlane.f32.xlu0 %v1760_v29  ;;  %8670 = vmatprep.subr.bf16.mxu1 %v2013_v44 }
 0x944   :  { %v2106_v3 = vpop.permute.xlu1 %2105 }
 0x945   :  { %1851 = vadd.xlane.f32.xlu1 %v1850_v0 }
 0x946   :  { %8671 = vmatpush3.bf16.msra.mxu1 %v2013_v44  ;;  %v1769_v44 = vsel %vm556_vm3, %v11184_v42, -inf }
 0x947   :  { %1779 = vmax.xlane.f32.xlu0 %v1778_v20  ;;  %9177 = vmatprep.subr.msk.bf16.mxu1 %vm53_vm1, %v11165_v57 }
 0x948   :  { %v2108_v56 = vpop.permute.xlu1 %2107 }
 0x949   :  { %1764 = vmax.xlane.f32.xlu1 %v1763_v41 }
 0x94b   :  { %1773 = vmax.xlane.f32.xlu0 %v1772_v35 }
 0x94c   :  { %v2110_v13 = vpop.permute.xlu1 %2109 }
 0x94d   :  { %1758 = vmax.xlane.f32.xlu1 %v1757_v14 }
 0x950   :  { %v11194_v50 = vpop.permute.xlu1 %2210 }
 0x951   :  { %1776 = vmax.xlane.f32.xlu1 %v1775_v38 }
 0x955   :  { %1770 = vmax.xlane.f32.xlu1 %v1769_v44 }
 0x961   :  { %2095 = vrot.lane.b32.xlu0 %v10348_v2, %s10170_s24 }
 0x966   :  { %2097 = vrot.lane.b32.xlu1 %v10346_v1, %s10170_s24 }
 0x985   :  { %v1837_v29 = vpop.xlane.xlu1 %1836 }
 0x989   :  { %v1831_v0 = vpop.xlane.xlu1 %1830  ;;  %v1840_v20 = vpop.xlane.xlu0 %1839 }
 0x98a   :  { %9633 = vrcp.f32 %v1840_v20 }
 0x98b   :  { %9635 = vrcp.f32 %v1831_v0 }
 0x98c   :  { %9637 = vrcp.f32 %v1837_v29  ;;  %v2124_v29 = vsel %vm53_vm1, %v11135_v52, 0 }
 0x98d   :  { %v1834_v41 = vpop.xlane.xlu0 %1833 }
 0x98e   :  { %9639 = vrcp.f32 %v1834_v41 }
 0x994   :  { %v9634_v35 = vpop.eup %9633 }
 0x995   :  { %v9636_v14 = vpop.eup %9635  ;;  %v1896_v17 = vmul.f32 %v9634_v35, %v11112_v32  ;;  %v2127_v32 = vsel %vm53_vm1, %v2106_v3, 0 }
 0x996   :  { %v9638_v38 = vpop.eup %9637  ;;  %v1893_v55 = vmul.f32 %v9636_v14, %v11110_v5  ;;  %v2130_v5 = vsel %vm53_vm1, %v2108_v56, 0 }
 0x997   :  { %v1895_v40 = vmul.f32 %v9638_v38, %v11106_v4 }
 0x998   :  { %v9640_v44 = vpop.eup %9639 }
 0x999   :  { %v1894_v45 = vmul.f32 %v9640_v44, %v11118_v28  ;;  %v1910_v59 = vpack.c.bf16 %v1896_v17, %v1895_v40  ;;  %v2133_v17 = vsel %vm53_vm1, %v2110_v13, 0 }
 0x99b   :  { %v1909_v61 = vpack.c.bf16 %v1894_v45, %v1893_v55 }
 0x99d   :  { %8656 = vmatprep.mubr.msk.bf16.mxu0 %vm556_vm3, %v1909_v61 }
 0x99e   :  { %8657 = vmatmul.mubr.msk.bf16.vlgmr.msra.gmra.mrb[48].mxu0 %vm556_vm3, %v1910_v59 }
 0x99f   :  { %8681 = vmatpush3.bf16.xpose.msra.mxu0 %v2124_v29 }
 0x9a0   :  { %9174 = vmatprep.subr.msk.bf16.mxu0 %vm53_vm1, %v2106_v3 }
 0x9a7   :  { %8683 = vmatpush3.bf16.xpose.msra.mxu0 %v2127_v32 }
 0x9a8   :  { %9175 = vmatprep.subr.msk.bf16.mxu0 %vm53_vm1, %v2108_v56 }
 0x9af   :  { %8685 = vmatpush3.bf16.xpose.msra.mxu0 %v2130_v5 }
 0x9b0   :  { %9176 = vmatprep.subr.msk.bf16.mxu0 %vm53_vm1, %v2110_v13 }
 0x9b7   :  { %8687 = vmatpush3.bf16.xpose.msra.mxu0 %v2133_v17 }
 0x9c8   :  { %v1846_v4 = vpop.xlane.xlu0 %1845 }
 0x9c9   :  { %9641 = vrcp.f32 %v1846_v4 }
 0x9ca   :  { %v1849_v55 = vpop.xlane.xlu1 %1848 }
 0x9cc   :  { %v1768_v61 = vpop.xlane.xlu0 %1767 }
 0x9cd   :  { %v1792_v28 = vsub.f32 %v11129_v27, %v1768_v61 }
 0x9ce   :  { %v1843_v45 = vpop.xlane.xlu1 %1842 }
 0x9cf   :  { %9643 = vrcp.f32 %v1843_v45  ;;  %v1819_v13 = vmul.f32 1.442695, %v1792_v28 }
 0x9d0   :  { %v1762_v59 = vpop.xlane.xlu0 %1761  ;;  %9645 = vrcp.f32 %v1849_v55 }
 0x9d1   :  { %v1790_v41 = vsub.f32 %v11142_v23, %v1762_v59 }
 0x9d2   :  { %v1852_v40 = vpop.xlane.xlu1 %1851 }
 0x9d3   :  { %9647 = vrcp.f32 %v1852_v40  ;;  %v9642_v56 = vpop.eup %9641  ;;  %v1815_v4 = vmul.f32 1.442695, %v1790_v41 }
 0x9d4   :  { %v1780_v52 = vpop.xlane.xlu0 %1779  ;;  %v1898_v44 = vmul.f32 %v9642_v56, %v11126_v53 }
 0x9d6   :  { %v1765_v3 = vpop.xlane.xlu1 %1764 }
 0x9d7   :  { %v1791_v0 = vsub.f32 %v11158_v34, %v1765_v3 }
 0x9d8   :  { %v1774_v27 = vpop.xlane.xlu0 %1773 }
 0x9d9   :  { %v9644_v20 = vpop.eup %9643  ;;  %v1817_v35 = vmul.f32 1.442695, %v1791_v0 }
 0x9da   :  { %v1759_v14 = vpop.xlane.xlu1 %1758  ;;  %v1897_v38 = vmul.f32 %v9644_v20, %v11139_v6  ;;  %v9646_v29 = vpop.eup %9645  ;;  %v1794_v20 = vsub.f32 %v11163_v10, %v1774_v27 }
 0x9db   :  { %9649 = vpow2.f32 %v1817_v35  ;;  %v1789_v32 = vsub.f32 %v11172_v47, %v1759_v14  ;;  %v1899_v23 = vmul.f32 %v9646_v29, %v11133_v7 }
 0x9dc   :  { %v1911_v5 = vpack.c.bf16 %v1898_v44, %v1897_v38  ;;  %9651 = vpow2.f32 %v1819_v13  ;;  %v2096_v53 = vpop.permute.xlu0 %2095  ;;  %v1823_v13 = vmul.f32 1.442695, %v1794_v20  ;;  %v1796_v38 = vsub.f32 %v11153_v31, %v1780_v52 }
 0x9dd   :  { %v9648_v17 = vpop.eup %9647  ;;  %v1813_v34 = vmul.f32 1.442695, %v1789_v32 }
 0x9de   :  { %v1777_v55 = vpop.xlane.xlu1 %1776  ;;  %8660 = vmatprep.mubr.msk.bf16.mxu0 %vm556_vm3, %v1911_v5  ;;  %v1900_v61 = vmul.f32 %v9648_v17, %v11150_v30  ;;  %v1827_v29 = vmul.f32 1.442695, %v1796_v38 }
 0x9df   :  { %9653 = vpow2.f32 %v1813_v34  ;;  %v1795_v41 = vsub.f32 %v11179_v19, %v1777_v55 }
 0x9e0   :  { %v1912_v6 = vpack.c.bf16 %v1900_v61, %v1899_v23  ;;  %9655 = vpow2.f32 %v1815_v4 }
 0x9e1   :  { %9657 = vpow2.f32 %v1823_v13  ;;  %v1825_v35 = vmul.f32 1.442695, %v1795_v41 }
 0x9e2   :  { %8661 = vmatmul.mubr.msk.bf16.gmra.mrb[52].mxu0 %vm556_vm3, %v1912_v6  ;;  %v1771_v47 = vpop.xlane.xlu1 %1770 }
 0x9e3   :  { %8688 = vmatprep.mubr.msk.bf16.mxu0 %vm53_vm1, %v2096_v53  ;;  %v1793_v14 = vsub.f32 %v11184_v42, %v1771_v47  ;;  %9659 = vpow2.f32 %v1825_v35 }
 0x9e5   :  { %v11221_v45 = vpop.eup %9649  ;;  %v1821_v44 = vmul.f32 1.442695, %v1793_v14 }
 0x9e6   :  { %v1859_v59 = vsel %vm556_vm3, %v11221_v45, 0.0  ;;  %v11225_v40 = vpop.eup %9651  ;;  %v2098_v30 = vpop.permute.xlu1 %2097 }
 0x9e7   :  { %1860 = vadd.xlane.f32.xlu0 %v1859_v59  ;;  %v1862_v3 = vsel %vm556_vm3, %v11225_v40, 0.0  ;;  %9661 = vpow2.f32 %v1821_v44 }
 0x9e8   :  { %9663 = vpow2.f32 %v1827_v29  ;;  %v2229_v29 = vsel %vm53_vm1, %v11165_v57, 0 }
 0x9e9   :  { %v11227_v7 = vpop.eup %9653 }
 0x9ea   :  { %8689 = vmatmul.mubr.msk.bf16.vlgmr.msra.gmra.mrb[56].mxu0 %vm53_vm1, %v2098_v30  ;;  %v1853_v28 = vsel %vm556_vm3, %v11227_v7, 0.0  ;;  %v9656_v56 = vpop.eup %9655 }
 0x9eb   :  { %1854 = vadd.xlane.f32.xlu1 %v1853_v28  ;;  %1863 = vadd.xlane.f32.xlu0 %v1862_v3  ;;  %v1856_v0 = vsel %vm556_vm3, %v9656_v56, 0.0  ;;  %v11243_v32 = vpop.eup %9657 }
 0x9ec   :  { %v1868_v5 = vsel %vm556_vm3, %v11243_v32, 0.0 }
 0x9ed   :  { %v11247_v10 = vpop.eup %9659 }
 0x9ee   :  { %v1871_v19 = vsel %vm556_vm3, %v11247_v10, 0.0 }
 0x9ef   :  { %1857 = vadd.xlane.f32.xlu0 %v1856_v0 }
 0x9f1   :  { %v11251_v27 = vpop.eup %9661 }
 0x9f2   :  { %v1865_v31 = vsel %vm556_vm3, %v11251_v27, 0.0  ;;  %v11255_v42 = vpop.eup %9663 }
 0x9f3   :  { %v1874_v52 = vsel %vm556_vm3, %v11255_v42, 0.0 }
 0x9fc   :  { %2099 = vrot.lane.b32.xlu1 %v10358_v12, %s10170_s24 }
 0xa05   :  { %2212 = vrot.lane.b32.xlu0 %v10376_v43, %s10169_s23 }
 0xa20   :  { %1869 = vadd.xlane.f32.xlu1 %v1868_v5 }
 0xa24   :  { %1872 = vadd.xlane.f32.xlu0 %v1871_v19 }
 0xa28   :  { %1866 = vadd.xlane.f32.xlu0 %v1865_v31 }
 0xa2c   :  { %1875 = vadd.xlane.f32.xlu0 %v1874_v52 }
 0xa31   :  { %2214 = vrot.lane.b32.xlu1 %v10374_v39, %s10169_s23 }
 0xa35   :  { %2202 = vrot.lane.b32.xlu1 %v10364_v21, %s10170_s24 }
 0xa39   :  { %2206 = vrot.lane.b32.xlu1 %v10374_v39, %s10170_s24 }
 0xa42   :  { %2101 = vrot.lane.b32.xlu0 %v10356_v11, %s10170_s24 }
 0xa46   :  { %2200 = vrot.lane.b32.xlu0 %v10366_v22, %s10170_s24 }
 0xa4a   :  { %2204 = vrot.lane.b32.xlu0 %v10376_v43, %s10170_s24 }
 0xa71   :  { %v11271_v17 = vpop.f32.mrb[48].mxu0 }
 0xa72   :  { %v11273_v4 = vpop.f32.mrb[49].mxu0 }
 0xa73   :  { %v11275_v34 = vpop.f32.mrb[50].mxu0 }
 0xa74   :  { %v11279_v23 = vpop.f32.mrb[51].mxu0  ;;  %v1861_v6 = vpop.xlane.xlu0 %1860 }
 0xa78   :  { %v1855_v53 = vpop.xlane.xlu1 %1854  ;;  %v1864_v47 = vpop.xlane.xlu0 %1863 }
 0xa79   :  { %9665 = vrcp.f32 %v1864_v47 }
 0xa7a   :  { %9667 = vrcp.f32 %v1855_v53 }
 0xa7b   :  { %9669 = vrcp.f32 %v1861_v6 }
 0xa7c   :  { %v2100_v59 = vpop.permute.xlu1 %2099  ;;  %v1858_v30 = vpop.xlane.xlu0 %1857 }
 0xa7d   :  { %9671 = vrcp.f32 %v1858_v30  ;;  %8692 = vmatprep.mubr.msk.bf16.mxu0 %vm53_vm1, %v2100_v59 }
 0xa83   :  { %v9666_v28 = vpop.eup %9665 }
 0xa84   :  { %v9668_v3 = vpop.eup %9667  ;;  %v1904_v13 = vmul.f32 %v9666_v28, %v11225_v40  ;;  %v2232_v40 = vsel %vm53_vm1, %v11194_v50, 0 }
 0xa85   :  { %v9670_v0 = vpop.eup %9669  ;;  %v1901_v41 = vmul.f32 %v9668_v3, %v11227_v7  ;;  %v2213_v7 = vpop.permute.xlu0 %2212 }
 0xa86   :  { %v1903_v14 = vmul.f32 %v9670_v0, %v11221_v45  ;;  %v2235_v45 = vsel %vm53_vm1, %v2213_v7, 0 }
 0xa87   :  { %v9672_v20 = vpop.eup %9671 }
 0xa88   :  { %v1902_v35 = vmul.f32 %v9672_v20, %v9656_v56  ;;  %v1914_v44 = vpack.c.bf16 %v1904_v13, %v1903_v14 }
 0xa8a   :  { %v1913_v38 = vpack.c.bf16 %v1902_v35, %v1901_v41 }
 0xa8c   :  { %8672 = vmatprep.mubr.msk.bf16.mxu1 %vm556_vm3, %v1913_v38 }
 0xa8d   :  { %8673 = vmatmul.mubr.msk.bf16.vlgmr.msra.gmra.mrb[64].mxu1 %vm556_vm3, %v1914_v44 }
 0xa8e   :  { %8697 = vmatpush3.bf16.xpose.msra.mxu1 %v2229_v29 }
 0xa8f   :  { %9178 = vmatprep.subr.msk.bf16.mxu1 %vm53_vm1, %v11194_v50 }
 0xa96   :  { %8699 = vmatpush3.bf16.xpose.msra.mxu1 %v2232_v40 }
 0xa97   :  { %9179 = vmatprep.subr.msk.bf16.mxu1 %vm53_vm1, %v2213_v7 }
 0xa9e   :  { %8701 = vmatpush3.bf16.xpose.msra.mxu1 %v2235_v45 }
 0xaad   :  { %v1870_v56 = vpop.xlane.xlu1 %1869 }
 0xaae   :  { %9673 = vrcp.f32 %v1870_v56 }
 0xab1   :  { %v2215_v5 = vpop.permute.xlu1 %2214  ;;  %v1873_v19 = vpop.xlane.xlu0 %1872 }
 0xab2   :  { %9180 = vmatprep.subr.msk.bf16.mxu1 %vm53_vm1, %v2215_v5  ;;  %v2238_v57 = vsel %vm53_vm1, %v2215_v5, 0 }
 0xab3   :  { %8703 = vmatpush3.bf16.xpose.msra.mxu1 %v2238_v57 }
 0xab5   :  { %v11299_v31 = vpop.f32.mrb[52].mxu0  ;;  %v1867_v52 = vpop.xlane.xlu0 %1866 }
 0xab6   :  { %v11301_v50 = vpop.f32.mrb[53].mxu0  ;;  %9675 = vrcp.f32 %v1867_v52 }
 0xab7   :  { %v11303_v6 = vpop.f32.mrb[54].mxu0  ;;  %9677 = vrcp.f32 %v1873_v19 }
 0xab8   :  { %v11307_v47 = vpop.f32.mrb[55].mxu0  ;;  %v9674_v20 = vpop.eup %9673 }
 0xab9   :  { %v1876_v30 = vpop.xlane.xlu0 %1875  ;;  %v1906_v7 = vmul.f32 %v9674_v20, %v11243_v32 }
 0xaba   :  { %9679 = vrcp.f32 %v1876_v30 }
 0xabd   :  { %v8690_v28 = vpop.f32.mrb[56].mxu0  ;;  %v2102_v3 = vpop.permute.xlu0 %2101 }
 0xabe   :  { %v2169_v0 = vpop.f32.mrb[57].mxu0  ;;  %8693 = vmatmul.mubr.msk.bf16.gmra.mrb[60].mxu0 %vm53_vm1, %v2102_v3  ;;  %v11314_v38 = vmul.f32 0.35355338, %v8690_v28 }
 0xabf   :  { %v11311_v13 = vmul.f32 0.35355338, %v2169_v0  ;;  %v8691_v41 = vpop.f32.mrb[58].mxu0  ;;  %v2203_v0 = vpop.permute.xlu1 %2202 }
 0xac0   :  { %v2172_v35 = vpop.f32.mrb[59].mxu0  ;;  %v9676_v14 = vpop.eup %9675  ;;  %v2308_v57 = vmul.f32 0.35355338, %v8691_v41  ;;  %v2327_v52 = vsel %vm556_vm3, %v11314_v38, -inf }
 0xac1   :  { %v2306_v44 = vmul.f32 0.35355338, %v2172_v35  ;;  %v2321_v29 = vsel %vm556_vm3, %v11311_v13, -inf  ;;  %v1905_v40 = vmul.f32 %v9676_v14, %v11251_v27  ;;  %v9678_v45 = vpop.eup %9677  ;;  %v2201_v3 = vpop.permute.xlu0 %2200 }
 0xac2   :  { %2322 = vmax.xlane.f32.xlu0 %v2321_v29  ;;  %v1907_v30 = vmul.f32 %v9678_v45, %v11247_v10  ;;  %v2330_v32 = vsel %vm556_vm3, %v2308_v57, -inf }
 0xac3   :  { %v2324_v56 = vsel %vm556_vm3, %v2306_v44, -inf  ;;  %v1915_v5 = vpack.c.bf16 %v1906_v7, %v1905_v40  ;;  %v2207_v41 = vpop.permute.xlu1 %2206 }
 0xac4   :  { %2325 = vmax.xlane.f32.xlu1 %v2324_v56  ;;  %v9680_v19 = vpop.eup %9679 }
 0xac5   :  { %8676 = vmatprep.mubr.msk.bf16.mxu1 %vm556_vm3, %v1915_v5  ;;  %v1908_v28 = vmul.f32 %v9680_v19, %v11255_v42  ;;  %v2205_v20 = vpop.permute.xlu0 %2204 }
 0xac6   :  { %2328 = vmax.xlane.f32.xlu0 %v2327_v52 }
 0xac7   :  { %v1916_v27 = vpack.c.bf16 %v1908_v28, %v1907_v30 }
 0xac9   :  { %8677 = vmatmul.mubr.msk.bf16.gmra.mrb[68].mxu1 %vm556_vm3, %v1916_v27 }
 0xaca   :  { %2331 = vmax.xlane.f32.xlu0 %v2330_v32  ;;  %8704 = vmatprep.mubr.msk.bf16.mxu1 %vm53_vm1, %v2201_v3 }
 0xad1   :  { %8705 = vmatmul.mubr.msk.bf16.vlgmr.msra.gmra.mrb[72].mxu1 %vm53_vm1, %v2203_v0 }
 0xad2   :  { %8708 = vmatprep.mubr.msk.bf16.mxu1 %vm53_vm1, %v2205_v20 }
 0xad9   :  { %8709 = vmatmul.mubr.msk.bf16.gmra.mrb[76].mxu1 %vm53_vm1, %v2207_v41 }
 0xb4f   :  { %v2323_v7 = vpop.xlane.xlu0 %2322 }
 0xb51   :  { %v2326_v19 = vpop.xlane.xlu1 %2325 }
 0xb52   :  { %v2370_v52 = vsub.f32 %v2306_v44, %v2326_v19 }
 0xb53   :  { %v2329_v45 = vpop.xlane.xlu0 %2328 }
 0xb54   :  { %v2387_v27 = vmul.f32 1.442695, %v2370_v52 }
 0xb57   :  { %v2332_v56 = vpop.xlane.xlu0 %2331 }
 0xb58   :  { %v2372_v5 = vsub.f32 %v2308_v57, %v2332_v56 }
 0xb5a   :  { %v2391_v30 = vmul.f32 1.442695, %v2372_v5 }
 0xb5c   :  { %9681 = vpow2.f32 %v2391_v30 }
 0xb5d   :  { %9683 = vpow2.f32 %v2387_v27  ;;  %v2369_v27 = vsub.f32 %v11311_v13, %v2323_v7 }
 0xb60   :  { %v11332_v10 = vpop.f32.mrb[64].mxu1 }
 0xb61   :  { %v11334_v42 = vpop.f32.mrb[65].mxu1 }
 0xb62   :  { %v11336_v35 = vpop.f32.mrb[66].mxu1 }
 0xb63   :  { %v11340_v29 = vpop.f32.mrb[67].mxu1 }
 0xb66   :  { %v11348_v56 = vpop.eup %9681 }
 0xb91   :  { %v8694_v28 = vpop.f32.mrb[60].mxu0 }
 0xb92   :  { %v2185_v32 = vpop.f32.mrb[61].mxu0  ;;  %v2311_v41 = vmul.f32 0.35355338, %v8694_v28  ;;  %v11362_v28 = vpop.eup %9683 }
 0xb93   :  { %v2309_v3 = vmul.f32 0.35355338, %v2185_v32  ;;  %v8695_v0 = vpop.f32.mrb[62].mxu0  ;;  %v2420_v32 = vsel %vm556_vm3, %v11362_v28, 0.0 }
 0xb94   :  { %v2188_v20 = vpop.f32.mrb[63].mxu0  ;;  %v2312_v40 = vmul.f32 0.35355338, %v8695_v0  ;;  %v2339_v44 = vsel %vm556_vm3, %v2311_v41, -inf }
 0xb95   :  { %v2310_v14 = vmul.f32 0.35355338, %v2188_v20  ;;  %v2333_v59 = vsel %vm556_vm3, %v2309_v3, -inf }
 0xb96   :  { %2334 = vmax.xlane.f32.xlu1 %v2333_v59  ;;  %v2342_v57 = vsel %vm556_vm3, %v2312_v40, -inf }
 0xb97   :  { %v2336_v53 = vsel %vm556_vm3, %v2310_v14, -inf }
 0xb98   :  { %2337 = vmax.xlane.f32.xlu0 %v2336_v53  ;;  %v2426_v53 = vsel %vm556_vm3, %v11348_v56, 0.0 }
 0xb9a   :  { %2340 = vmax.xlane.f32.xlu1 %v2339_v44 }
 0xb9c   :  { %v11350_v5 = vpop.f32.mrb[68].mxu1  ;;  %2343 = vmax.xlane.f32.xlu0 %v2342_v57 }
 0xb9d   :  { %14452 = vst [vmem:[#allocation41_spill] sm:$0xff] %v11350_v5  ;;  %v11352_v19 = vpop.f32.mrb[69].mxu1 }
 0xb9e   :  { %14453 = vst [vmem:[#allocation42_spill] sm:$0xff] %v11352_v19  ;;  %v11354_v52 = vpop.f32.mrb[70].mxu1 }
 0xb9f   :  { %14454 = vst [vmem:[#allocation43_spill] sm:$0xff] %v11354_v52  ;;  %v11358_v30 = vpop.f32.mrb[71].mxu1 }
 0xba0   :  { %14455 = vst [vmem:[#allocation44_spill] sm:$0xff] %v11358_v30  ;;  %2427 = vadd.xlane.f32.xlu0 %v2426_v53  ;;  %v2371_v53 = vsub.f32 %v11314_v38, %v2329_v45  ;;  %v2385_v30 = vmul.f32 1.442695, %v2369_v27 }
 0xba2   :  { %v2389_v19 = vmul.f32 1.442695, %v2371_v53 }
 0xba4   :  { %v8706_v0 = vpop.f32.mrb[72].mxu1  ;;  %2421 = vadd.xlane.f32.xlu0 %v2420_v32  ;;  %9685 = vpow2.f32 %v2389_v19 }
 0xba5   :  { %v2274_v20 = vpop.f32.mrb[73].mxu1  ;;  %9687 = vpow2.f32 %v2385_v30 }
 0xba6   :  { %v8707_v44 = vpop.f32.mrb[74].mxu1 }
 0xba7   :  { %v2277_v57 = vpop.f32.mrb[75].mxu1 }
 0xbab   :  { %2505 = vrot.lane.b32.xlu1 %v10348_v2, %s10171_s25 }
 0xbac   :  { %v11370_v59 = vpop.f32.mrb[76].mxu1 }
 0xbad   :  { %v11372_v55 = vpop.f32.mrb[77].mxu1 }
 0xbae   :  { %v8711_v61 = vpop.f32.mrb[78].mxu1  ;;  %v11376_v32 = vpop.eup %9685 }
 0xbaf   :  { %v2293_v5 = vpop.f32.mrb[79].mxu1  ;;  %v2423_v52 = vsel %vm556_vm3, %v11376_v32, 0.0  ;;  %v11380_v2 = vpop.eup %9687 }
 0xbb0   :  { %v2417_v37 = vsel %vm556_vm3, %v11380_v2, 0.0 }
 0xbcf   :  { %2424 = vadd.xlane.f32.xlu1 %v2423_v52  ;;  %v2313_v52 = vmul.f32 0.35355338, %v2274_v20 }
 0xbd3   :  { %2418 = vadd.xlane.f32.xlu1 %v2417_v37 }
 0xc23   :  { %v2335_v15 = vpop.xlane.xlu1 %2334 }
 0xc24   :  { %v2373_v38 = vsub.f32 %v2309_v3, %v2335_v15 }
 0xc25   :  { %v2338_v45 = vpop.xlane.xlu0 %2337 }
 0xc26   :  { %v2374_v7 = vsub.f32 %v2310_v14, %v2338_v45  ;;  %v2393_v19 = vmul.f32 1.442695, %v2373_v38  ;;  %v2314_v45 = vmul.f32 0.35355338, %v2277_v57 }
 0xc27   :  { %v2341_v13 = vpop.xlane.xlu1 %2340 }
 0xc28   :  { %v2375_v27 = vsub.f32 %v2311_v41, %v2341_v13  ;;  %v2395_v51 = vmul.f32 1.442695, %v2374_v7  ;;  %v2345_v7 = vsel %vm556_vm3, %v2313_v52, -inf }
 0xc29   :  { %v2344_v30 = vpop.xlane.xlu0 %2343 }
 0xc2a   :  { %v2397_v53 = vmul.f32 1.442695, %v2375_v27  ;;  %v2376_v26 = vsub.f32 %v2312_v40, %v2344_v30  ;;  %v2348_v27 = vsel %vm556_vm3, %v2314_v45, -inf }
 0xc2b   :  { %v2506_v16 = vpop.permute.xlu1 %2505 }
 0xc2c   :  { %9689 = vpow2.f32 %v2397_v53  ;;  %v2399_v63 = vmul.f32 1.442695, %v2376_v26  ;;  %8712 = vmatprep.subr.bf16.mxu0 %v2506_v16  ;;  %v2315_v26 = vmul.f32 0.35355338, %v8706_v0  ;;  %v11403_v0 = vmul.f32 0.35355338, %v8711_v61 }
 0xc2d   :  { %9691 = vpow2.f32 %v2393_v19  ;;  %8713 = vmatpush3.bf16.msra.mxu0 %v2506_v16  ;;  %v11411_v57 = vpop.xlane.xlu0 %2427 }
 0xc2e   :  { %9693 = vpow2.f32 %v2399_v63  ;;  %v2316_v63 = vmul.f32 0.35355338, %v8707_v44  ;;  %v2351_v38 = vsel %vm556_vm3, %v2315_v26, -inf  ;;  %v2318_v44 = vmul.f32 0.35355338, %v2293_v5 }
 0xc2f   :  { %9695 = vpow2.f32 %v2395_v51  ;;  %v2366_v19 = vsel %vm556_vm3, %v11403_v0, -inf }
 0xc30   :  { %v2354_v13 = vsel %vm556_vm3, %v2316_v63, -inf  ;;  %v2360_v20 = vsel %vm556_vm3, %v2318_v44, -inf }
 0xc31   :  { %v2422_v30 = vpop.xlane.xlu0 %2421 }
 0xc32   :  { %9697 = vrcp.f32 %v2422_v30 }
 0xc36   :  { %v11384_v37 = vpop.eup %9689 }
 0xc37   :  { %v11386_v15 = vpop.eup %9691  ;;  %v2435_v14 = vsel %vm556_vm3, %v11384_v37, 0.0 }
 0xc38   :  { %v11390_v3 = vpop.eup %9693  ;;  %2436 = vadd.xlane.f32.xlu1 %v2435_v14  ;;  %v2429_v51 = vsel %vm556_vm3, %v11386_v15, 0.0 }
 0xc39   :  { %v2438_v40 = vsel %vm556_vm3, %v11390_v3, 0.0  ;;  %v11394_v41 = vpop.eup %9695 }
 0xc3a   :  { %2439 = vadd.xlane.f32.xlu0 %v2438_v40  ;;  %v2432_v16 = vsel %vm556_vm3, %v11394_v41, 0.0 }
 0xc3c   :  { %2430 = vadd.xlane.f32.xlu1 %v2429_v51  ;;  %v9698_v5 = vpop.eup %9697 }
 0xc3d   :  { %v2482_v51 = vmul.f32 %v9698_v5, %v11362_v28 }
 0xc3e   :  { %2433 = vadd.xlane.f32.xlu0 %v2432_v16 }
 0xc40   :  { %2352 = vmax.xlane.f32.xlu1 %v2351_v38  ;;  %v11424_v38 = vmul.f32 0.35355338, %v11372_v55 }
 0xc42   :  { %2355 = vmax.xlane.f32.xlu0 %v2354_v13 }
 0xc44   :  { %2346 = vmax.xlane.f32.xlu1 %v2345_v7 }
 0xc46   :  { %2349 = vmax.xlane.f32.xlu0 %v2348_v27 }
 0xc4a   :  { %2367 = vmax.xlane.f32.xlu0 %v2366_v19 }
 0xc4e   :  { %2361 = vmax.xlane.f32.xlu0 %v2360_v20 }
 0xc55   :  { %2507 = vrot.lane.b32.xlu1 %v10346_v1, %s10171_s25  ;;  %v11421_v1 = vmul.f32 0.35355338, %v11370_v59 }
 0xc57   :  { %v2363_v13 = vsel %vm556_vm3, %v11421_v1, -inf }
 0xc5c   :  { %v11413_v53 = vpop.xlane.xlu1 %2424 }
 0xc60   :  { %v2419_v61 = vpop.xlane.xlu1 %2418 }
 0xc61   :  { %9699 = vrcp.f32 %v2419_v61 }
 0xc64   :  { %2509 = vrot.lane.b32.xlu0 %v10358_v12, %s10171_s25  ;;  %v2357_v12 = vsel %vm556_vm3, %v11424_v38, -inf }
 0xc6b   :  { %v9700_v14 = vpop.eup %9699 }
 0xc6c   :  { %v2481_v40 = vmul.f32 %v9700_v14, %v11380_v2 }
 0xc6e   :  { %v2497_v16 = vpack.c.bf16 %v2482_v51, %v2481_v40 }
 0xc70   :  { %8720 = vmatprep.mubr.msk.bf16.mxu0 %vm556_vm3, %v2497_v16 }
 0xc79   :  { %2364 = vmax.xlane.f32.xlu1 %v2363_v13 }
 0xc7d   :  { %2358 = vmax.xlane.f32.xlu1 %v2357_v12 }
 0xc8e   :  { %2511 = vrot.lane.b32.xlu1 %v10356_v11, %s10171_s25 }
 0xc92   :  { %2594 = vrot.lane.b32.xlu1 %v10366_v22, %s10171_s25 }
 0xcc5   :  { %v2437_v28 = vpop.xlane.xlu1 %2436 }
 0xcc7   :  { %v2440_v59 = vpop.xlane.xlu0 %2439 }
 0xcc9   :  { %v2431_v2 = vpop.xlane.xlu1 %2430 }
 0xccb   :  { %v2434_v7 = vpop.xlane.xlu0 %2433 }
 0xccd   :  { %v2353_v55 = vpop.xlane.xlu1 %2352 }
 0xcce   :  { %v2379_v27 = vsub.f32 %v2315_v26, %v2353_v55 }
 0xccf   :  { %v2356_v19 = vpop.xlane.xlu0 %2355 }
 0xcd0   :  { %v2405_v20 = vmul.f32 1.442695, %v2379_v27  ;;  %v2380_v30 = vsub.f32 %v2316_v63, %v2356_v19 }
 0xcd1   :  { %v2347_v61 = vpop.xlane.xlu1 %2346 }
 0xcd2   :  { %9701 = vpow2.f32 %v2405_v20  ;;  %v2377_v5 = vsub.f32 %v2313_v52, %v2347_v61  ;;  %v2407_v40 = vmul.f32 1.442695, %v2380_v30 }
 0xcd3   :  { %v2350_v14 = vpop.xlane.xlu0 %2349 }
 0xcd4   :  { %v2401_v51 = vmul.f32 1.442695, %v2377_v5  ;;  %v2378_v16 = vsub.f32 %v2314_v45, %v2350_v14 }
 0xcd5   :  { %v2508_v11 = vpop.permute.xlu1 %2507 }
 0xcd6   :  { %9703 = vpow2.f32 %v2401_v51  ;;  %8714 = vmatprep.subr.bf16.mxu0 %v2508_v11  ;;  %v2403_v13 = vmul.f32 1.442695, %v2378_v16  ;;  %v14456_v51 = vpack.i.bf16 %v10958_v33, %v10952_v18 }
 0xcd7   :  { %8715 = vmatpush3.bf16.msra.mxu0 %v2508_v11  ;;  %v2368_v22 = vpop.xlane.xlu0 %2367  ;;  %9705 = vpow2.f32 %v2407_v40 }
 0xcd8   :  { %9707 = vpow2.f32 %v2403_v13  ;;  %v2384_v16 = vsub.f32 %v11403_v0, %v2368_v22 }
 0xcda   :  { %v2415_v33 = vmul.f32 1.442695, %v2384_v16 }
 0xcdb   :  { %v2362_v12 = vpop.xlane.xlu0 %2361 }
 0xcdc   :  { %v11434_v58 = vpop.eup %9701  ;;  %v2382_v26 = vsub.f32 %v2318_v44, %v2362_v12 }
 0xcdd   :  { %v2447_v63 = vsel %vm556_vm3, %v11434_v58, 0.0 }
 0xcde   :  { %v2411_v52 = vmul.f32 1.442695, %v2382_v26  ;;  %2448 = vadd.xlane.f32.xlu0 %v2447_v63 }
 0xcdf   :  { %v2510_v55 = vpop.permute.xlu0 %2509 }
 0xce0   :  { %v11438_v27 = vpop.eup %9703  ;;  %9709 = vpow2.f32 %v2411_v52  ;;  %8716 = vmatprep.subr.bf16.mxu0 %v2510_v55 }
 0xce1   :  { %8717 = vmatpush3.bf16.msra.mxu0 %v2510_v55  ;;  %v2441_v45 = vsel %vm556_vm3, %v11438_v27, 0.0  ;;  %v11442_v19 = vpop.eup %9705  ;;  %9711 = vrcp.f32 %v11413_v53 }
 0xce2   :  { %2442 = vadd.xlane.f32.xlu0 %v2441_v45  ;;  %v2450_v44 = vsel %vm556_vm3, %v11442_v19, 0.0  ;;  %v11446_v20 = vpop.eup %9707  ;;  %9713 = vrcp.f32 %v2434_v7 }
 0xce3   :  { %v2444_v30 = vsel %vm556_vm3, %v11446_v20, 0.0  ;;  %9715 = vrcp.f32 %v11411_v57 }
 0xce4   :  { %9717 = vrcp.f32 %v2431_v2 }
 0xce5   :  { %9719 = vrcp.f32 %v2440_v59 }
 0xce6   :  { %2451 = vadd.xlane.f32.xlu0 %v2450_v44  ;;  %9721 = vrcp.f32 %v2437_v28 }
 0xcea   :  { %v11450_v61 = vpop.eup %9709  ;;  %2445 = vadd.xlane.f32.xlu0 %v2444_v30 }
 0xceb   :  { %v2456_v5 = vsel %vm556_vm3, %v11450_v61, 0.0  ;;  %v9712_v7 = vpop.eup %9711 }
 0xcec   :  { %v9714_v2 = vpop.eup %9713  ;;  %v2483_v18 = vmul.f32 %v9712_v7, %v11376_v32 }
 0xced   :  { %v9716_v11 = vpop.eup %9715  ;;  %v2486_v28 = vmul.f32 %v9714_v2, %v11394_v41 }
 0xcee   :  { %2457 = vadd.xlane.f32.xlu0 %v2456_v5  ;;  %v9718_v59 = vpop.eup %9717  ;;  %v2484_v13 = vmul.f32 %v9716_v11, %v11348_v56 }
 0xcef   :  { %v9720_v26 = vpop.eup %9719 }
 0xcf0   :  { %v2498_v12 = vpack.c.bf16 %v2484_v13, %v2483_v18  ;;  %v9722_v32 = vpop.eup %9721  ;;  %v2488_v56 = vmul.f32 %v9720_v26, %v11390_v3  ;;  %v14459_v3 = vpack.i.bf16 %v11275_v34, %v11271_v17 }
 0xd04   :  { %2596 = vrot.lane.b32.xlu0 %v10364_v21, %s10171_s25 }
 0xd06   :  { %v2365_v14 = vpop.xlane.xlu1 %2364 }
 0xd07   :  { %v2383_v40 = vsub.f32 %v11421_v1, %v2365_v14  ;;  %v14457_v1 = vpack.i.bf16 %v11279_v23, %v11273_v4 }
 0xd08   :  { %9230 = vrot.lane.b32.xlu0 %v14456_v51, %s10172_s26 }
 0xd09   :  { %v2413_v53 = vmul.f32 1.442695, %v2383_v40 }
 0xd0a   :  { %v2359_v57 = vpop.xlane.xlu1 %2358 }
 0xd0b   :  { %9723 = vpow2.f32 %v2413_v53  ;;  %v2381_v21 = vsub.f32 %v11424_v38, %v2359_v57  ;;  %v2485_v38 = vmul.f32 %v9718_v59, %v11386_v15  ;;  %v2487_v15 = vmul.f32 %v9722_v32, %v11384_v37 }
 0xd0c   :  { %9240 = vrot.lane.b32.xlu0 %v14457_v1, %s10173_s27  ;;  %v14458_v37 = vpack.i.bf16 %v10954_v46, %v10950_v54 }
 0xd0d   :  { %v2409_v0 = vmul.f32 1.442695, %v2381_v21  ;;  %v2499_v23 = vpack.c.bf16 %v2486_v28, %v2485_v38  ;;  %v2500_v55 = vpack.c.bf16 %v2488_v56, %v2487_v15 }
 0xd0e   :  { %v2512_v22 = vpop.permute.xlu1 %2511 }
 0xd0f   :  { %9725 = vpow2.f32 %v2409_v0  ;;  %8718 = vmatprep.subr.bf16.mxu0 %v2512_v22 }
 0xd10   :  { %8719 = vmatpush3.bf16.msra.mxu0 %v2512_v22  ;;  %9727 = vpow2.f32 %v2415_v33 }
 0xd12   :  { %v2595_v4 = vpop.permute.xlu1 %2594 }
 0xd13   :  { %8721 = vmatmul.mubr.msk.bf16.vlgmr.msra.gmra.mrb[64].mxu0 %vm556_vm3, %v2498_v12  ;;  %8728 = vmatprep.subr.bf16.mxu1 %v2595_v4 }
 0xd14   :  { %8724 = vmatprep.mubr.msk.bf16.mxu0 %vm556_vm3, %v2499_v23  ;;  %8729 = vmatpush3.bf16.msra.mxu1 %v2595_v4 }
 0xd15   :  { %v11475_v41 = vpop.eup %9723 }
 0xd16   :  { %v2459_v63 = vsel %vm556_vm3, %v11475_v41, 0.0 }
 0xd17   :  { %2460 = vadd.xlane.f32.xlu1 %v2459_v63 }
 0xd19   :  { %v9726_v52 = vpop.eup %9725 }
 0xd1a   :  { %v2453_v45 = vsel %vm556_vm3, %v9726_v52, 0.0  ;;  %v9728_v44 = vpop.eup %9727 }
 0xd1b   :  { %2454 = vadd.xlane.f32.xlu1 %v2453_v45  ;;  %8725 = vmatmul.mubr.msk.bf16.gmra.mrb[68].mxu0 %vm556_vm3, %v2500_v55  ;;  %v2462_v30 = vsel %vm556_vm3, %v9728_v44, 0.0  ;;  %v14461_v45 = vpack.i.bf16 %v10982_v60, %v10976_v25  ;;  %v14464_v25 = vpack.i.bf16 %v11022_v49, %v11016_v8  ;;  %v14466_v60 = vpack.i.bf16 %v11336_v35, %v11332_v10  ;;  %v14468_v35 = vld [vmem:[#allocation23_spill] sm:$0xff] }
 0xd1f   :  { %2463 = vadd.xlane.f32.xlu1 %v2462_v30 }
 0xd30   :  { %2598 = vrot.lane.b32.xlu1 %v10376_v43, %s10171_s25 }
 0xd34   :  { %2600 = vrot.lane.b32.xlu1 %v10374_v39, %s10171_s25  ;;  %v9471_v39 = vld [vmem:[%s14352_s3] sm:$0xff]  }
 0xd35   :  { %8744 = vmatprep.subr.bf16.mxu0 %v9471_v39 }
 0xd36   :  { %8745 = vmatpush3.bf16.msra.mxu0 %v9471_v39 }
 0xd38   :  { %9235 = vrot.lane.b32.xlu1 %v14458_v37, %s10172_s26 }
 0xd3c   :  { %9245 = vrot.lane.b32.xlu1 %v14459_v3, %s10173_s27 }
 0xd6b   :  { %v2449_v5 = vpop.xlane.xlu0 %2448 }
 0xd6f   :  { %v2443_v14 = vpop.xlane.xlu0 %2442 }
 0xd70   :  { %9729 = vrcp.f32 %v2443_v14 }
 0xd73   :  { %v2452_v40 = vpop.xlane.xlu0 %2451 }
 0xd77   :  { %v2446_v51 = vpop.xlane.xlu0 %2445 }
 0xd78   :  { %9731 = vrcp.f32 %v2446_v51 }
 0xd79   :  { %9733 = vrcp.f32 %v2452_v40 }
 0xd7a   :  { %v9730_v53 = vpop.eup %9729  ;;  %9735 = vrcp.f32 %v2449_v5  ;;  %v14462_v5 = vpack.i.bf16 %v11303_v6, %v11299_v31  ;;  %v14467_v31 = vpack.i.bf16 %v11340_v29, %v11334_v42  ;;  %v14469_v29 = vld [vmem:[#allocation24_spill] sm:$0xff] }
 0xd7b   :  { %v2458_v43 = vpop.xlane.xlu0 %2457  ;;  %v2489_v46 = vmul.f32 %v9730_v53, %v11438_v27 }
 0xd7c   :  { %9737 = vrcp.f32 %v2458_v43 }
 0xd7f   :  { %v2597_v16 = vpop.permute.xlu0 %2596 }
 0xd80   :  { %8730 = vmatprep.subr.bf16.mxu1 %v2597_v16 }
 0xd81   :  { %8731 = vmatpush3.bf16.msra.mxu1 %v2597_v16 }
 0xd82   :  { %v9732_v54 = vpop.eup %9731 }
 0xd83   :  { %v2490_v17 = vmul.f32 %v9732_v54, %v11446_v20  ;;  %v9734_v21 = vpop.eup %9733  ;;  %v9231_v6 = vpop.permute.xlu0 %9230  ;;  %v14470_v54 = vld [vmem:[#allocation22_spill] sm:$0xff] }
 0xd84   :  { %v9736_v1 = vpop.eup %9735  ;;  %v2492_v59 = vmul.f32 %v9734_v21, %v11442_v19  ;;  %v9233_v8 = vunpack.i.h.bf16 %v9231_v6  ;;  %v9232_v49 = vunpack.i.l.bf16 %v9231_v6 }
 0xd85   :  { %v2501_v34 = vpack.c.bf16 %v2490_v17, %v2489_v46  ;;  %v2491_v0 = vmul.f32 %v9736_v1, %v11434_v58  ;;  %v9472_v58 = vld [vmem:[%s14352_s3 + $0x8] sm:$0xff]  }
 0xd86   :  { %v9738_v27 = vpop.eup %9737  ;;  %8746 = vmatprep.subr.bf16.mxu0 %v9472_v58  ;;  %v2876_v10 = vsel %vm53_vm1, %v10680_v9, %v9233_v8  ;;  %v2875_v53 = vsel %vm53_vm1, %v14468_v35, %v9232_v49 }
 0xd87   :  { %8736 = vmatprep.mubr.msk.bf16.mxu1 %vm556_vm3, %v2501_v34  ;;  %v2494_v22 = vmul.f32 %v9738_v27, %v11450_v61  ;;  %v2502_v28 = vpack.c.bf16 %v2492_v59, %v2491_v0  ;;  %8747 = vmatpush3.bf16.msra.mxu0 %v9472_v58  ;;  %v9241_v14 = vpop.permute.xlu0 %9240 }
 0xd88   :  { %v9243_v43 = vunpack.i.h.bf16 %v9241_v14  ;;  %v9242_v16 = vunpack.i.l.bf16 %v9241_v14 }
 0xd8a   :  { %v2893_v1 = vsel %vm2891_vm4, %v2876_v10, %v9243_v43 }
 0xda4   :  { %v2461_v7 = vpop.xlane.xlu1 %2460 }
 0xda8   :  { %v2455_v57 = vpop.xlane.xlu1 %2454 }
 0xda9   :  { %9739 = vrcp.f32 %v2455_v57 }
 0xdac   :  { %v2464_v2 = vpop.xlane.xlu1 %2463 }
 0xdad   :  { %9741 = vrcp.f32 %v2464_v2 }
 0xdae   :  { %9743 = vrcp.f32 %v2461_v7 }
 0xdb0   :  { %v2599_v11 = vpop.permute.xlu1 %2598 }
 0xdb1   :  { %8732 = vmatprep.subr.bf16.mxu1 %v2599_v11 }
 0xdb2   :  { %8733 = vmatpush3.bf16.msra.mxu1 %v2599_v11  ;;  %v2892_v11 = vsel %vm2891_vm4, %v2875_v53, %v9242_v16  ;;  %v14475_v53 = vld [vmem:[#allocation39_spill] sm:$0xff] }
 0xdb3   :  { %v9740_v20 = vpop.eup %9739 }
 0xdb4   :  { %v2601_v18 = vpop.permute.xlu1 %2600  ;;  %v2493_v33 = vmul.f32 %v9740_v20, %v9726_v52  ;;  %v14460_v52 = vpack.i.bf16 %v10978_v48, %v10974_v24  ;;  %v14463_v24 = vpack.i.bf16 %v11307_v47, %v11301_v50  ;;  %v14465_v48 = vpack.i.bf16 %v11026_v36, %v11018_v62 }
 0xdb5   :  { %8734 = vmatprep.subr.bf16.mxu1 %v2601_v18 }
 0xdb6   :  { %8735 = vmatpush3.bf16.msra.mxu1 %v2601_v18  ;;  %v2503_v38 = vpack.c.bf16 %v2494_v22, %v2493_v33 }
 0xdb7   :  { %v9742_v13 = vpop.eup %9741 }
 0xdb8   :  { %v9744_v12 = vpop.eup %9743  ;;  %v2496_v26 = vmul.f32 %v9742_v13, %v9728_v44  ;;  %v9236_v50 = vpop.permute.xlu1 %9235 }
 0xdb9   :  { %8737 = vmatmul.mubr.msk.bf16.vlgmr.msra.gmra.mrb[80].mxu1 %vm556_vm3, %v2502_v28  ;;  %v2495_v4 = vmul.f32 %v9744_v12, %v11475_v41  ;;  %v9238_v40 = vunpack.i.h.bf16 %v9236_v50  ;;  %v9237_v51 = vunpack.i.l.bf16 %v9236_v50 }
 0xdba   :  { %8740 = vmatprep.mubr.msk.bf16.mxu1 %vm556_vm3, %v2503_v38 }
 0xdbb   :  { %v2504_v19 = vpack.c.bf16 %v2496_v26, %v2495_v4  ;;  %v2878_v39 = vsel %vm53_vm1, %v14469_v29, %v9238_v40  ;;  %v2877_v46 = vsel %vm53_vm1, %v14470_v54, %v9237_v51  ;;  %v14478_v54 = vld [vmem:[#allocation40_spill] sm:$0xff] }
 0xdbc   :  { %v9246_v47 = vpop.permute.xlu1 %9245 }
 0xdbd   :  { %v9248_v62 = vunpack.i.h.bf16 %v9246_v47  ;;  %v9247_v36 = vunpack.i.l.bf16 %v9246_v47 }
 0xdbf   :  { %v2894_v57 = vsel %vm2891_vm4, %v2877_v46, %v9247_v36  ;;  %v2895_v2 = vsel %vm2891_vm4, %v2878_v39, %v9248_v62  ;;  %v14479_v46 = vld [vmem:[#allocation38_spill] sm:$0xff] }
 0xdc1   :  { %8741 = vmatmul.mubr.msk.bf16.gmra.mrb[84].mxu1 %vm556_vm3, %v2504_v19 }
 0xde6   :  { %v8722_v61 = vpop.f32.mrb[64].mxu0 }
 0xde7   :  { %v2563_v23 = vpop.f32.mrb[65].mxu0 }
 0xde8   :  { %v8723_v32 = vpop.f32.mrb[66].mxu0 }
 0xde9   :  { %v9254_v56 = vpack.i.bf16 %v8723_v32, %v8722_v61  ;;  %v2566_v63 = vpop.f32.mrb[67].mxu0 }
 0xdea   :  { %v9249_v15 = vpack.i.bf16 %v2566_v63, %v2563_v23 }
 0xdeb   :  { %9255 = vrot.lane.b32.xlu1 %v9254_v56, %s10174_s9  ;;  %v14471_v56 = vld [vmem:[#allocation27_spill] sm:$0xff] }
 0xdec   :  { %9250 = vrot.lane.b32.xlu0 %v9249_v15, %s10174_s9  ;;  %v14472_v15 = vld [vmem:[#allocation25_spill] sm:$0xff] }
 0xdee   :  { %v8726_v41 = vpop.f32.mrb[68].mxu0 }
 0xdef   :  { %9265 = vrot.lane.b32.xlu1 %v14460_v52, %s10172_s26  ;;  %v2579_v55 = vpop.f32.mrb[69].mxu0 }
 0xdf0   :  { %9260 = vrot.lane.b32.xlu0 %v14461_v45, %s10172_s26  ;;  %v8727_v44 = vpop.f32.mrb[70].mxu0 }
 0xdf1   :  { %v9284_v30 = vpack.i.bf16 %v8727_v44, %v8726_v41  ;;  %v2582_v37 = vpop.f32.mrb[71].mxu0  ;;  %v14474_v44 = vld [vmem:[#allocation26_spill] sm:$0xff] }
 0xdf2   :  { %v9279_v3 = vpack.i.bf16 %v2582_v37, %v2579_v55  ;;  %v14473_v55 = vld [vmem:[#allocation28_spill] sm:$0xff] }
 0xdf3   :  { %9275 = vrot.lane.b32.xlu1 %v14462_v5, %s10173_s27 }
 0xdf4   :  { %9270 = vrot.lane.b32.xlu0 %v14463_v24, %s10173_s27 }
 0xdf7   :  { %9285 = vrot.lane.b32.xlu1 %v9284_v30, %s10174_s9 }
 0xdf8   :  { %9280 = vrot.lane.b32.xlu0 %v9279_v3, %s10174_s9 }
 0xdfb   :  { %9295 = vrot.lane.b32.xlu1 %v14464_v25, %s10172_s26 }
 0xdfc   :  { %9290 = vrot.lane.b32.xlu0 %v14465_v48, %s10172_s26 }
 0xdff   :  { %9305 = vrot.lane.b32.xlu1 %v14466_v60, %s10173_s27 }
 0xe00   :  { %9300 = vrot.lane.b32.xlu0 %v14467_v31, %s10173_s27 }
 0xe5d   :  { %v9256_v42 = vpop.permute.xlu1 %9255 }
 0xe5e   :  { %v9258_v17 = vunpack.i.h.bf16 %v9256_v42  ;;  %v9257_v34 = vunpack.i.l.bf16 %v9256_v42  ;;  %v9251_v7 = vpop.permute.xlu0 %9250  ;;  %v14476_v42 = vld [vmem:[#allocation37_spill] sm:$0xff] }
 0xe5f   :  { %v9253_v9 = vunpack.i.h.bf16 %v9251_v7  ;;  %v9252_v21 = vunpack.i.l.bf16 %v9251_v7  ;;  %v14477_v29 = vpack.i.bf16 %v14475_v53, %v14476_v42  ;;  %v14491_v42 = vld [vmem:[#allocation35_spill] sm:$0xff] }
 0xe60   :  { %v2912_v27 = vsel %vm2908_vm5, %v2895_v2, %v9258_v17  ;;  %v2911_v20 = vsel %vm2908_vm5, %v2894_v57, %v9257_v34  ;;  %v14480_v17 = vpack.i.bf16 %v14478_v54, %v14479_v46 }
 0xe61   :  { %v2926_v59 = vpack.c.bf16 %v2912_v27, %v2911_v20  ;;  %v2909_v18 = vsel %vm2908_vm5, %v2892_v11, %v9252_v21  ;;  %v2910_v33 = vsel %vm2908_vm5, %v2893_v1, %v9253_v9  ;;  %v9266_v0 = vpop.permute.xlu1 %9265  ;;  %v14481_v9 = vld [vmem:[#allocation43_spill] sm:$0xff]  ;;  %v14482_v21 = vld [vmem:[#allocation41_spill] sm:$0xff]  ;;  %v14484_v1 = vld [vmem:[#allocation44_spill] sm:$0xff] }
 0xe62   :  { %v9261_v22 = vpop.permute.xlu0 %9260  ;;  %v2925_v28 = vpack.c.bf16 %v2910_v33, %v2909_v18  ;;  %v9268_v13 = vunpack.i.h.bf16 %v9266_v0  ;;  %v9267_v38 = vunpack.i.l.bf16 %v9266_v0  ;;  %v14483_v11 = vpack.i.bf16 %v14481_v9, %v14482_v21  ;;  %v14485_v27 = vld [vmem:[#allocation42_spill] sm:$0xff] }
 0xe63   :  { %v9263_v26 = vunpack.i.h.bf16 %v9261_v22  ;;  %v9262_v4 = vunpack.i.l.bf16 %v9261_v22  ;;  %v14486_v20 = vpack.i.bf16 %v14484_v1, %v14485_v27 }
 0xe64   :  { %8748 = vmatprep.mubr.msk.bf16.mxu0 %vm208_vm2, %v2925_v28  ;;  %v2882_v63 = vsel %vm53_vm1, %v14471_v56, %v9268_v13  ;;  %v2881_v41 = vsel %vm53_vm1, %v14472_v15, %v9267_v38 }
 0xe65   :  { %v9276_v12 = vpop.permute.xlu1 %9275  ;;  %8749 = vmatmul.mubr.msk.bf16.vlgmr.msra.gmra.mrb[72].mxu0 %vm208_vm2, %v2926_v59  ;;  %v2880_v45 = vsel %vm53_vm1, %v14473_v55, %v9263_v26  ;;  %v2879_v30 = vsel %vm53_vm1, %v14474_v44, %v9262_v4 }
 0xe66   :  { %v9271_v19 = vpop.permute.xlu0 %9270  ;;  %v9278_v58 = vunpack.i.h.bf16 %v9276_v12  ;;  %v9277_v61 = vunpack.i.l.bf16 %v9276_v12 }
 0xe67   :  { %v9273_v23 = vunpack.i.h.bf16 %v9271_v19  ;;  %v9272_v32 = vunpack.i.l.bf16 %v9271_v19 }
 0xe68   :  { %v2898_v24 = vsel %vm2891_vm4, %v2881_v41, %v9277_v61  ;;  %v2899_v25 = vsel %vm2891_vm4, %v2882_v63, %v9278_v58  ;;  %v14487_v58 = vld [vmem:[#allocation31_spill] sm:$0xff]  ;;  %v14489_v63 = vld [vmem:[#allocation32_spill] sm:$0xff]  ;;  %v14490_v41 = vld [vmem:[#allocation30_spill] sm:$0xff] }
 0xe69   :  { %v9286_v52 = vpop.permute.xlu1 %9285  ;;  %v2896_v31 = vsel %vm2891_vm4, %v2879_v30, %v9272_v32  ;;  %v2897_v50 = vsel %vm2891_vm4, %v2880_v45, %v9273_v23  ;;  %v14488_v23 = vld [vmem:[#allocation29_spill] sm:$0xff] }
 0xe6a   :  { %v9288_v37 = vunpack.i.h.bf16 %v9286_v52  ;;  %v9287_v3 = vunpack.i.l.bf16 %v9286_v52  ;;  %v9281_v5 = vpop.permute.xlu0 %9280 }
 0xe6b   :  { %v9283_v48 = vunpack.i.h.bf16 %v9281_v5  ;;  %v9282_v60 = vunpack.i.l.bf16 %v9281_v5 }
 0xe6c   :  { %v2916_v6 = vsel %vm2908_vm5, %v2899_v25, %v9288_v37  ;;  %v2915_v47 = vsel %vm2908_vm5, %v2898_v24, %v9287_v3 }
 0xe6d   :  { %v2913_v8 = vsel %vm2908_vm5, %v2896_v31, %v9282_v60  ;;  %v2914_v49 = vsel %vm2908_vm5, %v2897_v50, %v9283_v48  ;;  %v2928_v14 = vpack.c.bf16 %v2916_v6, %v2915_v47  ;;  %v9296_v59 = vpop.permute.xlu1 %9295 }
 0xe6e   :  { %v2927_v40 = vpack.c.bf16 %v2914_v49, %v2913_v8  ;;  %v9291_v18 = vpop.permute.xlu0 %9290  ;;  %v9298_v0 = vunpack.i.h.bf16 %v9296_v59  ;;  %v9297_v22 = vunpack.i.l.bf16 %v9296_v59 }
 0xe6f   :  { %v9293_v13 = vunpack.i.h.bf16 %v9291_v18  ;;  %v9292_v38 = vunpack.i.l.bf16 %v9291_v18 }
 0xe70   :  { %8752 = vmatprep.mubr.msk.bf16.mxu0 %vm208_vm2, %v2927_v40  ;;  %v2886_v61 = vsel %vm53_vm1, %v14487_v58, %v9298_v0  ;;  %v2885_v32 = vsel %vm53_vm1, %v14488_v23, %v9297_v22 }
 0xe71   :  { %8753 = vmatmul.mubr.msk.bf16.gmra.mrb[76].mxu0 %vm208_vm2, %v2928_v14  ;;  %v9306_v33 = vpop.permute.xlu1 %9305  ;;  %v2884_v15 = vsel %vm53_vm1, %v14489_v63, %v9293_v13  ;;  %v2883_v52 = vsel %vm53_vm1, %v14490_v41, %v9292_v38  ;;  %v14496_v63 = vld [vmem:[#allocation5_spill] sm:$0xff] }
 0xe72   :  { %v9301_v28 = vpop.permute.xlu0 %9300  ;;  %v9308_v12 = vunpack.i.h.bf16 %v9306_v33  ;;  %v9307_v26 = vunpack.i.l.bf16 %v9306_v33 }
 0xe73   :  { %v9303_v4 = vunpack.i.h.bf16 %v9301_v28  ;;  %v9302_v19 = vunpack.i.l.bf16 %v9301_v28 }
 0xe74   :  { %v2902_v30 = vsel %vm2891_vm4, %v2885_v32, %v9307_v26  ;;  %v2903_v37 = vsel %vm2891_vm4, %v2886_v61, %v9308_v12  ;;  %v14495_v12 = vld [vmem:[#allocation21_spill] sm:$0xff] }
 0xe75   :  { %v2900_v24 = vsel %vm2891_vm4, %v2883_v52, %v9302_v19  ;;  %v2901_v25 = vsel %vm2891_vm4, %v2884_v15, %v9303_v4  ;;  %v14390_v26 = vsub.s32 1, %v14495_v12  ;;  %v11644_v4 = vld [vmem:[%s14355_s6] sm:$0xff] }
 0xe77   :  { %v11649_v19 = vrot.slane %v11644_v4, %v14390_v26 }
 0xe8c   :  { %v8738_v51 = vpop.f32.mrb[80].mxu1 }
 0xe8d   :  { %v2652_v62 = vpop.f32.mrb[81].mxu1 }
 0xe8e   :  { %v8739_v36 = vpop.f32.mrb[82].mxu1 }
 0xe8f   :  { %v9314_v43 = vpack.i.bf16 %v8739_v36, %v8738_v51  ;;  %v2655_v16 = vpop.f32.mrb[83].mxu1 }
 0xe90   :  { %v9309_v10 = vpack.i.bf16 %v2655_v16, %v2652_v62 }
 0xe91   :  { %9315 = vrot.lane.b32.xlu1 %v9314_v43, %s10174_s9 }
 0xe92   :  { %9310 = vrot.lane.b32.xlu0 %v9309_v10, %s10174_s9 }
 0xe94   :  { %v8742_v35 = vpop.f32.mrb[84].mxu1 }
 0xe95   :  { %9325 = vrot.lane.b32.xlu1 %v14477_v29, %s10172_s26  ;;  %v2668_v39 = vpop.f32.mrb[85].mxu1 }
 0xe96   :  { %9320 = vrot.lane.b32.xlu0 %v14480_v17, %s10172_s26  ;;  %v8743_v34 = vpop.f32.mrb[86].mxu1  ;;  %v14493_v17 = vld [vmem:[#allocation36_spill] sm:$0xff] }
 0xe97   :  { %v9344_v7 = vpack.i.bf16 %v8743_v34, %v8742_v35  ;;  %v2671_v57 = vpop.f32.mrb[87].mxu1 }
 0xe98   :  { %v9339_v2 = vpack.i.bf16 %v2671_v57, %v2668_v39  ;;  %v14492_v39 = vld [vmem:[#allocation33_spill] sm:$0xff] }
 0xe99   :  { %9335 = vrot.lane.b32.xlu1 %v14483_v11, %s10173_s27 }
 0xe9a   :  { %9330 = vrot.lane.b32.xlu0 %v14486_v20, %s10173_s27 }
 0xe9d   :  { %9345 = vrot.lane.b32.xlu1 %v9344_v7, %s10174_s9  ;;  %v14494_v7 = vld [vmem:[#allocation34_spill] sm:$0xff] }
 0xe9e   :  { %9340 = vrot.lane.b32.xlu0 %v9339_v2, %s10174_s9 }
 0xf03   :  { %v9316_v56 = vpop.permute.xlu1 %9315 }
 0xf04   :  { %v9318_v55 = vunpack.i.h.bf16 %v9316_v56  ;;  %v9317_v45 = vunpack.i.l.bf16 %v9316_v56  ;;  %v9311_v44 = vpop.permute.xlu0 %9310 }
 0xf05   :  { %v9313_v3 = vunpack.i.h.bf16 %v9311_v44  ;;  %v9312_v5 = vunpack.i.l.bf16 %v9311_v44 }
 0xf06   :  { %v2920_v48 = vsel %vm2908_vm5, %v2903_v37, %v9318_v55  ;;  %v2919_v60 = vsel %vm2908_vm5, %v2902_v30, %v9317_v45  ;;  %v14497_v55 = vld [vmem:[#allocation6_spill] sm:$0xff]  ;;  %v14498_v30 = vld [vmem:[#allocation7_spill] sm:$0xff] }
 0xf07   :  { %v2917_v31 = vsel %vm2908_vm5, %v2900_v24, %v9312_v5  ;;  %v2918_v50 = vsel %vm2908_vm5, %v2901_v25, %v9313_v3  ;;  %v9326_v6 = vpop.permute.xlu1 %9325  ;;  %v2930_v47 = vpack.c.bf16 %v2920_v48, %v2919_v60  ;;  %v14499_v3 = vld [vmem:[#allocation8_spill] sm:$0xff] }
 0xf08   :  { %v9321_v8 = vpop.permute.xlu0 %9320  ;;  %v2929_v49 = vpack.c.bf16 %v2918_v50, %v2917_v31  ;;  %v9328_v14 = vunpack.i.h.bf16 %v9326_v6  ;;  %v9327_v40 = vunpack.i.l.bf16 %v9326_v6 }
 0xf09   :  { %v9323_v62 = vunpack.i.h.bf16 %v9321_v8  ;;  %v9322_v36 = vunpack.i.l.bf16 %v9321_v8 }
 0xf0a   :  { %8756 = vmatprep.mubr.msk.bf16.mxu0 %vm208_vm2, %v2929_v49  ;;  %v2890_v29 = vsel %vm53_vm1, %v14491_v42, %v9328_v14  ;;  %v2889_v54 = vsel %vm53_vm1, %v14492_v39, %v9327_v40  ;;  %v14500_v49 = vld [vmem:[#allocation9_spill] sm:$0xff] }
 0xf0b   :  { %v9336_v51 = vpop.permute.xlu1 %9335  ;;  %8757 = vmatmul.mubr.msk.bf16.gmra.mrb[80].mxu0 %vm208_vm2, %v2930_v47  ;;  %v2888_v34 = vsel %vm53_vm1, %v14493_v17, %v9323_v62  ;;  %v2887_v57 = vsel %vm53_vm1, %v14494_v7, %v9322_v36  ;;  %v14501_v62 = vld [vmem:[#allocation10_spill] sm:$0xff] }
 0xf0c   :  { %v9331_v43 = vpop.permute.xlu0 %9330  ;;  %v9338_v16 = vunpack.i.h.bf16 %v9336_v51  ;;  %v9337_v10 = vunpack.i.l.bf16 %v9336_v51 }
 0xf0d   :  { %v9333_v35 = vunpack.i.h.bf16 %v9331_v43  ;;  %v9332_v53 = vunpack.i.l.bf16 %v9331_v43 }
 0xf0e   :  { %v2906_v11 = vsel %vm2891_vm4, %v2889_v54, %v9337_v10  ;;  %v2907_v1 = vsel %vm2891_vm4, %v2890_v29, %v9338_v16  ;;  %v14502_v16 = vld [vmem:[#allocation11_spill] sm:$0xff] }
 0xf0f   :  { %v9346_v46 = vpop.permute.xlu1 %9345  ;;  %v2904_v59 = vsel %vm2891_vm4, %v2887_v57, %v9332_v53  ;;  %v2905_v18 = vsel %vm2891_vm4, %v2888_v34, %v9333_v35  ;;  %v14503_v35 = vld [vmem:[#allocation12_spill] sm:$0xff] }
 0xf10   :  { %v9348_v2 = vunpack.i.h.bf16 %v9346_v46  ;;  %v9347_v9 = vunpack.i.l.bf16 %v9346_v46  ;;  %v9341_v21 = vpop.permute.xlu0 %9340 }
 0xf11   :  { %v9343_v27 = vunpack.i.h.bf16 %v9341_v21  ;;  %v9342_v20 = vunpack.i.l.bf16 %v9341_v21 }
 0xf12   :  { %v2924_v33 = vsel %vm2908_vm5, %v2907_v1, %v9348_v2  ;;  %v2923_v0 = vsel %vm2908_vm5, %v2906_v11, %v9347_v9  ;;  %v14504_v9 = vld [vmem:[#allocation13_spill] sm:$0xff] }
 0xf13   :  { %v2921_v22 = vsel %vm2908_vm5, %v2904_v59, %v9342_v20  ;;  %v2922_v28 = vsel %vm2908_vm5, %v2905_v18, %v9343_v27  ;;  %v2932_v13 = vpack.c.bf16 %v2924_v33, %v2923_v0  ;;  %v14505_v27 = vld [vmem:[#allocation14_spill] sm:$0xff]  ;;  %v14506_v18 = vld [vmem:[#allocation15_spill] sm:$0xff]  ;;  %v14507_v0 = vld [vmem:[#allocation16_spill] sm:$0xff] }
 0xf14   :  { %v2931_v38 = vpack.c.bf16 %v2922_v28, %v2921_v22 }
 0xf16   :  { %8760 = vmatprep.mubr.msk.bf16.mxu0 %vm208_vm2, %v2931_v38 }
 0xf17   :  { %8761 = vmatmul.mubr.msk.bf16.gmra.mrb[84].mxu0 %vm208_vm2, %v2932_v13 }
 0xf38   :  { %v8750_v58 = vpop.f32.mrb[72].mxu0 }
 0xf39   :  { %v3020_v61 = vadd.f32 %v8750_v58, %v11649_v19  ;;  %v3011_v23 = vpop.f32.mrb[73].mxu0 }
 0xf3a   :  { %v3012_v32 = vadd.f32 %v3011_v23, %v11649_v19  ;;  %v8751_v56 = vpop.f32.mrb[74].mxu0 }
 0xf3b   :  { %v11654_v15 = vadd.f32 %v14496_v63, %v3020_v61  ;;  %v3023_v41 = vadd.f32 %v8751_v56, %v11649_v19  ;;  %v3014_v52 = vpop.f32.mrb[75].mxu0 }
 0xf3c   :  { %v11658_v45 = vadd.f32 %v3012_v32, %v14497_v55  ;;  %v3015_v44 = vadd.f32 %v3014_v52, %v11649_v19 }
 0xf3d   :  { %v11662_v37 = vadd.f32 %v14498_v30, %v3023_v41  ;;  %v3096_v48 = vsel %vm208_vm2, %v11654_v15, 0.0  ;;  %v14508_v30 = vld [vmem:[#allocation17_spill] sm:$0xff] }
 0xf3e   :  { %v11665_v5 = vadd.f32 %v3015_v44, %v14499_v3  ;;  %v3090_v24 = vsel %vm208_vm2, %v11658_v45, 0.0 }
 0xf3f   :  { %3091 = vadd.xlane.f32.xlu0 %v3090_v24  ;;  %v3099_v8 = vsel %vm208_vm2, %v11662_v37, 0.0 }
 0xf40   :  { %v3093_v25 = vsel %vm208_vm2, %v11665_v5, 0.0 }
 0xf41   :  { %3094 = vadd.xlane.f32.xlu1 %v3093_v25 }
 0xf43   :  { %3097 = vadd.xlane.f32.xlu0 %v3096_v48 }
 0xf44   :  { %v8754_v60 = vpop.f32.mrb[76].mxu0 }
 0xf45   :  { %v3036_v31 = vadd.f32 %v8754_v60, %v11649_v19  ;;  %v3027_v50 = vpop.f32.mrb[77].mxu0  ;;  %v14509_v60 = vld [vmem:[#allocation18_spill] sm:$0xff] }
 0xf46   :  { %v3028_v6 = vadd.f32 %v3027_v50, %v11649_v19  ;;  %v8755_v47 = vpop.f32.mrb[78].mxu0 }
 0xf47   :  { %v11678_v14 = vadd.f32 %v14500_v49, %v3036_v31  ;;  %v3039_v40 = vadd.f32 %v8755_v47, %v11649_v19  ;;  %v3030_v51 = vpop.f32.mrb[79].mxu0  ;;  %3100 = vadd.xlane.f32.xlu0 %v3099_v8  ;;  %v14510_v47 = vld [vmem:[#allocation19_spill] sm:$0xff] }
 0xf48   :  { %v11682_v36 = vadd.f32 %v3028_v6, %v14501_v62  ;;  %v3031_v43 = vadd.f32 %v3030_v51, %v11649_v19  ;;  %v14511_v51 = vld [vmem:[#allocation20_spill] sm:$0xff] }
 0xf49   :  { %v11686_v10 = vadd.f32 %v14502_v16, %v3039_v40  ;;  %v3108_v39 = vsel %vm208_vm2, %v11678_v14, 0.0 }
 0xf4a   :  { %v11689_v53 = vadd.f32 %v3031_v43, %v14503_v35  ;;  %v3102_v42 = vsel %vm208_vm2, %v11682_v36, 0.0 }
 0xf4b   :  { %3103 = vadd.xlane.f32.xlu1 %v3102_v42  ;;  %v3111_v54 = vsel %vm208_vm2, %v11686_v10, 0.0 }
 0xf4c   :  { %v3105_v29 = vsel %vm208_vm2, %v11689_v53, 0.0 }
 0xf4d   :  { %3106 = vadd.xlane.f32.xlu0 %v3105_v29 }
 0xf4f   :  { %3109 = vadd.xlane.f32.xlu1 %v3108_v39 }
 0xf51   :  { %3112 = vadd.xlane.f32.xlu0 %v3111_v54 }
 0xfcc   :  { %v3092_v2 = vpop.xlane.xlu0 %3091 }
 0xfcd   :  { %v3139_v41 = vmul.f32 0.03125, %v3092_v2 }
 0xfce   :  { %v3095_v32 = vpop.xlane.xlu1 %3094 }
 0xfcf   :  { %v3140_v48 = vmul.f32 0.03125, %v3095_v32  ;;  %v11737_v49 = vsub.f32 %v11658_v45, %v3139_v41  ;;  %v9473_v32 = vld [vmem:[%s14353_s4] sm:$0xff]  }
 0xfd0   :  { %v3098_v38 = vpop.xlane.xlu0 %3097  ;;  %8764 = vmatprep.subr.bf16.mxu1 %v9473_v32 }
 0xfd1   :  { %v3141_v40 = vmul.f32 0.03125, %v3098_v38  ;;  %v11745_v35 = vsub.f32 %v11665_v5, %v3140_v48  ;;  %v3171_v54 = vmul.f32 %v11737_v49, %v11737_v49  ;;  %8765 = vmatpush3.bf16.msra.mxu1 %v9473_v32 }
 0xfd3   :  { %v11750_v45 = vsub.f32 %v11654_v15, %v3141_v40  ;;  %v3172_v15 = vmul.f32 %v11745_v35, %v11745_v35 }
 0xfd4   :  { %v3101_v44 = vpop.xlane.xlu0 %3100 }
 0xfd8   :  { %v3104_v6 = vpop.xlane.xlu1 %3103 }
 0xfd9   :  { %v3143_v29 = vmul.f32 0.03125, %v3104_v6 }
 0xfda   :  { %v3107_v16 = vpop.xlane.xlu0 %3106 }
 0xfde   :  { %v8758_v46 = vpop.f32.mrb[80].mxu0 }
 0xfdf   :  { %v3052_v17 = vadd.f32 %v8758_v46, %v11649_v19  ;;  %v3043_v34 = vpop.f32.mrb[81].mxu0  ;;  %v3110_v46 = vpop.xlane.xlu1 %3109 }
 0xfe0   :  { %v3044_v7 = vadd.f32 %v3043_v34, %v11649_v19  ;;  %v8759_v57 = vpop.f32.mrb[82].mxu0  ;;  %v3145_v2 = vmul.f32 0.03125, %v3110_v46 }
 0xfe1   :  { %v11702_v21 = vadd.f32 %v14504_v9, %v3052_v17  ;;  %v3055_v11 = vadd.f32 %v8759_v57, %v11649_v19  ;;  %v3046_v1 = vpop.f32.mrb[83].mxu0  ;;  %v3144_v17 = vmul.f32 0.03125, %v3107_v16  ;;  %v11764_v57 = vsub.f32 %v11682_v36, %v3143_v29 }
 0xfe2   :  { %v11706_v20 = vadd.f32 %v3044_v7, %v14505_v27  ;;  %v3047_v59 = vadd.f32 %v3046_v1, %v11649_v19  ;;  %v3113_v7 = vpop.xlane.xlu0 %3112  ;;  %v3187_v9 = vsel %vm208_vm2, %v3171_v54, 0.0  ;;  %v3190_v27 = vsel %vm208_vm2, %v3172_v15, 0.0 }
 0xfe3   :  { %v11710_v33 = vadd.f32 %v14506_v18, %v3055_v11  ;;  %v3120_v58 = vsel %vm208_vm2, %v11702_v21, 0.0  ;;  %v3173_v11 = vmul.f32 %v11750_v45, %v11750_v45  ;;  %v3146_v1 = vmul.f32 0.03125, %v3113_v7 }
 0xfe4   :  { %v11713_v22 = vadd.f32 %v3047_v59, %v14507_v0  ;;  %v3114_v28 = vsel %vm208_vm2, %v11706_v20, 0.0  ;;  %v11776_v36 = vsub.f32 %v11678_v14, %v3145_v2  ;;  %v3175_v0 = vmul.f32 %v11764_v57, %v11764_v57 }
 0xfe5   :  { %3115 = vadd.xlane.f32.xlu1 %v3114_v28  ;;  %v3123_v23 = vsel %vm208_vm2, %v11710_v33, 0.0  ;;  %v3193_v18 = vsel %vm208_vm2, %v3173_v11, 0.0  ;;  %v11782_v28 = vsub.f32 %v11686_v10, %v3146_v1 }
 0xfe6   :  { %v3117_v13 = vsel %vm208_vm2, %v11713_v22, 0.0  ;;  %v3199_v38 = vsel %vm208_vm2, %v3175_v0, 0.0  ;;  %v3177_v14 = vmul.f32 %v11776_v36, %v11776_v36 }
 0xfe7   :  { %3118 = vadd.xlane.f32.xlu0 %v3117_v13 }
 0xfe8   :  { %v3205_v10 = vsel %vm208_vm2, %v3177_v14, 0.0 }
 0xfe9   :  { %3121 = vadd.xlane.f32.xlu1 %v3120_v58 }
 0xfea   :  { %v8762_v61 = vpop.f32.mrb[84].mxu0 }
 0xfeb   :  { %v3068_v56 = vadd.f32 %v8762_v61, %v11649_v19  ;;  %v3059_v63 = vpop.f32.mrb[85].mxu0  ;;  %3124 = vadd.xlane.f32.xlu0 %v3123_v23  ;;  %v3178_v61 = vmul.f32 %v11782_v28, %v11782_v28 }
 0xfec   :  { %v3060_v52 = vadd.f32 %v3059_v63, %v11649_v19  ;;  %v8763_v55 = vpop.f32.mrb[86].mxu0 }
 0xfed   :  { %v11726_v3 = vadd.f32 %v14508_v30, %v3068_v56  ;;  %v3071_v24 = vadd.f32 %v8763_v55, %v11649_v19  ;;  %v3062_v25 = vpop.f32.mrb[87].mxu0  ;;  %v3208_v23 = vsel %vm208_vm2, %v3178_v61, 0.0  ;;  %v9474_v56 = vld [vmem:[%s14353_s4 + $0x8] sm:$0xff]  }
 0xfee   :  { %v11730_v31 = vadd.f32 %v3060_v52, %v14509_v60  ;;  %v3063_v50 = vadd.f32 %v3062_v25, %v11649_v19  ;;  %v3142_v19 = vmul.f32 0.03125, %v3101_v44  ;;  %8766 = vmatprep.subr.bf16.mxu1 %v9474_v56 }
 0xfef   :  { %v11734_v8 = vadd.f32 %v14510_v47, %v3071_v24  ;;  %v3132_v39 = vsel %vm208_vm2, %v11726_v3, 0.0  ;;  %8767 = vmatpush3.bf16.msra.mxu1 %v9474_v56 }
 0xff0   :  { %v11740_v62 = vadd.f32 %v3063_v50, %v14511_v51  ;;  %v3126_v43 = vsel %vm208_vm2, %v11730_v31, 0.0  ;;  %v11757_v5 = vsub.f32 %v11662_v37, %v3142_v19  ;;  %v11770_v37 = vsub.f32 %v11689_v53, %v3144_v17 }
 0xff1   :  { %3127 = vadd.xlane.f32.xlu1 %v3126_v43  ;;  %v3135_v34 = vsel %vm208_vm2, %v11734_v8, 0.0 }
 0xff2   :  { %v3129_v42 = vsel %vm208_vm2, %v11740_v62, 0.0  ;;  %v3174_v59 = vmul.f32 %v11757_v5, %v11757_v5  ;;  %v3176_v13 = vmul.f32 %v11770_v37, %v11770_v37 }
 0xff3   :  { %3130 = vadd.xlane.f32.xlu0 %v3129_v42 }
 0xff4   :  { %v3196_v53 = vsel %vm208_vm2, %v3174_v59, 0.0  ;;  %v3202_v58 = vsel %vm208_vm2, %v3176_v13, 0.0 }
 0xff5   :  { %3133 = vadd.xlane.f32.xlu1 %v3132_v39 }
 0xff7   :  { %3136 = vadd.xlane.f32.xlu0 %v3135_v34 }
 0xff9   :  { %3188 = vadd.xlane.f32.xlu1 %v3187_v9 }
 0xffb   :  { %3191 = vadd.xlane.f32.xlu0 %v3190_v27 }
 0xffd   :  { %3194 = vadd.xlane.f32.xlu1 %v3193_v18 }
 0xfff   :  { %3197 = vadd.xlane.f32.xlu0 %v3196_v53 }
0x1001   :  { %3200 = vadd.xlane.f32.xlu1 %v3199_v38 }
0x1003   :  { %3203 = vadd.xlane.f32.xlu0 %v3202_v58 }
0x1005   :  { %3206 = vadd.xlane.f32.xlu1 %v3205_v10 }
0x1007   :  { %3209 = vadd.xlane.f32.xlu0 %v3208_v23 }
0x1072   :  { %v3116_v63 = vpop.xlane.xlu1 %3115 }
0x1073   :  { %v3147_v41 = vmul.f32 0.03125, %v3116_v63 }
0x1074   :  { %v3119_v52 = vpop.xlane.xlu0 %3118 }
0x1075   :  { %v11802_v55 = vsub.f32 %v11706_v20, %v3147_v41  ;;  %v3148_v44 = vmul.f32 0.03125, %v3119_v52  ;;  %v14389_v41 = vsub.s32 2, %v14495_v12 }
0x1076   :  { %v3122_v30 = vpop.xlane.xlu1 %3121 }
0x1077   :  { %v11805_v24 = vsub.f32 %v11713_v22, %v3148_v44  ;;  %v3149_v25 = vmul.f32 0.03125, %v3122_v30  ;;  %v3179_v48 = vmul.f32 %v11802_v55, %v11802_v55 }
0x1078   :  { %v3125_v60 = vpop.xlane.xlu0 %3124 }
0x1079   :  { %v11810_v50 = vsub.f32 %v11702_v21, %v3149_v25  ;;  %v3150_v6 = vmul.f32 0.03125, %v3125_v60  ;;  %v3211_v47 = vsel %vm208_vm2, %v3179_v48, 0.0  ;;  %v3180_v20 = vmul.f32 %v11805_v24, %v11805_v24 }
0x107a   :  { %3212 = vadd.xlane.f32.xlu1 %v3211_v47  ;;  %v14388_v47 = vsub.s32 3, %v14495_v12 }
0x107b   :  { %v11816_v40 = vsub.f32 %v11710_v33, %v3150_v6  ;;  %v3214_v22 = vsel %vm208_vm2, %v3180_v20, 0.0  ;;  %v3181_v51 = vmul.f32 %v11810_v50, %v11810_v50  ;;  %v11853_v6 = vrot.slane %v11644_v4, %v14389_v41 }
0x107c   :  { %3215 = vadd.xlane.f32.xlu0 %v3214_v22 }
0x107d   :  { %v3217_v43 = vsel %vm208_vm2, %v3181_v51, 0.0  ;;  %v3182_v21 = vmul.f32 %v11816_v40, %v11816_v40 }
0x107e   :  { %v3128_v16 = vpop.xlane.xlu1 %3127  ;;  %3218 = vadd.xlane.f32.xlu1 %v3217_v43 }
0x107f   :  { %v3151_v19 = vmul.f32 0.03125, %v3128_v16  ;;  %v3220_v42 = vsel %vm208_vm2, %v3182_v21, 0.0 }
0x1080   :  { %3221 = vadd.xlane.f32.xlu0 %v3220_v42  ;;  %v3131_v29 = vpop.xlane.xlu0 %3130  ;;  %v11860_v42 = vrot.slane %v11644_v4, %v14388_v47 }
0x1081   :  { %v11826_v33 = vsub.f32 %v11730_v31, %v3151_v19  ;;  %v3152_v39 = vmul.f32 0.03125, %v3131_v29 }
0x1082   :  { %v3134_v54 = vpop.xlane.xlu1 %3133 }
0x1083   :  { %v11829_v46 = vsub.f32 %v11740_v62, %v3152_v39  ;;  %v3153_v17 = vmul.f32 0.03125, %v3134_v54  ;;  %v3183_v34 = vmul.f32 %v11826_v33, %v11826_v33 }
0x1084   :  { %v3137_v15 = vpop.xlane.xlu0 %3136 }
0x1085   :  { %v11834_v7 = vsub.f32 %v11726_v3, %v3153_v17  ;;  %v3154_v2 = vmul.f32 0.03125, %v3137_v15  ;;  %v3223_v9 = vsel %vm208_vm2, %v3183_v34, 0.0  ;;  %v3184_v31 = vmul.f32 %v11829_v46, %v11829_v46 }
0x1086   :  { %v3189_v11 = vpop.xlane.xlu1 %3188  ;;  %3224 = vadd.xlane.f32.xlu1 %v3223_v9 }
0x1087   :  { %v11840_v1 = vsub.f32 %v11734_v8, %v3154_v2  ;;  %v3235_v62 = vmul.f32 0.03125, %v3189_v11  ;;  %v3226_v27 = vsel %vm208_vm2, %v3184_v31, 0.0  ;;  %v3185_v59 = vmul.f32 %v11834_v7, %v11834_v7 }
0x1088   :  { %3227 = vadd.xlane.f32.xlu0 %v3226_v27  ;;  %v3192_v3 = vpop.xlane.xlu0 %3191 }
0x1089   :  { %v3251_v18 = vadd.f32 1e-05, %v3235_v62  ;;  %v3236_v0 = vmul.f32 0.03125, %v3192_v3  ;;  %v3229_v53 = vsel %vm208_vm2, %v3185_v59, 0.0  ;;  %v3186_v13 = vmul.f32 %v11840_v1, %v11840_v1 }
0x108a   :  { %3230 = vadd.xlane.f32.xlu1 %v3229_v53  ;;  %v3195_v38 = vpop.xlane.xlu1 %3194 }
0x108b   :  { %9745 = vrsqrt.f32 %v3251_v18  ;;  %v3252_v8 = vadd.f32 1e-05, %v3236_v0  ;;  %v3237_v14 = vmul.f32 0.03125, %v3195_v38  ;;  %v3232_v58 = vsel %vm208_vm2, %v3186_v13, 0.0 }
0x108c   :  { %3233 = vadd.xlane.f32.xlu0 %v3232_v58  ;;  %v3198_v61 = vpop.xlane.xlu0 %3197 }
0x108d   :  { %9747 = vrsqrt.f32 %v3252_v8  ;;  %v3253_v10 = vadd.f32 1e-05, %v3237_v14  ;;  %v3238_v23 = vmul.f32 0.03125, %v3198_v61 }
0x108e   :  { %v3201_v32 = vpop.xlane.xlu1 %3200 }
0x108f   :  { %9749 = vrsqrt.f32 %v3253_v10  ;;  %v3254_v56 = vadd.f32 1e-05, %v3238_v23  ;;  %v3239_v63 = vmul.f32 0.03125, %v3201_v32 }
0x1090   :  { %v3204_v52 = vpop.xlane.xlu0 %3203 }
0x1091   :  { %9751 = vrsqrt.f32 %v3254_v56  ;;  %v3255_v44 = vadd.f32 1e-05, %v3239_v63  ;;  %v3240_v30 = vmul.f32 0.03125, %v3204_v52  ;;  %v9476_v56 = vld [vmem:[%s14354_s5 + $0x8] sm:$0xff]   ;;  %v9477_v63 = vld [vmem:[%s14354_s5 + $0x10] sm:$0xff]   ;;  %v9478_v52 = vld [vmem:[%s14354_s5 + $0x18] sm:$0xff]  }
0x1092   :  { %v3207_v25 = vpop.xlane.xlu1 %3206 }
0x1093   :  { %9753 = vrsqrt.f32 %v3255_v44  ;;  %v3256_v48 = vadd.f32 1e-05, %v3240_v30  ;;  %v3241_v60 = vmul.f32 0.03125, %v3207_v25 }
0x1094   :  { %v3210_v20 = vpop.xlane.xlu0 %3209 }
0x1095   :  { %v9746_v22 = vpop.eup %9745  ;;  %9755 = vrsqrt.f32 %v3256_v48  ;;  %v3257_v51 = vadd.f32 1e-05, %v3241_v60  ;;  %v3242_v43 = vmul.f32 0.03125, %v3210_v20 }
0x1096   :  { %v3283_v21 = vmul.f32 %v9746_v22, %v11737_v49 }
0x1097   :  { %v9748_v16 = vpop.eup %9747  ;;  %9757 = vrsqrt.f32 %v3257_v51  ;;  %v3258_v19 = vadd.f32 1e-05, %v3242_v43 }
0x1098   :  { %v3284_v29 = vmul.f32 %v9748_v16, %v11745_v35  ;;  %v3303_v39 = vmul.f32 %v11853_v6, %v3283_v21 }
0x1099   :  { %v9750_v54 = vpop.eup %9749  ;;  %9759 = vrsqrt.f32 %v3258_v19 }
0x109a   :  { %v3285_v17 = vmul.f32 %v9750_v54, %v11750_v45  ;;  %v3304_v34 = vmul.f32 %v11853_v6, %v3284_v29  ;;  %v11869_v9 = vadd.f32 %v11860_v42, %v3303_v39 }
0x109b   :  { %v9752_v15 = vpop.eup %9751 }
0x109c   :  { %v3305_v49 = vmul.f32 %v11853_v6, %v3285_v17  ;;  %v3286_v2 = vmul.f32 %v9752_v15, %v11757_v5  ;;  %v11872_v31 = vadd.f32 %v11860_v42, %v3304_v34 }
0x109d   :  { %v9754_v35 = vpop.eup %9753 }
0x109e   :  { %v3306_v11 = vmul.f32 %v11853_v6, %v3286_v2  ;;  %v3339_v62 = vpack.c.bf16 %v11872_v31, %v11869_v9  ;;  %v3287_v45 = vmul.f32 %v9754_v35, %v11764_v57  ;;  %v11879_v59 = vadd.f32 %v11860_v42, %v3305_v49 }
0x109f   :  { %v9756_v27 = vpop.eup %9755 }
0x10a0   :  { %v11882_v5 = vadd.f32 %v11860_v42, %v3306_v11  ;;  %8768 = vmatprep.mubr.msk.bf16.mxu1 %vm208_vm2, %v3339_v62  ;;  %v3288_v3 = vmul.f32 %v9756_v27, %v11770_v37  ;;  %v3307_v18 = vmul.f32 %v11853_v6, %v3287_v45 }
0x10a1   :  { %v9758_v0 = vpop.eup %9757 }
0x10a2   :  { %v3340_v53 = vpack.c.bf16 %v11882_v5, %v11879_v59  ;;  %v3308_v13 = vmul.f32 %v11853_v6, %v3288_v3  ;;  %v3289_v57 = vmul.f32 %v9758_v0, %v11776_v36  ;;  %v11893_v8 = vadd.f32 %v11860_v42, %v3307_v18 }
0x10a3   :  { %v9760_v38 = vpop.eup %9759 }
0x10a4   :  { %8769 = vmatmul.mubr.msk.bf16.vlgmr.msra.gmra.mrb[88].mxu1 %vm208_vm2, %v3340_v53  ;;  %v11896_v14 = vadd.f32 %v11860_v42, %v3308_v13  ;;  %v3290_v37 = vmul.f32 %v9760_v38, %v11782_v28  ;;  %v3309_v58 = vmul.f32 %v11853_v6, %v3289_v57  ;;  %v9475_v28 = vld [vmem:[%s14354_s5] sm:$0xff]  }
0x10a5   :  { %8784 = vmatprep.subr.bf16.mxu0 %v9475_v28 }
0x10a6   :  { %v3341_v61 = vpack.c.bf16 %v11896_v14, %v11893_v8  ;;  %v3310_v10 = vmul.f32 %v11853_v6, %v3290_v37  ;;  %v11905_v36 = vadd.f32 %v11860_v42, %v3309_v58  ;;  %8785 = vmatpush3.bf16.msra.mxu0 %v9475_v28 }
0x10a7   :  { %8786 = vmatprep.subr.bf16.mxu0 %v9476_v56 }
0x10a8   :  { %8772 = vmatprep.mubr.msk.bf16.mxu1 %vm208_vm2, %v3341_v61  ;;  %v11908_v23 = vadd.f32 %v11860_v42, %v3310_v10 }
0x10aa   :  { %v3342_v32 = vpack.c.bf16 %v11908_v23, %v11905_v36  ;;  %8787 = vmatpush3.bf16.msra.mxu0 %v9476_v56 }
0x10ab   :  { %8788 = vmatprep.subr.bf16.mxu0 %v9477_v63 }
0x10ac   :  { %8773 = vmatmul.mubr.msk.bf16.gmra.mrb[92].mxu1 %vm208_vm2, %v3342_v32 }
0x10ae   :  { %8789 = vmatpush3.bf16.msra.mxu0 %v9477_v63 }
0x10af   :  { %8790 = vmatprep.subr.bf16.mxu0 %v9478_v52 }
0x10b2   :  { %8791 = vmatpush3.bf16.msra.mxu0 %v9478_v52 }
0x1107   :  { %v3213_v44 = vpop.xlane.xlu1 %3212 }
0x1108   :  { %v3243_v30 = vmul.f32 0.03125, %v3213_v44 }
0x1109   :  { %v3216_v25 = vpop.xlane.xlu0 %3215 }
0x110a   :  { %v3259_v48 = vadd.f32 1e-05, %v3243_v30  ;;  %v3244_v60 = vmul.f32 0.03125, %v3216_v25 }
0x110b   :  { %v3219_v20 = vpop.xlane.xlu1 %3218 }
0x110c   :  { %9761 = vrsqrt.f32 %v3259_v48  ;;  %v3260_v22 = vadd.f32 1e-05, %v3244_v60  ;;  %v3245_v51 = vmul.f32 0.03125, %v3219_v20 }
0x110d   :  { %v3222_v43 = vpop.xlane.xlu0 %3221 }
0x110e   :  { %9763 = vrsqrt.f32 %v3260_v22  ;;  %v3261_v21 = vadd.f32 1e-05, %v3245_v51  ;;  %v3246_v16 = vmul.f32 0.03125, %v3222_v43 }
0x1110   :  { %9765 = vrsqrt.f32 %v3261_v21  ;;  %v3262_v19 = vadd.f32 1e-05, %v3246_v16 }
0x1112   :  { %9767 = vrsqrt.f32 %v3262_v19 }
0x1113   :  { %v3225_v29 = vpop.xlane.xlu1 %3224 }
0x1114   :  { %v3247_v39 = vmul.f32 0.03125, %v3225_v29 }
0x1115   :  { %v3228_v54 = vpop.xlane.xlu0 %3227 }
0x1116   :  { %v9762_v17 = vpop.eup %9761  ;;  %v3263_v34 = vadd.f32 1e-05, %v3247_v39  ;;  %v3248_v15 = vmul.f32 0.03125, %v3228_v54 }
0x1117   :  { %v3231_v49 = vpop.xlane.xlu1 %3230  ;;  %v3291_v2 = vmul.f32 %v9762_v17, %v11802_v55 }
0x1118   :  { %v9764_v35 = vpop.eup %9763  ;;  %9769 = vrsqrt.f32 %v3263_v34  ;;  %v3264_v11 = vadd.f32 1e-05, %v3248_v15  ;;  %v3249_v62 = vmul.f32 0.03125, %v3231_v49 }
0x1119   :  { %v3234_v45 = vpop.xlane.xlu0 %3233  ;;  %v3292_v27 = vmul.f32 %v9764_v35, %v11805_v24  ;;  %v3311_v3 = vmul.f32 %v11853_v6, %v3291_v2 }
0x111a   :  { %v9766_v18 = vpop.eup %9765  ;;  %9771 = vrsqrt.f32 %v3264_v11  ;;  %v3265_v0 = vadd.f32 1e-05, %v3249_v62  ;;  %v3250_v53 = vmul.f32 0.03125, %v3234_v45 }
0x111b   :  { %v3312_v13 = vmul.f32 %v11853_v6, %v3292_v27  ;;  %v3293_v57 = vmul.f32 %v9766_v18, %v11810_v50  ;;  %v11931_v37 = vadd.f32 %v11860_v42, %v3311_v3 }
0x111c   :  { %v9768_v38 = vpop.eup %9767  ;;  %9773 = vrsqrt.f32 %v3265_v0  ;;  %v3266_v55 = vadd.f32 1e-05, %v3250_v53 }
0x111d   :  { %v11934_v58 = vadd.f32 %v11860_v42, %v3312_v13  ;;  %v3294_v24 = vmul.f32 %v9768_v38, %v11816_v40  ;;  %v3313_v61 = vmul.f32 %v11853_v6, %v3293_v57 }
0x111e   :  { %9775 = vrsqrt.f32 %v3266_v55 }
0x111f   :  { %v3343_v10 = vpack.c.bf16 %v11934_v58, %v11931_v37  ;;  %v3314_v32 = vmul.f32 %v11853_v6, %v3294_v24  ;;  %v11943_v50 = vadd.f32 %v11860_v42, %v3313_v61 }
0x1121   :  { %8776 = vmatprep.mubr.msk.bf16.mxu1 %vm208_vm2, %v3343_v10  ;;  %v11946_v28 = vadd.f32 %v11860_v42, %v3314_v32 }
0x1122   :  { %v9770_v56 = vpop.eup %9769 }
0x1123   :  { %v3344_v40 = vpack.c.bf16 %v11946_v28, %v11943_v50  ;;  %v3295_v63 = vmul.f32 %v9770_v56, %v11826_v33 }
0x1124   :  { %v9772_v52 = vpop.eup %9771 }
0x1125   :  { %8777 = vmatmul.mubr.msk.bf16.gmra.mrb[96].mxu1 %vm208_vm2, %v3344_v40  ;;  %v3296_v44 = vmul.f32 %v9772_v52, %v11829_v46  ;;  %v3315_v30 = vmul.f32 %v11853_v6, %v3295_v63 }
0x1126   :  { %v9774_v25 = vpop.eup %9773 }
0x1127   :  { %v3316_v48 = vmul.f32 %v11853_v6, %v3296_v44  ;;  %v3297_v60 = vmul.f32 %v9774_v25, %v11834_v7  ;;  %v11957_v22 = vadd.f32 %v11860_v42, %v3315_v30 }
0x1128   :  { %v9776_v20 = vpop.eup %9775 }
0x1129   :  { %v11960_v51 = vadd.f32 %v11860_v42, %v3316_v48  ;;  %v3298_v33 = vmul.f32 %v9776_v20, %v11840_v1  ;;  %v3317_v43 = vmul.f32 %v11853_v6, %v3297_v60  ;;  %v14387_v1 = vsub.s32 4, %v14495_v12 }
0x112b   :  { %v3345_v46 = vpack.c.bf16 %v11960_v51, %v11957_v22  ;;  %v3318_v21 = vmul.f32 %v11853_v6, %v3298_v33  ;;  %v11969_v7 = vadd.f32 %v11860_v42, %v3317_v43  ;;  %v3354_v29 = vrot.slane %v11644_v4, %v14387_v1 }
0x112d   :  { %8780 = vmatprep.mubr.msk.bf16.mxu1 %vm208_vm2, %v3345_v46  ;;  %v11972_v16 = vadd.f32 %v11860_v42, %v3318_v21 }
0x112f   :  { %v3346_v19 = vpack.c.bf16 %v11972_v16, %v11969_v7 }
0x1131   :  { %8781 = vmatmul.mubr.msk.bf16.gmra.mrb[100].mxu1 %vm208_vm2, %v3346_v19 }
0x1177   :  { %v8770_v6 = vpop.f32.mrb[88].mxu1 }
0x1178   :  { %v3434_v39 = vadd.f32 %v8770_v6, %v3354_v29  ;;  %v3425_v54 = vpop.f32.mrb[89].mxu1 }
0x1179   :  { %v3426_v17 = vadd.f32 %v3425_v54, %v3354_v29  ;;  %v8771_v34 = vpop.f32.mrb[90].mxu1 }
0x117a   :  { %v3437_v15 = vadd.f32 %v8771_v34, %v3354_v29  ;;  %v3428_v49 = vpop.f32.mrb[91].mxu1  ;;  %v3490_v2 = vmax.f32 %v3434_v39, 0.0 }
0x117b   :  { %v3429_v42 = vadd.f32 %v3428_v49, %v3354_v29  ;;  %v3488_v11 = vmax.f32 %v3426_v17, 0.0 }
0x117c   :  { %v3491_v35 = vmax.f32 %v3437_v15, 0.0 }
0x117d   :  { %v3489_v62 = vmax.f32 %v3429_v42, 0.0 }
0x117e   :  { %v3505_v45 = vpack.c.bf16 %v3491_v35, %v3490_v2 }
0x117f   :  { %v3504_v27 = vpack.c.bf16 %v3489_v62, %v3488_v11  ;;  %v8774_v3 = vpop.f32.mrb[92].mxu1 }
0x1180   :  { %v3450_v18 = vadd.f32 %v8774_v3, %v3354_v29  ;;  %v3441_v0 = vpop.f32.mrb[93].mxu1 }
0x1181   :  { %v3442_v53 = vadd.f32 %v3441_v0, %v3354_v29  ;;  %v8775_v13 = vpop.f32.mrb[94].mxu1  ;;  %8792 = vmatprep.mubr.msk.bf16.mxu0 %vm556_vm3, %v3504_v27 }
0x1182   :  { %v3453_v57 = vadd.f32 %v8775_v13, %v3354_v29  ;;  %v3444_v38 = vpop.f32.mrb[95].mxu1  ;;  %8793 = vmatmul.mubr.msk.bf16.vlgmr.msra.gmra.mrb[88].mxu0 %vm556_vm3, %v3505_v45  ;;  %v3494_v24 = vmax.f32 %v3450_v18, 0.0  ;;  %v14386_v18 = vsub.s32 5, %v14495_v12 }
0x1183   :  { %v3445_v55 = vadd.f32 %v3444_v38, %v3354_v29  ;;  %v3492_v10 = vmax.f32 %v3442_v53, 0.0 }
0x1184   :  { %v3495_v61 = vmax.f32 %v3453_v57, 0.0  ;;  %v11993_v0 = vrot.slane %v11644_v4, %v14386_v18 }
0x1185   :  { %v3493_v32 = vmax.f32 %v3445_v55, 0.0 }
0x1186   :  { %v3507_v56 = vpack.c.bf16 %v3495_v61, %v3494_v24 }
0x1187   :  { %v3506_v40 = vpack.c.bf16 %v3493_v32, %v3492_v10 }
0x1189   :  { %8796 = vmatprep.mubr.msk.bf16.mxu0 %vm556_vm3, %v3506_v40 }
0x118a   :  { %8797 = vmatmul.mubr.msk.bf16.gmra.mrb[92].mxu0 %vm556_vm3, %v3507_v56 }
0x11f8   :  { %v8778_v63 = vpop.f32.mrb[96].mxu1 }
0x11f9   :  { %v3466_v52 = vadd.f32 %v8778_v63, %v3354_v29  ;;  %v3457_v44 = vpop.f32.mrb[97].mxu1 }
0x11fa   :  { %v3458_v30 = vadd.f32 %v3457_v44, %v3354_v29  ;;  %v8779_v25 = vpop.f32.mrb[98].mxu1 }
0x11fb   :  { %v3469_v48 = vadd.f32 %v8779_v25, %v3354_v29  ;;  %v3460_v60 = vpop.f32.mrb[99].mxu1  ;;  %v3498_v33 = vmax.f32 %v3466_v52, 0.0 }
0x11fc   :  { %v3461_v20 = vadd.f32 %v3460_v60, %v3354_v29  ;;  %v3496_v46 = vmax.f32 %v3458_v30, 0.0 }
0x11fd   :  { %v3499_v43 = vmax.f32 %v3469_v48, 0.0 }
0x11fe   :  { %v3497_v21 = vmax.f32 %v3461_v20, 0.0 }
0x11ff   :  { %v3509_v19 = vpack.c.bf16 %v3499_v43, %v3498_v33 }
0x1200   :  { %v3508_v6 = vpack.c.bf16 %v3497_v21, %v3496_v46 }
0x1202   :  { %8800 = vmatprep.mubr.msk.bf16.mxu0 %vm556_vm3, %v3508_v6 }
0x1203   :  { %8801 = vmatmul.mubr.msk.bf16.gmra.mrb[96].mxu0 %vm556_vm3, %v3509_v19 }
0x1204   :  { %v8782_v39 = vpop.f32.mrb[100].mxu1 }
0x1205   :  { %v3482_v54 = vadd.f32 %v8782_v39, %v3354_v29  ;;  %v3473_v17 = vpop.f32.mrb[101].mxu1 }
0x1206   :  { %v3474_v34 = vadd.f32 %v3473_v17, %v3354_v29  ;;  %v8783_v15 = vpop.f32.mrb[102].mxu1 }
0x1207   :  { %v3485_v49 = vadd.f32 %v8783_v15, %v3354_v29  ;;  %v3476_v42 = vpop.f32.mrb[103].mxu1  ;;  %v3502_v35 = vmax.f32 %v3482_v54, 0.0 }
0x1208   :  { %v3477_v2 = vadd.f32 %v3476_v42, %v3354_v29  ;;  %v3500_v62 = vmax.f32 %v3474_v34, 0.0 }
0x1209   :  { %v3503_v11 = vmax.f32 %v3485_v49, 0.0 }
0x120a   :  { %v3501_v45 = vmax.f32 %v3477_v2, 0.0 }
0x120b   :  { %v3511_v27 = vpack.c.bf16 %v3503_v11, %v3502_v35 }
0x120c   :  { %v3510_v3 = vpack.c.bf16 %v3501_v45, %v3500_v62 }
0x120e   :  { %8804 = vmatprep.mubr.msk.bf16.mxu0 %vm556_vm3, %v3510_v3 }
0x120f   :  { %8805 = vmatmul.mubr.msk.bf16.gmra.mrb[100].mxu0 %vm556_vm3, %v3511_v27 }
0x1255   :  { %v8794_v53 = vpop.f32.mrb[88].mxu0 }
0x1256   :  { %v3606_v13 = vpop.f32.mrb[89].mxu0  ;;  %v3615_v29 = vadd.f32 %v8794_v53, %v11993_v0 }
0x1257   :  { %v3607_v57 = vadd.f32 %v3606_v13, %v11993_v0  ;;  %v8795_v38 = vpop.f32.mrb[90].mxu0 }
0x1258   :  { %v3609_v55 = vpop.f32.mrb[91].mxu0  ;;  %v3618_v61 = vadd.f32 %v8795_v38, %v11993_v0  ;;  %v12003_v32 = vadd.f32 %v3615_v29, %v11879_v59 }
0x1259   :  { %v11998_v24 = vadd.f32 %v3607_v57, %v11869_v9  ;;  %v3610_v10 = vadd.f32 %v3609_v55, %v11993_v0 }
0x125a   :  { %v12011_v40 = vadd.f32 %v3618_v61, %v11882_v5 }
0x125b   :  { %v12006_v4 = vadd.f32 %v3610_v10, %v11872_v31  ;;  %v3685_v56 = vsel %vm208_vm2, %v11998_v24, 0.0  ;;  %v3691_v31 = vsel %vm208_vm2, %v12003_v32, 0.0 }
0x125c   :  { %3686 = vadd.xlane.f32.xlu1 %v3685_v56  ;;  %v3694_v20 = vsel %vm208_vm2, %v12011_v40, 0.0 }
0x125d   :  { %v8798_v63 = vpop.f32.mrb[92].mxu0  ;;  %v3688_v9 = vsel %vm208_vm2, %v12006_v4, 0.0 }
0x125e   :  { %3689 = vadd.xlane.f32.xlu0 %v3688_v9  ;;  %v3622_v52 = vpop.f32.mrb[93].mxu0  ;;  %v3631_v44 = vadd.f32 %v8798_v63, %v11993_v0 }
0x125f   :  { %v3623_v59 = vadd.f32 %v3622_v52, %v11993_v0  ;;  %v8799_v30 = vpop.f32.mrb[94].mxu0 }
0x1260   :  { %3692 = vadd.xlane.f32.xlu1 %v3691_v31  ;;  %v3625_v25 = vpop.f32.mrb[95].mxu0  ;;  %v3634_v5 = vadd.f32 %v8799_v30, %v11993_v0  ;;  %v12027_v33 = vadd.f32 %v3631_v44, %v11905_v36 }
0x1261   :  { %v12020_v48 = vadd.f32 %v3623_v59, %v11893_v8  ;;  %v3626_v60 = vadd.f32 %v3625_v25, %v11993_v0 }
0x1262   :  { %3695 = vadd.xlane.f32.xlu0 %v3694_v20  ;;  %v12035_v8 = vadd.f32 %v3634_v5, %v11908_v23  ;;  %v3703_v19 = vsel %vm208_vm2, %v12027_v33, 0.0 }
0x1263   :  { %v12030_v43 = vadd.f32 %v3626_v60, %v11896_v14  ;;  %v3697_v46 = vsel %vm208_vm2, %v12020_v48, 0.0 }
0x1264   :  { %3698 = vadd.xlane.f32.xlu1 %v3697_v46  ;;  %v3706_v36 = vsel %vm208_vm2, %v12035_v8, 0.0 }
0x1265   :  { %v3700_v21 = vsel %vm208_vm2, %v12030_v43, 0.0 }
0x1266   :  { %3701 = vadd.xlane.f32.xlu0 %v3700_v21 }
0x1268   :  { %3704 = vadd.xlane.f32.xlu1 %v3703_v19 }
0x126a   :  { %3707 = vadd.xlane.f32.xlu0 %v3706_v36 }
0x12d6   :  { %v8802_v14 = vpop.f32.mrb[96].mxu0 }
0x12d7   :  { %v3638_v6 = vpop.f32.mrb[97].mxu0  ;;  %v3647_v39 = vadd.f32 %v8802_v14, %v11993_v0 }
0x12d8   :  { %v3639_v54 = vadd.f32 %v3638_v6, %v11993_v0  ;;  %v8803_v23 = vpop.f32.mrb[98].mxu0 }
0x12d9   :  { %v3641_v17 = vpop.f32.mrb[99].mxu0  ;;  %v3650_v15 = vadd.f32 %v8803_v23, %v11993_v0  ;;  %v12051_v42 = vadd.f32 %v3647_v39, %v11943_v50 }
0x12da   :  { %v12046_v34 = vadd.f32 %v3639_v54, %v11931_v37  ;;  %v3642_v49 = vadd.f32 %v3641_v17, %v11993_v0 }
0x12db   :  { %v12059_v11 = vadd.f32 %v3650_v15, %v11946_v28  ;;  %v3715_v62 = vsel %vm208_vm2, %v12051_v42, 0.0 }
0x12dc   :  { %v12054_v2 = vadd.f32 %v3642_v49, %v11934_v58  ;;  %v3709_v35 = vsel %vm208_vm2, %v12046_v34, 0.0 }
0x12dd   :  { %3710 = vadd.xlane.f32.xlu1 %v3709_v35  ;;  %v3718_v58 = vsel %vm208_vm2, %v12059_v11, 0.0 }
0x12de   :  { %v3712_v37 = vsel %vm208_vm2, %v12054_v2, 0.0 }
0x12df   :  { %3713 = vadd.xlane.f32.xlu0 %v3712_v37 }
0x12e1   :  { %3716 = vadd.xlane.f32.xlu1 %v3715_v62 }
0x12e2   :  { %v8806_v50 = vpop.f32.mrb[100].mxu0 }
0x12e3   :  { %3719 = vadd.xlane.f32.xlu0 %v3718_v58  ;;  %v3654_v45 = vpop.f32.mrb[101].mxu0  ;;  %v3663_v27 = vadd.f32 %v8806_v50, %v11993_v0 }
0x12e4   :  { %v3655_v3 = vadd.f32 %v3654_v45, %v11993_v0  ;;  %v8807_v28 = vpop.f32.mrb[102].mxu0 }
0x12e5   :  { %v3657_v53 = vpop.f32.mrb[103].mxu0  ;;  %v3666_v29 = vadd.f32 %v8807_v28, %v11993_v0  ;;  %v12075_v38 = vadd.f32 %v3663_v27, %v11969_v7  ;;  %v9479_v27 = vld [vmem:[%s14351_s2 + $0x10] sm:$0xff]  }
0x12e6   :  { %v12070_v13 = vadd.f32 %v3655_v3, %v11957_v22  ;;  %v3658_v57 = vadd.f32 %v3657_v53, %v11993_v0  ;;  %8808 = vmatprep.subr.bf16.mxu1 %v9479_v27 }
0x12e7   :  { %v12083_v56 = vadd.f32 %v3666_v29, %v11972_v16  ;;  %8809 = vmatpush3.bf16.msra.mxu1 %v9479_v27 }
0x12e8   :  { %v12078_v55 = vadd.f32 %v3658_v57, %v11960_v51  ;;  %v3721_v61 = vsel %vm208_vm2, %v12070_v13, 0.0  ;;  %v3727_v51 = vsel %vm208_vm2, %v12075_v38, 0.0 }
0x12e9   :  { %v3687_v10 = vpop.xlane.xlu1 %3686  ;;  %3722 = vadd.xlane.f32.xlu1 %v3721_v61  ;;  %v3730_v59 = vsel %vm208_vm2, %v12083_v56, 0.0 }
0x12ea   :  { %v3733_v22 = vmul.f32 0.03125, %v3687_v10  ;;  %v3724_v63 = vsel %vm208_vm2, %v12078_v55, 0.0 }
0x12eb   :  { %3725 = vadd.xlane.f32.xlu0 %v3724_v63  ;;  %v3690_v0 = vpop.xlane.xlu0 %3689 }
0x12ec   :  { %v12088_v7 = vsub.f32 %v11998_v24, %v3733_v22  ;;  %v3734_v9 = vmul.f32 0.03125, %v3690_v0 }
0x12ed   :  { %v3693_v52 = vpop.xlane.xlu1 %3692  ;;  %3728 = vadd.xlane.f32.xlu1 %v3727_v51 }
0x12ee   :  { %v12093_v44 = vsub.f32 %v12006_v4, %v3734_v9  ;;  %v3735_v16 = vmul.f32 0.03125, %v3693_v52  ;;  %v3765_v30 = vmul.f32 %v12088_v7, %v12088_v7 }
0x12ef   :  { %3731 = vadd.xlane.f32.xlu0 %v3730_v59  ;;  %v3696_v31 = vpop.xlane.xlu0 %3695 }
0x12f0   :  { %v12100_v24 = vsub.f32 %v12003_v32, %v3735_v16  ;;  %v3736_v25 = vmul.f32 0.03125, %v3696_v31  ;;  %v3781_v5 = vsel %vm208_vm2, %v3765_v30, 0.0  ;;  %v3766_v60 = vmul.f32 %v12093_v44, %v12093_v44 }
0x12f1   :  { %v3699_v4 = vpop.xlane.xlu1 %3698  ;;  %3782 = vadd.xlane.f32.xlu1 %v3781_v5 }
0x12f2   :  { %v12106_v20 = vsub.f32 %v12011_v40, %v3736_v25  ;;  %v3737_v46 = vmul.f32 0.03125, %v3699_v4  ;;  %v3784_v21 = vsel %vm208_vm2, %v3766_v60, 0.0  ;;  %v3767_v19 = vmul.f32 %v12100_v24, %v12100_v24 }
0x12f3   :  { %3785 = vadd.xlane.f32.xlu0 %v3784_v21  ;;  %v3702_v32 = vpop.xlane.xlu0 %3701 }
0x12f4   :  { %v12112_v36 = vsub.f32 %v12020_v48, %v3737_v46  ;;  %v3738_v14 = vmul.f32 0.03125, %v3702_v32  ;;  %v3787_v6 = vsel %vm208_vm2, %v3767_v19, 0.0  ;;  %v3768_v39 = vmul.f32 %v12106_v20, %v12106_v20 }
0x12f5   :  { %v3705_v54 = vpop.xlane.xlu1 %3704  ;;  %3788 = vadd.xlane.f32.xlu1 %v3787_v6 }
0x12f6   :  { %v12118_v40 = vsub.f32 %v12030_v43, %v3738_v14  ;;  %v3739_v23 = vmul.f32 0.03125, %v3705_v54  ;;  %v3790_v17 = vsel %vm208_vm2, %v3768_v39, 0.0  ;;  %v3769_v15 = vmul.f32 %v12112_v36, %v12112_v36 }
0x12f7   :  { %3791 = vadd.xlane.f32.xlu0 %v3790_v17  ;;  %v3708_v48 = vpop.xlane.xlu0 %3707 }
0x12f8   :  { %v12124_v49 = vsub.f32 %v12027_v33, %v3739_v23  ;;  %v3740_v35 = vmul.f32 0.03125, %v3708_v48  ;;  %v3793_v37 = vsel %vm208_vm2, %v3769_v15, 0.0  ;;  %v3770_v62 = vmul.f32 %v12118_v40, %v12118_v40 }
0x12f9   :  { %3794 = vadd.xlane.f32.xlu1 %v3793_v37 }
0x12fa   :  { %v12130_v43 = vsub.f32 %v12035_v8, %v3740_v35  ;;  %v3796_v50 = vsel %vm208_vm2, %v3770_v62, 0.0  ;;  %v3771_v58 = vmul.f32 %v12124_v49, %v12124_v49  ;;  %v9480_v8 = vld [vmem:[%s14351_s2 + $0x18] sm:$0xff]  }
0x12fb   :  { %3797 = vadd.xlane.f32.xlu0 %v3796_v50  ;;  %8810 = vmatprep.subr.bf16.mxu1 %v9480_v8 }
0x12fc   :  { %v3799_v45 = vsel %vm208_vm2, %v3771_v58, 0.0  ;;  %v3772_v33 = vmul.f32 %v12130_v43, %v12130_v43  ;;  %8811 = vmatpush3.bf16.msra.mxu1 %v9480_v8 }
0x12fd   :  { %3800 = vadd.xlane.f32.xlu1 %v3799_v45 }
0x12fe   :  { %v3802_v3 = vsel %vm208_vm2, %v3772_v33, 0.0 }
0x12ff   :  { %3803 = vadd.xlane.f32.xlu0 %v3802_v3 }
0x136a   :  { %v3711_v28 = vpop.xlane.xlu1 %3710 }
0x136b   :  { %v3741_v53 = vmul.f32 0.03125, %v3711_v28 }
0x136c   :  { %v3714_v29 = vpop.xlane.xlu0 %3713 }
0x136d   :  { %v12146_v57 = vsub.f32 %v12046_v34, %v3741_v53  ;;  %v3742_v61 = vmul.f32 0.03125, %v3714_v29 }
0x136e   :  { %v3717_v10 = vpop.xlane.xlu1 %3716 }
0x136f   :  { %v12149_v22 = vsub.f32 %v12054_v2, %v3742_v61  ;;  %v3743_v63 = vmul.f32 0.03125, %v3717_v10  ;;  %v3773_v0 = vmul.f32 %v12146_v57, %v12146_v57  ;;  %v14385_v10 = vsub.s32 6, %v14495_v12 }
0x1370   :  { %v3720_v9 = vpop.xlane.xlu0 %3719 }
0x1371   :  { %v12154_v51 = vsub.f32 %v12051_v42, %v3743_v63  ;;  %v3744_v52 = vmul.f32 0.03125, %v3720_v9  ;;  %v3805_v16 = vsel %vm208_vm2, %v3773_v0, 0.0  ;;  %v3774_v34 = vmul.f32 %v12149_v22, %v12149_v22 }
0x1372   :  { %3806 = vadd.xlane.f32.xlu1 %v3805_v16 }
0x1373   :  { %v12160_v59 = vsub.f32 %v12059_v11, %v3744_v52  ;;  %v3808_v2 = vsel %vm208_vm2, %v3774_v34, 0.0  ;;  %v3775_v30 = vmul.f32 %v12154_v51, %v12154_v51 }
0x1374   :  { %3809 = vadd.xlane.f32.xlu0 %v3808_v2  ;;  %v10134_v2 = vld [vmem:[%s14355_s6] sm:$0xff] }
0x1375   :  { %v3811_v31 = vsel %vm208_vm2, %v3775_v30, 0.0  ;;  %v3776_v42 = vmul.f32 %v12160_v59, %v12160_v59  ;;  %v12199_v30 = vrot.slane %v10134_v2, %v14385_v10 }
0x1376   :  { %3812 = vadd.xlane.f32.xlu1 %v3811_v31  ;;  %v3723_v25 = vpop.xlane.xlu1 %3722  ;;  %v14384_v31 = vsub.s32 7, %v14495_v12 }
0x1377   :  { %v3745_v5 = vmul.f32 0.03125, %v3723_v25  ;;  %v3814_v60 = vsel %vm208_vm2, %v3776_v42, 0.0 }
0x1378   :  { %3815 = vadd.xlane.f32.xlu0 %v3814_v60  ;;  %v3726_v4 = vpop.xlane.xlu0 %3725 }
0x1379   :  { %v12170_v11 = vsub.f32 %v12070_v13, %v3745_v5  ;;  %v3746_v46 = vmul.f32 0.03125, %v3726_v4 }
0x137a   :  { %v3729_v21 = vpop.xlane.xlu1 %3728 }
0x137b   :  { %v12173_v19 = vsub.f32 %v12078_v55, %v3746_v46  ;;  %v3747_v32 = vmul.f32 0.03125, %v3729_v21  ;;  %v3777_v14 = vmul.f32 %v12170_v11, %v12170_v11 }
0x137c   :  { %v3732_v6 = vpop.xlane.xlu0 %3731 }
0x137d   :  { %v12178_v39 = vsub.f32 %v12075_v38, %v3747_v32  ;;  %v3748_v54 = vmul.f32 0.03125, %v3732_v6  ;;  %v3817_v23 = vsel %vm208_vm2, %v3777_v14, 0.0  ;;  %v3778_v13 = vmul.f32 %v12173_v19, %v12173_v19 }
0x137e   :  { %3818 = vadd.xlane.f32.xlu1 %v3817_v23  ;;  %v3783_v17 = vpop.xlane.xlu1 %3782  ;;  %v12205_v32 = vrot.slane %v10134_v2, %v14384_v31 }
0x137f   :  { %v12184_v15 = vsub.f32 %v12083_v56, %v3748_v54  ;;  %v3829_v55 = vmul.f32 0.03125, %v3783_v17  ;;  %v3820_v48 = vsel %vm208_vm2, %v3778_v13, 0.0  ;;  %v3779_v35 = vmul.f32 %v12178_v39, %v12178_v39 }
0x1380   :  { %3821 = vadd.xlane.f32.xlu0 %v3820_v48  ;;  %v3786_v38 = vpop.xlane.xlu0 %3785 }
0x1381   :  { %v3845_v37 = vadd.f32 1e-05, %v3829_v55  ;;  %v3830_v62 = vmul.f32 0.03125, %v3786_v38  ;;  %v3823_v50 = vsel %vm208_vm2, %v3779_v35, 0.0  ;;  %v3780_v58 = vmul.f32 %v12184_v15, %v12184_v15 }
0x1382   :  { %3824 = vadd.xlane.f32.xlu1 %v3823_v50  ;;  %v3789_v45 = vpop.xlane.xlu1 %3788 }
0x1383   :  { %9777 = vrsqrt.f32 %v3845_v37  ;;  %v3846_v56 = vadd.f32 1e-05, %v3830_v62  ;;  %v3831_v33 = vmul.f32 0.03125, %v3789_v45  ;;  %v3826_v27 = vsel %vm208_vm2, %v3780_v58, 0.0 }
0x1384   :  { %3827 = vadd.xlane.f32.xlu0 %v3826_v27  ;;  %v3792_v3 = vpop.xlane.xlu0 %3791 }
0x1385   :  { %9779 = vrsqrt.f32 %v3846_v56  ;;  %v3847_v8 = vadd.f32 1e-05, %v3831_v33  ;;  %v3832_v28 = vmul.f32 0.03125, %v3792_v3 }
0x1386   :  { %v3795_v53 = vpop.xlane.xlu1 %3794 }
0x1387   :  { %9781 = vrsqrt.f32 %v3847_v8  ;;  %v3848_v29 = vadd.f32 1e-05, %v3832_v28  ;;  %v3833_v61 = vmul.f32 0.03125, %v3795_v53 }
0x1388   :  { %v3798_v63 = vpop.xlane.xlu0 %3797 }
0x1389   :  { %9783 = vrsqrt.f32 %v3848_v29  ;;  %v3849_v0 = vadd.f32 1e-05, %v3833_v61  ;;  %v3834_v9 = vmul.f32 0.03125, %v3798_v63 }
0x138a   :  { %v3801_v52 = vpop.xlane.xlu1 %3800 }
0x138b   :  { %9785 = vrsqrt.f32 %v3849_v0  ;;  %v3850_v16 = vadd.f32 1e-05, %v3834_v9  ;;  %v3835_v34 = vmul.f32 0.03125, %v3801_v52 }
0x138c   :  { %v3804_v42 = vpop.xlane.xlu0 %3803 }
0x138d   :  { %v9778_v25 = vpop.eup %9777  ;;  %9787 = vrsqrt.f32 %v3850_v16  ;;  %v3851_v5 = vadd.f32 1e-05, %v3835_v34  ;;  %v3836_v60 = vmul.f32 0.03125, %v3804_v42 }
0x138e   :  { %v3877_v4 = vmul.f32 %v9778_v25, %v12088_v7 }
0x138f   :  { %v9780_v46 = vpop.eup %9779  ;;  %9789 = vrsqrt.f32 %v3851_v5  ;;  %v3852_v21 = vadd.f32 1e-05, %v3836_v60 }
0x1390   :  { %v3878_v14 = vmul.f32 %v9780_v46, %v12093_v44  ;;  %v3897_v6 = vmul.f32 %v12199_v30, %v3877_v4 }
0x1391   :  { %v9782_v54 = vpop.eup %9781  ;;  %9791 = vrsqrt.f32 %v3852_v21 }
0x1392   :  { %v3879_v23 = vmul.f32 %v9782_v54, %v12100_v24  ;;  %v3898_v13 = vmul.f32 %v12199_v30, %v3878_v14  ;;  %v12214_v48 = vadd.f32 %v12205_v32, %v3897_v6 }
0x1393   :  { %v9784_v17 = vpop.eup %9783 }
0x1394   :  { %v3899_v7 = vmul.f32 %v12199_v30, %v3879_v23  ;;  %v3880_v55 = vmul.f32 %v9784_v17, %v12106_v20  ;;  %14512 = vst [vmem:[#allocation23_spill] sm:$0xff] %v12214_v48  ;;  %v12217_v35 = vadd.f32 %v12205_v32, %v3898_v13 }
0x1395   :  { %v9786_v44 = vpop.eup %9785 }
0x1396   :  { %14513 = vst [vmem:[#allocation24_spill] sm:$0xff] %v12217_v35  ;;  %v3900_v38 = vmul.f32 %v12199_v30, %v3880_v55  ;;  %v3935_v37 = vpack.c.bf16 %v12217_v35, %v12214_v48  ;;  %v3881_v24 = vmul.f32 %v9786_v44, %v12112_v36  ;;  %v12224_v50 = vadd.f32 %v12205_v32, %v3899_v7 }
0x1397   :  { %v9788_v62 = vpop.eup %9787 }
0x1398   :  { %14514 = vst [vmem:[#allocation22_spill] sm:$0xff] %v12224_v50  ;;  %v12227_v20 = vadd.f32 %v12205_v32, %v3900_v38  ;;  %8812 = vmatprep.mubr.msk.bf16.mxu1 %vm208_vm2, %v3935_v37  ;;  %v3882_v58 = vmul.f32 %v9788_v62, %v12118_v40  ;;  %v3901_v45 = vmul.f32 %v12199_v30, %v3881_v24 }
0x1399   :  { %v9790_v56 = vpop.eup %9789 }
0x139a   :  { %14515 = vst [vmem:[#allocation27_spill] sm:$0xff] %v12227_v20  ;;  %v3936_v33 = vpack.c.bf16 %v12227_v20, %v12224_v50  ;;  %v3902_v27 = vmul.f32 %v12199_v30, %v3882_v58  ;;  %v3883_v36 = vmul.f32 %v9790_v56, %v12124_v49  ;;  %v12238_v8 = vadd.f32 %v12205_v32, %v3901_v45 }
0x139b   :  { %v9792_v3 = vpop.eup %9791 }
0x139c   :  { %8813 = vmatmul.mubr.msk.bf16.vlgmr.msra.gmra.mrb[104].mxu1 %vm208_vm2, %v3936_v33  ;;  %14516 = vst [vmem:[#allocation25_spill] sm:$0xff] %v12238_v8  ;;  %v12241_v28 = vadd.f32 %v12205_v32, %v3902_v27  ;;  %v3884_v40 = vmul.f32 %v9792_v3, %v12130_v43  ;;  %v3903_v53 = vmul.f32 %v12199_v30, %v3883_v36 }
0x139e   :  { %14517 = vst [vmem:[#allocation28_spill] sm:$0xff] %v12241_v28  ;;  %v3937_v29 = vpack.c.bf16 %v12241_v28, %v12238_v8  ;;  %v3904_v61 = vmul.f32 %v12199_v30, %v3884_v40  ;;  %v12250_v49 = vadd.f32 %v12205_v32, %v3903_v53 }
0x13a0   :  { %8816 = vmatprep.mubr.msk.bf16.mxu1 %vm208_vm2, %v3937_v29  ;;  %14518 = vst [vmem:[#allocation26_spill] sm:$0xff] %v12250_v49  ;;  %v12253_v63 = vadd.f32 %v12205_v32, %v3904_v61 }
0x13a2   :  { %14519 = vst [vmem:[#allocation39_spill] sm:$0xff] %v12253_v63  ;;  %v3938_v0 = vpack.c.bf16 %v12253_v63, %v12250_v49 }
0x13a4   :  { %8817 = vmatmul.mubr.msk.bf16.gmra.mrb[108].mxu1 %vm208_vm2, %v3938_v0 }
0x13ff   :  { %v3807_v43 = vpop.xlane.xlu1 %3806 }
0x1400   :  { %v3837_v9 = vmul.f32 0.03125, %v3807_v43 }
0x1401   :  { %v3810_v52 = vpop.xlane.xlu0 %3809 }
0x1402   :  { %v3853_v16 = vadd.f32 1e-05, %v3837_v9  ;;  %v3838_v34 = vmul.f32 0.03125, %v3810_v52 }
0x1403   :  { %v3813_v2 = vpop.xlane.xlu1 %3812 }
0x1404   :  { %9793 = vrsqrt.f32 %v3853_v16  ;;  %v3854_v42 = vadd.f32 1e-05, %v3838_v34  ;;  %v3839_v25 = vmul.f32 0.03125, %v3813_v2 }
0x1405   :  { %v3816_v5 = vpop.xlane.xlu0 %3815 }
0x1406   :  { %9795 = vrsqrt.f32 %v3854_v42  ;;  %v3855_v60 = vadd.f32 1e-05, %v3839_v25  ;;  %v3840_v4 = vmul.f32 0.03125, %v3816_v5 }
0x1408   :  { %9797 = vrsqrt.f32 %v3855_v60  ;;  %v3856_v46 = vadd.f32 1e-05, %v3840_v4 }
0x140a   :  { %9799 = vrsqrt.f32 %v3856_v46 }
0x140b   :  { %v3819_v21 = vpop.xlane.xlu1 %3818 }
0x140c   :  { %v3841_v14 = vmul.f32 0.03125, %v3819_v21 }
0x140d   :  { %v3822_v6 = vpop.xlane.xlu0 %3821 }
0x140e   :  { %v9794_v54 = vpop.eup %9793  ;;  %v3857_v23 = vadd.f32 1e-05, %v3841_v14  ;;  %v3842_v13 = vmul.f32 0.03125, %v3822_v6 }
0x140f   :  { %v3825_v17 = vpop.xlane.xlu1 %3824  ;;  %v3885_v7 = vmul.f32 %v9794_v54, %v12146_v57  ;;  %v14528_v54 = vsub.s32 0, %v14495_v12 }
0x1410   :  { %v9796_v55 = vpop.eup %9795  ;;  %9801 = vrsqrt.f32 %v3857_v23  ;;  %v3858_v44 = vadd.f32 1e-05, %v3842_v13  ;;  %v3843_v38 = vmul.f32 0.03125, %v3825_v17 }
0x1411   :  { %v3828_v37 = vpop.xlane.xlu0 %3827  ;;  %v3886_v24 = vmul.f32 %v9796_v55, %v12149_v22  ;;  %v3905_v62 = vmul.f32 %v12199_v30, %v3885_v7 }
0x1412   :  { %v9798_v58 = vpop.eup %9797  ;;  %9803 = vrsqrt.f32 %v3858_v44  ;;  %v3859_v45 = vadd.f32 1e-05, %v3843_v38  ;;  %v3844_v56 = vmul.f32 0.03125, %v3828_v37 }
0x1413   :  { %v3906_v33 = vmul.f32 %v12199_v30, %v3886_v24  ;;  %v3887_v27 = vmul.f32 %v9798_v58, %v12154_v51  ;;  %v12264_v3 = vadd.f32 %v12205_v32, %v3905_v62 }
0x1414   :  { %v9800_v36 = vpop.eup %9799  ;;  %9805 = vrsqrt.f32 %v3859_v45  ;;  %v3860_v57 = vadd.f32 1e-05, %v3844_v56 }
0x1415   :  { %14520 = vst [vmem:[#allocation37_spill] sm:$0xff] %v12264_v3  ;;  %v12267_v40 = vadd.f32 %v12205_v32, %v3906_v33  ;;  %v3888_v22 = vmul.f32 %v9800_v36, %v12160_v59  ;;  %v3907_v53 = vmul.f32 %v12199_v30, %v3887_v27 }
0x1416   :  { %9807 = vrsqrt.f32 %v3860_v57 }
0x1417   :  { %14521 = vst [vmem:[#allocation40_spill] sm:$0xff] %v12267_v40  ;;  %v3939_v29 = vpack.c.bf16 %v12267_v40, %v12264_v3  ;;  %v3908_v61 = vmul.f32 %v12199_v30, %v3888_v22  ;;  %v12276_v51 = vadd.f32 %v12205_v32, %v3907_v53 }
0x1419   :  { %8820 = vmatprep.mubr.msk.bf16.mxu1 %vm208_vm2, %v3939_v29  ;;  %14522 = vst [vmem:[#allocation38_spill] sm:$0xff] %v12276_v51  ;;  %v12279_v0 = vadd.f32 %v12205_v32, %v3908_v61 }
0x141a   :  { %v9802_v43 = vpop.eup %9801 }
0x141b   :  { %14523 = vst [vmem:[#allocation43_spill] sm:$0xff] %v12279_v0  ;;  %v3940_v59 = vpack.c.bf16 %v12279_v0, %v12276_v51  ;;  %v3889_v9 = vmul.f32 %v9802_v43, %v12170_v11 }
0x141c   :  { %v9804_v52 = vpop.eup %9803 }
0x141d   :  { %8821 = vmatmul.mubr.msk.bf16.gmra.mrb[112].mxu1 %vm208_vm2, %v3940_v59  ;;  %v3890_v16 = vmul.f32 %v9804_v52, %v12173_v19  ;;  %v3909_v34 = vmul.f32 %v12199_v30, %v3889_v9 }
0x141e   :  { %v9806_v2 = vpop.eup %9805 }
0x141f   :  { %v3910_v42 = vmul.f32 %v12199_v30, %v3890_v16  ;;  %v3891_v25 = vmul.f32 %v9806_v2, %v12178_v39  ;;  %v12290_v60 = vadd.f32 %v12205_v32, %v3909_v34 }
0x1420   :  { %v9808_v5 = vpop.eup %9807 }
0x1421   :  { %14524 = vst [vmem:[#allocation41_spill] sm:$0xff] %v12290_v60  ;;  %v12293_v4 = vadd.f32 %v12205_v32, %v3910_v42  ;;  %v3892_v11 = vmul.f32 %v9808_v5, %v12184_v15  ;;  %v3911_v46 = vmul.f32 %v12199_v30, %v3891_v25  ;;  %v7974_v15 = vld [vmem:[%s14355_s6 + $0x8] sm:$0xff] }
0x1423   :  { %14525 = vst [vmem:[#allocation44_spill] sm:$0xff] %v12293_v4  ;;  %v3941_v19 = vpack.c.bf16 %v12293_v4, %v12290_v60  ;;  %v3912_v21 = vmul.f32 %v12199_v30, %v3892_v11  ;;  %v12302_v39 = vadd.f32 %v12205_v32, %v3911_v46  ;;  %v3951_v30 = vrot.slane %v7974_v15, %v14528_v54 }
0x1425   :  { %8824 = vmatprep.mubr.msk.bf16.mxu1 %vm208_vm2, %v3941_v19  ;;  %14526 = vst [vmem:[#allocation42_spill] sm:$0xff] %v12302_v39  ;;  %v12305_v14 = vadd.f32 %v12205_v32, %v3912_v21 }
0x1427   :  { %14527 = vst [vmem:[#allocation31_spill] sm:$0xff] %v12305_v14  ;;  %v3942_v6 = vpack.c.bf16 %v12305_v14, %v12302_v39 }
0x1429   :  { %8825 = vmatmul.mubr.msk.bf16.gmra.mrb[116].mxu1 %vm208_vm2, %v3942_v6 }
0x146f   :  { %v8814_v23 = vpop.f32.mrb[104].mxu1 }
0x1470   :  { %v4022_v13 = vpop.f32.mrb[105].mxu1  ;;  %v4031_v7 = vadd.f32 %v8814_v23, %v3951_v30 }
0x1471   :  { %v8815_v17 = vpop.f32.mrb[106].mxu1  ;;  %v4023_v32 = vadd.f32 %v4022_v13, %v3951_v30 }
0x1472   :  { %v4034_v55 = vadd.f32 %v8815_v17, %v3951_v30  ;;  %v4025_v44 = vpop.f32.mrb[107].mxu1 }
0x1473   :  { %v4026_v38 = vadd.f32 %v4025_v44, %v3951_v30 }
0x1474   :  { %v12315_v37 = vpack.c.bf16 %v4034_v55, %v4031_v7 }
0x1475   :  { %v12317_v24 = vpack.c.bf16 %v4026_v38, %v4023_v32 }
0x1476   :  { %4099 = vrot.lane.b32.xlu0 %v12315_v37, %s10161_s15 }
0x1477   :  { %4097 = vrot.lane.b32.xlu1 %v12317_v24, %s10161_s15  ;;  %v8818_v62 = vpop.f32.mrb[108].mxu1  ;;  %8836 = vmatprep.mubr.msk.bf16.mxu0 %vm53_vm1, %v12317_v24 }
0x1478   :  { %v4038_v58 = vpop.f32.mrb[109].mxu1  ;;  %v4047_v56 = vadd.f32 %v8818_v62, %v3951_v30 }
0x1479   :  { %v8819_v45 = vpop.f32.mrb[110].mxu1  ;;  %v4039_v36 = vadd.f32 %v4038_v58, %v3951_v30 }
0x147a   :  { %v4050_v33 = vadd.f32 %v8819_v45, %v3951_v30  ;;  %v4041_v27 = vpop.f32.mrb[111].mxu1 }
0x147b   :  { %v4042_v57 = vadd.f32 %v4041_v27, %v3951_v30 }
0x147c   :  { %v12325_v22 = vpack.c.bf16 %v4050_v33, %v4047_v56 }
0x147d   :  { %v12327_v53 = vpack.c.bf16 %v4042_v57, %v4039_v36 }
0x147e   :  { %4103 = vrot.lane.b32.xlu0 %v12325_v22, %s10161_s15 }
0x147f   :  { %4101 = vrot.lane.b32.xlu1 %v12327_v53, %s10161_s15 }
0x14e8   :  { %v4100_v43 = vpop.permute.xlu0 %4099 }
0x14e9   :  { %v4098_v29 = vpop.permute.xlu1 %4097  ;;  %v4121_v16 = vsel %vm53_vm1, %v4100_v43, 0 }
0x14ea   :  { %9181 = vmatprep.subr.msk.bf16.mxu0 %vm53_vm1, %v4098_v29  ;;  %v4118_v61 = vsel %vm53_vm1, %v4098_v29, 0 }
0x14eb   :  { %8829 = vmatpush3.bf16.xpose.msra.mxu0 %v4118_v61 }
0x14ec   :  { %9182 = vmatprep.subr.msk.bf16.mxu0 %vm53_vm1, %v4100_v43 }
0x14f0   :  { %v8822_v59 = vpop.f32.mrb[112].mxu1  ;;  %v4104_v6 = vpop.permute.xlu0 %4103 }
0x14f1   :  { %v4054_v9 = vpop.f32.mrb[113].mxu1  ;;  %v4063_v34 = vadd.f32 %v8822_v59, %v3951_v30  ;;  %v4102_v2 = vpop.permute.xlu1 %4101  ;;  %v4127_v62 = vsel %vm53_vm1, %v4104_v6, 0 }
0x14f2   :  { %v8823_v52 = vpop.f32.mrb[114].mxu1  ;;  %v4055_v5 = vadd.f32 %v4054_v9, %v3951_v30  ;;  %v4124_v21 = vsel %vm53_vm1, %v4102_v2, 0 }
0x14f3   :  { %v4066_v42 = vadd.f32 %v8823_v52, %v3951_v30  ;;  %v4057_v25 = vpop.f32.mrb[115].mxu1  ;;  %8831 = vmatpush3.bf16.xpose.msra.mxu0 %v4121_v16 }
0x14f4   :  { %v4058_v11 = vadd.f32 %v4057_v25, %v3951_v30  ;;  %9183 = vmatprep.subr.msk.bf16.mxu0 %vm53_vm1, %v4102_v2 }
0x14f5   :  { %v12338_v46 = vpack.c.bf16 %v4066_v42, %v4063_v34 }
0x14f6   :  { %v12340_v19 = vpack.c.bf16 %v4058_v11, %v4055_v5 }
0x14f8   :  { %4198 = vrot.lane.b32.xlu1 %v12340_v19, %s10161_s15  ;;  %8852 = vmatprep.mubr.msk.bf16.mxu1 %vm53_vm1, %v12340_v19 }
0x14fb   :  { %8833 = vmatpush3.bf16.xpose.msra.mxu0 %v4124_v21 }
0x14fc   :  { %4200 = vrot.lane.b32.xlu1 %v12338_v46, %s10161_s15  ;;  %v8826_v15 = vpop.f32.mrb[116].mxu1  ;;  %9184 = vmatprep.subr.msk.bf16.mxu0 %vm53_vm1, %v4104_v6 }
0x14fd   :  { %v4070_v54 = vpop.f32.mrb[117].mxu1  ;;  %v4079_v13 = vadd.f32 %v8826_v15, %v3951_v30 }
0x14fe   :  { %v8827_v23 = vpop.f32.mrb[118].mxu1  ;;  %v4071_v55 = vadd.f32 %v4070_v54, %v3951_v30 }
0x14ff   :  { %v4082_v17 = vadd.f32 %v8827_v23, %v3951_v30  ;;  %v4073_v7 = vpop.f32.mrb[119].mxu1 }
0x1500   :  { %v4074_v44 = vadd.f32 %v4073_v7, %v3951_v30 }
0x1501   :  { %v12350_v32 = vpack.c.bf16 %v4082_v17, %v4079_v13 }
0x1502   :  { %v12352_v38 = vpack.c.bf16 %v4074_v44, %v4071_v55 }
0x1503   :  { %4204 = vrot.lane.b32.xlu1 %v12350_v32, %s10161_s15  ;;  %8835 = vmatpush3.bf16.xpose.msra.mxu0 %v4127_v62 }
0x1504   :  { %4202 = vrot.lane.b32.xlu0 %v12352_v38, %s10161_s15 }
0x150a   :  { %8837 = vmatmul.mubr.msk.bf16.vlgmr.msra.gmra.mrb[104].mxu0 %vm53_vm1, %v12315_v37 }
0x150b   :  { %8840 = vmatprep.mubr.msk.bf16.mxu0 %vm53_vm1, %v12327_v53 }
0x1512   :  { %8841 = vmatmul.mubr.msk.bf16.gmra.mrb[108].mxu0 %vm53_vm1, %v12325_v22 }
0x156a   :  { %v4199_v30 = vpop.permute.xlu1 %4198 }
0x156b   :  { %9185 = vmatprep.subr.msk.bf16.mxu1 %vm53_vm1, %v4199_v30  ;;  %v4219_v58 = vsel %vm53_vm1, %v4199_v30, 0 }
0x156c   :  { %8845 = vmatpush3.bf16.xpose.msra.mxu1 %v4219_v58 }
0x156e   :  { %v4201_v45 = vpop.permute.xlu1 %4200 }
0x156f   :  { %9186 = vmatprep.subr.msk.bf16.mxu1 %vm53_vm1, %v4201_v45  ;;  %v4222_v56 = vsel %vm53_vm1, %v4201_v45, 0 }
0x1574   :  { %8847 = vmatpush3.bf16.xpose.msra.mxu1 %v4222_v56 }
0x1575   :  { %v4205_v36 = vpop.permute.xlu1 %4204 }
0x1576   :  { %v4203_v33 = vpop.permute.xlu0 %4202  ;;  %v4228_v57 = vsel %vm53_vm1, %v4205_v36, 0 }
0x1577   :  { %9187 = vmatprep.subr.msk.bf16.mxu1 %vm53_vm1, %v4203_v33  ;;  %v4225_v27 = vsel %vm53_vm1, %v4203_v33, 0 }
0x157c   :  { %8849 = vmatpush3.bf16.xpose.msra.mxu1 %v4225_v27 }
0x157d   :  { %9188 = vmatprep.subr.msk.bf16.mxu1 %vm53_vm1, %v4205_v36 }
0x1584   :  { %8851 = vmatpush3.bf16.xpose.msra.mxu1 %v4228_v57 }
0x158b   :  { %8853 = vmatmul.mubr.msk.bf16.vlgmr.msra.gmra.mrb[120].mxu1 %vm53_vm1, %v12338_v46 }
0x158c   :  { %8856 = vmatprep.mubr.msk.bf16.mxu1 %vm53_vm1, %v12352_v38 }
0x1593   :  { %8857 = vmatmul.mubr.msk.bf16.gmra.mrb[124].mxu1 %vm53_vm1, %v12350_v32 }
0x15dd   :  { %v8838_v29 = vpop.f32.mrb[104].mxu0 }
0x15de   :  { %v4163_v61 = vpop.f32.mrb[105].mxu0  ;;  %v4297_v52 = vmul.f32 0.35355338, %v8838_v29 }
0x15df   :  { %v4295_v43 = vmul.f32 0.35355338, %v4163_v61  ;;  %v8839_v59 = vpop.f32.mrb[106].mxu0 }
0x15e0   :  { %v4166_v9 = vpop.f32.mrb[107].mxu0  ;;  %v4298_v42 = vmul.f32 0.35355338, %v8839_v59  ;;  %v4317_v5 = vsel %vm556_vm3, %v4297_v52, -inf }
0x15e1   :  { %v4296_v16 = vmul.f32 0.35355338, %v4166_v9  ;;  %v4311_v34 = vsel %vm556_vm3, %v4295_v43, -inf }
0x15e2   :  { %4312 = vmax.xlane.f32.xlu0 %v4311_v34  ;;  %v4320_v13 = vsel %vm556_vm3, %v4298_v42, -inf }
0x15e3   :  { %v4314_v2 = vsel %vm556_vm3, %v4296_v16, -inf }
0x15e4   :  { %4315 = vmax.xlane.f32.xlu1 %v4314_v2 }
0x15e5   :  { %v8842_v25 = vpop.f32.mrb[108].mxu0 }
0x15e6   :  { %4318 = vmax.xlane.f32.xlu0 %v4317_v5  ;;  %v4179_v11 = vpop.f32.mrb[109].mxu0  ;;  %v4301_v54 = vmul.f32 0.35355338, %v8842_v25 }
0x15e7   :  { %v4299_v21 = vmul.f32 0.35355338, %v4179_v11  ;;  %v8843_v6 = vpop.f32.mrb[110].mxu0 }
0x15e8   :  { %v4182_v15 = vpop.f32.mrb[111].mxu0  ;;  %v4302_v7 = vmul.f32 0.35355338, %v8843_v6  ;;  %v4329_v55 = vsel %vm556_vm3, %v4301_v54, -inf }
0x15e9   :  { %v12382_v23 = vmul.f32 0.35355338, %v4182_v15  ;;  %v4323_v17 = vsel %vm556_vm3, %v4299_v21, -inf }
0x15ea   :  { %4321 = vmax.xlane.f32.xlu0 %v4320_v13  ;;  %4324 = vmax.xlane.f32.xlu1 %v4323_v17  ;;  %v4332_v62 = vsel %vm556_vm3, %v4302_v7, -inf }
0x15eb   :  { %v4326_v44 = vsel %vm556_vm3, %v12382_v23, -inf }
0x15ee   :  { %4330 = vmax.xlane.f32.xlu1 %v4329_v55  ;;  %4327 = vmax.xlane.f32.xlu0 %v4326_v44 }
0x15f2   :  { %4333 = vmax.xlane.f32.xlu0 %v4332_v62 }
0x165e   :  { %v12390_v30 = vpop.f32.mrb[120].mxu1 }
0x165f   :  { %v12392_v58 = vpop.f32.mrb[121].mxu1 }
0x1660   :  { %v12394_v45 = vpop.f32.mrb[122].mxu1 }
0x1661   :  { %v12396_v56 = vpop.f32.mrb[123].mxu1 }
0x1666   :  { %v12398_v33 = vpop.f32.mrb[124].mxu1 }
0x1667   :  { %v12400_v27 = vpop.f32.mrb[125].mxu1 }
0x1668   :  { %v12402_v36 = vpop.f32.mrb[126].mxu1 }
0x1669   :  { %v12404_v57 = vpop.f32.mrb[127].mxu1 }
0x166f   :  { %v4313_v29 = vpop.xlane.xlu0 %4312 }
0x1670   :  { %v4359_v61 = vsub.f32 %v4295_v43, %v4313_v29 }
0x1671   :  { %v4316_v59 = vpop.xlane.xlu1 %4315 }
0x1672   :  { %v4375_v9 = vmul.f32 1.442695, %v4359_v61  ;;  %v4360_v34 = vsub.f32 %v4296_v16, %v4316_v59 }
0x1673   :  { %v4319_v2 = vpop.xlane.xlu0 %4318 }
0x1674   :  { %9809 = vpow2.f32 %v4375_v9  ;;  %v4377_v25 = vmul.f32 1.442695, %v4360_v34  ;;  %v4361_v5 = vsub.f32 %v4297_v52, %v4319_v2 }
0x1676   :  { %9811 = vpow2.f32 %v4377_v25  ;;  %v4379_v11 = vmul.f32 1.442695, %v4361_v5 }
0x1677   :  { %v4322_v6 = vpop.xlane.xlu0 %4321  ;;  %v4325_v29 = vpop.xlane.xlu1 %4324 }
0x1678   :  { %9813 = vpow2.f32 %v4379_v11  ;;  %v4362_v15 = vsub.f32 %v4298_v42, %v4322_v6  ;;  %v4363_v59 = vsub.f32 %v4299_v21, %v4325_v29  ;;  %v12462_v29 = vmul.f32 0.35355338, %v12394_v45 }
0x167a   :  { %v4381_v13 = vmul.f32 1.442695, %v4362_v15  ;;  %v4383_v34 = vmul.f32 1.442695, %v4363_v59  ;;  %v4344_v59 = vsel %vm556_vm3, %v12462_v29, -inf }
0x167b   :  { %v4328_v61 = vpop.xlane.xlu0 %4327  ;;  %v4331_v9 = vpop.xlane.xlu1 %4330 }
0x167c   :  { %9815 = vpow2.f32 %v4381_v13  ;;  %v4365_v2 = vsub.f32 %v4301_v54, %v4331_v9  ;;  %v4364_v25 = vsub.f32 %v12382_v23, %v4328_v61  ;;  %v12465_v61 = vmul.f32 0.35355338, %v12396_v56 }
0x167d   :  { %9817 = vpow2.f32 %v4383_v34  ;;  %v12470_v9 = vmul.f32 0.35355338, %v12402_v36  ;;  %v12480_v56 = vmul.f32 0.35355338, %v12390_v30  ;;  %v12485_v36 = vmul.f32 0.35355338, %v12392_v58 }
0x167e   :  { %v12406_v17 = vpop.eup %9809  ;;  %v4387_v11 = vmul.f32 1.442695, %v4365_v2  ;;  %v4385_v15 = vmul.f32 1.442695, %v4364_v25  ;;  %v4338_v34 = vsel %vm556_vm3, %v12465_v61, -inf }
0x167f   :  { %v4407_v55 = vsel %vm556_vm3, %v12406_v17, 0.0  ;;  %v4334_v5 = vpop.xlane.xlu0 %4333  ;;  %v12475_v2 = vmul.f32 0.35355338, %v12404_v57  ;;  %v4356_v45 = vsel %vm556_vm3, %v12470_v9, -inf  ;;  %v12490_v57 = vmul.f32 0.35355338, %v12398_v33 }
0x1680   :  { %v12410_v43 = vpop.eup %9811  ;;  %4408 = vadd.xlane.f32.xlu1 %v4407_v55  ;;  %v4366_v6 = vsub.f32 %v4302_v7, %v4334_v5  ;;  %9819 = vpow2.f32 %v4387_v11  ;;  %v4341_v5 = vsel %vm556_vm3, %v12480_v56, -inf }
0x1681   :  { %v4410_v16 = vsel %vm556_vm3, %v12410_v43, 0.0  ;;  %9821 = vpow2.f32 %v4385_v15  ;;  %v4350_v25 = vsel %vm556_vm3, %v12475_v2, -inf  ;;  %v12495_v15 = vmul.f32 0.35355338, %v12400_v27 }
0x1682   :  { %v12414_v44 = vpop.eup %9813  ;;  %4411 = vadd.xlane.f32.xlu0 %v4410_v16  ;;  %v4389_v13 = vmul.f32 1.442695, %v4366_v6  ;;  %v4335_v6 = vsel %vm556_vm3, %v12485_v36, -inf }
0x1683   :  { %v4413_v52 = vsel %vm556_vm3, %v12414_v44, 0.0  ;;  %v4347_v33 = vsel %vm556_vm3, %v12495_v15, -inf }
0x1684   :  { %4414 = vadd.xlane.f32.xlu1 %v4413_v52  ;;  %9823 = vpow2.f32 %v4389_v13  ;;  %v4353_v13 = vsel %vm556_vm3, %v12490_v57, -inf }
0x1686   :  { %v12418_v42 = vpop.eup %9815 }
0x1687   :  { %v4416_v62 = vsel %vm556_vm3, %v12418_v42, 0.0  ;;  %v12431_v55 = vpop.eup %9817 }
0x1688   :  { %4417 = vadd.xlane.f32.xlu0 %v4416_v62  ;;  %v4419_v16 = vsel %vm556_vm3, %v12431_v55, 0.0 }
0x168a   :  { %v12435_v21 = vpop.eup %9819 }
0x168b   :  { %v12437_v54 = vpop.eup %9821  ;;  %v4425_v23 = vsel %vm556_vm3, %v12435_v21, 0.0 }
0x168c   :  { %v4422_v7 = vsel %vm556_vm3, %v12437_v54, 0.0 }
0x168e   :  { %v12441_v52 = vpop.eup %9823 }
0x168f   :  { %v4428_v62 = vsel %vm556_vm3, %v12441_v52, 0.0 }
0x1695   :  { %4495 = vrot.lane.b32.xlu1 %v12317_v24, %s10162_s16 }
0x1699   :  { %4499 = vrot.lane.b32.xlu1 %v12327_v53, %s10162_s16 }
0x169e   :  { %4497 = vrot.lane.b32.xlu0 %v12315_v37, %s10162_s16 }
0x16a2   :  { %4501 = vrot.lane.b32.xlu0 %v12325_v22, %s10162_s16 }
0x16bd   :  { %4420 = vadd.xlane.f32.xlu1 %v4419_v16 }
0x16c1   :  { %4426 = vadd.xlane.f32.xlu1 %v4425_v23  ;;  %4423 = vadd.xlane.f32.xlu0 %v4422_v7 }
0x16c5   :  { %4429 = vadd.xlane.f32.xlu1 %v4428_v62 }
0x16d6   :  { %4584 = vrot.lane.b32.xlu1 %v12340_v19, %s10162_s16 }
0x16d7   :  { %4586 = vrot.lane.b32.xlu0 %v12338_v46, %s10162_s16 }
0x16da   :  { %4681 = vrot.lane.b32.xlu1 %v12317_v24, %s10163_s17 }
0x16db   :  { %4590 = vrot.lane.b32.xlu0 %v12350_v32, %s10162_s16 }
0x16de   :  { %4683 = vrot.lane.b32.xlu1 %v12315_v37, %s10163_s17 }
0x16e2   :  { %4685 = vrot.lane.b32.xlu1 %v12327_v53, %s10163_s17 }
0x16e6   :  { %4588 = vrot.lane.b32.xlu1 %v12352_v38, %s10162_s16 }
0x16fa   :  { %4345 = vmax.xlane.f32.xlu0 %v4344_v59 }
0x16fe   :  { %4339 = vmax.xlane.f32.xlu0 %v4338_v34 }
0x1702   :  { %4357 = vmax.xlane.f32.xlu0 %v4356_v45 }
0x1706   :  { %4351 = vmax.xlane.f32.xlu0 %v4350_v25 }
0x170a   :  { %4342 = vmax.xlane.f32.xlu1 %v4341_v5 }
0x170d   :  { %v4409_v11 = vpop.xlane.xlu1 %4408 }
0x170e   :  { %9825 = vrcp.f32 %v4409_v11  ;;  %4336 = vmax.xlane.f32.xlu1 %v4335_v6 }
0x170f   :  { %v4412_v30 = vpop.xlane.xlu0 %4411 }
0x1710   :  { %9827 = vrcp.f32 %v4412_v30 }
0x1711   :  { %v4415_v58 = vpop.xlane.xlu1 %4414 }
0x1712   :  { %4354 = vmax.xlane.f32.xlu1 %v4353_v13  ;;  %9829 = vrcp.f32 %v4415_v58 }
0x1715   :  { %v4496_v16 = vpop.permute.xlu1 %4495  ;;  %v4418_v23 = vpop.xlane.xlu0 %4417 }
0x1716   :  { %8860 = vmatprep.subr.bf16.mxu0 %v4496_v16  ;;  %4348 = vmax.xlane.f32.xlu1 %v4347_v33  ;;  %9831 = vrcp.f32 %v4418_v23 }
0x1717   :  { %8861 = vmatpush3.bf16.msra.mxu0 %v4496_v16 }
0x1718   :  { %v9826_v7 = vpop.eup %9825 }
0x1719   :  { %v4498_v59 = vpop.permute.xlu0 %4497  ;;  %v4471_v27 = vmul.f32 %v9826_v7, %v12406_v17  ;;  %v4500_v45 = vpop.permute.xlu1 %4499 }
0x171a   :  { %v9828_v62 = vpop.eup %9827  ;;  %8862 = vmatprep.subr.bf16.mxu0 %v4498_v59 }
0x171b   :  { %v4472_v34 = vmul.f32 %v9828_v62, %v12410_v43  ;;  %8863 = vmatpush3.bf16.msra.mxu0 %v4498_v59 }
0x171c   :  { %4786 = vrot.lane.b32.xlu0 %v12340_v19, %s10163_s17  ;;  %8864 = vmatprep.subr.bf16.mxu0 %v4500_v45  ;;  %v9830_v5 = vpop.eup %9829 }
0x171d   :  { %v4487_v25 = vpack.c.bf16 %v4472_v34, %v4471_v27  ;;  %v4502_v11 = vpop.permute.xlu0 %4501  ;;  %v4473_v30 = vmul.f32 %v9830_v5, %v12414_v44 }
0x171f   :  { %8868 = vmatprep.mubr.msk.bf16.mxu0 %vm556_vm3, %v4487_v25  ;;  %8865 = vmatpush3.bf16.msra.mxu0 %v4500_v45 }
0x1720   :  { %v9832_v6 = vpop.eup %9831  ;;  %8866 = vmatprep.subr.bf16.mxu0 %v4502_v11 }
0x1721   :  { %v4474_v17 = vmul.f32 %v9832_v6, %v12418_v42 }
0x1723   :  { %v4488_v58 = vpack.c.bf16 %v4474_v17, %v4473_v30  ;;  %8867 = vmatpush3.bf16.msra.mxu0 %v4502_v11 }
0x1726   :  { %8869 = vmatmul.mubr.msk.bf16.vlgmr.msra.gmra.mrb[112].mxu0 %vm556_vm3, %v4488_v58 }
0x1727   :  { %4687 = vrot.lane.b32.xlu1 %v12325_v22, %s10163_s17 }
0x172b   :  { %4788 = vrot.lane.b32.xlu1 %v12338_v46, %s10163_s17 }
0x174a   :  { %v4421_v43 = vpop.xlane.xlu1 %4420 }
0x174b   :  { %9833 = vrcp.f32 %v4421_v43 }
0x174e   :  { %v4427_v13 = vpop.xlane.xlu1 %4426  ;;  %v4424_v16 = vpop.xlane.xlu0 %4423 }
0x174f   :  { %9835 = vrcp.f32 %v4424_v16 }
0x1750   :  { %9837 = vrcp.f32 %v4427_v13 }
0x1752   :  { %v4430_v33 = vpop.xlane.xlu1 %4429  ;;  %v4587_v23 = vpop.permute.xlu0 %4586 }
0x1753   :  { %9839 = vrcp.f32 %v4430_v33 }
0x1755   :  { %v9834_v42 = vpop.eup %9833 }
0x1756   :  { %v4585_v44 = vpop.permute.xlu1 %4584  ;;  %v4475_v34 = vmul.f32 %v9834_v42, %v12431_v55  ;;  %v4591_v43 = vpop.permute.xlu0 %4590 }
0x1757   :  { %8876 = vmatprep.subr.bf16.mxu1 %v4585_v44 }
0x1758   :  { %8877 = vmatpush3.bf16.msra.mxu1 %v4585_v44 }
0x1759   :  { %8878 = vmatprep.subr.bf16.mxu1 %v4587_v23  ;;  %v9836_v7 = vpop.eup %9835 }
0x175a   :  { %v4682_v62 = vpop.permute.xlu1 %4681  ;;  %v9838_v59 = vpop.eup %9837  ;;  %v4476_v45 = vmul.f32 %v9836_v7, %v12437_v54 }
0x175b   :  { %9189 = vmatprep.subr.msk.bf16.mxu0 %vm53_vm1, %v4682_v62  ;;  %v4702_v27 = vsel %vm53_vm1, %v4682_v62, 0  ;;  %v4477_v6 = vmul.f32 %v9838_v59, %v12435_v21 }
0x175c   :  { %8879 = vmatpush3.bf16.msra.mxu1 %v4587_v23  ;;  %8893 = vmatpush3.bf16.xpose.msra.mxu0 %v4702_v27  ;;  %v4489_v5 = vpack.c.bf16 %v4476_v45, %v4475_v34 }
0x175d   :  { %v9840_v25 = vpop.eup %9839 }
0x175e   :  { %v4684_v11 = vpop.permute.xlu1 %4683  ;;  %v4478_v30 = vmul.f32 %v9840_v25, %v12441_v52  ;;  %8872 = vmatprep.mubr.msk.bf16.mxu0 %vm556_vm3, %v4489_v5 }
0x175f   :  { %9190 = vmatprep.subr.msk.bf16.mxu0 %vm53_vm1, %v4684_v11  ;;  %v4705_v55 = vsel %vm53_vm1, %v4684_v11, 0 }
0x1760   :  { %v4490_v17 = vpack.c.bf16 %v4478_v30, %v4477_v6 }
0x1762   :  { %v4686_v58 = vpop.permute.xlu1 %4685  ;;  %8873 = vmatmul.mubr.msk.bf16.gmra.mrb[116].mxu0 %vm556_vm3, %v4490_v17 }
0x1763   :  { %v4708_v21 = vsel %vm53_vm1, %v4686_v58, 0 }
0x1764   :  { %8895 = vmatpush3.bf16.xpose.msra.mxu0 %v4705_v55 }
0x1765   :  { %9191 = vmatprep.subr.msk.bf16.mxu0 %vm53_vm1, %v4686_v58 }
0x1766   :  { %v4589_v54 = vpop.permute.xlu1 %4588 }
0x1767   :  { %8880 = vmatprep.subr.bf16.mxu1 %v4589_v54 }
0x1768   :  { %8881 = vmatpush3.bf16.msra.mxu1 %v4589_v54 }
0x1769   :  { %8882 = vmatprep.subr.bf16.mxu1 %v4591_v43 }
0x176c   :  { %8883 = vmatpush3.bf16.msra.mxu1 %v4591_v43  ;;  %8897 = vmatpush3.bf16.xpose.msra.mxu0 %v4708_v21 }
0x1787   :  { %v4346_v52 = vpop.xlane.xlu0 %4345 }
0x1788   :  { %v4370_v44 = vsub.f32 %v12462_v29, %v4346_v52 }
0x178a   :  { %v4397_v62 = vmul.f32 1.442695, %v4370_v44 }
0x178b   :  { %v4340_v13 = vpop.xlane.xlu0 %4339 }
0x178c   :  { %v4368_v59 = vsub.f32 %v12465_v61, %v4340_v13 }
0x178e   :  { %v4393_v25 = vmul.f32 1.442695, %v4368_v59 }
0x178f   :  { %v4358_v16 = vpop.xlane.xlu0 %4357 }
0x1793   :  { %v4352_v33 = vpop.xlane.xlu0 %4351 }
0x1794   :  { %v4372_v21 = vsub.f32 %v12475_v2, %v4352_v33 }
0x1796   :  { %v4401_v52 = vmul.f32 1.442695, %v4372_v21 }
0x1797   :  { %v4343_v42 = vpop.xlane.xlu1 %4342  ;;  %v12527_v7 = vpop.permute.xlu0 %4786 }
0x1798   :  { %v4369_v23 = vsub.f32 %v12480_v56, %v4343_v42  ;;  %9193 = vmatprep.subr.msk.bf16.mxu1 %vm53_vm1, %v12527_v7 }
0x179a   :  { %v4395_v27 = vmul.f32 1.442695, %v4369_v23  ;;  %v4374_v23 = vsub.f32 %v12470_v9, %v4358_v16 }
0x179b   :  { %v4337_v34 = vpop.xlane.xlu1 %4336 }
0x179c   :  { %9841 = vpow2.f32 %v4395_v27  ;;  %v4367_v45 = vsub.f32 %v12485_v36, %v4337_v34  ;;  %v4405_v59 = vmul.f32 1.442695, %v4374_v23 }
0x179d   :  { %9843 = vpow2.f32 %v4397_v62 }
0x179e   :  { %v4391_v5 = vmul.f32 1.442695, %v4367_v45 }
0x179f   :  { %v4355_v29 = vpop.xlane.xlu1 %4354 }
0x17a0   :  { %9845 = vpow2.f32 %v4391_v5  ;;  %v4373_v13 = vsub.f32 %v12490_v57, %v4355_v29 }
0x17a1   :  { %9847 = vpow2.f32 %v4393_v25 }
0x17a2   :  { %9849 = vpow2.f32 %v4401_v52  ;;  %v4403_v44 = vmul.f32 1.442695, %v4373_v13 }
0x17a3   :  { %v4349_v56 = vpop.xlane.xlu1 %4348 }
0x17a4   :  { %v4371_v42 = vsub.f32 %v12495_v15, %v4349_v56  ;;  %9851 = vpow2.f32 %v4403_v44 }
0x17a6   :  { %v12533_v11 = vpop.eup %9841  ;;  %v4399_v62 = vmul.f32 1.442695, %v4371_v42 }
0x17a7   :  { %v4688_v6 = vpop.permute.xlu1 %4687  ;;  %v4437_v30 = vsel %vm556_vm3, %v12533_v11, 0.0  ;;  %v12537_v17 = vpop.eup %9843 }
0x17a8   :  { %4438 = vadd.xlane.f32.xlu0 %v4437_v30  ;;  %9192 = vmatprep.subr.msk.bf16.mxu0 %vm53_vm1, %v4688_v6  ;;  %v4711_v61 = vsel %vm53_vm1, %v4688_v6, 0  ;;  %v4440_v55 = vsel %vm556_vm3, %v12537_v17, 0.0  ;;  %9853 = vpow2.f32 %v4399_v62 }
0x17a9   :  { %8899 = vmatpush3.bf16.xpose.msra.mxu0 %v4711_v61  ;;  %9855 = vpow2.f32 %v4405_v59 }
0x17aa   :  { %v12541_v36 = vpop.eup %9845 }
0x17ab   :  { %v4431_v58 = vsel %vm556_vm3, %v12541_v36, 0.0  ;;  %v12547_v54 = vpop.eup %9847  ;;  %v4789_v56 = vpop.permute.xlu1 %4788 }
0x17ac   :  { %4432 = vadd.xlane.f32.xlu1 %v4431_v58  ;;  %4441 = vadd.xlane.f32.xlu0 %v4440_v55  ;;  %v4434_v43 = vsel %vm556_vm3, %v12547_v54, 0.0  ;;  %v12559_v27 = vpop.eup %9849 }
0x17ad   :  { %v4446_v34 = vsel %vm556_vm3, %v12559_v27, 0.0 }
0x17ae   :  { %v12563_v2 = vpop.eup %9851 }
0x17af   :  { %v4449_v57 = vsel %vm556_vm3, %v12563_v2, 0.0 }
0x17b0   :  { %4435 = vadd.xlane.f32.xlu0 %v4434_v43 }
0x17b2   :  { %v12567_v33 = vpop.eup %9853 }
0x17b3   :  { %v4443_v9 = vsel %vm556_vm3, %v12567_v33, 0.0  ;;  %v12571_v15 = vpop.eup %9855 }
0x17b4   :  { %v4452_v16 = vsel %vm556_vm3, %v12571_v15, 0.0 }
0x17bd   :  { %4675 = vrot.lane.b32.xlu1 %v12315_v37, %s10164_s18 }
0x17c6   :  { %4673 = vrot.lane.b32.xlu0 %v12317_v24, %s10164_s18 }
0x17e1   :  { %4447 = vadd.xlane.f32.xlu1 %v4446_v34 }
0x17e5   :  { %4450 = vadd.xlane.f32.xlu0 %v4449_v57 }
0x17e9   :  { %4444 = vadd.xlane.f32.xlu0 %v4443_v9 }
0x17ed   :  { %4453 = vadd.xlane.f32.xlu0 %v4452_v16 }
0x17f2   :  { %4792 = vrot.lane.b32.xlu1 %v12350_v32, %s10163_s17 }
0x17f6   :  { %4780 = vrot.lane.b32.xlu1 %v12338_v46, %s10164_s18 }
0x17f9   :  { %v12579_v45 = vpop.f32.mrb[112].mxu0 }
0x17fa   :  { %14529 = vst [vmem:[#allocation29_spill] sm:$0xff] %v12579_v45  ;;  %4679 = vrot.lane.b32.xlu1 %v12325_v22, %s10164_s18  ;;  %v12583_v25 = vpop.f32.mrb[113].mxu0 }
0x17fb   :  { %14530 = vst [vmem:[#allocation32_spill] sm:$0xff] %v12583_v25  ;;  %v12585_v5 = vpop.f32.mrb[114].mxu0 }
0x17fc   :  { %14531 = vst [vmem:[#allocation30_spill] sm:$0xff] %v12585_v5  ;;  %v12587_v29 = vpop.f32.mrb[115].mxu0 }
0x17fd   :  { %14532 = vst [vmem:[#allocation35_spill] sm:$0xff] %v12587_v29 }
0x17fe   :  { %4784 = vrot.lane.b32.xlu1 %v12350_v32, %s10164_s18 }
0x1803   :  { %4790 = vrot.lane.b32.xlu0 %v12352_v38, %s10163_s17 }
0x1807   :  { %4778 = vrot.lane.b32.xlu0 %v12340_v19, %s10164_s18 }
0x180b   :  { %4677 = vrot.lane.b32.xlu0 %v12327_v53, %s10164_s18 }
0x180f   :  { %4782 = vrot.lane.b32.xlu0 %v12352_v38, %s10164_s18 }
0x1835   :  { %v12599_v6 = vpop.f32.mrb[116].mxu0  ;;  %v4439_v30 = vpop.xlane.xlu0 %4438 }
0x1836   :  { %14533 = vst [vmem:[#allocation33_spill] sm:$0xff] %v12599_v6  ;;  %v12601_v61 = vpop.f32.mrb[117].mxu0 }
0x1837   :  { %14534 = vst [vmem:[#allocation36_spill] sm:$0xff] %v12601_v61  ;;  %v12603_v58 = vpop.f32.mrb[118].mxu0 }
0x1838   :  { %14535 = vst [vmem:[#allocation34_spill] sm:$0xff] %v12603_v58  ;;  %v12605_v55 = vpop.f32.mrb[119].mxu0 }
0x1839   :  { %14536 = vst [vmem:[#allocation5_spill] sm:$0xff] %v12605_v55  ;;  %v4433_v43 = vpop.xlane.xlu1 %4432  ;;  %v4442_v21 = vpop.xlane.xlu0 %4441 }
0x183a   :  { %9857 = vrcp.f32 %v4442_v21  ;;  %v4807_v21 = vsel %vm53_vm1, %v12527_v7, 0 }
0x183b   :  { %9859 = vrcp.f32 %v4433_v43 }
0x183c   :  { %9861 = vrcp.f32 %v4439_v30 }
0x183d   :  { %v4436_v52 = vpop.xlane.xlu0 %4435  ;;  %v4676_v44 = vpop.permute.xlu1 %4675 }
0x183e   :  { %9863 = vrcp.f32 %v4436_v52 }
0x1841   :  { %v4674_v13 = vpop.permute.xlu0 %4673 }
0x1842   :  { %8900 = vmatprep.mubr.msk.bf16.mxu0 %vm53_vm1, %v4674_v13 }
0x1843   :  { %8901 = vmatmul.mubr.msk.bf16.vlgmr.msra.gmra.mrb[120].mxu0 %vm53_vm1, %v4676_v44 }
0x1844   :  { %v9858_v42 = vpop.eup %9857 }
0x1845   :  { %v9860_v23 = vpop.eup %9859  ;;  %v4482_v34 = vmul.f32 %v9858_v42, %v12537_v17  ;;  %v4810_v17 = vsel %vm53_vm1, %v4789_v56, 0 }
0x1846   :  { %v9862_v62 = vpop.eup %9861  ;;  %v4479_v57 = vmul.f32 %v9860_v23, %v12541_v36 }
0x1847   :  { %v4481_v16 = vmul.f32 %v9862_v62, %v12533_v11 }
0x1848   :  { %v9864_v59 = vpop.eup %9863 }
0x1849   :  { %v4480_v9 = vmul.f32 %v9864_v59, %v12547_v54  ;;  %v4492_v43 = vpack.c.bf16 %v4482_v34, %v4481_v16 }
0x184b   :  { %v4491_v30 = vpack.c.bf16 %v4480_v9, %v4479_v57 }
0x184d   :  { %8884 = vmatprep.mubr.msk.bf16.mxu1 %vm556_vm3, %v4491_v30 }
0x184e   :  { %8885 = vmatmul.mubr.msk.bf16.vlgmr.msra.gmra.mrb[128].mxu1 %vm556_vm3, %v4492_v43 }
0x184f   :  { %8909 = vmatpush3.bf16.xpose.msra.mxu1 %v4807_v21 }
0x1850   :  { %9194 = vmatprep.subr.msk.bf16.mxu1 %vm53_vm1, %v4789_v56 }
0x1857   :  { %8911 = vmatpush3.bf16.xpose.msra.mxu1 %v4810_v17 }
0x186e   :  { %v4448_v36 = vpop.xlane.xlu1 %4447 }
0x186f   :  { %9865 = vrcp.f32 %v4448_v36 }
0x1872   :  { %v4451_v52 = vpop.xlane.xlu0 %4450  ;;  %v4793_v13 = vpop.permute.xlu1 %4792 }
0x1873   :  { %v4816_v36 = vsel %vm53_vm1, %v4793_v13, 0 }
0x1876   :  { %v4445_v54 = vpop.xlane.xlu0 %4444  ;;  %v4781_v62 = vpop.permute.xlu1 %4780 }
0x1877   :  { %9867 = vrcp.f32 %v4445_v54 }
0x1878   :  { %9869 = vrcp.f32 %v4451_v52 }
0x1879   :  { %v9866_v42 = vpop.eup %9865 }
0x187a   :  { %v4454_v11 = vpop.xlane.xlu0 %4453  ;;  %v4484_v34 = vmul.f32 %v9866_v42, %v12559_v27  ;;  %v4680_v17 = vpop.permute.xlu1 %4679 }
0x187b   :  { %9871 = vrcp.f32 %v4454_v11 }
0x187e   :  { %v4791_v44 = vpop.permute.xlu0 %4790 }
0x187f   :  { %9195 = vmatprep.subr.msk.bf16.mxu1 %vm53_vm1, %v4791_v44  ;;  %v4813_v7 = vsel %vm53_vm1, %v4791_v44, 0 }
0x1880   :  { %8913 = vmatpush3.bf16.xpose.msra.mxu1 %v4813_v7 }
0x1881   :  { %v9868_v23 = vpop.eup %9867  ;;  %9196 = vmatprep.subr.msk.bf16.mxu1 %vm53_vm1, %v4793_v13 }
0x1882   :  { %v4779_v56 = vpop.permute.xlu0 %4778  ;;  %v4483_v59 = vmul.f32 %v9868_v23, %v12567_v33  ;;  %v9870_v57 = vpop.eup %9869 }
0x1883   :  { %v4485_v43 = vmul.f32 %v9870_v57, %v12563_v2  ;;  %v4785_v2 = vpop.permute.xlu1 %4784 }
0x1884   :  { %v4493_v9 = vpack.c.bf16 %v4484_v34, %v4483_v59 }
0x1885   :  { %v9872_v16 = vpop.eup %9871 }
0x1886   :  { %8888 = vmatprep.mubr.msk.bf16.mxu1 %vm556_vm3, %v4493_v9  ;;  %v4678_v30 = vpop.permute.xlu0 %4677  ;;  %v4486_v21 = vmul.f32 %v9872_v16, %v12571_v15 }
0x1887   :  { %8904 = vmatprep.mubr.msk.bf16.mxu0 %vm53_vm1, %v4678_v30 }
0x1888   :  { %8905 = vmatmul.mubr.msk.bf16.gmra.mrb[124].mxu0 %vm53_vm1, %v4680_v17  ;;  %8915 = vmatpush3.bf16.xpose.msra.mxu1 %v4816_v36  ;;  %v4494_v33 = vpack.c.bf16 %v4486_v21, %v4485_v43 }
0x188a   :  { %8889 = vmatmul.mubr.msk.bf16.gmra.mrb[132].mxu1 %vm556_vm3, %v4494_v33  ;;  %v4783_v27 = vpop.permute.xlu0 %4782 }
0x188b   :  { %8916 = vmatprep.mubr.msk.bf16.mxu1 %vm53_vm1, %v4779_v56 }
0x1892   :  { %8917 = vmatmul.mubr.msk.bf16.vlgmr.msra.gmra.mrb[136].mxu1 %vm53_vm1, %v4781_v62 }
0x1893   :  { %8920 = vmatprep.mubr.msk.bf16.mxu1 %vm53_vm1, %v4783_v27 }
0x189a   :  { %8921 = vmatmul.mubr.msk.bf16.gmra.mrb[140].mxu1 %vm53_vm1, %v4785_v2 }
0x1916   :  { %v8902_v15 = vpop.f32.mrb[120].mxu0 }
0x1917   :  { %v4747_v52 = vpop.f32.mrb[121].mxu0  ;;  %v4885_v44 = vmul.f32 0.35355338, %v8902_v15 }
0x1918   :  { %v4883_v54 = vmul.f32 0.35355338, %v4747_v52  ;;  %v8903_v11 = vpop.f32.mrb[122].mxu0 }
0x1919   :  { %v4750_v13 = vpop.f32.mrb[123].mxu0  ;;  %v4886_v62 = vmul.f32 0.35355338, %v8903_v11  ;;  %v4905_v56 = vsel %vm556_vm3, %v4885_v44, -inf }
0x191a   :  { %v12635_v42 = vmul.f32 0.35355338, %v4750_v13  ;;  %v4899_v7 = vsel %vm556_vm3, %v4883_v54, -inf }
0x191b   :  { %4900 = vmax.xlane.f32.xlu0 %v4899_v7  ;;  %v4908_v57 = vsel %vm556_vm3, %v4886_v62, -inf }
0x191c   :  { %v4902_v23 = vsel %vm556_vm3, %v12635_v42, -inf }
0x191d   :  { %4903 = vmax.xlane.f32.xlu1 %v4902_v23 }
0x191f   :  { %4906 = vmax.xlane.f32.xlu0 %v4905_v56 }
0x1921   :  { %v12641_v59 = vpop.f32.mrb[128].mxu1 }
0x1922   :  { %14537 = vst [vmem:[#allocation6_spill] sm:$0xff] %v12641_v59  ;;  %v12643_v34 = vpop.f32.mrb[129].mxu1 }
0x1923   :  { %14538 = vst [vmem:[#allocation7_spill] sm:$0xff] %v12643_v34  ;;  %v12646_v9 = vpop.f32.mrb[130].mxu1  ;;  %4909 = vmax.xlane.f32.xlu0 %v4908_v57 }
0x1924   :  { %14539 = vst [vmem:[#allocation8_spill] sm:$0xff] %v12646_v9  ;;  %v12648_v16 = vpop.f32.mrb[131].mxu1 }
0x1925   :  { %14540 = vst [vmem:[#allocation9_spill] sm:$0xff] %v12648_v16 }
0x195b   :  { %v8906_v30 = vpop.f32.mrb[124].mxu0 }
0x195c   :  { %v4763_v43 = vpop.f32.mrb[125].mxu0  ;;  %v12656_v2 = vmul.f32 0.35355338, %v8906_v30 }
0x195d   :  { %v12650_v21 = vmul.f32 0.35355338, %v4763_v43  ;;  %v12652_v17 = vpop.f32.mrb[132].mxu1  ;;  %v8907_v36 = vpop.f32.mrb[126].mxu0 }
0x195e   :  { %14541 = vst [vmem:[#allocation10_spill] sm:$0xff] %v12652_v17  ;;  %v12654_v33 = vpop.f32.mrb[133].mxu1  ;;  %v4766_v27 = vpop.f32.mrb[127].mxu0  ;;  %v12666_v7 = vmul.f32 0.35355338, %v8907_v36  ;;  %v4917_v56 = vsel %vm556_vm3, %v12656_v2, -inf }
0x195f   :  { %14542 = vst [vmem:[#allocation11_spill] sm:$0xff] %v12654_v33  ;;  %v12658_v15 = vmul.f32 0.35355338, %v4766_v27  ;;  %v12660_v52 = vpop.f32.mrb[134].mxu1  ;;  %v4911_v11 = vsel %vm556_vm3, %v12650_v21, -inf }
0x1960   :  { %14543 = vst [vmem:[#allocation12_spill] sm:$0xff] %v12660_v52  ;;  %v12664_v13 = vpop.f32.mrb[135].mxu1  ;;  %4912 = vmax.xlane.f32.xlu1 %v4911_v11  ;;  %v4920_v30 = vsel %vm556_vm3, %v12666_v7, -inf }
0x1961   :  { %14544 = vst [vmem:[#allocation13_spill] sm:$0xff] %v12664_v13  ;;  %v4914_v23 = vsel %vm556_vm3, %v12658_v15, -inf }
0x1962   :  { %4915 = vmax.xlane.f32.xlu0 %v4914_v23 }
0x1964   :  { %4918 = vmax.xlane.f32.xlu1 %v4917_v56 }
0x1965   :  { %v12672_v57 = vpop.f32.mrb[136].mxu1 }
0x1966   :  { %v12676_v43 = vpop.f32.mrb[137].mxu1  ;;  %4921 = vmax.xlane.f32.xlu0 %v4920_v30 }
0x1967   :  { %v12678_v27 = vpop.f32.mrb[138].mxu1 }
0x1968   :  { %v12680_v36 = vpop.f32.mrb[139].mxu1 }
0x196d   :  { %v12682_v11 = vpop.f32.mrb[140].mxu1 }
0x196e   :  { %v12684_v31 = vpop.f32.mrb[141].mxu1 }
0x196f   :  { %v12686_v23 = vpop.f32.mrb[142].mxu1 }
0x1970   :  { %v12688_v10 = vpop.f32.mrb[143].mxu1 }
0x1975   :  { %5083 = vrot.lane.b32.xlu1 %v12317_v24, %s10165_s19 }
0x1979   :  { %5087 = vrot.lane.b32.xlu1 %v12327_v53, %s10165_s19 }
0x197c   :  { %5085 = vrot.lane.b32.xlu0 %v12315_v37, %s10165_s19 }
0x197d   :  { %5172 = vrot.lane.b32.xlu1 %v12340_v19, %s10165_s19 }
0x1980   :  { %5089 = vrot.lane.b32.xlu0 %v12325_v22, %s10165_s19 }
0x1981   :  { %5269 = vrot.lane.b32.xlu1 %v12317_v24, %s10166_s20 }
0x1984   :  { %5174 = vrot.lane.b32.xlu0 %v12338_v46, %s10165_s19 }
0x1985   :  { %5176 = vrot.lane.b32.xlu1 %v12352_v38, %s10165_s19 }
0x1988   :  { %5178 = vrot.lane.b32.xlu0 %v12350_v32, %s10165_s19 }
0x1989   :  { %5271 = vrot.lane.b32.xlu1 %v12315_v37, %s10166_s20 }
0x198d   :  { %5273 = vrot.lane.b32.xlu1 %v12327_v53, %s10166_s20 }
0x19a8   :  { %v4901_v56 = vpop.xlane.xlu0 %4900 }
0x19a9   :  { %v4947_v30 = vsub.f32 %v4883_v54, %v4901_v56 }
0x19aa   :  { %v4904_v18 = vpop.xlane.xlu1 %4903 }
0x19ab   :  { %v4963_v41 = vmul.f32 1.442695, %v4947_v30  ;;  %v4948_v26 = vsub.f32 %v12635_v42, %v4904_v18 }
0x19ac   :  { %v4907_v1 = vpop.xlane.xlu0 %4906 }
0x19ad   :  { %v4949_v47 = vsub.f32 %v4885_v44, %v4907_v1  ;;  %v4965_v60 = vmul.f32 1.442695, %v4948_v26 }
0x19af   :  { %v4967_v14 = vmul.f32 1.442695, %v4949_v47 }
0x19b0   :  { %v4910_v4 = vpop.xlane.xlu0 %4909 }
0x19b1   :  { %9873 = vpow2.f32 %v4967_v14  ;;  %v4950_v39 = vsub.f32 %v4886_v62, %v4910_v4 }
0x19b2   :  { %9875 = vpow2.f32 %v4963_v41 }
0x19b3   :  { %v4969_v0 = vmul.f32 1.442695, %v4950_v39 }
0x19b5   :  { %9877 = vpow2.f32 %v4969_v0 }
0x19b6   :  { %9879 = vpow2.f32 %v4965_v60 }
0x19bb   :  { %v12713_v40 = vpop.eup %9873 }
0x19bc   :  { %v5001_v54 = vsel %vm556_vm3, %v12713_v40, 0.0  ;;  %v12717_v56 = vpop.eup %9875 }
0x19bd   :  { %5002 = vadd.xlane.f32.xlu1 %v5001_v54  ;;  %v4995_v47 = vsel %vm556_vm3, %v12717_v56, 0.0 }
0x19bf   :  { %v12719_v1 = vpop.eup %9877 }
0x19c0   :  { %v5004_v41 = vsel %vm556_vm3, %v12719_v1, 0.0  ;;  %v12725_v26 = vpop.eup %9879 }
0x19c1   :  { %4996 = vadd.xlane.f32.xlu1 %v4995_v47  ;;  %5005 = vadd.xlane.f32.xlu0 %v5004_v41  ;;  %v4998_v18 = vsel %vm556_vm3, %v12725_v26, 0.0 }
0x19c5   :  { %4999 = vadd.xlane.f32.xlu0 %v4998_v18 }
0x19ed   :  { %v4913_v0 = vpop.xlane.xlu1 %4912 }
0x19ee   :  { %v4951_v4 = vsub.f32 %v12650_v21, %v4913_v0 }
0x19ef   :  { %v4916_v60 = vpop.xlane.xlu0 %4915 }
0x19f0   :  { %v4952_v39 = vsub.f32 %v12658_v15, %v4916_v60  ;;  %v4971_v30 = vmul.f32 1.442695, %v4951_v4  ;;  %v12736_v60 = vmul.f32 0.35355338, %v12678_v27  ;;  %v12749_v27 = vmul.f32 0.35355338, %v12680_v36 }
0x19f1   :  { %v4919_v14 = vpop.xlane.xlu1 %4918  ;;  %v12760_v36 = vmul.f32 0.35355338, %v12686_v23 }
0x19f2   :  { %v4973_v44 = vmul.f32 1.442695, %v4952_v39  ;;  %v4953_v42 = vsub.f32 %v12656_v2, %v4919_v14 }
0x19f3   :  { %v4922_v62 = vpop.xlane.xlu0 %4921  ;;  %v4944_v23 = vsel %vm556_vm3, %v12760_v36, -inf }
0x19f4   :  { %9881 = vpow2.f32 %v4973_v44  ;;  %v4975_v54 = vmul.f32 1.442695, %v4953_v42  ;;  %v4954_v47 = vsub.f32 %v12666_v7, %v4922_v62  ;;  %v4932_v42 = vsel %vm556_vm3, %v12736_v60, -inf }
0x19f5   :  { %v5084_v41 = vpop.permute.xlu1 %5083 }
0x19f6   :  { %9883 = vpow2.f32 %v4975_v54  ;;  %8924 = vmatprep.subr.bf16.mxu0 %v5084_v41  ;;  %v4977_v51 = vmul.f32 1.442695, %v4954_v47 }
0x19f7   :  { %8925 = vmatpush3.bf16.msra.mxu0 %v5084_v41  ;;  %v5086_v18 = vpop.permute.xlu0 %5085  ;;  %9885 = vpow2.f32 %v4971_v30  ;;  %v4926_v41 = vsel %vm556_vm3, %v12749_v27, -inf }
0x19f8   :  { %8926 = vmatprep.subr.bf16.mxu0 %v5086_v18  ;;  %9887 = vpow2.f32 %v4977_v51 }
0x19f9   :  { %v5088_v21 = vpop.permute.xlu1 %5087 }
0x19fb   :  { %8927 = vmatpush3.bf16.msra.mxu0 %v5086_v18  ;;  %v5090_v15 = vpop.permute.xlu0 %5089  ;;  %v12765_v18 = vmul.f32 0.35355338, %v12672_v57 }
0x19fc   :  { %8928 = vmatprep.subr.bf16.mxu0 %v5088_v21 }
0x19fd   :  { %v5173_v2 = vpop.permute.xlu1 %5172 }
0x19fe   :  { %v12733_v0 = vpop.eup %9881  ;;  %8940 = vmatprep.subr.bf16.mxu1 %v5173_v2 }
0x19ff   :  { %8929 = vmatpush3.bf16.msra.mxu0 %v5088_v21  ;;  %8941 = vmatpush3.bf16.msra.mxu1 %v5173_v2  ;;  %v5175_v7 = vpop.permute.xlu0 %5174  ;;  %v5010_v4 = vsel %vm556_vm3, %v12733_v0, 0.0  ;;  %v12775_v2 = vmul.f32 0.35355338, %v12676_v43 }
0x1a00   :  { %v12740_v39 = vpop.eup %9883  ;;  %5011 = vadd.xlane.f32.xlu0 %v5010_v4  ;;  %8930 = vmatprep.subr.bf16.mxu0 %v5090_v15  ;;  %v12782_v4 = vmul.f32 0.35355338, %v12682_v11 }
0x1a01   :  { %8942 = vmatprep.subr.bf16.mxu1 %v5175_v7  ;;  %v12742_v51 = vpop.permute.xlu1 %5269  ;;  %v5013_v14 = vsel %vm556_vm3, %v12740_v39, 0.0  ;;  %v12746_v44 = vpop.eup %9885 }
0x1a02   :  { %5014 = vadd.xlane.f32.xlu1 %v5013_v14  ;;  %v5007_v30 = vsel %vm556_vm3, %v12746_v44, 0.0  ;;  %v12757_v54 = vpop.eup %9887  ;;  %v12787_v14 = vmul.f32 0.35355338, %v12684_v31  ;;  %v4941_v43 = vsel %vm556_vm3, %v12782_v4, -inf }
0x1a03   :  { %8931 = vmatpush3.bf16.msra.mxu0 %v5090_v15  ;;  %8943 = vmatpush3.bf16.msra.mxu1 %v5175_v7  ;;  %v5179_v47 = vpop.permute.xlu0 %5178  ;;  %v5016_v21 = vsel %vm556_vm3, %v12757_v54, 0.0  ;;  %v12770_v15 = vmul.f32 0.35355338, %v12688_v10  ;;  %v4929_v7 = vsel %vm556_vm3, %v12765_v18, -inf  ;;  %v4923_v10 = vsel %vm556_vm3, %v12775_v2, -inf }
0x1a04   :  { %4933 = vmax.xlane.f32.xlu0 %v4932_v42  ;;  %9197 = vmatprep.subr.msk.bf16.mxu0 %vm53_vm1, %v12742_v51  ;;  %v4935_v42 = vsel %vm556_vm3, %v12787_v14, -inf }
0x1a05   :  { %v5177_v62 = vpop.permute.xlu1 %5176  ;;  %v4938_v57 = vsel %vm556_vm3, %v12770_v15, -inf }
0x1a06   :  { %5008 = vadd.xlane.f32.xlu1 %v5007_v30  ;;  %8944 = vmatprep.subr.bf16.mxu1 %v5177_v62 }
0x1a07   :  { %8945 = vmatpush3.bf16.msra.mxu1 %v5177_v62 }
0x1a08   :  { %4927 = vmax.xlane.f32.xlu0 %v4926_v41  ;;  %8946 = vmatprep.subr.bf16.mxu1 %v5179_v47 }
0x1a09   :  { %v5272_v11 = vpop.permute.xlu1 %5271 }
0x1a0a   :  { %5017 = vadd.xlane.f32.xlu1 %v5016_v21 }
0x1a0b   :  { %8947 = vmatpush3.bf16.msra.mxu1 %v5179_v47 }
0x1a0c   :  { %4945 = vmax.xlane.f32.xlu0 %v4944_v23 }
0x1a0d   :  { %v5274_v31 = vpop.permute.xlu1 %5273 }
0x1a0e   :  { %4930 = vmax.xlane.f32.xlu1 %v4929_v7 }
0x1a10   :  { %4939 = vmax.xlane.f32.xlu0 %v4938_v57 }
0x1a12   :  { %4924 = vmax.xlane.f32.xlu1 %v4923_v10 }
0x1a16   :  { %4942 = vmax.xlane.f32.xlu1 %v4941_v43 }
0x1a1a   :  { %4936 = vmax.xlane.f32.xlu1 %v4935_v42 }
0x1a26   :  { %5374 = vrot.lane.b32.xlu0 %v12340_v19, %s10166_s20 }
0x1a2b   :  { %5275 = vrot.lane.b32.xlu1 %v12325_v22, %s10166_s20 }
0x1a2f   :  { %5376 = vrot.lane.b32.xlu1 %v12338_v46, %s10166_s20 }
0x1a4a   :  { %v5003_v62 = vpop.xlane.xlu1 %5002 }
0x1a4e   :  { %v4997_v30 = vpop.xlane.xlu1 %4996  ;;  %v5006_v47 = vpop.xlane.xlu0 %5005 }
0x1a4f   :  { %9889 = vrcp.f32 %v5006_v47 }
0x1a50   :  { %9891 = vrcp.f32 %v4997_v30 }
0x1a51   :  { %9893 = vrcp.f32 %v5003_v62  ;;  %v5290_v62 = vsel %vm53_vm1, %v12742_v51, 0 }
0x1a52   :  { %v5000_v41 = vpop.xlane.xlu0 %4999 }
0x1a53   :  { %9895 = vrcp.f32 %v5000_v41 }
0x1a59   :  { %v9890_v21 = vpop.eup %9889 }
0x1a5a   :  { %v9892_v23 = vpop.eup %9891  ;;  %v5062_v10 = vmul.f32 %v9890_v21, %v12719_v1  ;;  %v5293_v1 = vsel %vm53_vm1, %v5272_v11, 0 }
0x1a5b   :  { %v9894_v7 = vpop.eup %9893  ;;  %v5059_v43 = vmul.f32 %v9892_v23, %v12717_v56  ;;  %v5296_v56 = vsel %vm53_vm1, %v5274_v31, 0 }
0x1a5c   :  { %v5061_v3 = vmul.f32 %v9894_v7, %v12713_v40 }
0x1a5d   :  { %v9896_v57 = vpop.eup %9895 }
0x1a5e   :  { %v5060_v42 = vmul.f32 %v9896_v57, %v12725_v26  ;;  %v5076_v28 = vpack.c.bf16 %v5062_v10, %v5061_v3 }
0x1a60   :  { %v5075_v63 = vpack.c.bf16 %v5060_v42, %v5059_v43 }
0x1a62   :  { %8932 = vmatprep.mubr.msk.bf16.mxu0 %vm556_vm3, %v5075_v63 }
0x1a63   :  { %8933 = vmatmul.mubr.msk.bf16.vlgmr.msra.gmra.mrb[128].mxu0 %vm556_vm3, %v5076_v28 }
0x1a64   :  { %8957 = vmatpush3.bf16.xpose.msra.mxu0 %v5290_v62 }
0x1a65   :  { %9198 = vmatprep.subr.msk.bf16.mxu0 %vm53_vm1, %v5272_v11 }
0x1a6c   :  { %8959 = vmatpush3.bf16.xpose.msra.mxu0 %v5293_v1 }
0x1a6d   :  { %9199 = vmatprep.subr.msk.bf16.mxu0 %vm53_vm1, %v5274_v31 }
0x1a74   :  { %8961 = vmatpush3.bf16.xpose.msra.mxu0 %v5296_v56 }
0x1a8d   :  { %v5012_v40 = vpop.xlane.xlu0 %5011 }
0x1a8e   :  { %9897 = vrcp.f32 %v5012_v40 }
0x1a8f   :  { %v5015_v3 = vpop.xlane.xlu1 %5014 }
0x1a91   :  { %v4934_v26 = vpop.xlane.xlu0 %4933 }
0x1a92   :  { %v4958_v47 = vsub.f32 %v12736_v60, %v4934_v26 }
0x1a93   :  { %v5009_v63 = vpop.xlane.xlu1 %5008 }
0x1a94   :  { %9899 = vrcp.f32 %v5009_v63  ;;  %v4985_v7 = vmul.f32 1.442695, %v4958_v47 }
0x1a95   :  { %v4928_v28 = vpop.xlane.xlu0 %4927  ;;  %9901 = vrcp.f32 %v5015_v3 }
0x1a96   :  { %v4956_v57 = vsub.f32 %v12749_v27, %v4928_v28 }
0x1a97   :  { %v5018_v51 = vpop.xlane.xlu1 %5017 }
0x1a98   :  { %9903 = vrcp.f32 %v5018_v51  ;;  %v9898_v41 = vpop.eup %9897 }
0x1a99   :  { %v4946_v30 = vpop.xlane.xlu0 %4945  ;;  %v5064_v62 = vmul.f32 %v9898_v41, %v12733_v0 }
0x1a9b   :  { %v4931_v11 = vpop.xlane.xlu1 %4930 }
0x1a9c   :  { %v4957_v21 = vsub.f32 %v12765_v18, %v4931_v11  ;;  %v4981_v18 = vmul.f32 1.442695, %v4956_v57 }
0x1a9d   :  { %v4940_v23 = vpop.xlane.xlu0 %4939 }
0x1a9e   :  { %v9900_v31 = vpop.eup %9899  ;;  %v4983_v10 = vmul.f32 1.442695, %v4957_v21  ;;  %v4960_v57 = vsub.f32 %v12770_v15, %v4940_v23 }
0x1a9f   :  { %v4925_v43 = vpop.xlane.xlu1 %4924  ;;  %v5063_v42 = vmul.f32 %v9900_v31, %v12746_v44  ;;  %v9902_v1 = vpop.eup %9901 }
0x1aa0   :  { %9905 = vpow2.f32 %v4983_v10  ;;  %v4955_v56 = vsub.f32 %v12775_v2, %v4925_v43  ;;  %v5065_v44 = vmul.f32 %v9902_v1, %v12740_v39  ;;  %v4989_v10 = vmul.f32 1.442695, %v4960_v57 }
0x1aa1   :  { %v12817_v60 = vpop.permute.xlu0 %5374  ;;  %v5077_v40 = vpack.c.bf16 %v5064_v62, %v5063_v42  ;;  %9907 = vpow2.f32 %v4985_v7  ;;  %v4962_v1 = vsub.f32 %v12760_v36, %v4946_v30 }
0x1aa2   :  { %v9904_v3 = vpop.eup %9903  ;;  %v4979_v26 = vmul.f32 1.442695, %v4955_v56  ;;  %9201 = vmatprep.subr.msk.bf16.mxu1 %vm53_vm1, %v12817_v60 }
0x1aa3   :  { %v4943_v27 = vpop.xlane.xlu1 %4942  ;;  %8936 = vmatprep.mubr.msk.bf16.mxu0 %vm556_vm3, %v5077_v40  ;;  %v5066_v0 = vmul.f32 %v9904_v3, %v12757_v54  ;;  %v4993_v40 = vmul.f32 1.442695, %v4962_v1 }
0x1aa4   :  { %9909 = vpow2.f32 %v4979_v26  ;;  %v4961_v43 = vsub.f32 %v12782_v4, %v4943_v27 }
0x1aa5   :  { %v5078_v63 = vpack.c.bf16 %v5066_v0, %v5065_v44  ;;  %9911 = vpow2.f32 %v4981_v18 }
0x1aa6   :  { %9913 = vpow2.f32 %v4989_v10  ;;  %v4991_v42 = vmul.f32 1.442695, %v4961_v43 }
0x1aa7   :  { %v4937_v2 = vpop.xlane.xlu1 %4936  ;;  %8937 = vmatmul.mubr.msk.bf16.gmra.mrb[132].mxu0 %vm556_vm3, %v5078_v63 }
0x1aa8   :  { %v4959_v62 = vsub.f32 %v12787_v14, %v4937_v2  ;;  %9915 = vpow2.f32 %v4991_v42 }
0x1aaa   :  { %v12825_v28 = vpop.eup %9905  ;;  %v4987_v56 = vmul.f32 1.442695, %v4959_v62 }
0x1aab   :  { %v5276_v51 = vpop.permute.xlu1 %5275  ;;  %v5025_v47 = vsel %vm556_vm3, %v12825_v28, 0.0  ;;  %v12829_v11 = vpop.eup %9907 }
0x1aac   :  { %5026 = vadd.xlane.f32.xlu0 %v5025_v47  ;;  %9200 = vmatprep.subr.msk.bf16.mxu0 %vm53_vm1, %v5276_v51  ;;  %v5299_v39 = vsel %vm53_vm1, %v5276_v51, 0  ;;  %v5028_v21 = vsel %vm556_vm3, %v12829_v11, 0.0  ;;  %9917 = vpow2.f32 %v4987_v56 }
0x1aad   :  { %8963 = vmatpush3.bf16.xpose.msra.mxu0 %v5299_v39  ;;  %9919 = vpow2.f32 %v4993_v40 }
0x1aae   :  { %v12833_v54 = vpop.eup %9909 }
0x1aaf   :  { %v5019_v41 = vsel %vm556_vm3, %v12833_v54, 0.0  ;;  %v12839_v31 = vpop.eup %9911  ;;  %v5377_v44 = vpop.permute.xlu1 %5376 }
0x1ab0   :  { %5020 = vadd.xlane.f32.xlu1 %v5019_v41  ;;  %5029 = vadd.xlane.f32.xlu0 %v5028_v21  ;;  %v5022_v7 = vsel %vm556_vm3, %v12839_v31, 0.0  ;;  %v12851_v3 = vpop.eup %9913 }
0x1ab1   :  { %v5034_v18 = vsel %vm556_vm3, %v12851_v3, 0.0 }
0x1ab2   :  { %v12855_v15 = vpop.eup %9915 }
0x1ab3   :  { %v5037_v4 = vsel %vm556_vm3, %v12855_v15, 0.0 }
0x1ab4   :  { %5023 = vadd.xlane.f32.xlu0 %v5022_v7 }
0x1ab6   :  { %v12859_v23 = vpop.eup %9917 }
0x1ab7   :  { %v5031_v36 = vsel %vm556_vm3, %v12859_v23, 0.0  ;;  %v12863_v14 = vpop.eup %9919 }
0x1ab8   :  { %v5040_v30 = vsel %vm556_vm3, %v12863_v14, 0.0 }
0x1ac1   :  { %5263 = vrot.lane.b32.xlu1 %v12315_v37, %s10167_s21 }
0x1aca   :  { %5261 = vrot.lane.b32.xlu0 %v12317_v24, %s10167_s21 }
0x1ae5   :  { %5035 = vadd.xlane.f32.xlu1 %v5034_v18 }
0x1ae9   :  { %5038 = vadd.xlane.f32.xlu0 %v5037_v4 }
0x1aed   :  { %5032 = vadd.xlane.f32.xlu0 %v5031_v36 }
0x1af1   :  { %5041 = vadd.xlane.f32.xlu0 %v5040_v30  ;;  %v5395_v30 = vsel %vm53_vm1, %v12817_v60, 0 }
0x1af6   :  { %5380 = vrot.lane.b32.xlu1 %v12350_v32, %s10166_s20 }
0x1afa   :  { %5368 = vrot.lane.b32.xlu1 %v12338_v46, %s10167_s21 }
0x1afe   :  { %5267 = vrot.lane.b32.xlu1 %v12325_v22, %s10167_s21 }
0x1b02   :  { %5372 = vrot.lane.b32.xlu1 %v12350_v32, %s10167_s21 }
0x1b07   :  { %5378 = vrot.lane.b32.xlu0 %v12352_v38, %s10166_s20 }
0x1b0b   :  { %5366 = vrot.lane.b32.xlu0 %v12340_v19, %s10167_s21 }
0x1b0f   :  { %5265 = vrot.lane.b32.xlu0 %v12327_v53, %s10167_s21 }
0x1b13   :  { %5370 = vrot.lane.b32.xlu0 %v12352_v38, %s10167_s21 }
0x1b36   :  { %v12883_v26 = vpop.f32.mrb[128].mxu0 }
0x1b37   :  { %v12885_v27 = vpop.f32.mrb[129].mxu0 }
0x1b38   :  { %v12887_v0 = vpop.f32.mrb[130].mxu0 }
0x1b39   :  { %v12891_v2 = vpop.f32.mrb[131].mxu0  ;;  %v5027_v51 = vpop.xlane.xlu0 %5026 }
0x1b3d   :  { %v5021_v39 = vpop.xlane.xlu1 %5020  ;;  %v5030_v41 = vpop.xlane.xlu0 %5029 }
0x1b3e   :  { %9921 = vrcp.f32 %v5030_v41 }
0x1b3f   :  { %9923 = vrcp.f32 %v5021_v39 }
0x1b40   :  { %9925 = vrcp.f32 %v5027_v51 }
0x1b41   :  { %v5024_v21 = vpop.xlane.xlu0 %5023  ;;  %v5264_v57 = vpop.permute.xlu1 %5263 }
0x1b42   :  { %9927 = vrcp.f32 %v5024_v21 }
0x1b45   :  { %v5262_v7 = vpop.permute.xlu0 %5261 }
0x1b46   :  { %8964 = vmatprep.mubr.msk.bf16.mxu0 %vm53_vm1, %v5262_v7 }
0x1b47   :  { %8965 = vmatmul.mubr.msk.bf16.vlgmr.msra.gmra.mrb[136].mxu0 %vm53_vm1, %v5264_v57 }
0x1b48   :  { %v9922_v10 = vpop.eup %9921 }
0x1b49   :  { %v9924_v43 = vpop.eup %9923  ;;  %v5070_v1 = vmul.f32 %v9922_v10, %v12829_v11  ;;  %v5398_v11 = vsel %vm53_vm1, %v5377_v44, 0 }
0x1b4a   :  { %v9926_v42 = vpop.eup %9925  ;;  %v5067_v56 = vmul.f32 %v9924_v43, %v12833_v54 }
0x1b4b   :  { %v5069_v18 = vmul.f32 %v9926_v42, %v12825_v28 }
0x1b4c   :  { %v9928_v62 = vpop.eup %9927 }
0x1b4d   :  { %v5068_v40 = vmul.f32 %v9928_v62, %v12839_v31  ;;  %v5080_v36 = vpack.c.bf16 %v5070_v1, %v5069_v18 }
0x1b4f   :  { %v5079_v4 = vpack.c.bf16 %v5068_v40, %v5067_v56 }
0x1b51   :  { %8948 = vmatprep.mubr.msk.bf16.mxu1 %vm556_vm3, %v5079_v4 }
0x1b52   :  { %8949 = vmatmul.mubr.msk.bf16.vlgmr.msra.gmra.mrb[144].mxu1 %vm556_vm3, %v5080_v36 }
0x1b53   :  { %8973 = vmatpush3.bf16.xpose.msra.mxu1 %v5395_v30 }
0x1b54   :  { %9202 = vmatprep.subr.msk.bf16.mxu1 %vm53_vm1, %v5377_v44 }
0x1b5b   :  { %8975 = vmatpush3.bf16.xpose.msra.mxu1 %v5398_v11 }
0x1b72   :  { %v5036_v51 = vpop.xlane.xlu1 %5035 }
0x1b73   :  { %9929 = vrcp.f32 %v5036_v51 }
0x1b76   :  { %v5039_v54 = vpop.xlane.xlu0 %5038  ;;  %v5381_v57 = vpop.permute.xlu1 %5380 }
0x1b7a   :  { %v12907_v31 = vpop.f32.mrb[132].mxu0  ;;  %v5033_v28 = vpop.xlane.xlu0 %5032 }
0x1b7b   :  { %v12909_v39 = vpop.f32.mrb[133].mxu0  ;;  %9931 = vrcp.f32 %v5033_v28  ;;  %v5369_v1 = vpop.permute.xlu1 %5368 }
0x1b7c   :  { %v12911_v41 = vpop.f32.mrb[134].mxu0  ;;  %9933 = vrcp.f32 %v5039_v54 }
0x1b7d   :  { %v12915_v21 = vpop.f32.mrb[135].mxu0  ;;  %v9930_v43 = vpop.eup %9929 }
0x1b7e   :  { %v5042_v7 = vpop.xlane.xlu0 %5041  ;;  %v5072_v18 = vmul.f32 %v9930_v43, %v12851_v3 }
0x1b7f   :  { %9935 = vrcp.f32 %v5042_v7  ;;  %v5268_v28 = vpop.permute.xlu1 %5267  ;;  %v5404_v7 = vsel %vm53_vm1, %v5381_v57, 0 }
0x1b82   :  { %v5379_v10 = vpop.permute.xlu0 %5378 }
0x1b83   :  { %9203 = vmatprep.subr.msk.bf16.mxu1 %vm53_vm1, %v5379_v10  ;;  %v5401_v42 = vsel %vm53_vm1, %v5379_v10, 0 }
0x1b84   :  { %8977 = vmatpush3.bf16.xpose.msra.mxu1 %v5401_v42 }
0x1b85   :  { %v9932_v62 = vpop.eup %9931  ;;  %9204 = vmatprep.subr.msk.bf16.mxu1 %vm53_vm1, %v5381_v57 }
0x1b86   :  { %v5367_v56 = vpop.permute.xlu0 %5366  ;;  %v5071_v40 = vmul.f32 %v9932_v62, %v12859_v23  ;;  %v9934_v4 = vpop.eup %9933 }
0x1b87   :  { %v5073_v54 = vmul.f32 %v9934_v4, %v12855_v15  ;;  %v5373_v15 = vpop.permute.xlu1 %5372 }
0x1b88   :  { %v5081_v36 = vpack.c.bf16 %v5072_v18, %v5071_v40 }
0x1b89   :  { %v9936_v30 = vpop.eup %9935 }
0x1b8a   :  { %8952 = vmatprep.mubr.msk.bf16.mxu1 %vm556_vm3, %v5081_v36  ;;  %v5266_v11 = vpop.permute.xlu0 %5265  ;;  %v5074_v51 = vmul.f32 %v9936_v30, %v12863_v14 }
0x1b8b   :  { %8968 = vmatprep.mubr.msk.bf16.mxu0 %vm53_vm1, %v5266_v11 }
0x1b8c   :  { %8969 = vmatmul.mubr.msk.bf16.gmra.mrb[140].mxu0 %vm53_vm1, %v5268_v28  ;;  %8979 = vmatpush3.bf16.xpose.msra.mxu1 %v5404_v7  ;;  %v5082_v23 = vpack.c.bf16 %v5074_v51, %v5073_v54 }
0x1b8e   :  { %8953 = vmatmul.mubr.msk.bf16.gmra.mrb[148].mxu1 %vm556_vm3, %v5082_v23  ;;  %v5371_v3 = vpop.permute.xlu0 %5370 }
0x1b8f   :  { %8980 = vmatprep.mubr.msk.bf16.mxu1 %vm53_vm1, %v5367_v56 }
0x1b96   :  { %8981 = vmatmul.mubr.msk.bf16.vlgmr.msra.gmra.mrb[152].mxu1 %vm53_vm1, %v5369_v1 }
0x1b97   :  { %8984 = vmatprep.mubr.msk.bf16.mxu1 %vm53_vm1, %v5371_v3 }
0x1b9e   :  { %8985 = vmatmul.mubr.msk.bf16.gmra.mrb[156].mxu1 %vm53_vm1, %v5373_v15 }
0x1c1a   :  { %v8966_v14 = vpop.f32.mrb[136].mxu0 }
0x1c1b   :  { %v5335_v10 = vpop.f32.mrb[137].mxu0  ;;  %v12937_v62 = vmul.f32 0.35355338, %v8966_v14 }
0x1c1c   :  { %v12935_v43 = vmul.f32 0.35355338, %v5335_v10  ;;  %v8967_v57 = vpop.f32.mrb[138].mxu0 }
0x1c1d   :  { %v5338_v42 = vpop.f32.mrb[139].mxu0  ;;  %v12945_v18 = vmul.f32 0.35355338, %v8967_v57  ;;  %v5493_v4 = vsel %vm556_vm3, %v12937_v62, -inf }
0x1c1e   :  { %v12939_v40 = vmul.f32 0.35355338, %v5338_v42  ;;  %v5487_v56 = vsel %vm556_vm3, %v12935_v43, -inf }
0x1c1f   :  { %5488 = vmax.xlane.f32.xlu0 %v5487_v56  ;;  %v5496_v11 = vsel %vm556_vm3, %v12945_v18, -inf }
0x1c20   :  { %v5490_v1 = vsel %vm556_vm3, %v12939_v40, -inf }
0x1c21   :  { %5491 = vmax.xlane.f32.xlu1 %v5490_v1 }
0x1c23   :  { %5494 = vmax.xlane.f32.xlu0 %v5493_v4 }
0x1c25   :  { %v12949_v36 = vpop.f32.mrb[144].mxu1 }
0x1c26   :  { %v12951_v30 = vpop.f32.mrb[145].mxu1 }
0x1c27   :  { %v12955_v54 = vpop.f32.mrb[146].mxu1  ;;  %5497 = vmax.xlane.f32.xlu0 %v5496_v11 }
0x1c28   :  { %v12959_v28 = vpop.f32.mrb[147].mxu1 }
0x1c5f   :  { %v8970_v23 = vpop.f32.mrb[140].mxu0 }
0x1c60   :  { %v5351_v3 = vpop.f32.mrb[141].mxu0  ;;  %v12969_v56 = vmul.f32 0.35355338, %v8970_v23 }
0x1c61   :  { %v12963_v15 = vmul.f32 0.35355338, %v5351_v3  ;;  %v12965_v14 = vpop.f32.mrb[148].mxu1  ;;  %v8971_v10 = vpop.f32.mrb[142].mxu0 }
0x1c62   :  { %14545 = vst [vmem:[#allocation14_spill] sm:$0xff] %v12965_v14  ;;  %v12967_v57 = vpop.f32.mrb[149].mxu1  ;;  %v5354_v42 = vpop.f32.mrb[143].mxu0  ;;  %v12981_v51 = vmul.f32 0.35355338, %v8971_v10 }
0x1c63   :  { %14546 = vst [vmem:[#allocation15_spill] sm:$0xff] %v12967_v57  ;;  %v12971_v1 = vmul.f32 0.35355338, %v5354_v42  ;;  %v12973_v4 = vpop.f32.mrb[150].mxu1  ;;  %v5499_v11 = vsel %vm556_vm3, %v12963_v15, -inf  ;;  %v5505_v42 = vsel %vm556_vm3, %v12969_v56, -inf }
0x1c64   :  { %14547 = vst [vmem:[#allocation16_spill] sm:$0xff] %v12973_v4  ;;  %v12979_v3 = vpop.f32.mrb[151].mxu1  ;;  %5500 = vmax.xlane.f32.xlu1 %v5499_v11  ;;  %v5508_v7 = vsel %vm556_vm3, %v12981_v51, -inf }
0x1c65   :  { %14548 = vst [vmem:[#allocation17_spill] sm:$0xff] %v12979_v3  ;;  %v5502_v23 = vsel %vm556_vm3, %v12971_v1, -inf }
0x1c66   :  { %5503 = vmax.xlane.f32.xlu0 %v5502_v23 }
0x1c68   :  { %5506 = vmax.xlane.f32.xlu1 %v5505_v42 }
0x1c69   :  { %v12989_v60 = vpop.f32.mrb[152].mxu1 }
0x1c6a   :  { %v12993_v63 = vpop.f32.mrb[153].mxu1  ;;  %5509 = vmax.xlane.f32.xlu0 %v5508_v7 }
0x1c6b   :  { %v12995_v10 = vpop.f32.mrb[154].mxu1 }
0x1c6c   :  { %v12997_v11 = vpop.f32.mrb[155].mxu1 }
0x1c71   :  { %v12999_v44 = vpop.f32.mrb[156].mxu1 }
0x1c72   :  { %v13001_v47 = vpop.f32.mrb[157].mxu1 }
0x1c73   :  { %v13003_v23 = vpop.f32.mrb[158].mxu1 }
0x1c74   :  { %v13005_v49 = vpop.f32.mrb[159].mxu1 }
0x1c79   :  { %5671 = vrot.lane.b32.xlu1 %v12317_v24, %s10168_s22 }
0x1c7d   :  { %5675 = vrot.lane.b32.xlu1 %v12327_v53, %s10168_s22 }
0x1c80   :  { %5673 = vrot.lane.b32.xlu0 %v12315_v37, %s10168_s22 }
0x1c81   :  { %5760 = vrot.lane.b32.xlu1 %v12340_v19, %s10168_s22 }
0x1c84   :  { %5677 = vrot.lane.b32.xlu0 %v12325_v22, %s10168_s22 }
0x1c85   :  { %5857 = vrot.lane.b32.xlu1 %v12317_v24, %s10169_s23 }
0x1c88   :  { %5762 = vrot.lane.b32.xlu0 %v12338_v46, %s10168_s22 }
0x1c89   :  { %5764 = vrot.lane.b32.xlu1 %v12352_v38, %s10168_s22 }
0x1c8c   :  { %5766 = vrot.lane.b32.xlu0 %v12350_v32, %s10168_s22 }
0x1c8d   :  { %5859 = vrot.lane.b32.xlu1 %v12315_v37, %s10169_s23 }
0x1c90   :  { %5962 = vrot.lane.b32.xlu0 %v12340_v19, %s10169_s23 }
0x1c91   :  { %5861 = vrot.lane.b32.xlu1 %v12327_v53, %s10169_s23 }
0x1c95   :  { %5863 = vrot.lane.b32.xlu1 %v12325_v22, %s10169_s23 }
0x1c99   :  { %5964 = vrot.lane.b32.xlu1 %v12338_v46, %s10169_s23 }
0x1cac   :  { %v5489_v7 = vpop.xlane.xlu0 %5488 }
0x1cad   :  { %v5535_v42 = vsub.f32 %v12935_v43, %v5489_v7 }
0x1cae   :  { %v5492_v8 = vpop.xlane.xlu1 %5491 }
0x1caf   :  { %v5551_v50 = vmul.f32 1.442695, %v5535_v42  ;;  %v5536_v48 = vsub.f32 %v12939_v40, %v5492_v8 }
0x1cb0   :  { %v5495_v20 = vpop.xlane.xlu0 %5494 }
0x1cb1   :  { %v5537_v35 = vsub.f32 %v12937_v62, %v5495_v20  ;;  %v5553_v17 = vmul.f32 1.442695, %v5536_v48 }
0x1cb3   :  { %v5555_v12 = vmul.f32 1.442695, %v5537_v35 }
0x1cb4   :  { %v5498_v33 = vpop.xlane.xlu0 %5497 }
0x1cb5   :  { %9937 = vpow2.f32 %v5555_v12  ;;  %v5538_v13 = vsub.f32 %v12945_v18, %v5498_v33 }
0x1cb6   :  { %9939 = vpow2.f32 %v5551_v50 }
0x1cb7   :  { %v5557_v52 = vmul.f32 1.442695, %v5538_v13 }
0x1cb9   :  { %9941 = vpow2.f32 %v5557_v52 }
0x1cba   :  { %9943 = vpow2.f32 %v5553_v17 }
0x1cbf   :  { %v13039_v34 = vpop.eup %9937 }
0x1cc0   :  { %v5589_v43 = vsel %vm556_vm3, %v13039_v34, 0.0  ;;  %v13043_v7 = vpop.eup %9939 }
0x1cc1   :  { %5590 = vadd.xlane.f32.xlu1 %v5589_v43  ;;  %v5583_v12 = vsel %vm556_vm3, %v13043_v7, 0.0 }
0x1cc3   :  { %v13045_v20 = vpop.eup %9941 }
0x1cc4   :  { %v5592_v35 = vsel %vm556_vm3, %v13045_v20, 0.0  ;;  %v13051_v48 = vpop.eup %9943 }
0x1cc5   :  { %5584 = vadd.xlane.f32.xlu1 %v5583_v12  ;;  %5593 = vadd.xlane.f32.xlu0 %v5592_v35  ;;  %v5586_v50 = vsel %vm556_vm3, %v13051_v48, 0.0 }
0x1cc9   :  { %5587 = vadd.xlane.f32.xlu0 %v5586_v50 }
0x1cf1   :  { %v5501_v8 = vpop.xlane.xlu1 %5500 }
0x1cf2   :  { %v5539_v33 = vsub.f32 %v12963_v15, %v5501_v8 }
0x1cf3   :  { %v5504_v17 = vpop.xlane.xlu0 %5503 }
0x1cf4   :  { %v5540_v52 = vsub.f32 %v12971_v1, %v5504_v17  ;;  %v5559_v42 = vmul.f32 1.442695, %v5539_v33  ;;  %v13062_v17 = vmul.f32 0.35355338, %v12995_v10  ;;  %v13075_v10 = vmul.f32 0.35355338, %v12997_v11 }
0x1cf5   :  { %v5507_v13 = vpop.xlane.xlu1 %5506  ;;  %v13086_v11 = vmul.f32 0.35355338, %v13003_v23 }
0x1cf6   :  { %v5561_v62 = vmul.f32 1.442695, %v5540_v52  ;;  %v5541_v40 = vsub.f32 %v12969_v56, %v5507_v13 }
0x1cf7   :  { %v5510_v18 = vpop.xlane.xlu0 %5509  ;;  %v5532_v23 = vsel %vm556_vm3, %v13086_v11, -inf }
0x1cf8   :  { %9945 = vpow2.f32 %v5561_v62  ;;  %v5563_v43 = vmul.f32 1.442695, %v5541_v40  ;;  %v5542_v12 = vsub.f32 %v12981_v51, %v5510_v18  ;;  %v5520_v40 = vsel %vm556_vm3, %v13062_v17, -inf }
0x1cf9   :  { %v5672_v35 = vpop.permute.xlu1 %5671 }
0x1cfa   :  { %9947 = vpow2.f32 %v5563_v43  ;;  %8988 = vmatprep.subr.bf16.mxu0 %v5672_v35  ;;  %v5565_v16 = vmul.f32 1.442695, %v5542_v12 }
0x1cfb   :  { %8989 = vmatpush3.bf16.msra.mxu0 %v5672_v35  ;;  %v5674_v50 = vpop.permute.xlu0 %5673  ;;  %9949 = vpow2.f32 %v5559_v42  ;;  %v5514_v35 = vsel %vm556_vm3, %v13075_v10, -inf }
0x1cfc   :  { %8990 = vmatprep.subr.bf16.mxu0 %v5674_v50  ;;  %9951 = vpow2.f32 %v5565_v16 }
0x1cfd   :  { %v5676_v15 = vpop.permute.xlu1 %5675 }
0x1cff   :  { %8991 = vmatpush3.bf16.msra.mxu0 %v5674_v50  ;;  %v5678_v1 = vpop.permute.xlu0 %5677  ;;  %v13091_v50 = vmul.f32 0.35355338, %v12989_v60  ;;  %v13105_v60 = vmul.f32 0.35355338, %v12993_v63 }
0x1d00   :  { %8992 = vmatprep.subr.bf16.mxu0 %v5676_v15 }
0x1d01   :  { %v5761_v56 = vpop.permute.xlu1 %5760 }
0x1d02   :  { %v13059_v8 = vpop.eup %9945  ;;  %9004 = vmatprep.subr.bf16.mxu1 %v5761_v56 }
0x1d03   :  { %8993 = vmatpush3.bf16.msra.mxu0 %v5676_v15  ;;  %9005 = vmatpush3.bf16.msra.mxu1 %v5761_v56  ;;  %v5763_v51 = vpop.permute.xlu0 %5762  ;;  %v5598_v33 = vsel %vm556_vm3, %v13059_v8, 0.0 }
0x1d04   :  { %v13066_v52 = vpop.eup %9947  ;;  %5599 = vadd.xlane.f32.xlu0 %v5598_v33  ;;  %8994 = vmatprep.subr.bf16.mxu0 %v5678_v1  ;;  %v13112_v33 = vmul.f32 0.35355338, %v12999_v44 }
0x1d05   :  { %9006 = vmatprep.subr.bf16.mxu1 %v5763_v51  ;;  %v13068_v16 = vpop.permute.xlu1 %5857  ;;  %v5601_v13 = vsel %vm556_vm3, %v13066_v52, 0.0  ;;  %v13072_v62 = vpop.eup %9949 }
0x1d06   :  { %5602 = vadd.xlane.f32.xlu1 %v5601_v13  ;;  %v5595_v43 = vsel %vm556_vm3, %v13072_v62, 0.0  ;;  %v13083_v12 = vpop.eup %9951  ;;  %v5511_v13 = vsel %vm556_vm3, %v13105_v60, -inf  ;;  %v5529_v63 = vsel %vm556_vm3, %v13112_v33, -inf }
0x1d07   :  { %8995 = vmatpush3.bf16.msra.mxu0 %v5678_v1  ;;  %9007 = vmatpush3.bf16.msra.mxu1 %v5763_v51  ;;  %v5767_v18 = vpop.permute.xlu0 %5766  ;;  %v5604_v15 = vsel %vm556_vm3, %v13083_v12, 0.0  ;;  %v13096_v1 = vmul.f32 0.35355338, %v13005_v49  ;;  %v5517_v51 = vsel %vm556_vm3, %v13091_v50, -inf }
0x1d08   :  { %5521 = vmax.xlane.f32.xlu0 %v5520_v40  ;;  %9205 = vmatprep.subr.msk.bf16.mxu0 %vm53_vm1, %v13068_v16  ;;  %v13117_v40 = vmul.f32 0.35355338, %v13001_v47 }
0x1d09   :  { %v5765_v42 = vpop.permute.xlu1 %5764  ;;  %v5526_v49 = vsel %vm556_vm3, %v13096_v1, -inf }
0x1d0a   :  { %5596 = vadd.xlane.f32.xlu1 %v5595_v43  ;;  %9008 = vmatprep.subr.bf16.mxu1 %v5765_v42 }
0x1d0b   :  { %9009 = vmatpush3.bf16.msra.mxu1 %v5765_v42  ;;  %v13098_v56 = vpop.permute.xlu0 %5962 }
0x1d0c   :  { %5515 = vmax.xlane.f32.xlu0 %v5514_v35  ;;  %9010 = vmatprep.subr.bf16.mxu1 %v5767_v18 }
0x1d0d   :  { %v5860_v44 = vpop.permute.xlu1 %5859 }
0x1d0e   :  { %5605 = vadd.xlane.f32.xlu1 %v5604_v15 }
0x1d0f   :  { %9011 = vmatpush3.bf16.msra.mxu1 %v5767_v18  ;;  %v5523_v18 = vsel %vm556_vm3, %v13117_v40, -inf }
0x1d10   :  { %5533 = vmax.xlane.f32.xlu0 %v5532_v23  ;;  %9209 = vmatprep.subr.msk.bf16.mxu1 %vm53_vm1, %v13098_v56 }
0x1d11   :  { %v5862_v42 = vpop.permute.xlu1 %5861 }
0x1d12   :  { %5518 = vmax.xlane.f32.xlu1 %v5517_v51 }
0x1d14   :  { %5527 = vmax.xlane.f32.xlu0 %v5526_v49 }
0x1d15   :  { %v5864_v43 = vpop.permute.xlu1 %5863 }
0x1d16   :  { %5512 = vmax.xlane.f32.xlu1 %v5511_v13 }
0x1d19   :  { %v13127_v35 = vpop.permute.xlu1 %5964 }
0x1d1a   :  { %5530 = vmax.xlane.f32.xlu1 %v5529_v63 }
0x1d1e   :  { %5524 = vmax.xlane.f32.xlu1 %v5523_v18 }
0x1d2a   :  { %5849 = vrot.lane.b32.xlu0 %v12317_v24, %s10170_s24 }
0x1d2f   :  { %5851 = vrot.lane.b32.xlu1 %v12315_v37, %s10170_s24 }
0x1d4e   :  { %v5591_v47 = vpop.xlane.xlu1 %5590 }
0x1d52   :  { %v5585_v15 = vpop.xlane.xlu1 %5584  ;;  %v5594_v23 = vpop.xlane.xlu0 %5593 }
0x1d53   :  { %9953 = vrcp.f32 %v5594_v23 }
0x1d54   :  { %9955 = vrcp.f32 %v5585_v15 }
0x1d55   :  { %9957 = vrcp.f32 %v5591_v47  ;;  %v5878_v47 = vsel %vm53_vm1, %v13068_v16, 0 }
0x1d56   :  { %v5588_v51 = vpop.xlane.xlu0 %5587 }
0x1d57   :  { %9959 = vrcp.f32 %v5588_v51 }
0x1d5d   :  { %v9954_v49 = vpop.eup %9953 }
0x1d5e   :  { %v9956_v13 = vpop.eup %9955  ;;  %v5650_v59 = vmul.f32 %v9954_v49, %v13045_v20  ;;  %v5881_v20 = vsel %vm53_vm1, %v5860_v44, 0 }
0x1d5f   :  { %v9958_v63 = vpop.eup %9957  ;;  %v5647_v9 = vmul.f32 %v9956_v13, %v13043_v7  ;;  %v5884_v7 = vsel %vm53_vm1, %v5862_v42, 0 }
0x1d60   :  { %v5649_v55 = vmul.f32 %v9958_v63, %v13039_v34 }
0x1d61   :  { %v9960_v18 = vpop.eup %9959 }
0x1d62   :  { %v5648_v61 = vmul.f32 %v9960_v18, %v13051_v48  ;;  %v5664_v58 = vpack.c.bf16 %v5650_v59, %v5649_v55 }
0x1d64   :  { %v5663_v6 = vpack.c.bf16 %v5648_v61, %v5647_v9 }
0x1d66   :  { %8996 = vmatprep.mubr.msk.bf16.mxu0 %vm556_vm3, %v5663_v6  ;;  %v5887_v6 = vsel %vm53_vm1, %v5864_v43, 0 }
0x1d67   :  { %8997 = vmatmul.mubr.msk.bf16.vlgmr.msra.gmra.mrb[144].mxu0 %vm556_vm3, %v5664_v58 }
0x1d68   :  { %9021 = vmatpush3.bf16.xpose.msra.mxu0 %v5878_v47 }
0x1d69   :  { %9206 = vmatprep.subr.msk.bf16.mxu0 %vm53_vm1, %v5860_v44 }
0x1d70   :  { %9023 = vmatpush3.bf16.xpose.msra.mxu0 %v5881_v20 }
0x1d71   :  { %9207 = vmatprep.subr.msk.bf16.mxu0 %vm53_vm1, %v5862_v42 }
0x1d78   :  { %9025 = vmatpush3.bf16.xpose.msra.mxu0 %v5884_v7 }
0x1d79   :  { %9208 = vmatprep.subr.msk.bf16.mxu0 %vm53_vm1, %v5864_v43 }
0x1d80   :  { %9027 = vmatpush3.bf16.xpose.msra.mxu0 %v5887_v6 }
0x1d91   :  { %v5600_v61 = vpop.xlane.xlu0 %5599 }
0x1d92   :  { %9961 = vrcp.f32 %v5600_v61 }
0x1d93   :  { %v5603_v58 = vpop.xlane.xlu1 %5602 }
0x1d95   :  { %v5522_v55 = vpop.xlane.xlu0 %5521 }
0x1d96   :  { %v5546_v48 = vsub.f32 %v13062_v17, %v5522_v55 }
0x1d97   :  { %v5597_v59 = vpop.xlane.xlu1 %5596 }
0x1d98   :  { %9963 = vrcp.f32 %v5597_v59  ;;  %v5573_v43 = vmul.f32 1.442695, %v5546_v48 }
0x1d99   :  { %v5516_v34 = vpop.xlane.xlu0 %5515  ;;  %9965 = vrcp.f32 %v5603_v58 }
0x1d9a   :  { %v5544_v51 = vsub.f32 %v13075_v10, %v5516_v34 }
0x1d9b   :  { %v5606_v9 = vpop.xlane.xlu1 %5605 }
0x1d9c   :  { %9967 = vrcp.f32 %v5606_v9  ;;  %v9962_v42 = vpop.eup %9961  ;;  %v5569_v61 = vmul.f32 1.442695, %v5544_v51 }
0x1d9d   :  { %v5534_v16 = vpop.xlane.xlu0 %5533  ;;  %v5652_v18 = vmul.f32 %v9962_v42, %v13059_v8 }
0x1d9f   :  { %v5519_v44 = vpop.xlane.xlu1 %5518 }
0x1da0   :  { %v5545_v15 = vsub.f32 %v13091_v50, %v5519_v44 }
0x1da1   :  { %v5528_v17 = vpop.xlane.xlu0 %5527 }
0x1da2   :  { %v9964_v23 = vpop.eup %9963  ;;  %v5571_v49 = vmul.f32 1.442695, %v5545_v15 }
0x1da3   :  { %v5513_v13 = vpop.xlane.xlu1 %5512  ;;  %v5651_v63 = vmul.f32 %v9964_v23, %v13072_v62  ;;  %v9966_v47 = vpop.eup %9965  ;;  %v5548_v23 = vsub.f32 %v13096_v1, %v5528_v17 }
0x1da4   :  { %9969 = vpow2.f32 %v5571_v49  ;;  %v5543_v20 = vsub.f32 %v13105_v60, %v5513_v13  ;;  %v5653_v10 = vmul.f32 %v9966_v47, %v13066_v52 }
0x1da5   :  { %v5665_v7 = vpack.c.bf16 %v5652_v18, %v5651_v63  ;;  %9971 = vpow2.f32 %v5573_v43  ;;  %v5850_v8 = vpop.permute.xlu0 %5849  ;;  %v5577_v43 = vmul.f32 1.442695, %v5548_v23  ;;  %v5550_v63 = vsub.f32 %v13086_v11, %v5534_v16 }
0x1da6   :  { %v9968_v6 = vpop.eup %9967  ;;  %v5567_v50 = vmul.f32 1.442695, %v5543_v20 }
0x1da7   :  { %v5531_v58 = vpop.xlane.xlu1 %5530  ;;  %9000 = vmatprep.mubr.msk.bf16.mxu0 %vm556_vm3, %v5665_v7  ;;  %v5654_v55 = vmul.f32 %v9968_v6, %v13083_v12  ;;  %v5581_v47 = vmul.f32 1.442695, %v5550_v63 }
0x1da8   :  { %9973 = vpow2.f32 %v5567_v50  ;;  %v5549_v51 = vsub.f32 %v13112_v33, %v5531_v58 }
0x1da9   :  { %v5666_v62 = vpack.c.bf16 %v5654_v55, %v5653_v10  ;;  %9975 = vpow2.f32 %v5569_v61 }
0x1daa   :  { %9977 = vpow2.f32 %v5577_v43  ;;  %v5579_v49 = vmul.f32 1.442695, %v5549_v51 }
0x1dab   :  { %9001 = vmatmul.mubr.msk.bf16.gmra.mrb[148].mxu0 %vm556_vm3, %v5666_v62  ;;  %v5525_v60 = vpop.xlane.xlu1 %5524 }
0x1dac   :  { %9028 = vmatprep.mubr.msk.bf16.mxu0 %vm53_vm1, %v5850_v8  ;;  %v5547_v13 = vsub.f32 %v13117_v40, %v5525_v60  ;;  %9979 = vpow2.f32 %v5579_v49 }
0x1dae   :  { %v13154_v59 = vpop.eup %9969  ;;  %v5575_v18 = vmul.f32 1.442695, %v5547_v13 }
0x1daf   :  { %v5613_v34 = vsel %vm556_vm3, %v13154_v59, 0.0  ;;  %v13158_v9 = vpop.eup %9971  ;;  %v5852_v12 = vpop.permute.xlu1 %5851 }
0x1db0   :  { %5614 = vadd.xlane.f32.xlu0 %v5613_v34  ;;  %v5616_v44 = vsel %vm556_vm3, %v13158_v9, 0.0  ;;  %9981 = vpow2.f32 %v5575_v18 }
0x1db1   :  { %9983 = vpow2.f32 %v5581_v47  ;;  %v5983_v47 = vsel %vm53_vm1, %v13098_v56, 0 }
0x1db2   :  { %v13160_v52 = vpop.eup %9973 }
0x1db3   :  { %9029 = vmatmul.mubr.msk.bf16.vlgmr.msra.gmra.mrb[152].mxu0 %vm53_vm1, %v5852_v12  ;;  %v5607_v48 = vsel %vm556_vm3, %v13160_v52, 0.0  ;;  %v9976_v42 = vpop.eup %9975 }
0x1db4   :  { %5608 = vadd.xlane.f32.xlu1 %v5607_v48  ;;  %5617 = vadd.xlane.f32.xlu0 %v5616_v44  ;;  %v5610_v15 = vsel %vm556_vm3, %v9976_v42, 0.0  ;;  %v13176_v20 = vpop.eup %9977 }
0x1db5   :  { %v5622_v7 = vsel %vm556_vm3, %v13176_v20, 0.0 }
0x1db6   :  { %v13180_v1 = vpop.eup %9979 }
0x1db7   :  { %v5625_v33 = vsel %vm556_vm3, %v13180_v1, 0.0 }
0x1db8   :  { %5611 = vadd.xlane.f32.xlu0 %v5610_v15 }
0x1dba   :  { %v13184_v17 = vpop.eup %9981 }
0x1dbb   :  { %v5619_v11 = vsel %vm556_vm3, %v13184_v17, 0.0  ;;  %v13188_v40 = vpop.eup %9983 }
0x1dbc   :  { %v5628_v16 = vsel %vm556_vm3, %v13188_v40, 0.0 }
0x1dc5   :  { %5853 = vrot.lane.b32.xlu1 %v12327_v53, %s10170_s24 }
0x1dce   :  { %5966 = vrot.lane.b32.xlu0 %v12352_v38, %s10169_s23 }
0x1de9   :  { %5623 = vadd.xlane.f32.xlu1 %v5622_v7 }
0x1ded   :  { %5626 = vadd.xlane.f32.xlu0 %v5625_v33 }
0x1df1   :  { %5620 = vadd.xlane.f32.xlu0 %v5619_v11 }
0x1df5   :  { %5629 = vadd.xlane.f32.xlu0 %v5628_v16 }
0x1dfa   :  { %5968 = vrot.lane.b32.xlu1 %v12350_v32, %s10169_s23 }
0x1dfe   :  { %5956 = vrot.lane.b32.xlu1 %v12338_v46, %s10170_s24 }
0x1e02   :  { %5960 = vrot.lane.b32.xlu1 %v12350_v32, %s10170_s24 }
0x1e0b   :  { %5855 = vrot.lane.b32.xlu0 %v12325_v22, %s10170_s24 }
0x1e0f   :  { %5954 = vrot.lane.b32.xlu0 %v12340_v19, %s10170_s24 }
0x1e13   :  { %5958 = vrot.lane.b32.xlu0 %v12352_v38, %s10170_s24 }
0x1e3a   :  { %v13204_v6 = vpop.f32.mrb[144].mxu0 }
0x1e3b   :  { %v13206_v61 = vpop.f32.mrb[145].mxu0 }
0x1e3c   :  { %v13208_v50 = vpop.f32.mrb[146].mxu0 }
0x1e3d   :  { %v13212_v10 = vpop.f32.mrb[147].mxu0  ;;  %v5615_v62 = vpop.xlane.xlu0 %5614 }
0x1e41   :  { %v5609_v8 = vpop.xlane.xlu1 %5608  ;;  %v5618_v60 = vpop.xlane.xlu0 %5617 }
0x1e42   :  { %9985 = vrcp.f32 %v5618_v60 }
0x1e43   :  { %9987 = vrcp.f32 %v5609_v8 }
0x1e44   :  { %9989 = vrcp.f32 %v5615_v62 }
0x1e45   :  { %v5854_v34 = vpop.permute.xlu1 %5853  ;;  %v5612_v12 = vpop.xlane.xlu0 %5611 }
0x1e46   :  { %9991 = vrcp.f32 %v5612_v12  ;;  %9032 = vmatprep.mubr.msk.bf16.mxu0 %vm53_vm1, %v5854_v34 }
0x1e4c   :  { %v9986_v48 = vpop.eup %9985 }
0x1e4d   :  { %v9988_v44 = vpop.eup %9987  ;;  %v5658_v43 = vmul.f32 %v9986_v48, %v13158_v9  ;;  %v5986_v9 = vsel %vm53_vm1, %v13127_v35, 0 }
0x1e4e   :  { %v9990_v15 = vpop.eup %9989  ;;  %v5655_v51 = vmul.f32 %v9988_v44, %v13160_v52  ;;  %v5967_v52 = vpop.permute.xlu0 %5966 }
0x1e4f   :  { %v5657_v13 = vmul.f32 %v9990_v15, %v13154_v59  ;;  %v5989_v59 = vsel %vm53_vm1, %v5967_v52, 0 }
0x1e50   :  { %v9992_v23 = vpop.eup %9991 }
0x1e51   :  { %v5656_v49 = vmul.f32 %v9992_v23, %v9976_v42  ;;  %v5668_v18 = vpack.c.bf16 %v5658_v43, %v5657_v13 }
0x1e53   :  { %v5667_v63 = vpack.c.bf16 %v5656_v49, %v5655_v51 }
0x1e55   :  { %9012 = vmatprep.mubr.msk.bf16.mxu1 %vm556_vm3, %v5667_v63 }
0x1e56   :  { %9013 = vmatmul.mubr.msk.bf16.vlgmr.msra.gmra.mrb[160].mxu1 %vm556_vm3, %v5668_v18 }
0x1e57   :  { %9037 = vmatpush3.bf16.xpose.msra.mxu1 %v5983_v47 }
0x1e58   :  { %9210 = vmatprep.subr.msk.bf16.mxu1 %vm53_vm1, %v13127_v35 }
0x1e5f   :  { %9039 = vmatpush3.bf16.xpose.msra.mxu1 %v5986_v9 }
0x1e60   :  { %9211 = vmatprep.subr.msk.bf16.mxu1 %vm53_vm1, %v5967_v52 }
0x1e67   :  { %9041 = vmatpush3.bf16.xpose.msra.mxu1 %v5989_v59 }
0x1e76   :  { %v5624_v42 = vpop.xlane.xlu1 %5623 }
0x1e77   :  { %9993 = vrcp.f32 %v5624_v42 }
0x1e7a   :  { %v5969_v7 = vpop.permute.xlu1 %5968  ;;  %v5627_v33 = vpop.xlane.xlu0 %5626 }
0x1e7b   :  { %9212 = vmatprep.subr.msk.bf16.mxu1 %vm53_vm1, %v5969_v7  ;;  %v5992_v56 = vsel %vm53_vm1, %v5969_v7, 0 }
0x1e7c   :  { %9043 = vmatpush3.bf16.xpose.msra.mxu1 %v5992_v56 }
0x1e7e   :  { %v13232_v11 = vpop.f32.mrb[148].mxu0  ;;  %v5621_v16 = vpop.xlane.xlu0 %5620 }
0x1e7f   :  { %v13234_v35 = vpop.f32.mrb[149].mxu0  ;;  %9995 = vrcp.f32 %v5621_v16 }
0x1e80   :  { %v13236_v62 = vpop.f32.mrb[150].mxu0  ;;  %9997 = vrcp.f32 %v5627_v33 }
0x1e81   :  { %v13240_v60 = vpop.f32.mrb[151].mxu0  ;;  %v9994_v23 = vpop.eup %9993 }
0x1e82   :  { %v5630_v12 = vpop.xlane.xlu0 %5629  ;;  %v5660_v52 = vmul.f32 %v9994_v23, %v13176_v20 }
0x1e83   :  { %9999 = vrcp.f32 %v5630_v12 }
0x1e86   :  { %v9030_v48 = vpop.f32.mrb[152].mxu0  ;;  %v5856_v44 = vpop.permute.xlu0 %5855 }
0x1e87   :  { %v5923_v15 = vpop.f32.mrb[153].mxu0  ;;  %9033 = vmatmul.mubr.msk.bf16.gmra.mrb[156].mxu0 %vm53_vm1, %v5856_v44  ;;  %v13247_v63 = vmul.f32 0.35355338, %v9030_v48 }
0x1e88   :  { %v13244_v43 = vmul.f32 0.35355338, %v5923_v15  ;;  %v9031_v51 = vpop.f32.mrb[154].mxu0  ;;  %v5957_v15 = vpop.permute.xlu1 %5956 }
0x1e89   :  { %v5926_v49 = vpop.f32.mrb[155].mxu0  ;;  %v9996_v13 = vpop.eup %9995  ;;  %v6062_v56 = vmul.f32 0.35355338, %v9031_v51  ;;  %v6081_v16 = vsel %vm556_vm3, %v13247_v63, -inf }
0x1e8a   :  { %v6060_v18 = vmul.f32 0.35355338, %v5926_v49  ;;  %v6075_v47 = vsel %vm556_vm3, %v13244_v43, -inf  ;;  %v5659_v9 = vmul.f32 %v9996_v13, %v13184_v17  ;;  %v9998_v59 = vpop.eup %9997  ;;  %v5955_v44 = vpop.permute.xlu0 %5954 }
0x1e8b   :  { %6076 = vmax.xlane.f32.xlu0 %v6075_v47  ;;  %v5661_v12 = vmul.f32 %v9998_v59, %v13180_v1  ;;  %v6084_v20 = vsel %vm556_vm3, %v6062_v56, -inf }
0x1e8c   :  { %v6078_v42 = vsel %vm556_vm3, %v6060_v18, -inf  ;;  %v5669_v7 = vpack.c.bf16 %v5660_v52, %v5659_v9  ;;  %v5961_v51 = vpop.permute.xlu1 %5960 }
0x1e8d   :  { %6079 = vmax.xlane.f32.xlu1 %v6078_v42  ;;  %v10000_v33 = vpop.eup %9999 }
0x1e8e   :  { %9016 = vmatprep.mubr.msk.bf16.mxu1 %vm556_vm3, %v5669_v7  ;;  %v5662_v48 = vmul.f32 %v10000_v33, %v13188_v40  ;;  %v5959_v23 = vpop.permute.xlu0 %5958 }
0x1e8f   :  { %6082 = vmax.xlane.f32.xlu0 %v6081_v16 }
0x1e90   :  { %v5670_v17 = vpack.c.bf16 %v5662_v48, %v5661_v12 }
0x1e92   :  { %9017 = vmatmul.mubr.msk.bf16.gmra.mrb[164].mxu1 %vm556_vm3, %v5670_v17 }
0x1e93   :  { %6085 = vmax.xlane.f32.xlu0 %v6084_v20  ;;  %9044 = vmatprep.mubr.msk.bf16.mxu1 %vm53_vm1, %v5955_v44 }
0x1e9a   :  { %9045 = vmatmul.mubr.msk.bf16.vlgmr.msra.gmra.mrb[168].mxu1 %vm53_vm1, %v5957_v15 }
0x1e9b   :  { %9048 = vmatprep.mubr.msk.bf16.mxu1 %vm53_vm1, %v5959_v23 }
0x1ea2   :  { %9049 = vmatmul.mubr.msk.bf16.gmra.mrb[172].mxu1 %vm53_vm1, %v5961_v51 }
0x1f18   :  { %v6077_v52 = vpop.xlane.xlu0 %6076 }
0x1f1a   :  { %v6080_v33 = vpop.xlane.xlu1 %6079 }
0x1f1b   :  { %v6124_v16 = vsub.f32 %v6060_v18, %v6080_v33 }
0x1f1c   :  { %v6083_v59 = vpop.xlane.xlu0 %6082 }
0x1f1d   :  { %v6141_v17 = vmul.f32 1.442695, %v6124_v16 }
0x1f20   :  { %v6086_v42 = vpop.xlane.xlu0 %6085 }
0x1f21   :  { %v6126_v7 = vsub.f32 %v6062_v56, %v6086_v42 }
0x1f23   :  { %v6145_v12 = vmul.f32 1.442695, %v6126_v7 }
0x1f25   :  { %10001 = vpow2.f32 %v6145_v12 }
0x1f26   :  { %10003 = vpow2.f32 %v6141_v17  ;;  %v6123_v17 = vsub.f32 %v13244_v43, %v6077_v52 }
0x1f29   :  { %v13265_v1 = vpop.f32.mrb[160].mxu1 }
0x1f2a   :  { %v13267_v40 = vpop.f32.mrb[161].mxu1 }
0x1f2b   :  { %v13269_v49 = vpop.f32.mrb[162].mxu1 }
0x1f2c   :  { %v13273_v47 = vpop.f32.mrb[163].mxu1 }
0x1f2f   :  { %v13281_v42 = vpop.eup %10001 }
0x1f5a   :  { %v9034_v48 = vpop.f32.mrb[156].mxu0 }
0x1f5b   :  { %v5939_v20 = vpop.f32.mrb[157].mxu0  ;;  %v6065_v51 = vmul.f32 0.35355338, %v9034_v48  ;;  %v13295_v48 = vpop.eup %10003 }
0x1f5c   :  { %v6063_v44 = vmul.f32 0.35355338, %v5939_v20  ;;  %v9035_v15 = vpop.f32.mrb[158].mxu0  ;;  %v6174_v20 = vsel %vm556_vm3, %v13295_v48, 0.0 }
0x1f5d   :  { %v5942_v23 = vpop.f32.mrb[159].mxu0  ;;  %v6066_v9 = vmul.f32 0.35355338, %v9035_v15  ;;  %v6093_v18 = vsel %vm556_vm3, %v6065_v51, -inf }
0x1f5e   :  { %v6064_v13 = vmul.f32 0.35355338, %v5942_v23  ;;  %v6087_v34 = vsel %vm556_vm3, %v6063_v44, -inf }
0x1f5f   :  { %6088 = vmax.xlane.f32.xlu1 %v6087_v34  ;;  %v6096_v56 = vsel %vm556_vm3, %v6066_v9, -inf }
0x1f60   :  { %v6090_v8 = vsel %vm556_vm3, %v6064_v13, -inf }
0x1f61   :  { %6091 = vmax.xlane.f32.xlu0 %v6090_v8  ;;  %v6180_v8 = vsel %vm556_vm3, %v13281_v42, 0.0 }
0x1f63   :  { %6094 = vmax.xlane.f32.xlu1 %v6093_v18 }
0x1f65   :  { %v13283_v7 = vpop.f32.mrb[164].mxu1  ;;  %6097 = vmax.xlane.f32.xlu0 %v6096_v56 }
0x1f66   :  { %14549 = vst [vmem:[#allocation18_spill] sm:$0xff] %v13283_v7  ;;  %v13285_v33 = vpop.f32.mrb[165].mxu1 }
0x1f67   :  { %14550 = vst [vmem:[#allocation19_spill] sm:$0xff] %v13285_v33  ;;  %v13287_v16 = vpop.f32.mrb[166].mxu1  ;;  %v6139_v33 = vmul.f32 1.442695, %v6123_v17 }
0x1f68   :  { %14551 = vst [vmem:[#allocation20_spill] sm:$0xff] %v13287_v16  ;;  %v13291_v12 = vpop.f32.mrb[167].mxu1  ;;  %v6125_v16 = vsub.f32 %v13247_v63, %v6083_v59 }
0x1f69   :  { %14552 = vst [vmem:[#allocation45_spill] sm:$0xff] %v13291_v12  ;;  %6181 = vadd.xlane.f32.xlu0 %v6180_v8 }
0x1f6a   :  { %v6143_v8 = vmul.f32 1.442695, %v6125_v16 }
0x1f6c   :  { %10005 = vpow2.f32 %v6143_v8 }
0x1f6d   :  { %v9046_v15 = vpop.f32.mrb[168].mxu1  ;;  %6175 = vadd.xlane.f32.xlu0 %v6174_v20  ;;  %10007 = vpow2.f32 %v6139_v33 }
0x1f6e   :  { %v6028_v23 = vpop.f32.mrb[169].mxu1 }
0x1f6f   :  { %v9047_v18 = vpop.f32.mrb[170].mxu1 }
0x1f70   :  { %v6031_v56 = vpop.f32.mrb[171].mxu1 }
0x1f74   :  { %6259 = vrot.lane.b32.xlu1 %v12317_v24, %s10171_s25 }
0x1f75   :  { %v9050_v34 = vpop.f32.mrb[172].mxu1 }
0x1f76   :  { %v6044_v58 = vpop.f32.mrb[173].mxu1  ;;  %v13305_v12 = vpop.eup %10005 }
0x1f77   :  { %v9051_v55 = vpop.f32.mrb[174].mxu1  ;;  %v6177_v20 = vsel %vm556_vm3, %v13305_v12, 0.0  ;;  %v13309_v45 = vpop.eup %10007 }
0x1f78   :  { %v6047_v7 = vpop.f32.mrb[175].mxu1  ;;  %v6171_v24 = vsel %vm556_vm3, %v13309_v45, 0.0 }
0x1f98   :  { %6178 = vadd.xlane.f32.xlu1 %v6177_v20 }
0x1f9c   :  { %6172 = vadd.xlane.f32.xlu1 %v6171_v24  ;;  %v6067_v24 = vmul.f32 0.35355338, %v6028_v23  ;;  %v13334_v23 = vmul.f32 0.35355338, %v6047_v7 }
0x1fec   :  { %v6089_v5 = vpop.xlane.xlu1 %6088 }
0x1fed   :  { %v6127_v63 = vsub.f32 %v6063_v44, %v6089_v5 }
0x1fee   :  { %v6092_v59 = vpop.xlane.xlu0 %6091 }
0x1fef   :  { %v6128_v52 = vsub.f32 %v6064_v13, %v6092_v59  ;;  %v6147_v17 = vmul.f32 1.442695, %v6127_v63  ;;  %v6068_v59 = vmul.f32 0.35355338, %v6031_v56 }
0x1ff0   :  { %v6095_v43 = vpop.xlane.xlu1 %6094 }
0x1ff1   :  { %v6129_v16 = vsub.f32 %v6065_v51, %v6095_v43  ;;  %v6149_v57 = vmul.f32 1.442695, %v6128_v52  ;;  %v6073_v52 = vmul.f32 0.35355338, %v9050_v34  ;;  %v6114_v34 = vsel %vm556_vm3, %v13334_v23, -inf }
0x1ff2   :  { %v6098_v33 = vpop.xlane.xlu0 %6097 }
0x1ff3   :  { %v6151_v8 = vmul.f32 1.442695, %v6129_v16  ;;  %v6130_v25 = vsub.f32 %v6066_v9, %v6098_v33  ;;  %v6074_v16 = vmul.f32 0.35355338, %v9051_v55  ;;  %v6117_v33 = vsel %vm556_vm3, %v6073_v52, -inf }
0x1ff4   :  { %v6260_v29 = vpop.permute.xlu1 %6259 }
0x1ff5   :  { %10009 = vpow2.f32 %v6151_v8  ;;  %v6153_v3 = vmul.f32 1.442695, %v6130_v25  ;;  %9052 = vmatprep.subr.bf16.mxu0 %v6260_v29  ;;  %v6069_v25 = vmul.f32 0.35355338, %v9046_v15  ;;  %v6099_v15 = vsel %vm556_vm3, %v6067_v24, -inf }
0x1ff6   :  { %10011 = vpow2.f32 %v6147_v17  ;;  %9053 = vmatpush3.bf16.msra.mxu0 %v6260_v29  ;;  %v6102_v17 = vsel %vm556_vm3, %v6068_v59, -inf  ;;  %v6120_v8 = vsel %vm556_vm3, %v6074_v16, -inf  ;;  %v6182_v55 = vpop.xlane.xlu0 %6181 }
0x1ff7   :  { %10013 = vpow2.f32 %v6153_v3  ;;  %v6105_v63 = vsel %vm556_vm3, %v6069_v25, -inf }
0x1ff8   :  { %10015 = vpow2.f32 %v6149_v57  ;;  %v6070_v57 = vmul.f32 0.35355338, %v9047_v18  ;;  %v6071_v18 = vmul.f32 0.35355338, %v6044_v58 }
0x1ffa   :  { %v6108_v43 = vsel %vm556_vm3, %v6070_v57, -inf  ;;  %v6111_v56 = vsel %vm556_vm3, %v6071_v18, -inf }
0x1fff   :  { %v13313_v20 = vpop.eup %10009 }
0x2000   :  { %v13315_v5 = vpop.eup %10011  ;;  %v6189_v13 = vsel %vm556_vm3, %v13313_v20, 0.0 }
0x2001   :  { %v13319_v44 = vpop.eup %10013  ;;  %6190 = vadd.xlane.f32.xlu1 %v6189_v13  ;;  %v6183_v29 = vsel %vm556_vm3, %v13315_v5, 0.0  ;;  %v6176_v13 = vpop.xlane.xlu0 %6175 }
0x2002   :  { %v6192_v9 = vsel %vm556_vm3, %v13319_v44, 0.0  ;;  %v13323_v51 = vpop.eup %10015  ;;  %10017 = vrcp.f32 %v6176_v13 }
0x2003   :  { %6193 = vadd.xlane.f32.xlu0 %v6192_v9  ;;  %v6186_v3 = vsel %vm556_vm3, %v13323_v51, 0.0 }
0x2005   :  { %6184 = vadd.xlane.f32.xlu1 %v6183_v29 }
0x2007   :  { %6187 = vadd.xlane.f32.xlu0 %v6186_v3 }
0x2009   :  { %6106 = vmax.xlane.f32.xlu1 %v6105_v63 }
0x200b   :  { %6109 = vmax.xlane.f32.xlu0 %v6108_v43 }
0x200c   :  { %v10018_v7 = vpop.eup %10017 }
0x200d   :  { %6100 = vmax.xlane.f32.xlu1 %v6099_v15  ;;  %v6236_v63 = vmul.f32 %v10018_v7, %v13295_v48 }
0x200f   :  { %6103 = vmax.xlane.f32.xlu0 %v6102_v17 }
0x2011   :  { %6118 = vmax.xlane.f32.xlu1 %v6117_v33 }
0x2013   :  { %6121 = vmax.xlane.f32.xlu0 %v6120_v8 }
0x2015   :  { %6112 = vmax.xlane.f32.xlu1 %v6111_v56 }
0x2017   :  { %6115 = vmax.xlane.f32.xlu0 %v6114_v34 }
0x2025   :  { %v6179_v9 = vpop.xlane.xlu1 %6178 }
0x2026   :  { %6261 = vrot.lane.b32.xlu1 %v12315_v37, %s10171_s25 }
0x2029   :  { %v6173_v58 = vpop.xlane.xlu1 %6172 }
0x202a   :  { %10019 = vrcp.f32 %v6173_v58  ;;  %6265 = vrot.lane.b32.xlu1 %v12325_v22, %s10171_s25 }
0x202d   :  { %6263 = vrot.lane.b32.xlu0 %v12327_v53, %s10171_s25 }
0x2034   :  { %v10020_v29 = vpop.eup %10019 }
0x2035   :  { %v6235_v3 = vmul.f32 %v10020_v29, %v13309_v45 }
0x2037   :  { %v6251_v43 = vpack.c.bf16 %v6236_v63, %v6235_v3 }
0x2039   :  { %9060 = vmatprep.mubr.msk.bf16.mxu0 %vm556_vm3, %v6251_v43 }
0x208e   :  { %v6191_v15 = vpop.xlane.xlu1 %6190 }
0x2090   :  { %v6194_v37 = vpop.xlane.xlu0 %6193 }
0x2092   :  { %v6185_v17 = vpop.xlane.xlu1 %6184 }
0x2094   :  { %v6188_v33 = vpop.xlane.xlu0 %6187 }
0x2096   :  { %v6107_v8 = vpop.xlane.xlu1 %6106 }
0x2097   :  { %v6133_v56 = vsub.f32 %v6069_v25, %v6107_v8 }
0x2098   :  { %v6110_v34 = vpop.xlane.xlu0 %6109 }
0x2099   :  { %v6159_v22 = vmul.f32 1.442695, %v6133_v56  ;;  %v6134_v13 = vsub.f32 %v6070_v57, %v6110_v34 }
0x209a   :  { %v6101_v58 = vpop.xlane.xlu1 %6100 }
0x209b   :  { %10021 = vpow2.f32 %v6159_v22  ;;  %v6131_v53 = vsub.f32 %v6067_v24, %v6101_v58  ;;  %v6161_v4 = vmul.f32 1.442695, %v6134_v13 }
0x209c   :  { %v6104_v14 = vpop.xlane.xlu0 %6103  ;;  %10023 = vrcp.f32 %v6182_v55 }
0x209d   :  { %v6155_v45 = vmul.f32 1.442695, %v6131_v53  ;;  %v6132_v29 = vsub.f32 %v6068_v59, %v6104_v14 }
0x209e   :  { %v6119_v48 = vpop.xlane.xlu1 %6118 }
0x209f   :  { %10025 = vpow2.f32 %v6155_v45  ;;  %v6137_v7 = vsub.f32 %v6073_v52, %v6119_v48  ;;  %v6157_v63 = vmul.f32 1.442695, %v6132_v29 }
0x20a0   :  { %10027 = vrcp.f32 %v6179_v9  ;;  %v6122_v3 = vpop.xlane.xlu0 %6121 }
0x20a1   :  { %10029 = vpow2.f32 %v6161_v4  ;;  %v6167_v43 = vmul.f32 1.442695, %v6137_v7  ;;  %v6138_v25 = vsub.f32 %v6074_v16, %v6122_v3 }
0x20a2   :  { %10031 = vrcp.f32 %v6188_v33  ;;  %v6113_v8 = vpop.xlane.xlu1 %6112 }
0x20a3   :  { %10033 = vpow2.f32 %v6167_v43  ;;  %v6135_v57 = vsub.f32 %v6071_v18, %v6113_v8  ;;  %v6169_v24 = vmul.f32 1.442695, %v6138_v25 }
0x20a4   :  { %10035 = vrcp.f32 %v6185_v17  ;;  %v6116_v56 = vpop.xlane.xlu0 %6115 }
0x20a5   :  { %v13349_v34 = vpop.eup %10021  ;;  %10037 = vpow2.f32 %v6157_v63  ;;  %v6163_v14 = vmul.f32 1.442695, %v6135_v57  ;;  %v6136_v59 = vsub.f32 %v13334_v23, %v6116_v56 }
0x20a6   :  { %10039 = vrcp.f32 %v6194_v37  ;;  %v6262_v52 = vpop.permute.xlu1 %6261  ;;  %v6201_v4 = vsel %vm556_vm3, %v13349_v34, 0.0  ;;  %v10024_v55 = vpop.eup %10023 }
0x20a7   :  { %10041 = vpow2.f32 %v6163_v14  ;;  %v6165_v16 = vmul.f32 1.442695, %v6136_v59  ;;  %9054 = vmatprep.subr.bf16.mxu0 %v6262_v52  ;;  %6202 = vadd.xlane.f32.xlu0 %v6201_v4  ;;  %v6238_v3 = vmul.f32 %v10024_v55, %v13281_v42 }
0x20a8   :  { %10043 = vpow2.f32 %v6169_v24  ;;  %9055 = vmatpush3.bf16.msra.mxu0 %v6262_v52  ;;  %v6264_v18 = vpop.permute.xlu0 %6263 }
0x20a9   :  { %v13354_v9 = vpop.eup %10025  ;;  %10045 = vpow2.f32 %v6165_v16  ;;  %9056 = vmatprep.subr.bf16.mxu0 %v6264_v18 }
0x20aa   :  { %v10028_v17 = vpop.eup %10027  ;;  %v6195_v23 = vsel %vm556_vm3, %v13354_v9, 0.0  ;;  %10047 = vrcp.f32 %v6191_v15  ;;  %v6266_v22 = vpop.permute.xlu1 %6265 }
0x20ab   :  { %v13358_v37 = vpop.eup %10029  ;;  %6196 = vadd.xlane.f32.xlu0 %v6195_v23  ;;  %v6237_v53 = vmul.f32 %v10028_v17, %v13305_v12 }
0x20ac   :  { %v10032_v33 = vpop.eup %10031  ;;  %9057 = vmatpush3.bf16.msra.mxu0 %v6264_v18  ;;  %v6204_v29 = vsel %vm556_vm3, %v13358_v37, 0.0 }
0x20ad   :  { %v13360_v13 = vpop.eup %10033  ;;  %9058 = vmatprep.subr.bf16.mxu0 %v6266_v22  ;;  %v6240_v15 = vmul.f32 %v10032_v33, %v13323_v51  ;;  %v6252_v25 = vpack.c.bf16 %v6238_v3, %v6237_v53 }
0x20ae   :  { %v10036_v58 = vpop.eup %10035  ;;  %v6213_v45 = vsel %vm556_vm3, %v13360_v13, 0.0 }
0x20af   :  { %v10038_v48 = vpop.eup %10037  ;;  %6214 = vadd.xlane.f32.xlu1 %v6213_v45  ;;  %6205 = vadd.xlane.f32.xlu0 %v6204_v29  ;;  %v6239_v43 = vmul.f32 %v10036_v58, %v13315_v5 }
0x20b0   :  { %v10040_v7 = vpop.eup %10039  ;;  %9059 = vmatpush3.bf16.msra.mxu0 %v6266_v22  ;;  %v6198_v57 = vsel %vm556_vm3, %v10038_v48, 0.0 }
0x20b1   :  { %v13369_v63 = vpop.eup %10041  ;;  %v6253_v51 = vpack.c.bf16 %v6240_v15, %v6239_v43  ;;  %v6242_v14 = vmul.f32 %v10040_v7, %v13319_v44  ;;  %v14553_v44 = vpack.i.bf16 %v12891_v2, %v12885_v27 }
0x20b2   :  { %v13372_v12 = vpop.eup %10043  ;;  %v6207_v8 = vsel %vm556_vm3, %v13369_v63, 0.0 }
0x20b3   :  { %v13377_v24 = vpop.eup %10045  ;;  %6208 = vadd.xlane.f32.xlu1 %v6207_v8  ;;  %6199 = vadd.xlane.f32.xlu0 %v6198_v57  ;;  %v6216_v5 = vsel %vm556_vm3, %v13372_v12, 0.0 }
0x20b4   :  { %9061 = vmatmul.mubr.msk.bf16.vlgmr.msra.gmra.mrb[160].mxu0 %vm556_vm3, %v6252_v25  ;;  %v10048_v42 = vpop.eup %10047  ;;  %v6210_v56 = vsel %vm556_vm3, %v13377_v24, 0.0 }
0x20b5   :  { %9064 = vmatprep.mubr.msk.bf16.mxu0 %vm556_vm3, %v6253_v51  ;;  %v6241_v59 = vmul.f32 %v10048_v42, %v13313_v20  ;;  %v14554_v20 = vpack.i.bf16 %v12887_v0, %v12883_v26 }
0x20b7   :  { %6217 = vadd.xlane.f32.xlu1 %v6216_v5  ;;  %6211 = vadd.xlane.f32.xlu0 %v6210_v56  ;;  %v6254_v52 = vpack.c.bf16 %v6242_v14, %v6241_v59 }
0x20bc   :  { %9065 = vmatmul.mubr.msk.bf16.gmra.mrb[164].mxu0 %vm556_vm3, %v6254_v52  ;;  %v14558_v52 = vpack.i.bf16 %v12915_v21, %v12909_v39  ;;  %v14561_v39 = vpack.i.bf16 %v12955_v54, %v12949_v36  ;;  %v14563_v21 = vpack.i.bf16 %v13269_v49, %v13265_v1  ;;  %v14568_v54 = vld [vmem:[#allocation17_spill] sm:$0xff] }
0x20c8   :  { %6350 = vrot.lane.b32.xlu1 %v12338_v46, %s10171_s25  ;;  %v14555_v46 = vpack.i.bf16 %v13212_v10, %v13206_v61 }
0x20cc   :  { %6352 = vrot.lane.b32.xlu1 %v12352_v38, %s10171_s25 }
0x20cd   :  { %6348 = vrot.lane.b32.xlu0 %v12340_v19, %s10171_s25  ;;  %v14556_v19 = vpack.i.bf16 %v13208_v50, %v13204_v6 }
0x20d0   :  { %6354 = vrot.lane.b32.xlu1 %v12350_v32, %s10171_s25  ;;  %v9481_v32 = vld [vmem:[%s14352_s3 + $0x10] sm:$0xff]  }
0x20d1   :  { %9350 = vrot.lane.b32.xlu0 %v14553_v44, %s10172_s26  ;;  %9084 = vmatprep.subr.bf16.mxu0 %v9481_v32 }
0x20d2   :  { %9085 = vmatpush3.bf16.msra.mxu0 %v9481_v32  ;;  %v14559_v32 = vpack.i.bf16 %v13236_v62, %v13232_v11  ;;  %v14564_v11 = vpack.i.bf16 %v13273_v47, %v13267_v40  ;;  %v14566_v62 = vld [vmem:[#allocation14_spill] sm:$0xff] }
0x20d4   :  { %9355 = vrot.lane.b32.xlu1 %v14554_v20, %s10172_s26 }
0x20d5   :  { %9360 = vrot.lane.b32.xlu0 %v14555_v46, %s10173_s27 }
0x20d8   :  { %9365 = vrot.lane.b32.xlu1 %v14556_v19, %s10173_s27 }
0x2134   :  { %v6203_v38 = vpop.xlane.xlu0 %6202 }
0x2138   :  { %v6197_v27 = vpop.xlane.xlu0 %6196 }
0x2139   :  { %10049 = vrcp.f32 %v6197_v27 }
0x213c   :  { %v6215_v26 = vpop.xlane.xlu1 %6214  ;;  %v6206_v0 = vpop.xlane.xlu0 %6205 }
0x2140   :  { %v6209_v2 = vpop.xlane.xlu1 %6208  ;;  %v6200_v4 = vpop.xlane.xlu0 %6199 }
0x2141   :  { %10051 = vrcp.f32 %v6200_v4 }
0x2142   :  { %10053 = vrcp.f32 %v6206_v0 }
0x2143   :  { %v10050_v16 = vpop.eup %10049 }
0x2144   :  { %v6218_v61 = vpop.xlane.xlu1 %6217  ;;  %v6212_v10 = vpop.xlane.xlu0 %6211  ;;  %v6243_v17 = vmul.f32 %v10050_v16, %v13354_v9 }
0x2145   :  { %10055 = vrcp.f32 %v6212_v10  ;;  %v14571_v10 = vld [vmem:[#allocation35_spill] sm:$0xff] }
0x2146   :  { %10057 = vrcp.f32 %v6203_v38 }
0x2147   :  { %10059 = vrcp.f32 %v6209_v2 }
0x2148   :  { %v6351_v6 = vpop.permute.xlu1 %6350  ;;  %v6349_v50 = vpop.permute.xlu0 %6348  ;;  %10061 = vrcp.f32 %v6218_v61 }
0x2149   :  { %9068 = vmatprep.subr.bf16.mxu1 %v6349_v50  ;;  %10063 = vrcp.f32 %v6215_v26 }
0x214a   :  { %9069 = vmatpush3.bf16.msra.mxu1 %v6349_v50  ;;  %v14572_v50 = vld [vmem:[#allocation32_spill] sm:$0xff] }
0x214b   :  { %9070 = vmatprep.subr.bf16.mxu1 %v6351_v6  ;;  %v10052_v55 = vpop.eup %10051 }
0x214c   :  { %v6353_v18 = vpop.permute.xlu1 %6352  ;;  %v6244_v23 = vmul.f32 %v10052_v55, %v10038_v48  ;;  %v10054_v22 = vpop.eup %10053 }
0x214d   :  { %v6246_v15 = vmul.f32 %v10054_v22, %v13358_v37  ;;  %v9351_v38 = vpop.permute.xlu0 %9350 }
0x214e   :  { %9071 = vmatpush3.bf16.msra.mxu1 %v6351_v6  ;;  %v6255_v33 = vpack.c.bf16 %v6244_v23, %v6243_v17  ;;  %v9353_v1 = vunpack.i.h.bf16 %v9351_v38  ;;  %v9352_v49 = vunpack.i.l.bf16 %v9351_v38  ;;  %v14574_v23 = vld [vmem:[#allocation29_spill] sm:$0xff] }
0x214f   :  { %9072 = vmatprep.subr.bf16.mxu1 %v6353_v18  ;;  %v10056_v58 = vpop.eup %10055 }
0x2150   :  { %9076 = vmatprep.mubr.msk.bf16.mxu1 %vm556_vm3, %v6255_v33  ;;  %v10058_v53 = vpop.eup %10057  ;;  %v6355_v45 = vpop.permute.xlu1 %6354  ;;  %v6248_v7 = vmul.f32 %v10056_v58, %v13377_v24  ;;  %v6630_v6 = vsel %vm53_vm1, %v14571_v10, %v9353_v1  ;;  %v6629_v16 = vsel %vm53_vm1, %v14572_v50, %v9352_v49 }
0x2151   :  { %v10060_v29 = vpop.eup %10059  ;;  %v6245_v9 = vmul.f32 %v10058_v53, %v13349_v34  ;;  %v9482_v34 = vld [vmem:[%s14352_s3 + $0x18] sm:$0xff]   ;;  %v9361_v26 = vpop.permute.xlu0 %9360 }
0x2152   :  { %9073 = vmatpush3.bf16.msra.mxu1 %v6353_v18  ;;  %v6247_v48 = vmul.f32 %v10060_v29, %v13369_v63  ;;  %v10062_v43 = vpop.eup %10061  ;;  %9086 = vmatprep.subr.bf16.mxu0 %v9482_v34  ;;  %v9363_v4 = vunpack.i.h.bf16 %v9361_v26  ;;  %v9362_v61 = vunpack.i.l.bf16 %v9361_v26  ;;  %v14573_v18 = vld [vmem:[#allocation30_spill] sm:$0xff] }
0x2153   :  { %9074 = vmatprep.subr.bf16.mxu1 %v6355_v45  ;;  %v6256_v3 = vpack.c.bf16 %v6246_v15, %v6245_v9  ;;  %v10064_v8 = vpop.eup %10063  ;;  %v6250_v57 = vmul.f32 %v10062_v43, %v13372_v12  ;;  %9087 = vmatpush3.bf16.msra.mxu0 %v9482_v34  ;;  %v14557_v12 = vpack.i.bf16 %v12911_v41, %v12907_v31 }
0x2154   :  { %v6257_v25 = vpack.c.bf16 %v6248_v7, %v6247_v48  ;;  %v6249_v37 = vmul.f32 %v10064_v8, %v13360_v13  ;;  %v14560_v31 = vpack.i.bf16 %v13240_v60, %v13234_v35  ;;  %v14562_v41 = vpack.i.bf16 %v12959_v28, %v12951_v30  ;;  %v14565_v35 = vld [vmem:[#allocation16_spill] sm:$0xff]  ;;  %v14569_v60 = vld [vmem:[#allocation15_spill] sm:$0xff]  ;;  %v9356_v28 = vpop.permute.xlu1 %9355 }
0x2155   :  { %v14567_v36 = vpack.i.bf16 %v14565_v35, %v14566_v62  ;;  %v14570_v30 = vpack.i.bf16 %v14568_v54, %v14569_v60  ;;  %v9358_v0 = vunpack.i.h.bf16 %v9356_v28  ;;  %v9357_v2 = vunpack.i.l.bf16 %v9356_v28 }
0x2156   :  { %9075 = vmatpush3.bf16.msra.mxu1 %v6355_v45  ;;  %v6258_v51 = vpack.c.bf16 %v6250_v57, %v6249_v37  ;;  %v6645_v9 = vsel %vm2891_vm4, %v6629_v16, %v9362_v61  ;;  %v6646_v48 = vsel %vm2891_vm4, %v6630_v6, %v9363_v4  ;;  %v14579_v16 = vld [vmem:[#allocation20_spill] sm:$0xff] }
0x2157   :  { %v6632_v17 = vsel %vm53_vm1, %v14573_v18, %v9358_v0  ;;  %v6631_v33 = vsel %vm53_vm1, %v14574_v23, %v9357_v2  ;;  %v14582_v23 = vld [vmem:[#allocation45_spill] sm:$0xff] }
0x2158   :  { %v9366_v27 = vpop.permute.xlu1 %9365 }
0x2159   :  { %9077 = vmatmul.mubr.msk.bf16.vlgmr.msra.gmra.mrb[176].mxu1 %vm556_vm3, %v6256_v3  ;;  %v9368_v40 = vunpack.i.h.bf16 %v9366_v27  ;;  %v9367_v47 = vunpack.i.l.bf16 %v9366_v27 }
0x215a   :  { %9080 = vmatprep.mubr.msk.bf16.mxu1 %vm556_vm3, %v6257_v25 }
0x215b   :  { %v6647_v45 = vsel %vm2891_vm4, %v6631_v33, %v9367_v47  ;;  %v6648_v29 = vsel %vm2891_vm4, %v6632_v17, %v9368_v40  ;;  %v14583_v33 = vld [vmem:[#allocation19_spill] sm:$0xff] }
0x2161   :  { %9081 = vmatmul.mubr.msk.bf16.gmra.mrb[180].mxu1 %vm556_vm3, %v6258_v51 }
0x2187   :  { %v9062_v63 = vpop.f32.mrb[160].mxu0 }
0x2188   :  { %v6317_v24 = vpop.f32.mrb[161].mxu0 }
0x2189   :  { %v9063_v42 = vpop.f32.mrb[162].mxu0 }
0x218a   :  { %v9374_v5 = vpack.i.bf16 %v9063_v42, %v9062_v63  ;;  %v6320_v56 = vpop.f32.mrb[163].mxu0 }
0x218b   :  { %v9369_v14 = vpack.i.bf16 %v6320_v56, %v6317_v24 }
0x218c   :  { %9375 = vrot.lane.b32.xlu1 %v9374_v5, %s10174_s9 }
0x218d   :  { %9370 = vrot.lane.b32.xlu0 %v9369_v14, %s10174_s9 }
0x218f   :  { %v9066_v13 = vpop.f32.mrb[164].mxu0 }
0x2190   :  { %9385 = vrot.lane.b32.xlu1 %v14557_v12, %s10172_s26  ;;  %v6333_v59 = vpop.f32.mrb[165].mxu0 }
0x2191   :  { %9380 = vrot.lane.b32.xlu0 %v14558_v52, %s10172_s26  ;;  %v9067_v44 = vpop.f32.mrb[166].mxu0 }
0x2192   :  { %v9404_v20 = vpack.i.bf16 %v9067_v44, %v9066_v13  ;;  %v6336_v46 = vpop.f32.mrb[167].mxu0  ;;  %v14575_v44 = vld [vmem:[#allocation34_spill] sm:$0xff] }
0x2193   :  { %v9399_v19 = vpack.i.bf16 %v6336_v46, %v6333_v59  ;;  %v14576_v46 = vld [vmem:[#allocation33_spill] sm:$0xff] }
0x2194   :  { %9395 = vrot.lane.b32.xlu1 %v14559_v32, %s10173_s27 }
0x2195   :  { %9390 = vrot.lane.b32.xlu0 %v14560_v31, %s10173_s27  ;;  %v14577_v31 = vld [vmem:[#allocation5_spill] sm:$0xff] }
0x2198   :  { %9405 = vrot.lane.b32.xlu1 %v9404_v20, %s10174_s9 }
0x2199   :  { %9400 = vrot.lane.b32.xlu0 %v9399_v19, %s10174_s9 }
0x219c   :  { %9415 = vrot.lane.b32.xlu1 %v14561_v39, %s10172_s26 }
0x219d   :  { %9410 = vrot.lane.b32.xlu0 %v14562_v41, %s10172_s26  ;;  %v14578_v41 = vld [vmem:[#allocation36_spill] sm:$0xff] }
0x21a0   :  { %9425 = vrot.lane.b32.xlu1 %v14563_v21, %s10173_s27 }
0x21a1   :  { %9420 = vrot.lane.b32.xlu0 %v14564_v11, %s10173_s27 }
0x21a4   :  { %9435 = vrot.lane.b32.xlu1 %v14567_v36, %s10172_s26 }
0x21a5   :  { %9430 = vrot.lane.b32.xlu0 %v14570_v30, %s10172_s26 }
0x21fe   :  { %v9376_v55 = vpop.permute.xlu1 %9375 }
0x21ff   :  { %v9378_v22 = vunpack.i.h.bf16 %v9376_v55  ;;  %v9377_v58 = vunpack.i.l.bf16 %v9376_v55  ;;  %v9371_v53 = vpop.permute.xlu0 %9370  ;;  %v14580_v55 = vld [vmem:[#allocation18_spill] sm:$0xff] }
0x2200   :  { %v9373_v15 = vunpack.i.h.bf16 %v9371_v53  ;;  %v9372_v7 = vunpack.i.l.bf16 %v9371_v53  ;;  %v14581_v18 = vpack.i.bf16 %v14579_v16, %v14580_v55  ;;  %v14591_v16 = vld [vmem:[#allocation13_spill] sm:$0xff] }
0x2201   :  { %v6664_v3 = vsel %vm2908_vm5, %v6648_v29, %v9378_v22  ;;  %v6663_v43 = vsel %vm2908_vm5, %v6647_v45, %v9377_v58  ;;  %v14584_v22 = vpack.i.bf16 %v14582_v23, %v14583_v33 }
0x2202   :  { %v6678_v25 = vpack.c.bf16 %v6664_v3, %v6663_v43  ;;  %v6661_v8 = vsel %vm2908_vm5, %v6645_v9, %v9372_v7  ;;  %v6662_v57 = vsel %vm2908_vm5, %v6646_v48, %v9373_v15  ;;  %v9386_v37 = vpop.permute.xlu1 %9385 }
0x2203   :  { %v6677_v51 = vpack.c.bf16 %v6662_v57, %v6661_v8  ;;  %v9381_v34 = vpop.permute.xlu0 %9380  ;;  %v9388_v63 = vunpack.i.h.bf16 %v9386_v37  ;;  %v9387_v24 = vunpack.i.l.bf16 %v9386_v37 }
0x2204   :  { %v9383_v5 = vunpack.i.h.bf16 %v9381_v34  ;;  %v9382_v56 = vunpack.i.l.bf16 %v9381_v34 }
0x2205   :  { %9088 = vmatprep.mubr.msk.bf16.mxu0 %vm208_vm2, %v6677_v51  ;;  %v6636_v20 = vsel %vm53_vm1, %v14575_v44, %v9388_v63  ;;  %v6635_v19 = vsel %vm53_vm1, %v14576_v46, %v9387_v24 }
0x2206   :  { %v9396_v42 = vpop.permute.xlu1 %9395  ;;  %9089 = vmatmul.mubr.msk.bf16.vlgmr.msra.gmra.mrb[168].mxu0 %vm208_vm2, %v6678_v25  ;;  %v6634_v39 = vsel %vm53_vm1, %v14577_v31, %v9383_v5  ;;  %v6633_v21 = vsel %vm53_vm1, %v14578_v41, %v9382_v56  ;;  %v14586_v56 = vld [vmem:[#allocation6_spill] sm:$0xff] }
0x2207   :  { %v9391_v14 = vpop.permute.xlu0 %9390  ;;  %v9398_v13 = vunpack.i.h.bf16 %v9396_v42  ;;  %v9397_v12 = vunpack.i.l.bf16 %v9396_v42  ;;  %v14585_v42 = vld [vmem:[#allocation8_spill] sm:$0xff] }
0x2208   :  { %v9393_v59 = vunpack.i.h.bf16 %v9391_v14  ;;  %v9392_v52 = vunpack.i.l.bf16 %v9391_v14 }
0x2209   :  { %v6651_v36 = vsel %vm2891_vm4, %v6635_v19, %v9397_v12  ;;  %v6652_v54 = vsel %vm2891_vm4, %v6636_v20, %v9398_v13  ;;  %v14587_v13 = vld [vmem:[#allocation9_spill] sm:$0xff] }
0x220a   :  { %v9406_v32 = vpop.permute.xlu1 %9405  ;;  %v6649_v28 = vsel %vm2891_vm4, %v6633_v21, %v9392_v52  ;;  %v6650_v38 = vsel %vm2891_vm4, %v6634_v39, %v9393_v59  ;;  %v14588_v52 = vld [vmem:[#allocation7_spill] sm:$0xff] }
0x220b   :  { %v9408_v11 = vunpack.i.h.bf16 %v9406_v32  ;;  %v9407_v35 = vunpack.i.l.bf16 %v9406_v32  ;;  %v9401_v62 = vpop.permute.xlu0 %9400 }
0x220c   :  { %v9403_v60 = vunpack.i.h.bf16 %v9401_v62  ;;  %v9402_v30 = vunpack.i.l.bf16 %v9401_v62 }
0x220d   :  { %v6668_v27 = vsel %vm2908_vm5, %v6652_v54, %v9408_v11  ;;  %v6667_v1 = vsel %vm2908_vm5, %v6651_v36, %v9407_v35 }
0x220e   :  { %v6680_v49 = vpack.c.bf16 %v6668_v27, %v6667_v1  ;;  %v6665_v26 = vsel %vm2908_vm5, %v6649_v28, %v9402_v30  ;;  %v6666_v0 = vsel %vm2908_vm5, %v6650_v38, %v9403_v60  ;;  %v9416_v15 = vpop.permute.xlu1 %9415 }
0x220f   :  { %v6679_v2 = vpack.c.bf16 %v6666_v0, %v6665_v26  ;;  %v9411_v7 = vpop.permute.xlu0 %9410  ;;  %v9418_v3 = vunpack.i.h.bf16 %v9416_v15  ;;  %v9417_v43 = vunpack.i.l.bf16 %v9416_v15 }
0x2210   :  { %v9413_v25 = vunpack.i.h.bf16 %v9411_v7  ;;  %v9412_v57 = vunpack.i.l.bf16 %v9411_v7 }
0x2211   :  { %9092 = vmatprep.mubr.msk.bf16.mxu0 %vm208_vm2, %v6679_v2  ;;  %v6640_v5 = vsel %vm53_vm1, %v14585_v42, %v9418_v3  ;;  %v6639_v14 = vsel %vm53_vm1, %v14586_v56, %v9417_v43 }
0x2212   :  { %9093 = vmatmul.mubr.msk.bf16.gmra.mrb[172].mxu0 %vm208_vm2, %v6680_v49  ;;  %v9426_v9 = vpop.permute.xlu1 %9425  ;;  %v6638_v12 = vsel %vm53_vm1, %v14587_v13, %v9413_v25  ;;  %v6637_v44 = vsel %vm53_vm1, %v14588_v52, %v9412_v57  ;;  %v13560_v57 = vld [vmem:[%s14355_s6 + $0x8] sm:$0xff]  ;;  %v14595_v13 = vld [vmem:[#allocation23_spill] sm:$0xff] }
0x2213   :  { %v9421_v48 = vpop.permute.xlu0 %9420  ;;  %v9427_v37 = vunpack.i.l.bf16 %v9426_v9  ;;  %v9428_v34 = vunpack.i.h.bf16 %v9426_v9  ;;  %v14596_v52 = vld [vmem:[#allocation22_spill] sm:$0xff] }
0x2214   :  { %v9422_v63 = vunpack.i.l.bf16 %v9421_v48  ;;  %v9423_v24 = vunpack.i.h.bf16 %v9421_v48 }
0x2215   :  { %v6655_v20 = vsel %vm2891_vm4, %v6639_v14, %v9427_v37  ;;  %v6656_v31 = vsel %vm2891_vm4, %v6640_v5, %v9428_v34  ;;  %v14593_v37 = vld [vmem:[#allocation21_spill] sm:$0xff] }
0x2216   :  { %v9436_v8 = vpop.permute.xlu1 %9435  ;;  %v6653_v39 = vsel %vm2891_vm4, %v6637_v44, %v9422_v63  ;;  %v6654_v11 = vsel %vm2891_vm4, %v6638_v12, %v9423_v24 }
0x2217   :  { %v9431_v51 = vpop.permute.xlu0 %9430  ;;  %v9438_v35 = vunpack.i.h.bf16 %v9436_v8  ;;  %v9437_v54 = vunpack.i.l.bf16 %v9436_v8 }
0x2218   :  { %v9433_v27 = vunpack.i.h.bf16 %v9431_v51  ;;  %v9432_v1 = vunpack.i.l.bf16 %v9431_v51  ;;  %v14594_v51 = vsub.s32 1, %v14593_v37 }
0x221a   :  { %v6642_v55 = vsel %vm53_vm1, %v14591_v16, %v9433_v27  ;;  %v13565_v34 = vrot.slane %v13560_v57, %v14594_v51 }
0x222c   :  { %v9078_v40 = vpop.f32.mrb[176].mxu1 }
0x222d   :  { %v6406_v47 = vpop.f32.mrb[177].mxu1 }
0x222e   :  { %v9079_v4 = vpop.f32.mrb[178].mxu1 }
0x222f   :  { %v9439_v61 = vpack.i.bf16 %v9079_v4, %v9078_v40  ;;  %v6409_v10 = vpop.f32.mrb[179].mxu1  ;;  %v14589_v4 = vld [vmem:[#allocation12_spill] sm:$0xff] }
0x2230   :  { %v9444_v6 = vpack.i.bf16 %v6409_v10, %v6406_v47  ;;  %v14590_v10 = vld [vmem:[#allocation10_spill] sm:$0xff] }
0x2231   :  { %9440 = vrot.lane.b32.xlu1 %v9439_v61, %s10174_s9  ;;  %v6644_v61 = vsel %vm53_vm1, %v14589_v4, %v9438_v35 }
0x2232   :  { %9445 = vrot.lane.b32.xlu0 %v9444_v6, %s10174_s9  ;;  %v6643_v6 = vsel %vm53_vm1, %v14590_v10, %v9437_v54 }
0x2234   :  { %v9082_v50 = vpop.f32.mrb[180].mxu1 }
0x2235   :  { %9455 = vrot.lane.b32.xlu1 %v14581_v18, %s10173_s27  ;;  %v6422_v17 = vpop.f32.mrb[181].mxu1  ;;  %v14592_v18 = vld [vmem:[#allocation11_spill] sm:$0xff] }
0x2236   :  { %9450 = vrot.lane.b32.xlu0 %v14584_v22, %s10173_s27  ;;  %v9083_v58 = vpop.f32.mrb[182].mxu1 }
0x2237   :  { %v9464_v53 = vpack.i.bf16 %v9083_v58, %v9082_v50  ;;  %v6425_v45 = vpop.f32.mrb[183].mxu1 }
0x2238   :  { %v9459_v29 = vpack.i.bf16 %v6425_v45, %v6422_v17  ;;  %v6641_v17 = vsel %vm53_vm1, %v14592_v18, %v9432_v1 }
0x2239   :  { %9465 = vrot.lane.b32.xlu1 %v9464_v53, %s10174_s9 }
0x223a   :  { %9460 = vrot.lane.b32.xlu0 %v9459_v29, %s10174_s9 }
0x22a3   :  { %v9441_v59 = vpop.permute.xlu1 %9440 }
0x22a4   :  { %v9443_v46 = vunpack.i.h.bf16 %v9441_v59  ;;  %v9442_v19 = vunpack.i.l.bf16 %v9441_v59  ;;  %v9446_v32 = vpop.permute.xlu0 %9445 }
0x22a5   :  { %v9448_v41 = vunpack.i.h.bf16 %v9446_v32  ;;  %v9447_v21 = vunpack.i.l.bf16 %v9446_v32 }
0x22a6   :  { %v6672_v62 = vsel %vm2908_vm5, %v6656_v31, %v9443_v46  ;;  %v6671_v36 = vsel %vm2908_vm5, %v6655_v20, %v9442_v19  ;;  %v14597_v46 = vld [vmem:[#allocation24_spill] sm:$0xff] }
0x22a7   :  { %v6682_v60 = vpack.c.bf16 %v6672_v62, %v6671_v36  ;;  %v6669_v30 = vsel %vm2908_vm5, %v6653_v39, %v9447_v21  ;;  %v6670_v28 = vsel %vm2908_vm5, %v6654_v11, %v9448_v41  ;;  %v9456_v38 = vpop.permute.xlu1 %9455  ;;  %v14598_v39 = vld [vmem:[#allocation27_spill] sm:$0xff] }
0x22a8   :  { %v6681_v49 = vpack.c.bf16 %v6670_v28, %v6669_v30  ;;  %v9451_v26 = vpop.permute.xlu0 %9450  ;;  %v9458_v0 = vunpack.i.h.bf16 %v9456_v38  ;;  %v9457_v2 = vunpack.i.l.bf16 %v9456_v38  ;;  %v14599_v28 = vld [vmem:[#allocation25_spill] sm:$0xff] }
0x22a9   :  { %v9453_v40 = vunpack.i.h.bf16 %v9451_v26  ;;  %v9452_v47 = vunpack.i.l.bf16 %v9451_v26 }
0x22aa   :  { %9096 = vmatprep.mubr.msk.bf16.mxu0 %vm208_vm2, %v6681_v49  ;;  %v6660_v58 = vsel %vm2891_vm4, %v6644_v61, %v9458_v0  ;;  %v6659_v53 = vsel %vm2891_vm4, %v6643_v6, %v9457_v2  ;;  %v14600_v49 = vld [vmem:[#allocation26_spill] sm:$0xff]  ;;  %v14601_v0 = vld [vmem:[#allocation28_spill] sm:$0xff] }
0x22ab   :  { %v9466_v50 = vpop.permute.xlu1 %9465  ;;  %9097 = vmatmul.mubr.msk.bf16.gmra.mrb[176].mxu0 %vm208_vm2, %v6682_v60  ;;  %v6657_v15 = vsel %vm2891_vm4, %v6641_v17, %v9452_v47  ;;  %v6658_v7 = vsel %vm2891_vm4, %v6642_v55, %v9453_v40  ;;  %v14602_v47 = vld [vmem:[#allocation39_spill] sm:$0xff] }
0x22ac   :  { %v9468_v23 = vunpack.i.h.bf16 %v9466_v50  ;;  %v9467_v33 = vunpack.i.l.bf16 %v9466_v50  ;;  %v9461_v22 = vpop.permute.xlu0 %9460 }
0x22ad   :  { %v9463_v45 = vunpack.i.h.bf16 %v9461_v22  ;;  %v9462_v29 = vunpack.i.l.bf16 %v9461_v22  ;;  %v14603_v22 = vld [vmem:[#allocation37_spill] sm:$0xff] }
0x22ae   :  { %v6676_v9 = vsel %vm2908_vm5, %v6660_v58, %v9468_v23  ;;  %v6675_v48 = vsel %vm2908_vm5, %v6659_v53, %v9467_v33 }
0x22af   :  { %v6684_v3 = vpack.c.bf16 %v6676_v9, %v6675_v48  ;;  %v6673_v43 = vsel %vm2908_vm5, %v6657_v15, %v9462_v29  ;;  %v6674_v25 = vsel %vm2908_vm5, %v6658_v7, %v9463_v45  ;;  %v14604_v15 = vld [vmem:[#allocation38_spill] sm:$0xff]  ;;  %v14605_v9 = vld [vmem:[#allocation40_spill] sm:$0xff] }
0x22b0   :  { %v6683_v8 = vpack.c.bf16 %v6674_v25, %v6673_v43  ;;  %v14606_v25 = vld [vmem:[#allocation43_spill] sm:$0xff] }
0x22b2   :  { %9100 = vmatprep.mubr.msk.bf16.mxu0 %vm208_vm2, %v6683_v8 }
0x22b3   :  { %9101 = vmatmul.mubr.msk.bf16.gmra.mrb[180].mxu0 %vm208_vm2, %v6684_v3 }
0x22d9   :  { %v9090_v63 = vpop.f32.mrb[168].mxu0 }
0x22da   :  { %v6764_v24 = vpop.f32.mrb[169].mxu0  ;;  %v6773_v42 = vadd.f32 %v9090_v63, %v13565_v34 }
0x22db   :  { %v6765_v5 = vadd.f32 %v6764_v24, %v13565_v34  ;;  %v9091_v56 = vpop.f32.mrb[170].mxu0 }
0x22dc   :  { %v6767_v14 = vpop.f32.mrb[171].mxu0  ;;  %v13574_v44 = vadd.f32 %v6773_v42, %v14596_v52  ;;  %v6776_v20 = vadd.f32 %v9091_v56, %v13565_v34 }
0x22dd   :  { %v13570_v12 = vadd.f32 %v6765_v5, %v14595_v13  ;;  %v6768_v59 = vadd.f32 %v6767_v14, %v13565_v34 }
0x22de   :  { %v13585_v41 = vadd.f32 %v6776_v20, %v14598_v39  ;;  %v6849_v21 = vsel %vm208_vm2, %v13574_v44, 0.0 }
0x22df   :  { %v13578_v19 = vadd.f32 %v6768_v59, %v14597_v46  ;;  %v6843_v32 = vsel %vm208_vm2, %v13570_v12, 0.0  ;;  %v14607_v46 = vld [vmem:[#allocation41_spill] sm:$0xff] }
0x22e0   :  { %6844 = vadd.xlane.f32.xlu0 %v6843_v32  ;;  %v6852_v60 = vsel %vm208_vm2, %v13585_v41, 0.0 }
0x22e1   :  { %v6846_v31 = vsel %vm208_vm2, %v13578_v19, 0.0 }
0x22e2   :  { %6847 = vadd.xlane.f32.xlu1 %v6846_v31 }
0x22e4   :  { %6850 = vadd.xlane.f32.xlu0 %v6849_v21 }
0x22e5   :  { %v9094_v11 = vpop.f32.mrb[172].mxu0 }
0x22e6   :  { %v6780_v35 = vpop.f32.mrb[173].mxu0  ;;  %v6789_v62 = vadd.f32 %v9094_v11, %v13565_v34 }
0x22e7   :  { %v6781_v36 = vadd.f32 %v6780_v35, %v13565_v34  ;;  %v9095_v54 = vpop.f32.mrb[174].mxu0 }
0x22e8   :  { %v6783_v30 = vpop.f32.mrb[175].mxu0  ;;  %6853 = vadd.xlane.f32.xlu0 %v6852_v60  ;;  %v6792_v27 = vadd.f32 %v9095_v54, %v13565_v34  ;;  %v13599_v26 = vadd.f32 %v6789_v62, %v14600_v49  ;;  %v14609_v60 = vld [vmem:[#allocation44_spill] sm:$0xff] }
0x22e9   :  { %v13594_v38 = vadd.f32 %v6781_v36, %v14599_v28  ;;  %v6784_v1 = vadd.f32 %v6783_v30, %v13565_v34  ;;  %v14608_v36 = vld [vmem:[#allocation42_spill] sm:$0xff] }
0x22ea   :  { %v13607_v4 = vadd.f32 %v6792_v27, %v14602_v47  ;;  %v6861_v10 = vsel %vm208_vm2, %v13599_v26, 0.0 }
0x22eb   :  { %v13602_v2 = vadd.f32 %v6784_v1, %v14601_v0  ;;  %v6855_v40 = vsel %vm208_vm2, %v13594_v38, 0.0 }
0x22ec   :  { %6856 = vadd.xlane.f32.xlu1 %v6855_v40  ;;  %v6864_v6 = vsel %vm208_vm2, %v13607_v4, 0.0 }
0x22ed   :  { %v6858_v61 = vsel %vm208_vm2, %v13602_v2, 0.0 }
0x22ee   :  { %6859 = vadd.xlane.f32.xlu0 %v6858_v61 }
0x22f0   :  { %6862 = vadd.xlane.f32.xlu1 %v6861_v10 }
0x22f2   :  { %6865 = vadd.xlane.f32.xlu0 %v6864_v6 }
0x236d   :  { %v6845_v50 = vpop.xlane.xlu0 %6844 }
0x236e   :  { %v6891_v24 = vmul.f32 0.03125, %v6845_v50 }
0x236f   :  { %v6848_v43 = vpop.xlane.xlu1 %6847 }
0x2370   :  { %v6892_v59 = vmul.f32 0.03125, %v6848_v43  ;;  %v13647_v11 = vsub.f32 %v13570_v12, %v6891_v24  ;;  %v14610_v12 = vld [vmem:[#allocation31_spill] sm:$0xff] }
0x2371   :  { %v6851_v29 = vpop.xlane.xlu0 %6850  ;;  %v9483_v24 = vld [vmem:[%s14353_s4 + $0x10] sm:$0xff]  }
0x2372   :  { %v6893_v62 = vmul.f32 0.03125, %v6851_v29  ;;  %v6923_v10 = vmul.f32 %v13647_v11, %v13647_v11  ;;  %9104 = vmatprep.subr.bf16.mxu1 %v9483_v24 }
0x2373   :  { %9105 = vmatpush3.bf16.msra.mxu1 %v9483_v24 }
0x2374   :  { %v13666_v40 = vsub.f32 %v13574_v44, %v6893_v62 }
0x2375   :  { %v6854_v52 = vpop.xlane.xlu0 %6853 }
0x2376   :  { %v6894_v1 = vmul.f32 0.03125, %v6854_v52 }
0x2378   :  { %v13673_v6 = vsub.f32 %v13585_v41, %v6894_v1 }
0x2379   :  { %v6857_v35 = vpop.xlane.xlu1 %6856 }
0x237a   :  { %v6895_v47 = vmul.f32 0.03125, %v6857_v35 }
0x237b   :  { %v6860_v27 = vpop.xlane.xlu0 %6859 }
0x237c   :  { %v6896_v50 = vmul.f32 0.03125, %v6860_v27 }
0x237e   :  { %v9098_v16 = vpop.f32.mrb[176].mxu0  ;;  %v13686_v41 = vsub.f32 %v13602_v2, %v6896_v50 }
0x237f   :  { %v6796_v55 = vpop.f32.mrb[177].mxu0  ;;  %v6805_v18 = vadd.f32 %v9098_v16, %v13565_v34 }
0x2380   :  { %v6797_v17 = vadd.f32 %v6796_v55, %v13565_v34  ;;  %v9099_v23 = vpop.f32.mrb[178].mxu0  ;;  %v6866_v55 = vpop.xlane.xlu0 %6865 }
0x2381   :  { %v6799_v33 = vpop.f32.mrb[179].mxu0  ;;  %v6808_v53 = vadd.f32 %v9099_v23, %v13565_v34  ;;  %v13623_v7 = vadd.f32 %v6805_v18, %v14604_v15  ;;  %v13680_v18 = vsub.f32 %v13594_v38, %v6895_v47  ;;  %v6939_v23 = vsel %vm208_vm2, %v6923_v10, 0.0 }
0x2382   :  { %v13618_v58 = vadd.f32 %v6797_v17, %v14603_v22  ;;  %v6800_v45 = vadd.f32 %v6799_v33, %v13565_v34  ;;  %v6925_v33 = vmul.f32 %v13666_v40, %v13666_v40  ;;  %v6898_v22 = vmul.f32 0.03125, %v6866_v55 }
0x2383   :  { %v13631_v8 = vadd.f32 %v6808_v53, %v14606_v25  ;;  %v6873_v13 = vsel %vm208_vm2, %v13623_v7, 0.0  ;;  %v6927_v15 = vmul.f32 %v13680_v18, %v13680_v18 }
0x2384   :  { %v13626_v48 = vadd.f32 %v6800_v45, %v14605_v9  ;;  %v6867_v3 = vsel %vm208_vm2, %v13618_v58, 0.0  ;;  %v6926_v45 = vmul.f32 %v13673_v6, %v13673_v6  ;;  %v6945_v29 = vsel %vm208_vm2, %v6925_v33, 0.0 }
0x2385   :  { %6868 = vadd.xlane.f32.xlu1 %v6867_v3  ;;  %v6876_v21 = vsel %vm208_vm2, %v13631_v8, 0.0  ;;  %v13698_v9 = vsub.f32 %v13607_v4, %v6898_v22  ;;  %v6928_v3 = vmul.f32 %v13686_v41, %v13686_v41  ;;  %v6951_v43 = vsel %vm208_vm2, %v6927_v15, 0.0 }
0x2386   :  { %v9102_v51 = vpop.f32.mrb[180].mxu0  ;;  %v6870_v63 = vsel %vm208_vm2, %v13626_v48, 0.0  ;;  %v6948_v2 = vsel %vm208_vm2, %v6926_v45, 0.0 }
0x2387   :  { %v6812_v42 = vpop.f32.mrb[181].mxu0  ;;  %6871 = vadd.xlane.f32.xlu0 %v6870_v63  ;;  %v6821_v5 = vadd.f32 %v9102_v51, %v13565_v34  ;;  %v6954_v25 = vsel %vm208_vm2, %v6928_v3, 0.0  ;;  %v6930_v51 = vmul.f32 %v13698_v9, %v13698_v9 }
0x2388   :  { %v6813_v56 = vadd.f32 %v6812_v42, %v13565_v34  ;;  %v9103_v14 = vpop.f32.mrb[182].mxu0  ;;  %v9484_v42 = vld [vmem:[%s14353_s4 + $0x18] sm:$0xff]  }
0x2389   :  { %v6815_v20 = vpop.f32.mrb[183].mxu0  ;;  %6874 = vadd.xlane.f32.xlu1 %v6873_v13  ;;  %v6824_v31 = vadd.f32 %v9103_v14, %v13565_v34  ;;  %v13650_v54 = vadd.f32 %v6821_v5, %v14608_v36  ;;  %v6960_v63 = vsel %vm208_vm2, %v6930_v51, 0.0  ;;  %9106 = vmatprep.subr.bf16.mxu1 %v9484_v42 }
0x238a   :  { %v13640_v32 = vadd.f32 %v6813_v56, %v14607_v46  ;;  %v6816_v39 = vadd.f32 %v6815_v20, %v13565_v34  ;;  %v13658_v34 = vsub.f32 %v13578_v19, %v6892_v59  ;;  %v6863_v19 = vpop.xlane.xlu1 %6862  ;;  %9107 = vmatpush3.bf16.msra.mxu1 %v9484_v42 }
0x238b   :  { %6877 = vadd.xlane.f32.xlu0 %v6876_v21  ;;  %v13661_v49 = vadd.f32 %v6824_v31, %v14610_v12  ;;  %v6885_v61 = vsel %vm208_vm2, %v13650_v54, 0.0  ;;  %v6897_v17 = vmul.f32 0.03125, %v6863_v19 }
0x238c   :  { %v13653_v30 = vadd.f32 %v6816_v39, %v14609_v60  ;;  %v6879_v28 = vsel %vm208_vm2, %v13640_v32, 0.0  ;;  %v6924_v44 = vmul.f32 %v13658_v34, %v13658_v34 }
0x238d   :  { %6880 = vadd.xlane.f32.xlu1 %v6879_v28  ;;  %v6888_v16 = vsel %vm208_vm2, %v13661_v49, 0.0  ;;  %v13692_v38 = vsub.f32 %v13599_v26, %v6897_v17 }
0x238e   :  { %v6882_v0 = vsel %vm208_vm2, %v13653_v30, 0.0  ;;  %v6942_v53 = vsel %vm208_vm2, %v6924_v44, 0.0 }
0x238f   :  { %6883 = vadd.xlane.f32.xlu0 %v6882_v0  ;;  %v6929_v26 = vmul.f32 %v13692_v38, %v13692_v38 }
0x2391   :  { %6886 = vadd.xlane.f32.xlu1 %v6885_v61  ;;  %v6957_v4 = vsel %vm208_vm2, %v6929_v26, 0.0 }
0x2393   :  { %6889 = vadd.xlane.f32.xlu0 %v6888_v16 }
0x2395   :  { %6940 = vadd.xlane.f32.xlu1 %v6939_v23 }
0x2397   :  { %6943 = vadd.xlane.f32.xlu0 %v6942_v53 }
0x2399   :  { %6946 = vadd.xlane.f32.xlu1 %v6945_v29 }
0x239b   :  { %6949 = vadd.xlane.f32.xlu0 %v6948_v2 }
0x239d   :  { %6952 = vadd.xlane.f32.xlu1 %v6951_v43 }
0x239f   :  { %6955 = vadd.xlane.f32.xlu0 %v6954_v25 }
0x23a1   :  { %6958 = vadd.xlane.f32.xlu1 %v6957_v4 }
0x23a3   :  { %6961 = vadd.xlane.f32.xlu0 %v6960_v63 }
0x2412   :  { %v6869_v5 = vpop.xlane.xlu1 %6868 }
0x2413   :  { %v6899_v56 = vmul.f32 0.03125, %v6869_v5 }
0x2414   :  { %v6872_v14 = vpop.xlane.xlu0 %6871 }
0x2415   :  { %v13718_v13 = vsub.f32 %v13618_v58, %v6899_v56  ;;  %v6900_v59 = vmul.f32 0.03125, %v6872_v14 }
0x2416   :  { %v6875_v52 = vpop.xlane.xlu1 %6874 }
0x2417   :  { %v13721_v20 = vsub.f32 %v13626_v48, %v6900_v59  ;;  %v6901_v46 = vmul.f32 0.03125, %v6875_v52  ;;  %v6931_v31 = vmul.f32 %v13718_v13, %v13718_v13 }
0x2418   :  { %v6878_v39 = vpop.xlane.xlu0 %6877 }
0x2419   :  { %v13726_v21 = vsub.f32 %v13623_v7, %v6901_v46  ;;  %v6902_v35 = vmul.f32 0.03125, %v6878_v39  ;;  %v6963_v62 = vsel %vm208_vm2, %v6931_v31, 0.0  ;;  %v6932_v58 = vmul.f32 %v13721_v20, %v13721_v20 }
0x241a   :  { %v6881_v36 = vpop.xlane.xlu1 %6880  ;;  %6964 = vadd.xlane.f32.xlu1 %v6963_v62  ;;  %v14611_v31 = vsub.s32 2, %v14593_v37 }
0x241b   :  { %v13732_v60 = vsub.f32 %v13631_v8, %v6902_v35  ;;  %v6903_v48 = vmul.f32 0.03125, %v6881_v36  ;;  %v6966_v28 = vsel %vm208_vm2, %v6932_v58, 0.0  ;;  %v6933_v27 = vmul.f32 %v13726_v21, %v13726_v21 }
0x241c   :  { %6967 = vadd.xlane.f32.xlu0 %v6966_v28  ;;  %v6884_v7 = vpop.xlane.xlu0 %6883  ;;  %v13768_v39 = vrot.slane %v13560_v57, %v14611_v31 }
0x241d   :  { %v13738_v1 = vsub.f32 %v13640_v32, %v6903_v48  ;;  %v6904_v12 = vmul.f32 0.03125, %v6884_v7  ;;  %v6969_v0 = vsel %vm208_vm2, %v6933_v27, 0.0  ;;  %v6934_v47 = vmul.f32 %v13732_v60, %v13732_v60 }
0x241e   :  { %v6887_v61 = vpop.xlane.xlu1 %6886  ;;  %6970 = vadd.xlane.f32.xlu1 %v6969_v0 }
0x241f   :  { %v13744_v8 = vsub.f32 %v13653_v30, %v6904_v12  ;;  %v6905_v10 = vmul.f32 0.03125, %v6887_v61  ;;  %v6972_v19 = vsel %vm208_vm2, %v6934_v47, 0.0  ;;  %v6935_v50 = vmul.f32 %v13738_v1, %v13738_v1 }
0x2420   :  { %6973 = vadd.xlane.f32.xlu0 %v6972_v19  ;;  %v6890_v32 = vpop.xlane.xlu0 %6889  ;;  %v14612_v12 = vsub.s32 3, %v14593_v37 }
0x2421   :  { %v13750_v16 = vsub.f32 %v13650_v54, %v6905_v10  ;;  %v6906_v44 = vmul.f32 0.03125, %v6890_v32  ;;  %v6975_v55 = vsel %vm208_vm2, %v6935_v50, 0.0  ;;  %v6936_v17 = vmul.f32 %v13744_v8, %v13744_v8 }
0x2422   :  { %v6941_v23 = vpop.xlane.xlu1 %6940  ;;  %6976 = vadd.xlane.f32.xlu1 %v6975_v55  ;;  %v13775_v0 = vrot.slane %v13560_v57, %v14612_v12 }
0x2423   :  { %v13756_v30 = vsub.f32 %v13661_v49, %v6906_v44  ;;  %v6987_v33 = vmul.f32 0.03125, %v6941_v23  ;;  %v6978_v22 = vsel %vm208_vm2, %v6936_v17, 0.0  ;;  %v6937_v53 = vmul.f32 %v13750_v16, %v13750_v16 }
0x2424   :  { %6979 = vadd.xlane.f32.xlu0 %v6978_v22  ;;  %v6944_v54 = vpop.xlane.xlu0 %6943 }
0x2425   :  { %v7003_v45 = vadd.f32 1e-05, %v6987_v33  ;;  %v6988_v29 = vmul.f32 0.03125, %v6944_v54  ;;  %v6981_v15 = vsel %vm208_vm2, %v6937_v53, 0.0  ;;  %v6938_v2 = vmul.f32 %v13756_v30, %v13756_v30 }
0x2426   :  { %6982 = vadd.xlane.f32.xlu1 %v6981_v15  ;;  %v6947_v3 = vpop.xlane.xlu1 %6946 }
0x2427   :  { %10065 = vrsqrt.f32 %v7003_v45  ;;  %v7004_v49 = vadd.f32 1e-05, %v6988_v29  ;;  %v6989_v43 = vmul.f32 0.03125, %v6947_v3  ;;  %v6984_v26 = vsel %vm208_vm2, %v6938_v2, 0.0 }
0x2428   :  { %6985 = vadd.xlane.f32.xlu0 %v6984_v26  ;;  %v6950_v25 = vpop.xlane.xlu0 %6949 }
0x2429   :  { %10067 = vrsqrt.f32 %v7004_v49  ;;  %v7005_v51 = vadd.f32 1e-05, %v6989_v43  ;;  %v6990_v4 = vmul.f32 0.03125, %v6950_v25 }
0x242a   :  { %v6953_v63 = vpop.xlane.xlu1 %6952 }
0x242b   :  { %10069 = vrsqrt.f32 %v7005_v51  ;;  %v7006_v24 = vadd.f32 1e-05, %v6990_v4  ;;  %v6991_v42 = vmul.f32 0.03125, %v6953_v63  ;;  %v9485_v4 = vld [vmem:[%s14354_s5 + $0x20] sm:$0xff]   ;;  %v9486_v63 = vld [vmem:[%s14354_s5 + $0x28] sm:$0xff]  }
0x242c   :  { %v6956_v5 = vpop.xlane.xlu0 %6955  ;;  %9124 = vmatprep.subr.bf16.mxu0 %v9485_v4 }
0x242d   :  { %10071 = vrsqrt.f32 %v7006_v24  ;;  %v7007_v56 = vadd.f32 1e-05, %v6991_v42  ;;  %v6992_v14 = vmul.f32 0.03125, %v6956_v5  ;;  %9125 = vmatpush3.bf16.msra.mxu0 %v9485_v4  ;;  %v9487_v24 = vld [vmem:[%s14354_s5 + $0x30] sm:$0xff]   ;;  %v9488_v42 = vld [vmem:[%s14354_s5 + $0x38] sm:$0xff]  }
0x242e   :  { %v6959_v59 = vpop.xlane.xlu1 %6958  ;;  %9126 = vmatprep.subr.bf16.mxu0 %v9486_v63 }
0x242f   :  { %10073 = vrsqrt.f32 %v7007_v56  ;;  %v7008_v52 = vadd.f32 1e-05, %v6992_v14  ;;  %v6993_v46 = vmul.f32 0.03125, %v6959_v59 }
0x2430   :  { %v6962_v35 = vpop.xlane.xlu0 %6961 }
0x2431   :  { %v10066_v62 = vpop.eup %10065  ;;  %10075 = vrsqrt.f32 %v7008_v52  ;;  %v7009_v58 = vadd.f32 1e-05, %v6993_v46  ;;  %v6994_v36 = vmul.f32 0.03125, %v6962_v35  ;;  %9127 = vmatpush3.bf16.msra.mxu0 %v9486_v63 }
0x2432   :  { %v7035_v48 = vmul.f32 %v10066_v62, %v13647_v11  ;;  %9128 = vmatprep.subr.bf16.mxu0 %v9487_v24 }
0x2433   :  { %v10068_v28 = vpop.eup %10067  ;;  %10077 = vrsqrt.f32 %v7009_v58  ;;  %v7010_v27 = vadd.f32 1e-05, %v6994_v36 }
0x2434   :  { %v7036_v7 = vmul.f32 %v10068_v28, %v13658_v34  ;;  %v7055_v47 = vmul.f32 %v13768_v39, %v7035_v48 }
0x2435   :  { %v10070_v61 = vpop.eup %10069  ;;  %10079 = vrsqrt.f32 %v7010_v27  ;;  %9129 = vmatpush3.bf16.msra.mxu0 %v9487_v24 }
0x2436   :  { %v7037_v10 = vmul.f32 %v10070_v61, %v13666_v40  ;;  %v7056_v19 = vmul.f32 %v13768_v39, %v7036_v7  ;;  %v13783_v34 = vadd.f32 %v13775_v0, %v7055_v47  ;;  %9130 = vmatprep.subr.bf16.mxu0 %v9488_v42 }
0x2437   :  { %v10072_v50 = vpop.eup %10071 }
0x2438   :  { %v7057_v11 = vmul.f32 %v13768_v39, %v7037_v10  ;;  %v7038_v32 = vmul.f32 %v10072_v50, %v13673_v6  ;;  %v13786_v44 = vadd.f32 %v13775_v0, %v7056_v19 }
0x2439   :  { %v10074_v55 = vpop.eup %10073  ;;  %9131 = vmatpush3.bf16.msra.mxu0 %v9488_v42 }
0x243a   :  { %v7058_v17 = vmul.f32 %v13768_v39, %v7038_v32  ;;  %v7039_v23 = vmul.f32 %v10074_v55, %v13680_v18  ;;  %v7091_v40 = vpack.c.bf16 %v13786_v44, %v13783_v34  ;;  %v13793_v22 = vadd.f32 %v13775_v0, %v7057_v11 }
0x243b   :  { %v10076_v33 = vpop.eup %10075 }
0x243c   :  { %v13796_v6 = vadd.f32 %v13775_v0, %v7058_v17  ;;  %v7040_v53 = vmul.f32 %v10076_v33, %v13686_v41  ;;  %9108 = vmatprep.mubr.msk.bf16.mxu1 %vm208_vm2, %v7091_v40  ;;  %v7059_v54 = vmul.f32 %v13768_v39, %v7039_v23 }
0x243d   :  { %v10078_v45 = vpop.eup %10077 }
0x243e   :  { %v7041_v29 = vmul.f32 %v10078_v45, %v13692_v38  ;;  %v7092_v18 = vpack.c.bf16 %v13796_v6, %v13793_v22  ;;  %v7060_v15 = vmul.f32 %v13768_v39, %v7040_v53  ;;  %v13808_v49 = vadd.f32 %v13775_v0, %v7059_v54 }
0x243f   :  { %v10080_v2 = vpop.eup %10079 }
0x2440   :  { %v7042_v3 = vmul.f32 %v10080_v2, %v13698_v9  ;;  %9109 = vmatmul.mubr.msk.bf16.vlgmr.msra.gmra.mrb[184].mxu1 %vm208_vm2, %v7092_v18  ;;  %v13811_v41 = vadd.f32 %v13775_v0, %v7060_v15  ;;  %v7061_v43 = vmul.f32 %v13768_v39, %v7041_v29 }
0x2442   :  { %v7093_v38 = vpack.c.bf16 %v13811_v41, %v13808_v49  ;;  %v7062_v26 = vmul.f32 %v13768_v39, %v7042_v3  ;;  %v13819_v25 = vadd.f32 %v13775_v0, %v7061_v43 }
0x2444   :  { %9112 = vmatprep.mubr.msk.bf16.mxu1 %vm208_vm2, %v7093_v38  ;;  %v13822_v9 = vadd.f32 %v13775_v0, %v7062_v26 }
0x2446   :  { %v7094_v51 = vpack.c.bf16 %v13822_v9, %v13819_v25 }
0x2448   :  { %9113 = vmatmul.mubr.msk.bf16.gmra.mrb[188].mxu1 %vm208_vm2, %v7094_v51 }
0x24a7   :  { %v6965_v5 = vpop.xlane.xlu1 %6964 }
0x24a8   :  { %v6995_v56 = vmul.f32 0.03125, %v6965_v5 }
0x24a9   :  { %v6968_v14 = vpop.xlane.xlu0 %6967 }
0x24aa   :  { %v7011_v59 = vadd.f32 1e-05, %v6995_v56  ;;  %v6996_v52 = vmul.f32 0.03125, %v6968_v14 }
0x24ab   :  { %v6971_v46 = vpop.xlane.xlu1 %6970 }
0x24ac   :  { %10081 = vrsqrt.f32 %v7011_v59  ;;  %v7012_v31 = vadd.f32 1e-05, %v6996_v52  ;;  %v6997_v35 = vmul.f32 0.03125, %v6971_v46 }
0x24ad   :  { %v6974_v62 = vpop.xlane.xlu0 %6973 }
0x24ae   :  { %10083 = vrsqrt.f32 %v7012_v31  ;;  %v7013_v58 = vadd.f32 1e-05, %v6997_v35  ;;  %v6998_v36 = vmul.f32 0.03125, %v6974_v62  ;;  %v14613_v62 = vsub.s32 4, %v14593_v37 }
0x24af   :  { %v6977_v48 = vpop.xlane.xlu1 %6976 }
0x24b0   :  { %10085 = vrsqrt.f32 %v7013_v58  ;;  %v7014_v28 = vadd.f32 1e-05, %v6998_v36  ;;  %v6999_v27 = vmul.f32 0.03125, %v6977_v48  ;;  %v7107_v58 = vrot.slane %v13560_v57, %v14613_v62 }
0x24b1   :  { %v6980_v7 = vpop.xlane.xlu0 %6979 }
0x24b2   :  { %10087 = vrsqrt.f32 %v7014_v28  ;;  %v7015_v12 = vadd.f32 1e-05, %v6999_v27  ;;  %v7000_v47 = vmul.f32 0.03125, %v6980_v7 }
0x24b3   :  { %v6983_v61 = vpop.xlane.xlu1 %6982 }
0x24b4   :  { %10089 = vrsqrt.f32 %v7015_v12  ;;  %v7016_v10 = vadd.f32 1e-05, %v7000_v47  ;;  %v7001_v19 = vmul.f32 0.03125, %v6983_v61 }
0x24b5   :  { %v6986_v50 = vpop.xlane.xlu0 %6985 }
0x24b6   :  { %v10082_v11 = vpop.eup %10081  ;;  %10091 = vrsqrt.f32 %v7016_v10  ;;  %v7017_v32 = vadd.f32 1e-05, %v7001_v19  ;;  %v7002_v55 = vmul.f32 0.03125, %v6986_v50 }
0x24b7   :  { %v7043_v17 = vmul.f32 %v10082_v11, %v13718_v13 }
0x24b8   :  { %v10084_v23 = vpop.eup %10083  ;;  %10093 = vrsqrt.f32 %v7017_v32  ;;  %v7018_v40 = vadd.f32 1e-05, %v7002_v55 }
0x24b9   :  { %v7044_v33 = vmul.f32 %v10084_v23, %v13721_v20  ;;  %v7063_v53 = vmul.f32 %v13768_v39, %v7043_v17 }
0x24ba   :  { %v10086_v54 = vpop.eup %10085  ;;  %10095 = vrsqrt.f32 %v7018_v40 }
0x24bb   :  { %v7045_v45 = vmul.f32 %v10086_v54, %v13726_v21  ;;  %v7064_v29 = vmul.f32 %v13768_v39, %v7044_v33  ;;  %v13846_v2 = vadd.f32 %v13775_v0, %v7063_v53 }
0x24bc   :  { %v10088_v18 = vpop.eup %10087 }
0x24bd   :  { %v7046_v15 = vmul.f32 %v10088_v18, %v13732_v60  ;;  %v13849_v13 = vadd.f32 %v13775_v0, %v7064_v29  ;;  %v7065_v3 = vmul.f32 %v13768_v39, %v7045_v45 }
0x24be   :  { %v10090_v20 = vpop.eup %10089 }
0x24bf   :  { %v7047_v43 = vmul.f32 %v10090_v20, %v13738_v1  ;;  %v7095_v38 = vpack.c.bf16 %v13849_v13, %v13846_v2  ;;  %v7066_v21 = vmul.f32 %v13768_v39, %v7046_v15  ;;  %v13859_v60 = vadd.f32 %v13775_v0, %v7065_v3 }
0x24c0   :  { %v10092_v26 = vpop.eup %10091 }
0x24c1   :  { %v7048_v51 = vmul.f32 %v10092_v26, %v13744_v8  ;;  %9116 = vmatprep.mubr.msk.bf16.mxu1 %vm208_vm2, %v7095_v38  ;;  %v13862_v4 = vadd.f32 %v13775_v0, %v7066_v21  ;;  %v7067_v63 = vmul.f32 %v13768_v39, %v7047_v43 }
0x24c2   :  { %v10094_v24 = vpop.eup %10093 }
0x24c3   :  { %v7049_v1 = vmul.f32 %v10094_v24, %v13750_v16  ;;  %v7096_v42 = vpack.c.bf16 %v13862_v4, %v13859_v60  ;;  %v7068_v5 = vmul.f32 %v13768_v39, %v7048_v51  ;;  %v13872_v14 = vadd.f32 %v13775_v0, %v7067_v63 }
0x24c4   :  { %v10096_v56 = vpop.eup %10095 }
0x24c5   :  { %v7050_v8 = vmul.f32 %v10096_v56, %v13756_v30  ;;  %9117 = vmatmul.mubr.msk.bf16.gmra.mrb[192].mxu1 %vm208_vm2, %v7096_v42  ;;  %v13875_v59 = vadd.f32 %v13775_v0, %v7068_v5  ;;  %v7069_v52 = vmul.f32 %v13768_v39, %v7049_v1 }
0x24c7   :  { %v7097_v16 = vpack.c.bf16 %v13875_v59, %v13872_v14  ;;  %v7070_v46 = vmul.f32 %v13768_v39, %v7050_v8  ;;  %v13883_v31 = vadd.f32 %v13775_v0, %v7069_v52 }
0x24c9   :  { %9120 = vmatprep.mubr.msk.bf16.mxu1 %vm208_vm2, %v7097_v16  ;;  %v13886_v30 = vadd.f32 %v13775_v0, %v7070_v46 }
0x24cb   :  { %v7098_v35 = vpack.c.bf16 %v13886_v30, %v13883_v31 }
0x24cd   :  { %9121 = vmatmul.mubr.msk.bf16.gmra.mrb[196].mxu1 %vm208_vm2, %v7098_v35 }
0x2513   :  { %v9110_v36 = vpop.f32.mrb[184].mxu1 }
0x2514   :  { %v7187_v48 = vadd.f32 %v9110_v36, %v7107_v58  ;;  %v7178_v39 = vpop.f32.mrb[185].mxu1 }
0x2515   :  { %v7179_v28 = vadd.f32 %v7178_v39, %v7107_v58  ;;  %v9111_v27 = vpop.f32.mrb[186].mxu1 }
0x2516   :  { %v7190_v7 = vadd.f32 %v9111_v27, %v7107_v58  ;;  %v7181_v12 = vpop.f32.mrb[187].mxu1  ;;  %v7243_v61 = vmax.f32 %v7187_v48, 0.0 }
0x2517   :  { %v7182_v47 = vadd.f32 %v7181_v12, %v7107_v58  ;;  %v7241_v10 = vmax.f32 %v7179_v28, 0.0 }
0x2518   :  { %v7244_v0 = vmax.f32 %v7190_v7, 0.0 }
0x2519   :  { %v7242_v19 = vmax.f32 %v7182_v47, 0.0 }
0x251a   :  { %v7258_v50 = vpack.c.bf16 %v7244_v0, %v7243_v61 }
0x251b   :  { %v7257_v11 = vpack.c.bf16 %v7242_v19, %v7241_v10  ;;  %v9114_v32 = vpop.f32.mrb[188].mxu1  ;;  %v14614_v19 = vsub.s32 5, %v14593_v37 }
0x251c   :  { %v7203_v55 = vadd.f32 %v9114_v32, %v7107_v58  ;;  %v7194_v17 = vpop.f32.mrb[189].mxu1 }
0x251d   :  { %v7195_v23 = vadd.f32 %v7194_v17, %v7107_v58  ;;  %v9115_v40 = vpop.f32.mrb[190].mxu1  ;;  %9132 = vmatprep.mubr.msk.bf16.mxu0 %vm556_vm3, %v7257_v11 }
0x251e   :  { %v7206_v33 = vadd.f32 %v9115_v40, %v7107_v58  ;;  %v7197_v53 = vpop.f32.mrb[191].mxu1  ;;  %9133 = vmatmul.mubr.msk.bf16.vlgmr.msra.gmra.mrb[184].mxu0 %vm556_vm3, %v7258_v50  ;;  %v7247_v45 = vmax.f32 %v7203_v55, 0.0  ;;  %v13905_v50 = vrot.slane %v13560_v57, %v14614_v19 }
0x251f   :  { %v7198_v54 = vadd.f32 %v7197_v53, %v7107_v58  ;;  %v7245_v18 = vmax.f32 %v7195_v23, 0.0 }
0x2520   :  { %v7248_v29 = vmax.f32 %v7206_v33, 0.0 }
0x2521   :  { %v7246_v15 = vmax.f32 %v7198_v54, 0.0 }
0x2522   :  { %v7260_v3 = vpack.c.bf16 %v7248_v29, %v7247_v45 }
0x2523   :  { %v7259_v20 = vpack.c.bf16 %v7246_v15, %v7245_v18 }
0x2525   :  { %9136 = vmatprep.mubr.msk.bf16.mxu0 %vm556_vm3, %v7259_v20 }
0x2526   :  { %9137 = vmatmul.mubr.msk.bf16.gmra.mrb[188].mxu0 %vm556_vm3, %v7260_v3 }
0x2598   :  { %v9118_v43 = vpop.f32.mrb[192].mxu1 }
0x2599   :  { %v7219_v38 = vadd.f32 %v9118_v43, %v7107_v58  ;;  %v7210_v21 = vpop.f32.mrb[193].mxu1 }
0x259a   :  { %v7211_v26 = vadd.f32 %v7210_v21, %v7107_v58  ;;  %v9119_v51 = vpop.f32.mrb[194].mxu1 }
0x259b   :  { %v7222_v63 = vadd.f32 %v9119_v51, %v7107_v58  ;;  %v7213_v24 = vpop.f32.mrb[195].mxu1  ;;  %v7251_v42 = vmax.f32 %v7219_v38, 0.0 }
0x259c   :  { %v7214_v1 = vadd.f32 %v7213_v24, %v7107_v58  ;;  %v7249_v56 = vmax.f32 %v7211_v26, 0.0 }
0x259d   :  { %v7252_v5 = vmax.f32 %v7222_v63, 0.0 }
0x259e   :  { %v7250_v8 = vmax.f32 %v7214_v1, 0.0 }
0x259f   :  { %v7262_v52 = vpack.c.bf16 %v7252_v5, %v7251_v42 }
0x25a0   :  { %v7261_v16 = vpack.c.bf16 %v7250_v8, %v7249_v56  ;;  %v9122_v46 = vpop.f32.mrb[196].mxu1 }
0x25a1   :  { %v7235_v35 = vadd.f32 %v9122_v46, %v7107_v58  ;;  %v7226_v62 = vpop.f32.mrb[197].mxu1 }
0x25a2   :  { %v7227_v36 = vadd.f32 %v7226_v62, %v7107_v58  ;;  %v9123_v48 = vpop.f32.mrb[198].mxu1  ;;  %9140 = vmatprep.mubr.msk.bf16.mxu0 %vm556_vm3, %v7261_v16 }
0x25a3   :  { %v7238_v39 = vadd.f32 %v9123_v48, %v7107_v58  ;;  %v7229_v28 = vpop.f32.mrb[199].mxu1  ;;  %9141 = vmatmul.mubr.msk.bf16.gmra.mrb[192].mxu0 %vm556_vm3, %v7262_v52  ;;  %v7255_v7 = vmax.f32 %v7235_v35, 0.0 }
0x25a4   :  { %v7230_v27 = vadd.f32 %v7229_v28, %v7107_v58  ;;  %v7253_v47 = vmax.f32 %v7227_v36, 0.0 }
0x25a5   :  { %v7256_v12 = vmax.f32 %v7238_v39, 0.0 }
0x25a6   :  { %v7254_v61 = vmax.f32 %v7230_v27, 0.0 }
0x25a7   :  { %v7264_v0 = vpack.c.bf16 %v7256_v12, %v7255_v7 }
0x25a8   :  { %v7263_v10 = vpack.c.bf16 %v7254_v61, %v7253_v47 }
0x25aa   :  { %9144 = vmatprep.mubr.msk.bf16.mxu0 %vm556_vm3, %v7263_v10 }
0x25ab   :  { %9145 = vmatmul.mubr.msk.bf16.gmra.mrb[196].mxu0 %vm556_vm3, %v7264_v0 }
0x25f1   :  { %v9134_v11 = vpop.f32.mrb[184].mxu0 }
0x25f2   :  { %v7369_v32 = vadd.f32 %v9134_v11, %v13905_v50  ;;  %v7360_v55 = vpop.f32.mrb[185].mxu0 }
0x25f3   :  { %v7361_v58 = vadd.f32 %v7360_v55, %v13905_v50  ;;  %v9135_v17 = vpop.f32.mrb[186].mxu0 }
0x25f4   :  { %v13910_v23 = vadd.f32 %v7369_v32, %v13793_v22  ;;  %v7363_v40 = vpop.f32.mrb[187].mxu0  ;;  %v7372_v54 = vadd.f32 %v9135_v17, %v13905_v50 }
0x25f5   :  { %v7364_v33 = vadd.f32 %v7363_v40, %v13905_v50  ;;  %v13914_v53 = vadd.f32 %v7361_v58, %v13783_v34 }
0x25f6   :  { %v7445_v57 = vsel %vm208_vm2, %v13910_v23, 0.0  ;;  %v13925_v18 = vadd.f32 %v7372_v54, %v13796_v6 }
0x25f7   :  { %v13920_v45 = vadd.f32 %v7364_v33, %v13786_v44  ;;  %7446 = vadd.xlane.f32.xlu1 %v7445_v57  ;;  %v7439_v34 = vsel %vm208_vm2, %v13914_v53, 0.0 }
0x25f8   :  { %v7448_v38 = vsel %vm208_vm2, %v13925_v18, 0.0 }
0x25f9   :  { %v9138_v29 = vpop.f32.mrb[188].mxu0  ;;  %v7442_v22 = vsel %vm208_vm2, %v13920_v45, 0.0 }
0x25fa   :  { %7443 = vadd.xlane.f32.xlu0 %v7442_v22  ;;  %v7376_v15 = vpop.f32.mrb[189].mxu0  ;;  %v7385_v46 = vadd.f32 %v9138_v29, %v13905_v50 }
0x25fb   :  { %v7377_v3 = vadd.f32 %v7376_v15, %v13905_v50  ;;  %7440 = vadd.xlane.f32.xlu1 %v7439_v34  ;;  %v9139_v20 = vpop.f32.mrb[190].mxu0 }
0x25fc   :  { %v7379_v43 = vpop.f32.mrb[191].mxu0  ;;  %v13966_v39 = vadd.f32 %v7385_v46, %v13819_v25 }
0x25fd   :  { %v13931_v44 = vadd.f32 %v7377_v3, %v13808_v49  ;;  %v7380_v63 = vadd.f32 %v7379_v43, %v13905_v50 }
0x25fe   :  { %v7457_v0 = vsel %vm208_vm2, %v13966_v39, 0.0 }
0x25ff   :  { %7449 = vadd.xlane.f32.xlu1 %v7448_v38  ;;  %v7451_v6 = vsel %vm208_vm2, %v13931_v44, 0.0  ;;  %v13955_v35 = vadd.f32 %v7380_v63, %v13811_v41  ;;  %v7388_v41 = vadd.f32 %v9139_v20, %v13905_v50 }
0x2601   :  { %v7454_v27 = vsel %vm208_vm2, %v13955_v35, 0.0  ;;  %v13978_v25 = vadd.f32 %v7388_v41, %v13822_v9 }
0x2603   :  { %7452 = vadd.xlane.f32.xlu1 %v7451_v6  ;;  %v7460_v9 = vsel %vm208_vm2, %v13978_v25, 0.0 }
0x2676   :  { %v9142_v21 = vpop.f32.mrb[192].mxu0 }
0x2677   :  { %v7401_v26 = vadd.f32 %v9142_v21, %v13905_v50  ;;  %v7392_v51 = vpop.f32.mrb[193].mxu0 }
0x2678   :  { %v7393_v24 = vadd.f32 %v7392_v51, %v13905_v50  ;;  %v9143_v1 = vpop.f32.mrb[194].mxu0 }
0x2679   :  { %v13941_v49 = vadd.f32 %v7401_v26, %v13859_v60  ;;  %v7404_v42 = vadd.f32 %v9143_v1, %v13905_v50  ;;  %v7395_v5 = vpop.f32.mrb[195].mxu0 }
0x267a   :  { %v13945_v56 = vadd.f32 %v7393_v24, %v13846_v2  ;;  %v7396_v52 = vadd.f32 %v7395_v5, %v13905_v50 }
0x267b   :  { %v13948_v8 = vadd.f32 %v7404_v42, %v13862_v4  ;;  %v7469_v16 = vsel %vm208_vm2, %v13941_v49, 0.0 }
0x267c   :  { %7470 = vadd.xlane.f32.xlu0 %v7469_v16  ;;  %v7463_v60 = vsel %vm208_vm2, %v13945_v56, 0.0  ;;  %v13960_v62 = vadd.f32 %v7396_v52, %v13849_v13 }
0x267d   :  { %7464 = vadd.xlane.f32.xlu1 %v7463_v60  ;;  %v7472_v48 = vsel %vm208_vm2, %v13948_v8, 0.0 }
0x267e   :  { %v9146_v2 = vpop.f32.mrb[196].mxu0  ;;  %v7466_v47 = vsel %vm208_vm2, %v13960_v62, 0.0 }
0x267f   :  { %v7417_v4 = vadd.f32 %v9146_v2, %v13905_v50  ;;  %v7408_v36 = vpop.f32.mrb[197].mxu0 }
0x2680   :  { %7473 = vadd.xlane.f32.xlu0 %v7472_v48  ;;  %v9147_v28 = vpop.f32.mrb[198].mxu0  ;;  %v7409_v12 = vadd.f32 %v7408_v36, %v13905_v50 }
0x2681   :  { %7455 = vadd.xlane.f32.xlu1 %v7454_v27  ;;  %v7411_v7 = vpop.f32.mrb[199].mxu0  ;;  %v13972_v13 = vadd.f32 %v7417_v4, %v13883_v31  ;;  %v7420_v17 = vadd.f32 %v9147_v28, %v13905_v50 }
0x2682   :  { %v7412_v10 = vadd.f32 %v7411_v7, %v13905_v50  ;;  %v13984_v19 = vadd.f32 %v7409_v12, %v13872_v14 }
0x2683   :  { %v7481_v11 = vsel %vm208_vm2, %v13972_v13, 0.0  ;;  %v14005_v50 = vadd.f32 %v7420_v17, %v13886_v30 }
0x2684   :  { %v7447_v61 = vpop.xlane.xlu1 %7446  ;;  %7467 = vadd.xlane.f32.xlu0 %v7466_v47  ;;  %v13992_v40 = vadd.f32 %v7412_v10, %v13875_v59  ;;  %v7475_v57 = vsel %vm208_vm2, %v13984_v19, 0.0 }
0x2685   :  { %7458 = vadd.xlane.f32.xlu1 %v7457_v0  ;;  %v7489_v31 = vmul.f32 0.03125, %v7447_v61  ;;  %v7484_v30 = vsel %vm208_vm2, %v14005_v50, 0.0 }
0x2686   :  { %v7478_v59 = vsel %vm208_vm2, %v13992_v40, 0.0 }
0x2687   :  { %v7444_v32 = vpop.xlane.xlu0 %7443  ;;  %v13995_v14 = vsub.f32 %v13910_v23, %v7489_v31 }
0x2688   :  { %v7441_v55 = vpop.xlane.xlu1 %7440  ;;  %7482 = vadd.xlane.f32.xlu0 %v7481_v11  ;;  %v7488_v33 = vmul.f32 0.03125, %v7444_v32 }
0x2689   :  { %v7487_v58 = vmul.f32 0.03125, %v7441_v55  ;;  %7461 = vadd.xlane.f32.xlu1 %v7460_v9  ;;  %v7521_v3 = vmul.f32 %v13995_v14, %v13995_v14 }
0x268a   :  { %v14010_v23 = vsub.f32 %v13920_v45, %v7488_v33 }
0x268b   :  { %v13998_v54 = vsub.f32 %v13914_v53, %v7487_v58  ;;  %v7541_v45 = vsel %vm208_vm2, %v7521_v3, 0.0 }
0x268c   :  { %v7450_v29 = vpop.xlane.xlu1 %7449  ;;  %7476 = vadd.xlane.f32.xlu0 %v7475_v57  ;;  %v7520_v6 = vmul.f32 %v14010_v23, %v14010_v23 }
0x268d   :  { %v7490_v22 = vmul.f32 0.03125, %v7450_v29  ;;  %v7519_v15 = vmul.f32 %v13998_v54, %v13998_v54 }
0x268e   :  { %v7538_v26 = vsel %vm208_vm2, %v7520_v6, 0.0 }
0x268f   :  { %v14013_v53 = vsub.f32 %v13925_v18, %v7490_v22  ;;  %v7535_v34 = vsel %vm208_vm2, %v7519_v15, 0.0 }
0x2690   :  { %v7453_v20 = vpop.xlane.xlu1 %7452  ;;  %7536 = vadd.xlane.f32.xlu1 %v7535_v34  ;;  %7479 = vadd.xlane.f32.xlu0 %v7478_v59 }
0x2691   :  { %v7491_v43 = vmul.f32 0.03125, %v7453_v20  ;;  %v7522_v18 = vmul.f32 %v14013_v53, %v14013_v53 }
0x2693   :  { %v14021_v38 = vsub.f32 %v13931_v44, %v7491_v43  ;;  %v7544_v21 = vsel %vm208_vm2, %v7522_v18, 0.0 }
0x2694   :  { %7542 = vadd.xlane.f32.xlu1 %v7541_v45  ;;  %7485 = vadd.xlane.f32.xlu0 %v7484_v30 }
0x2695   :  { %v7523_v51 = vmul.f32 %v14021_v38, %v14021_v38 }
0x2697   :  { %v7547_v44 = vsel %vm208_vm2, %v7523_v51, 0.0 }
0x2698   :  { %7545 = vadd.xlane.f32.xlu1 %v7544_v21  ;;  %7539 = vadd.xlane.f32.xlu0 %v7538_v26 }
0x269c   :  { %7548 = vadd.xlane.f32.xlu1 %v7547_v44 }
0x2709   :  { %v7471_v63 = vpop.xlane.xlu0 %7470 }
0x270a   :  { %v7497_v24 = vmul.f32 0.03125, %v7471_v63  ;;  %v7465_v1 = vpop.xlane.xlu1 %7464 }
0x270b   :  { %v7495_v42 = vmul.f32 0.03125, %v7465_v1 }
0x270c   :  { %v14034_v5 = vsub.f32 %v13941_v49, %v7497_v24 }
0x270d   :  { %v14037_v52 = vsub.f32 %v13945_v56, %v7495_v42  ;;  %v7474_v16 = vpop.xlane.xlu0 %7473 }
0x270e   :  { %v7498_v46 = vmul.f32 0.03125, %v7474_v16  ;;  %v7456_v60 = vpop.xlane.xlu1 %7455  ;;  %v7529_v2 = vmul.f32 %v14034_v5, %v14034_v5 }
0x270f   :  { %v7492_v4 = vmul.f32 0.03125, %v7456_v60  ;;  %v7527_v36 = vmul.f32 %v14037_v52, %v14037_v52 }
0x2710   :  { %v14044_v48 = vsub.f32 %v13948_v8, %v7498_v46  ;;  %v7565_v41 = vsel %vm208_vm2, %v7529_v2, 0.0 }
0x2711   :  { %v14048_v49 = vsub.f32 %v13955_v35, %v7492_v4  ;;  %7566 = vadd.xlane.f32.xlu0 %v7565_v41  ;;  %v7468_v56 = vpop.xlane.xlu0 %7467  ;;  %v7559_v28 = vsel %vm208_vm2, %v7527_v36, 0.0 }
0x2712   :  { %v7496_v27 = vmul.f32 0.03125, %v7468_v56  ;;  %7560 = vadd.xlane.f32.xlu1 %v7559_v28  ;;  %v7459_v7 = vpop.xlane.xlu1 %7458  ;;  %v7530_v12 = vmul.f32 %v14044_v48, %v14044_v48 }
0x2713   :  { %v7493_v47 = vmul.f32 0.03125, %v7459_v7  ;;  %v7524_v8 = vmul.f32 %v14048_v49, %v14048_v49 }
0x2714   :  { %v14056_v61 = vsub.f32 %v13960_v62, %v7496_v27  ;;  %v7568_v35 = vsel %vm208_vm2, %v7530_v12, 0.0 }
0x2715   :  { %v14060_v0 = vsub.f32 %v13966_v39, %v7493_v47  ;;  %7569 = vadd.xlane.f32.xlu0 %v7568_v35  ;;  %v7483_v10 = vpop.xlane.xlu0 %7482  ;;  %v7550_v31 = vsel %vm208_vm2, %v7524_v8, 0.0 }
0x2716   :  { %v7501_v11 = vmul.f32 0.03125, %v7483_v10  ;;  %7551 = vadd.xlane.f32.xlu1 %v7550_v31  ;;  %v7462_v32 = vpop.xlane.xlu1 %7461  ;;  %v7528_v55 = vmul.f32 %v14056_v61, %v14056_v61  ;;  %v10136_v31 = vld [vmem:[%s14355_s6 + $0x8] sm:$0xff]  ;;  %s10175_s6 = smov [#allocation2]  }
0x2717   :  { %v7494_v9 = vmul.f32 0.03125, %v7462_v32  ;;  %v7525_v62 = vmul.f32 %v14060_v0, %v14060_v0  ;;  %s7849_s12 = sshll.u32 %s10175_s6, 4  ;;  %s7850_s12 = int_to_ptr.vmem [resolvable:$true] %s7849_s12 }
0x2718   :  { %v14068_v58 = vsub.f32 %v13972_v13, %v7501_v11  ;;  %v7562_v39 = vsel %vm208_vm2, %v7528_v55, 0.0  ;;  %v14615_v11 = vsub.s32 6, %v14593_v37  ;;  %s10137_s13 = scalar_lea.vmem %s7850_s12, 2048  ;;  %p10142_p1 = scmp.lt.s32.totalorder %s7850_s12, %s7850_s12 }
0x2719   :  { %v14072_v17 = vsub.f32 %v13978_v25, %v7494_v9  ;;  %7563 = vadd.xlane.f32.xlu0 %v7562_v39  ;;  %v7477_v33 = vpop.xlane.xlu0 %7476  ;;  %v7553_v57 = vsel %vm208_vm2, %v7525_v62, 0.0  ;;  %p10138_p0 = scmp.ne.s32.totalorder %s7850_s12, %s10137_s13  ;;  %p10143_p2 = scmp.lt.s32.totalorder %s10137_s13, %s10137_s13 }
0x271a   :  { %v7499_v29 = vmul.f32 0.03125, %v7477_v33  ;;  %7554 = vadd.xlane.f32.xlu1 %v7553_v57  ;;  %v7533_v22 = vmul.f32 %v14068_v58, %v14068_v58  ;;  %v14105_v32 = vrot.slane %v10136_v31, %v14615_v11 }
0x271b   :  { %v7526_v15 = vmul.f32 %v14072_v17, %v14072_v17  ;;  %p10144_p3 = por %p10143_p2, %p10142_p1 }
0x271c   :  { %v14080_v13 = vsub.f32 %v13984_v19, %v7499_v29  ;;  %v7577_v59 = vsel %vm208_vm2, %v7533_v22, 0.0 }
0x271d   :  { %7578 = vadd.xlane.f32.xlu0 %v7577_v59  ;;  %v7480_v25 = vpop.xlane.xlu0 %7479  ;;  %v7556_v34 = vsel %vm208_vm2, %v7526_v15, 0.0  ;;  %v7537_v51 = vpop.xlane.xlu1 %7536  ;;  %v14616_v15 = vsub.s32 7, %v14593_v37  ;;  %p10145_p4 = pnand %p10144_p3, %p10138_p0 }
0x271e   :  { %v7500_v3 = vmul.f32 0.03125, %v7480_v25  ;;  %7557 = vadd.xlane.f32.xlu1 %v7556_v34  ;;  %v7531_v20 = vmul.f32 %v14080_v13, %v14080_v13  ;;  %v7583_v1 = vmul.f32 0.03125, %v7537_v51 }
0x271f   :  { %v14112_v59 = vrot.slane %v10136_v31, %v14616_v15 }
0x2720   :  { %v14087_v43 = vsub.f32 %v13992_v40, %v7500_v3  ;;  %v7571_v30 = vsel %vm208_vm2, %v7531_v20, 0.0  ;;  %v7599_v60 = vadd.f32 1e-05, %v7583_v1 }
0x2721   :  { %7572 = vadd.xlane.f32.xlu0 %v7571_v30  ;;  %v7486_v45 = vpop.xlane.xlu0 %7485  ;;  %v7543_v63 = vpop.xlane.xlu1 %7542 }
0x2722   :  { %v7502_v19 = vmul.f32 0.03125, %v7486_v45  ;;  %v7532_v18 = vmul.f32 %v14087_v43, %v14087_v43  ;;  %v7585_v16 = vmul.f32 0.03125, %v7543_v63 }
0x2724   :  { %v14093_v6 = vsub.f32 %v14005_v50, %v7502_v19  ;;  %v7574_v21 = vsel %vm208_vm2, %v7532_v18, 0.0  ;;  %v7601_v50 = vadd.f32 1e-05, %v7585_v16 }
0x2725   :  { %7575 = vadd.xlane.f32.xlu0 %v7574_v21  ;;  %v7540_v44 = vpop.xlane.xlu0 %7539  ;;  %v7546_v46 = vpop.xlane.xlu1 %7545 }
0x2726   :  { %v7534_v26 = vmul.f32 %v14093_v6, %v14093_v6  ;;  %v7584_v24 = vmul.f32 0.03125, %v7540_v44  ;;  %v7586_v2 = vmul.f32 0.03125, %v7546_v46 }
0x2728   :  { %v7580_v40 = vsel %vm208_vm2, %v7534_v26, 0.0  ;;  %v7600_v42 = vadd.f32 1e-05, %v7584_v24  ;;  %v7602_v36 = vadd.f32 1e-05, %v7586_v2 }
0x2729   :  { %7581 = vadd.xlane.f32.xlu0 %v7580_v40  ;;  %v7549_v4 = vpop.xlane.xlu1 %7548 }
0x272a   :  { %10097 = vrsqrt.f32 %v7600_v42  ;;  %v7587_v41 = vmul.f32 0.03125, %v7549_v4 }
0x272b   :  { %10099 = vrsqrt.f32 %v7599_v60 }
0x272c   :  { %10101 = vrsqrt.f32 %v7601_v50  ;;  %v7603_v28 = vadd.f32 1e-05, %v7587_v41 }
0x272d   :  { %10103 = vrsqrt.f32 %v7602_v36 }
0x272e   :  { %10105 = vrsqrt.f32 %v7603_v28 }
0x2734   :  { %v10098_v56 = vpop.eup %10097 }
0x2735   :  { %v10100_v27 = vpop.eup %10099  ;;  %v7632_v12 = vmul.f32 %v10098_v56, %v14010_v23 }
0x2736   :  { %v10102_v10 = vpop.eup %10101  ;;  %v7631_v55 = vmul.f32 %v10100_v27, %v13998_v54 }
0x2737   :  { %v7652_v39 = vmul.f32 %v14105_v32, %v7632_v12  ;;  %v7633_v29 = vmul.f32 %v10102_v10, %v13995_v14  ;;  %v10104_v34 = vpop.eup %10103 }
0x2738   :  { %v7651_v25 = vmul.f32 %v14105_v32, %v7631_v55  ;;  %v7634_v21 = vmul.f32 %v10104_v34, %v14013_v53  ;;  %v10106_v40 = vpop.eup %10105 }
0x2739   :  { %v14116_v30 = vadd.f32 %v14112_v59, %v7652_v39  ;;  %v7653_v14 = vmul.f32 %v14105_v32, %v7633_v29  ;;  %v7635_v60 = vmul.f32 %v10106_v40, %v14021_v38 }
0x273a   :  { %v14120_v37 = vadd.f32 %v14112_v59, %v7651_v25  ;;  %v7654_v53 = vmul.f32 %v14105_v32, %v7634_v21 }
0x273b   :  { %v7688_v63 = vsel %vm208_vm2, %v14116_v30, 0.0  ;;  %v14126_v42 = vadd.f32 %v14112_v59, %v7653_v14 }
0x273c   :  { %v7687_v46 = vsel %vm208_vm2, %v14120_v37, 0.0  ;;  %v14136_v12 = vadd.f32 %v14112_v59, %v7654_v53 }
0x273d   :  { %v7689_v4 = vadd.f32 %v7688_v63, %v7687_v46  ;;  %v7690_v28 = vsel %vm208_vm2, %v14126_v42, 0.0 }
0x273e   :  { %v7692_v39 = vsel %vm208_vm2, %v14136_v12, 0.0 }
0x279e   :  { %v7567_v7 = vpop.xlane.xlu0 %7566 }
0x279f   :  { %v7593_v47 = vmul.f32 0.03125, %v7567_v7  ;;  %v7561_v8 = vpop.xlane.xlu1 %7560 }
0x27a0   :  { %v7591_v35 = vmul.f32 0.03125, %v7561_v8 }
0x27a1   :  { %v7609_v23 = vadd.f32 1e-05, %v7593_v47  ;;  %v7655_v47 = vmul.f32 %v14105_v32, %v7635_v60 }
0x27a2   :  { %v7607_v9 = vadd.f32 1e-05, %v7591_v35  ;;  %v7570_v62 = vpop.xlane.xlu0 %7569  ;;  %v7691_v35 = vadd.f32 %v7690_v28, %v7689_v4 }
0x27a3   :  { %v7594_v33 = vmul.f32 0.03125, %v7570_v62  ;;  %v7552_v57 = vpop.xlane.xlu1 %7551 }
0x27a4   :  { %10107 = vrsqrt.f32 %v7607_v9  ;;  %v7588_v22 = vmul.f32 0.03125, %v7552_v57 }
0x27a5   :  { %v7610_v3 = vadd.f32 1e-05, %v7594_v33  ;;  %10109 = vrsqrt.f32 %v7609_v23  ;;  %v14145_v23 = vadd.f32 %v14112_v59, %v7655_v47 }
0x27a6   :  { %v7604_v54 = vadd.f32 1e-05, %v7588_v22  ;;  %v7564_v20 = vpop.xlane.xlu0 %7563  ;;  %v7693_v22 = vadd.f32 %v7692_v39, %v7691_v35 }
0x27a7   :  { %v7592_v45 = vmul.f32 0.03125, %v7564_v20  ;;  %v7555_v19 = vpop.xlane.xlu1 %7554 }
0x27a8   :  { %10111 = vrsqrt.f32 %v7604_v54  ;;  %v7589_v18 = vmul.f32 0.03125, %v7555_v19 }
0x27a9   :  { %v7608_v26 = vadd.f32 1e-05, %v7592_v45  ;;  %10113 = vrsqrt.f32 %v7610_v3 }
0x27aa   :  { %v7605_v51 = vadd.f32 1e-05, %v7589_v18  ;;  %v7579_v44 = vpop.xlane.xlu0 %7578 }
0x27ab   :  { %10115 = vrsqrt.f32 %v7608_v26  ;;  %v7597_v24 = vmul.f32 0.03125, %v7579_v44  ;;  %v7558_v1 = vpop.xlane.xlu1 %7557 }
0x27ac   :  { %10117 = vrsqrt.f32 %v7605_v51  ;;  %v7590_v16 = vmul.f32 0.03125, %v7558_v1 }
0x27ad   :  { %v7613_v50 = vadd.f32 1e-05, %v7597_v24 }
0x27ae   :  { %v10108_v2 = vpop.eup %10107  ;;  %v7606_v36 = vadd.f32 1e-05, %v7590_v16  ;;  %v7573_v41 = vpop.xlane.xlu0 %7572 }
0x27af   :  { %v7595_v56 = vmul.f32 0.03125, %v7573_v41  ;;  %v7639_v27 = vmul.f32 %v10108_v2, %v14037_v52  ;;  %v10110_v7 = vpop.eup %10109 }
0x27b0   :  { %10119 = vrsqrt.f32 %v7606_v36  ;;  %v7641_v9 = vmul.f32 %v10110_v7, %v14034_v5 }
0x27b1   :  { %10121 = vrsqrt.f32 %v7613_v50  ;;  %v7611_v38 = vadd.f32 1e-05, %v7595_v56  ;;  %v7659_v52 = vmul.f32 %v14105_v32, %v7639_v27 }
0x27b2   :  { %v10112_v8 = vpop.eup %10111  ;;  %v7576_v10 = vpop.xlane.xlu0 %7575  ;;  %v7661_v3 = vmul.f32 %v14105_v32, %v7641_v9 }
0x27b3   :  { %v7636_v31 = vmul.f32 %v10112_v8, %v14048_v49  ;;  %10123 = vrsqrt.f32 %v7611_v38  ;;  %v7596_v11 = vmul.f32 0.03125, %v7576_v10  ;;  %v10114_v55 = vpop.eup %10113  ;;  %v14155_v54 = vadd.f32 %v14112_v59, %v7659_v52 }
0x27b4   :  { %v7642_v20 = vmul.f32 %v10114_v55, %v14044_v48  ;;  %v14172_v44 = vadd.f32 %v14112_v59, %v7661_v3 }
0x27b5   :  { %v10116_v62 = vpop.eup %10115  ;;  %v7656_v33 = vmul.f32 %v14105_v32, %v7636_v31  ;;  %v7612_v57 = vadd.f32 1e-05, %v7596_v11  ;;  %v7708_v63 = vsel %vm208_vm2, %v14155_v54, 0.0 }
0x27b6   :  { %v10118_v29 = vpop.eup %10117  ;;  %v7640_v49 = vmul.f32 %v10116_v62, %v14056_v61  ;;  %v7582_v15 = vpop.xlane.xlu0 %7581  ;;  %v7694_v61 = vsel %vm208_vm2, %v14145_v23, 0.0  ;;  %v7662_v24 = vmul.f32 %v14105_v32, %v7642_v20  ;;  %v7711_v36 = vsel %vm208_vm2, %v14172_v44, 0.0 }
0x27b7   :  { %v14150_v25 = vadd.f32 %v14112_v59, %v7656_v33  ;;  %v7637_v5 = vmul.f32 %v10118_v29, %v14060_v0  ;;  %10125 = vrsqrt.f32 %v7612_v57  ;;  %v7598_v34 = vmul.f32 0.03125, %v7582_v15 }
0x27b8   :  { %v7660_v45 = vmul.f32 %v14105_v32, %v7640_v49  ;;  %v7695_v21 = vadd.f32 %v7694_v61, %v7693_v22  ;;  %v14188_v41 = vadd.f32 %v14112_v59, %v7662_v24 }
0x27b9   :  { %v7657_v19 = vmul.f32 %v14105_v32, %v7637_v5  ;;  %v7614_v14 = vadd.f32 1e-05, %v7598_v34  ;;  %v7696_v40 = vsel %vm208_vm2, %v14150_v25, 0.0 }
0x27ba   :  { %v10120_v18 = vpop.eup %10119  ;;  %v14163_v0 = vadd.f32 %v14112_v59, %v7660_v45  ;;  %v7713_v35 = vsel %vm208_vm2, %v14188_v41, 0.0 }
0x27bb   :  { %v10122_v26 = vpop.eup %10121  ;;  %v14168_v51 = vadd.f32 %v14112_v59, %v7657_v19  ;;  %v7638_v48 = vmul.f32 %v10120_v18, %v14072_v17  ;;  %10127 = vrsqrt.f32 %v7614_v14  ;;  %v7697_v17 = vadd.f32 %v7696_v40, %v7695_v21 }
0x27bc   :  { %v7709_v1 = vsel %vm208_vm2, %v14163_v0, 0.0  ;;  %v7645_v50 = vmul.f32 %v10122_v26, %v14068_v58 }
0x27bd   :  { %v10124_v16 = vpop.eup %10123  ;;  %v7710_v46 = vadd.f32 %v7709_v1, %v7708_v63  ;;  %v7698_v53 = vsel %vm208_vm2, %v14168_v51, 0.0  ;;  %v7658_v60 = vmul.f32 %v14105_v32, %v7638_v48 }
0x27be   :  { %v7643_v2 = vmul.f32 %v10124_v16, %v14080_v13  ;;  %v7699_v56 = vadd.f32 %v7698_v53, %v7697_v17  ;;  %v7665_v38 = vmul.f32 %v14105_v32, %v7645_v50 }
0x27bf   :  { %v7678_v4 = vadd.f32 %v14112_v59, %v7658_v60  ;;  %v7712_v7 = vadd.f32 %v7711_v36, %v7710_v46 }
0x27c0   :  { %v7663_v28 = vmul.f32 %v14105_v32, %v7643_v2  ;;  %v14203_v52 = vadd.f32 %v14112_v59, %v7665_v38 }
0x27c1   :  { %v10126_v27 = vpop.eup %10125  ;;  %v7700_v47 = vsel %vm208_vm2, %v7678_v4, 0.0  ;;  %v7714_v9 = vadd.f32 %v7713_v35, %v7712_v7 }
0x27c2   :  { %v7701_v58 = vadd.f32 %v7700_v47, %v7699_v56  ;;  %v14194_v13 = vadd.f32 %v14112_v59, %v7663_v28  ;;  %v7644_v8 = vmul.f32 %v10126_v27, %v14087_v43  ;;  %v7719_v15 = vsel %vm208_vm2, %v14203_v52, 0.0 }
0x27c4   :  { %v7702_v10 = vrot.slane %v7701_v58, 4  ;;  %v7715_v31 = vsel %vm208_vm2, %v14194_v13, 0.0  ;;  %v7664_v11 = vmul.f32 %v14105_v32, %v7644_v8 }
0x27c5   :  { %v10128_v55 = vpop.eup %10127  ;;  %v7716_v33 = vadd.f32 %v7715_v31, %v7714_v9 }
0x27c6   :  { %v7703_v62 = vadd.f32 %v7702_v10, %v7701_v58  ;;  %v14206_v39 = vadd.f32 %v14112_v59, %v7664_v11  ;;  %v7646_v43 = vmul.f32 %v10128_v55, %v14093_v6 }
0x27c8   :  { %v7704_v57 = vrot.slane %v7703_v62, 2  ;;  %v7717_v29 = vsel %vm208_vm2, %v14206_v39, 0.0  ;;  %v7666_v22 = vmul.f32 %v14105_v32, %v7646_v43 }
0x27c9   :  { %v7718_v49 = vadd.f32 %v7717_v29, %v7716_v33 }
0x27ca   :  { %v7705_v5 = vadd.f32 %v7704_v57, %v7703_v62  ;;  %v14215_v34 = vadd.f32 %v14112_v59, %v7666_v22 }
0x27cb   :  { %v7720_v3 = vadd.f32 %v7719_v15, %v7718_v49 }
0x27cc   :  { %v7706_v20 = vrot.slane %v7705_v5, 1  ;;  %v7721_v6 = vsel %vm208_vm2, %v14215_v34, 0.0 }
0x27cd   :  { %v7722_v45 = vadd.f32 %v7721_v6, %v7720_v3 }
0x27ce   :  { %v7707_v61 = vadd.f32 %v7706_v20, %v7705_v5 }
0x27cf   :  { %v7723_v19 = vrot.slane %v7722_v45, 4 }
0x27d0   :  { %v7730_v14 = vmul.f32 0.015625, %v7707_v61 }
0x27d1   :  { %v7724_v26 = vadd.f32 %v7723_v19, %v7722_v45 }
0x27d2   :  { %v14220_v18 = vsub.f32 %v14120_v37, %v7730_v14  ;;  %v14223_v32 = vsub.f32 %v14116_v30, %v7730_v14  ;;  %v14226_v21 = vsub.f32 %v14126_v42, %v7730_v14  ;;  %v14229_v59 = vsub.f32 %v14136_v12, %v7730_v14 }
0x27d3   :  { %v14232_v40 = vsub.f32 %v14145_v23, %v7730_v14  ;;  %v14241_v63 = vsub.f32 %v14150_v25, %v7730_v14  ;;  %v14248_v1 = vsub.f32 %v14168_v51, %v7730_v14  ;;  %v7725_v53 = vrot.slane %v7724_v26, 2 }
0x27d4   :  { %v7748_v48 = vmul.f32 %v14220_v18, %v14220_v18  ;;  %v7749_v37 = vmul.f32 %v14223_v32, %v14223_v32  ;;  %v7750_v30 = vmul.f32 %v14226_v21, %v14226_v21  ;;  %v7751_v42 = vmul.f32 %v14229_v59, %v14229_v59 }
0x27d5   :  { %v7752_v16 = vmul.f32 %v14232_v40, %v14232_v40  ;;  %v14253_v60 = vsub.f32 %v7678_v4, %v7730_v14  ;;  %v7753_v17 = vmul.f32 %v14241_v63, %v14241_v63  ;;  %v7726_v2 = vadd.f32 %v7725_v53, %v7724_v26 }
0x27d6   :  { %v7764_v12 = vsel %vm208_vm2, %v7748_v48, 0.0  ;;  %v7765_v23 = vsel %vm208_vm2, %v7749_v37, 0.0  ;;  %v7767_v46 = vsel %vm208_vm2, %v7750_v30, 0.0  ;;  %v7769_v50 = vsel %vm208_vm2, %v7751_v42, 0.0 }
0x27d7   :  { %v7766_v24 = vadd.f32 %v7765_v23, %v7764_v12  ;;  %v7754_v51 = vmul.f32 %v14248_v1, %v14248_v1  ;;  %v7771_v56 = vsel %vm208_vm2, %v7752_v16, 0.0  ;;  %v7727_v28 = vrot.slane %v7726_v2, 1 }
0x27d8   :  { %v7755_v27 = vmul.f32 %v14253_v60, %v14253_v60  ;;  %v7773_v4 = vsel %vm208_vm2, %v7753_v17, 0.0 }
0x27d9   :  { %v7768_v25 = vadd.f32 %v7767_v46, %v7766_v24  ;;  %v7728_v47 = vadd.f32 %v7727_v28, %v7726_v2  ;;  %v7775_v58 = vsel %vm208_vm2, %v7754_v51, 0.0 }
0x27da   :  { %v7777_v10 = vsel %vm208_vm2, %v7755_v27, 0.0 }
0x27db   :  { %v7770_v36 = vadd.f32 %v7769_v50, %v7768_v25  ;;  %v7731_v8 = vmul.f32 0.015625, %v7728_v47 }
0x27dd   :  { %v7772_v7 = vadd.f32 %v7771_v56, %v7770_v36  ;;  %v14267_v31 = vsub.f32 %v14155_v54, %v7731_v8  ;;  %v14270_v11 = vsub.f32 %v14163_v0, %v7731_v8  ;;  %v14273_v55 = vsub.f32 %v14172_v44, %v7731_v8 }
0x27de   :  { %v14276_v9 = vsub.f32 %v14188_v41, %v7731_v8  ;;  %v14279_v43 = vsub.f32 %v14194_v13, %v7731_v8  ;;  %v14288_v44 = vsub.f32 %v14206_v39, %v7731_v8  ;;  %v7746_v15 = vsub.f32 %v14203_v52, %v7731_v8 }
0x27df   :  { %v7774_v38 = vadd.f32 %v7773_v4, %v7772_v7  ;;  %v7756_v33 = vmul.f32 %v14267_v31, %v14267_v31  ;;  %v7757_v54 = vmul.f32 %v14270_v11, %v14270_v11  ;;  %v7758_v0 = vmul.f32 %v14273_v55, %v14273_v55 }
0x27e0   :  { %v7759_v41 = vmul.f32 %v14276_v9, %v14276_v9  ;;  %v7760_v5 = vmul.f32 %v14279_v43, %v14279_v43  ;;  %v7747_v39 = vsub.f32 %v14215_v34, %v7731_v8  ;;  %v7761_v45 = vmul.f32 %v14288_v44, %v14288_v44 }
0x27e1   :  { %v7776_v35 = vadd.f32 %v7775_v58, %v7774_v38  ;;  %v7785_v29 = vsel %vm208_vm2, %v7756_v33, 0.0  ;;  %v7786_v13 = vsel %vm208_vm2, %v7757_v54, 0.0  ;;  %v7788_v3 = vsel %vm208_vm2, %v7758_v0, 0.0 }
0x27e2   :  { %v7787_v49 = vadd.f32 %v7786_v13, %v7785_v29  ;;  %v7790_v61 = vsel %vm208_vm2, %v7759_v41, 0.0  ;;  %v7762_v26 = vmul.f32 %v7746_v15, %v7746_v15  ;;  %v7792_v48 = vsel %vm208_vm2, %v7760_v5, 0.0 }
0x27e3   :  { %v7778_v62 = vadd.f32 %v7777_v10, %v7776_v35  ;;  %v7763_v30 = vmul.f32 %v7747_v39, %v7747_v39  ;;  %v7794_v42 = vsel %vm208_vm2, %v7761_v45, 0.0 }
0x27e4   :  { %v7789_v6 = vadd.f32 %v7788_v3, %v7787_v49  ;;  %v7796_v24 = vsel %vm208_vm2, %v7762_v26, 0.0 }
0x27e5   :  { %v7779_v57 = vrot.slane %v7778_v62, 4  ;;  %v7798_v46 = vsel %vm208_vm2, %v7763_v30, 0.0 }
0x27e6   :  { %v7791_v14 = vadd.f32 %v7790_v61, %v7789_v6 }
0x27e7   :  { %v7780_v22 = vadd.f32 %v7779_v57, %v7778_v62 }
0x27e8   :  { %v7793_v37 = vadd.f32 %v7792_v48, %v7791_v14 }
0x27e9   :  { %v7781_v20 = vrot.slane %v7780_v22, 2 }
0x27ea   :  { %v7795_v23 = vadd.f32 %v7794_v42, %v7793_v37 }
0x27eb   :  { %v7782_v19 = vadd.f32 %v7781_v20, %v7780_v22 }
0x27ec   :  { %v7797_v16 = vadd.f32 %v7796_v24, %v7795_v23 }
0x27ed   :  { %v7783_v52 = vrot.slane %v7782_v19, 1 }
0x27ee   :  { %v7799_v25 = vadd.f32 %v7798_v46, %v7797_v16 }
0x27ef   :  { %v7784_v12 = vadd.f32 %v7783_v52, %v7782_v19 }
0x27f0   :  { %v7800_v17 = vrot.slane %v7799_v25, 4 }
0x27f1   :  { %v7806_v34 = vmul.f32 0.015625, %v7784_v12 }
0x27f2   :  { %v7801_v50 = vadd.f32 %v7800_v17, %v7799_v25 }
0x27f3   :  { %v7808_v53 = vadd.f32 1e-05, %v7806_v34 }
0x27f4   :  { %v7802_v2 = vrot.slane %v7801_v50, 2 }
0x27f5   :  { %10129 = vrsqrt.f32 %v7808_v53 }
0x27f6   :  { %v7803_v36 = vadd.f32 %v7802_v2, %v7801_v50 }
0x27f8   :  { %v7804_v51 = vrot.slane %v7803_v36, 1 }
0x27fa   :  { %v7805_v28 = vadd.f32 %v7804_v51, %v7803_v36 }
0x27ff   :  { %v10130_v56 = vpop.eup %10129 }
0x2800   :  { %v7812_v27 = vmul.f32 %v10130_v56, %v14220_v18  ;;  %v7813_v7 = vmul.f32 %v10130_v56, %v14223_v32  ;;  %v7814_v4 = vmul.f32 %v10130_v56, %v14226_v21  ;;  %v7815_v47 = vmul.f32 %v10130_v56, %v14229_v59 }
0x2801   :  { %v7816_v38 = vmul.f32 %v10130_v56, %v14232_v40  ;;  %v7817_v58 = vmul.f32 %v10130_v56, %v14241_v63  ;;  %v7818_v8 = vmul.f32 %v10130_v56, %v14248_v1  ;;  %v7819_v35 = vmul.f32 %v10130_v56, %v14253_v60 }
0x2802   :  { %7828 = vst.msk [vmem:[#allocation2] sm:$0xff] %vm208_vm2, %v7812_v27  ;;  %7829 = vst.msk [vmem:[#allocation2 + $0x8] sm:$0xff] %vm208_vm2, %v7813_v7  ;;  %v7807_v18 = vmul.f32 0.015625, %v7805_v28 }
0x2803   :  { %7830 = vst.msk [vmem:[#allocation2 + $0x10] sm:$0xff] %vm208_vm2, %v7814_v4  ;;  %7831 = vst.msk [vmem:[#allocation2 + $0x18] sm:$0xff] %vm208_vm2, %v7815_v47 }
0x2804   :  { %7832 = vst.msk [vmem:[#allocation2 + $0x20] sm:$0xff] %vm208_vm2, %v7816_v38  ;;  %7833 = vst.msk [vmem:[#allocation2 + $0x28] sm:$0xff] %vm208_vm2, %v7817_v58  ;;  %v7809_v32 = vadd.f32 1e-05, %v7807_v18 }
0x2805   :  { %7834 = vst.msk [vmem:[#allocation2 + $0x30] sm:$0xff] %vm208_vm2, %v7818_v8  ;;  %7835 = vst.msk [vmem:[#allocation2 + $0x38] sm:$0xff] %vm208_vm2, %v7819_v35 }
0x2806   :  { %10131 = vrsqrt.f32 %v7809_v32 }
0x2810   :  { %v10132_v21 = vpop.eup %10131 }
0x2811   :  { %v7820_v59 = vmul.f32 %v10132_v21, %v14267_v31  ;;  %v7821_v40 = vmul.f32 %v10132_v21, %v14270_v11  ;;  %v7822_v63 = vmul.f32 %v10132_v21, %v14273_v55  ;;  %v7823_v1 = vmul.f32 %v10132_v21, %v14276_v9 }
0x2812   :  { %v7824_v60 = vmul.f32 %v10132_v21, %v14279_v43  ;;  %v7825_v10 = vmul.f32 %v10132_v21, %v14288_v44  ;;  %v7826_v62 = vmul.f32 %v10132_v21, %v7746_v15  ;;  %v7827_v33 = vmul.f32 %v10132_v21, %v7747_v39 }
0x2813   :  { %7836 = vst.msk [vmem:[#allocation2 + $0x40] sm:$0xff] %vm208_vm2, %v7820_v59  ;;  %7837 = vst.msk [vmem:[#allocation2 + $0x48] sm:$0xff] %vm208_vm2, %v7821_v40 }
0x2814   :  { %7838 = vst.msk [vmem:[#allocation2 + $0x50] sm:$0xff] %vm208_vm2, %v7822_v63  ;;  %7839 = vst.msk [vmem:[#allocation2 + $0x58] sm:$0xff] %vm208_vm2, %v7823_v1 }
0x2815   :  { %7840 = vst.msk [vmem:[#allocation2 + $0x60] sm:$0xff] %vm208_vm2, %v7824_v60  ;;  %7841 = vst.msk [vmem:[#allocation2 + $0x68] sm:$0xff] %vm208_vm2, %v7825_v10 }
0x2816   :  { %7842 = vst.msk [vmem:[#allocation2 + $0x70] sm:$0xff] %vm208_vm2, %v7826_v62  ;;  %7843 = vst.msk [vmem:[#allocation2 + $0x78] sm:$0xff] %vm208_vm2, %v7827_v33 }
0x2817   :  { %10148 = shalt.err (!%p10145_p4)
}
0x2818   :  { %s10149_s2 = scalar_lea.hbm %s14356_s7, 2048 }
0x2819   :  { %p10150_p5 = scmp.ne.s32.totalorder %s14356_s7, %s10149_s2  ;;  %p10153_p6 = scmp.lt.u32.totalorder %s10149_s2, %s14356_s7 }
0x281b   :  { %p10155_p7 = pnand %p10153_p6, %p10150_p5 }
0x281d   :  { %10158 = shalt.err (!%p10155_p7)
}
0x281e   :  { %s10176_s16 = smov 128  }
0x281f   :  { %7855 = dma.vmem_to_hbm [thread:$0]  %s7850_s12, 2048, %s14356_s7, [#allocation3], %s10176_s16, %s10176_s16, %s10172_s26  }
0x2820   :  { %10159 = dma.done.wait [#allocation3], 2048  }
0x2821   :  { %10160 = vsyncadd [#allocation3], 4294965248 }
0x2822   :  { %7859 = vsyncpa [#allocation3], 1 }

</bundles_post_ra>
